<compile_context>
chip_gen: v5e
topology: v5e:2x2
jax: 0.10.0
libtpu: 0.0.40
codegen_flags: <defaults>
</compile_context>

<pallas_src>
import jax
import jax.numpy as jnp
from jax.experimental import pallas as pl
from jax.experimental.pallas import tpu as pltpu

IN_FEATURES = 32 * 32 * 3   # 3072
HIDDEN = 512
OUT_FEATURES = 10
OUT_PADDED = 128            # lane-dense output slab
SUBLANE = 16                # bf16 sublane packing
TM_MAX = 512                # max batch-tile rows


def _round_up(n, m):
    return (n + m - 1) // m * m


def mlp_kernel(x_ref, w1_ref, b1_ref, w2_ref, b2_ref, w3_ref, b3_ref, o_ref):
    # Layer 1: (TM, 3072)bf16 @ (3072, 512)bf16 -> f32 acc, +bias(f32), ReLU(f32)
    h1 = jnp.dot(x_ref[...], w1_ref[...], preferred_element_type=jnp.float32)
    h1 = jnp.maximum(h1 + b1_ref[...], 0.0)
    # Layer 2: (TM, 512) @ (512, 512)
    h2 = jnp.dot(h1.astype(jnp.bfloat16), w2_ref[...],
                 preferred_element_type=jnp.float32)
    h2 = jnp.maximum(h2 + b2_ref[...], 0.0)
    # Layer 3: (TM, 512) @ (512, 128)  (cols 10..127 of w3/b3 are zero-padded)
    logits = jnp.dot(h2.astype(jnp.bfloat16), w3_ref[...],
                     preferred_element_type=jnp.float32)
    o_ref[...] = (logits + b3_ref[...]).astype(o_ref.dtype)


def neural_network_forward(x, params):
    """x: (B, 3, 32, 32) NCHW.  Returns (B, 10) float32 logits."""
    w1, b1, w2, b2, w3, b3 = params   # weights bf16 (in, out[padded]); biases f32
    B = x.shape[0]
    # nn.Flatten(): row-major flatten of (C, H, W) -> 3072, cast to bf16 (glue, plain JAX)
    x_flat = x.reshape(B, -1).astype(jnp.bfloat16)

    # Tile selection: TM <= 512, >=2 grid steps when the batch allows (v7x dual-TC),
    # TM a multiple of 16 sublanes (bf16 packing), padding waste < one sublane group.
    if B <= SUBLANE:
        nb = 1
        TM = max(SUBLANE, _round_up(B, SUBLANE))
    else:
        nb = max(2, pl.cdiv(B, TM_MAX))
        TM = _round_up(pl.cdiv(B, nb), SUBLANE)
    B_pad = nb * TM
    if B_pad != B:
        x_flat = jnp.pad(x_flat, ((0, B_pad - B), (0, 0)))

    def weight_spec(shape):
        # Constant block index + single buffering -> fetched once, resident in VMEM.
        return pl.BlockSpec(shape, lambda i: (0, 0), pipeline_mode=pl.Buffered(1))

    flops = 2 * B_pad * (IN_FEATURES * HIDDEN + HIDDEN * HIDDEN + HIDDEN * OUT_PADDED)
    bytes_accessed = (
        x_flat.size * 2                                    # bf16 activations
        + (w1.size + w2.size + w3.size) * 2                # bf16 weights
        + (b1.size + b2.size + b3.size) * 4                # f32 biases
        + B_pad * OUT_PADDED * 4                           # f32 output slab
    )

    out_padded = pl.pallas_call(
        mlp_kernel,
        out_shape=jax.ShapeDtypeStruct((B_pad, OUT_PADDED), jnp.float32),
        grid=(nb,),
        in_specs=[
            pl.BlockSpec((TM, IN_FEATURES), lambda i: (i, 0)),   # activations (bf16), tiled
            weight_spec((IN_FEATURES, HIDDEN)),                  # w1 (bf16)
            weight_spec((1, HIDDEN)),                            # b1 (f32)
            weight_spec((HIDDEN, HIDDEN)),                       # w2 (bf16)
            weight_spec((1, HIDDEN)),                            # b2 (f32)
            weight_spec((HIDDEN, OUT_PADDED)),                   # w3 (bf16, padded)
            weight_spec((1, OUT_PADDED)),                        # b3 (f32, padded)
        ],
        out_specs=pl.BlockSpec((TM, OUT_PADDED), lambda i: (i, 0)),
        compiler_params=pltpu.CompilerParams(
            dimension_semantics=("parallel",),
            vmem_limit_bytes=32 << 20,
        ),
        cost_estimate=pl.CostEstimate(
            flops=flops, bytes_accessed=bytes_accessed, transcendentals=0),
    )(x_flat, w1, b1, w2, b2, w3, b3)

    return out_padded[:B, :OUT_FEATURES]


def init_params(key):
    """Deterministic synthetic init matching the PyTorch layer shapes.

    Weights are stored pre-transposed as (in, out) so the kernel does x @ W
    (== PyTorch x @ W.T with W of shape (out, in)), and cast to bf16 for storage.
    w3/b3 are zero-padded from 10 to 128 output lanes. Biases stay f32, (1, N).
    """
    ks = jax.random.split(key, 6)

    def uniform_like_torch(k, shape, fan_in):
        bound = 1.0 / jnp.sqrt(fan_in)
        return jax.random.uniform(k, shape, jnp.float32, -bound, bound)

    w1 = uniform_like_torch(ks[0], (IN_FEATURES, HIDDEN), IN_FEATURES)
    b1 = uniform_like_torch(ks[1], (1, HIDDEN), IN_FEATURES)
    w2 = uniform_like_torch(ks[2], (HIDDEN, HIDDEN), HIDDEN)
    b2 = uniform_like_torch(ks[3], (1, HIDDEN), HIDDEN)
    w3 = uniform_like_torch(ks[4], (HIDDEN, OUT_FEATURES), HIDDEN)
    b3 = uniform_like_torch(ks[5], (1, OUT_FEATURES), HIDDEN)

    # bf16 weight storage (halves HBM bytes; MXU-native input dtype on all gens)
    w1 = w1.astype(jnp.bfloat16)
    w2 = w2.astype(jnp.bfloat16)
    # zero-pad the 10-wide output layer to 128 lanes for unmasked stores
    w3 = jnp.pad(w3, ((0, 0), (0, OUT_PADDED - OUT_FEATURES))).astype(jnp.bfloat16)
    b3 = jnp.pad(b3, ((0, 0), (0, OUT_PADDED - OUT_FEATURES)))
    return (w1, b1, w2, b2, w3, b3)


def reference_forward(x, params):
    """Pure-JAX reference emulating the same bf16-input / f32-accumulate math."""
    w1, b1, w2, b2, w3, b3 = params
    f = lambda a: a.astype(jnp.bfloat16).astype(jnp.float32)
    hi = jax.lax.Precision.HIGHEST
    xf = x.reshape(x.shape[0], -1)
    h1 = jnp.maximum(jnp.dot(f(xf), w1.astype(jnp.float32), precision=hi) + b1, 0.0)
    h2 = jnp.maximum(jnp.dot(f(h1), w2.astype(jnp.float32), precision=hi) + b2, 0.0)
    out = jnp.dot(f(h2), w3.astype(jnp.float32), precision=hi) + b3
    return out[:, :OUT_FEATURES]


if __name__ == "__main__":
    key = jax.random.PRNGKey(0)
    k_params, k_x = jax.random.split(key)

    params = init_params(k_params)
    # CIFAR-10 shaped input, small batch
    x = jax.random.normal(k_x, (2, 3, 32, 32), dtype=jnp.float32)

    logits = neural_network_forward(x, params)
    jax.block_until_ready(logits)

    ref = reference_forward(x, params)
    assert logits.shape == (2, 10)
    assert jnp.allclose(logits, ref, atol=2e-3, rtol=2e-3), (
        float(jnp.max(jnp.abs(logits - ref))))

    print("KERNEL_OK")
</pallas_src>

<mosaic_0001>
module attributes {stable_mosaic.version = 11 : i64} {
  func.func @mlp_kernel(%arg0: i32, %arg1: memref<16x3072xbf16, #tpu.memory_space<vmem>>, %arg2: memref<3072x512xbf16, #tpu.memory_space<vmem>>, %arg3: memref<1x512xf32, #tpu.memory_space<vmem>>, %arg4: memref<512x512xbf16, #tpu.memory_space<vmem>>, %arg5: memref<1x512xf32, #tpu.memory_space<vmem>>, %arg6: memref<512x128xbf16, #tpu.memory_space<vmem>>, %arg7: memref<1x128xf32, #tpu.memory_space<vmem>>, %arg8: memref<16x128xf32, #tpu.memory_space<vmem>>) attributes {dimension_semantics = [#tpu.dimension_semantics<parallel>], iteration_bounds = array<i64: 1>, scalar_prefetch = 0 : i64, scratch_operands = 0 : i64, tpu.core_type = #tpu.core_type<tc>, window_params = [{transform_indices = @transform_0, window_bounds = array<i64: 16, 3072>}, {pipeline_mode = #tpu.pipeline_mode<synchronous>, transform_indices = @transform_1, window_bounds = array<i64: 3072, 512>}, {pipeline_mode = #tpu.pipeline_mode<synchronous>, transform_indices = @transform_2, window_bounds = array<i64: 1, 512>}, {pipeline_mode = #tpu.pipeline_mode<synchronous>, transform_indices = @transform_3, window_bounds = array<i64: 512, 512>}, {pipeline_mode = #tpu.pipeline_mode<synchronous>, transform_indices = @transform_4, window_bounds = array<i64: 1, 512>}, {pipeline_mode = #tpu.pipeline_mode<synchronous>, transform_indices = @transform_5, window_bounds = array<i64: 512, 128>}, {pipeline_mode = #tpu.pipeline_mode<synchronous>, transform_indices = @transform_6, window_bounds = array<i64: 1, 128>}, {transform_indices = @transform_7, window_bounds = array<i64: 16, 128>}]} {
    %c0 = arith.constant 0 : index
    %c0_0 = arith.constant 0 : index
    %0 = vector.load %arg1[%c0, %c0_0] : memref<16x3072xbf16, #tpu.memory_space<vmem>>, vector<16x3072xbf16>
    %c0_1 = arith.constant 0 : index
    %c0_2 = arith.constant 0 : index
    %1 = vector.load %arg2[%c0_1, %c0_2] : memref<3072x512xbf16, #tpu.memory_space<vmem>>, vector<3072x512xbf16>
    %cst = arith.constant dense<0.000000e+00> : vector<16x512xf32>
    %2 = tpu.matmul %0, %1, %cst {dimension_numbers = #tpu.dot_dimension_numbers<[1], [0], [0], [1], [0, 0, 1, 1], [], []>} : vector<16x3072xbf16>, vector<3072x512xbf16>, vector<16x512xf32> -> vector<16x512xf32>
    %c0_3 = arith.constant 0 : index
    %c0_4 = arith.constant 0 : index
    %3 = vector.load %arg3[%c0_3, %c0_4] : memref<1x512xf32, #tpu.memory_space<vmem>>, vector<1x512xf32>
    %4 = vector.broadcast %3 : vector<1x512xf32> to vector<16x512xf32>
    %5 = arith.addf %2, %4 : vector<16x512xf32>
    %cst_5 = arith.constant 0.000000e+00 : f32
    %6 = vector.broadcast %cst_5 : f32 to vector<16x512xf32>
    %7 = arith.maximumf %5, %6 : vector<16x512xf32>
    %8 = arith.truncf %7 : vector<16x512xf32> to vector<16x512xbf16>
    %c0_6 = arith.constant 0 : index
    %c0_7 = arith.constant 0 : index
    %9 = vector.load %arg4[%c0_6, %c0_7] : memref<512x512xbf16, #tpu.memory_space<vmem>>, vector<512x512xbf16>
    %cst_8 = arith.constant dense<0.000000e+00> : vector<16x512xf32>
    %10 = tpu.matmul %8, %9, %cst_8 {dimension_numbers = #tpu.dot_dimension_numbers<[1], [0], [0], [1], [0, 0, 1, 1], [], []>} : vector<16x512xbf16>, vector<512x512xbf16>, vector<16x512xf32> -> vector<16x512xf32>
    %c0_9 = arith.constant 0 : index
    %c0_10 = arith.constant 0 : index
    %11 = vector.load %arg5[%c0_9, %c0_10] : memref<1x512xf32, #tpu.memory_space<vmem>>, vector<1x512xf32>
    %12 = vector.broadcast %11 : vector<1x512xf32> to vector<16x512xf32>
    %13 = arith.addf %10, %12 : vector<16x512xf32>
    %cst_11 = arith.constant 0.000000e+00 : f32
    %14 = vector.broadcast %cst_11 : f32 to vector<16x512xf32>
    %15 = arith.maximumf %13, %14 : vector<16x512xf32>
    %16 = arith.truncf %15 : vector<16x512xf32> to vector<16x512xbf16>
    %c0_12 = arith.constant 0 : index
    %c0_13 = arith.constant 0 : index
    %17 = vector.load %arg6[%c0_12, %c0_13] : memref<512x128xbf16, #tpu.memory_space<vmem>>, vector<512x128xbf16>
    %cst_14 = arith.constant dense<0.000000e+00> : vector<16x128xf32>
    %18 = tpu.matmul %16, %17, %cst_14 {dimension_numbers = #tpu.dot_dimension_numbers<[1], [0], [0], [1], [0, 0, 1, 1], [], []>} : vector<16x512xbf16>, vector<512x128xbf16>, vector<16x128xf32> -> vector<16x128xf32>
    %c0_15 = arith.constant 0 : index
    %c0_16 = arith.constant 0 : index
    %19 = vector.load %arg7[%c0_15, %c0_16] : memref<1x128xf32, #tpu.memory_space<vmem>>, vector<1x128xf32>
    %20 = vector.broadcast %19 : vector<1x128xf32> to vector<16x128xf32>
    %21 = arith.addf %18, %20 : vector<16x128xf32>
    %c0_17 = arith.constant 0 : index
    %c0_18 = arith.constant 0 : index
    %22 = vector.load %arg8[%c0_17, %c0_18] : memref<16x128xf32, #tpu.memory_space<vmem>>, vector<16x128xf32>
    tpu.vector_store %arg8[%c0_17, %c0_18], %21 {strides = array<i32>} : memref<16x128xf32, #tpu.memory_space<vmem>>, vector<16x128xf32>,
    return
  }
  func.func @transform_0(%arg0: i32) -> (i32, i32) {
    %c0_i32 = arith.constant 0 : i32
    %c0_i32_0 = arith.constant 0 : i32
    return %arg0, %c0_i32 : i32, i32
  }
  func.func @transform_1(%arg0: i32) -> (i32, i32) {
    %c0_i32 = arith.constant 0 : i32
    %c0_i32_0 = arith.constant 0 : i32
    %c0_i32_1 = arith.constant 0 : i32
    return %c0_i32, %c0_i32_0 : i32, i32
  }
  func.func @transform_2(%arg0: i32) -> (i32, i32) {
    %c0_i32 = arith.constant 0 : i32
    %c0_i32_0 = arith.constant 0 : i32
    %c0_i32_1 = arith.constant 0 : i32
    return %c0_i32, %c0_i32_0 : i32, i32
  }
  func.func @transform_3(%arg0: i32) -> (i32, i32) {
    %c0_i32 = arith.constant 0 : i32
    %c0_i32_0 = arith.constant 0 : i32
    %c0_i32_1 = arith.constant 0 : i32
    return %c0_i32, %c0_i32_0 : i32, i32
  }
  func.func @transform_4(%arg0: i32) -> (i32, i32) {
    %c0_i32 = arith.constant 0 : i32
    %c0_i32_0 = arith.constant 0 : i32
    %c0_i32_1 = arith.constant 0 : i32
    return %c0_i32, %c0_i32_0 : i32, i32
  }
  func.func @transform_5(%arg0: i32) -> (i32, i32) {
    %c0_i32 = arith.constant 0 : i32
    %c0_i32_0 = arith.constant 0 : i32
    %c0_i32_1 = arith.constant 0 : i32
    return %c0_i32, %c0_i32_0 : i32, i32
  }
  func.func @transform_6(%arg0: i32) -> (i32, i32) {
    %c0_i32 = arith.constant 0 : i32
    %c0_i32_0 = arith.constant 0 : i32
    %c0_i32_1 = arith.constant 0 : i32
    return %c0_i32, %c0_i32_0 : i32, i32
  }
  func.func @transform_7(%arg0: i32) -> (i32, i32) {
    %c0_i32 = arith.constant 0 : i32
    %c0_i32_0 = arith.constant 0 : i32
    return %arg0, %c0_i32 : i32, i32
  }
}

</mosaic_0001>

<bundles_post_ra>
// kernel: tpu_custom_call.1
= control target key start
LH: loop header
LB: loop body
LE: loop exit
PB: predicated region body
PF: predicated region fallthrough
CT: control target
= control target key end

     0   :  { %12 = vsyncpa [#allocation3], 0  ;;  %s13236_s0 = inlined_call_operand.hbm [shape: bf16[16,3072], index: 0, kind: input, shape index: {}]   ;;  %s13237_s1 = inlined_call_operand.hbm [shape: bf16[3072,512], index: 1, kind: input, shape index: {}]   ;;  %s13238_s2 = inlined_call_operand.hbm [shape: f32[1,512], index: 2, kind: input, shape index: {}]   ;;  %s13239_s3 = inlined_call_operand.hbm [shape: bf16[512,512], index: 3, kind: input, shape index: {}]   ;;  %s13240_s4 = inlined_call_operand.hbm [shape: f32[1,512], index: 4, kind: input, shape index: {}]   ;;  %s13241_s5 = inlined_call_operand.hbm [shape: bf16[512,128], index: 5, kind: input, shape index: {}]   ;;  %s13242_s6 = inlined_call_operand.hbm [shape: f32[1,128], index: 6, kind: input, shape index: {}]   ;;  %s13243_s7 = inlined_call_operand.hbm [shape: f32[16,128], index: 7, kind: output, shape index: {}]  }
   0x1   :  { %13 = vsyncpa [#allocation6], 0 }
   0x2   :  { %14 = vsyncpa [#allocation9], 0 }
   0x3   :  { %15 = vsyncpa [#allocation12], 0  ;;  %s34_s26 = sshll.u32 %s13237_s1, 4  ;;  %s35_s26 = int_to_ptr.hbm [resolvable:$true] %s34_s26 }
   0x4   :  { %16 = vsyncpa [#allocation4], 0  ;;  %s12584_s27 = smov [#allocation5]   ;;  %s58_s8 = sshll.u32 %s13239_s3, 4  ;;  %s59_s8 = int_to_ptr.hbm [resolvable:$true] %s58_s8 }
   0x5   :  { %s36_s28 = sshll.u32 %s12584_s27, 4  ;;  %s12585_s9 = smov 256   ;;  %s37_s28 = int_to_ptr.vmem [resolvable:$true] %s36_s28 }
   0x6   :  { %s12586_s10 = smov 16   ;;  %s12587_s11 = smov [#allocation8]  }
   0x7   :  { %42 = dma.hbm_to_vmem [thread:$0]  %s35_s26, 98304, %s37_s28, [#allocation6], %s12585_s9, %s12585_s9, %s12586_s10  }
   0x8   :  { %s60_s12 = sshll.u32 %s12587_s11, 4  ;;  %s82_s15 = sshll.u32 %s13241_s5, 4  ;;  %s61_s12 = int_to_ptr.vmem [resolvable:$true] %s60_s12  ;;  %s83_s15 = int_to_ptr.hbm [resolvable:$true] %s82_s15 }
   0x9   :  { %66 = dma.hbm_to_vmem [thread:$0]  %s59_s8, 16384, %s61_s12, [#allocation9], %s12585_s9, %s12585_s9, %s12586_s10  }
   0xa   :  { %s12588_s1 = smov [#allocation11]   ;;  %s21_s3 = sshll.u32 %s13236_s0, 4  ;;  %s22_s3 = int_to_ptr.hbm [resolvable:$true] %s21_s3 }
   0xb   :  { %s84_s16 = sshll.u32 %s12588_s1, 4  ;;  %s12589_s19 = smov 64   ;;  %s85_s16 = int_to_ptr.vmem [resolvable:$true] %s84_s16 }
   0xc   :  { %s12590_s20 = smov 4   ;;  %s12591_s21 = smov [#allocation2]  }
   0xd   :  { %90 = dma.hbm_to_vmem [thread:$0]  %s83_s15, 4096, %s85_s16, [#allocation12], %s12589_s19, %s12589_s19, %s12590_s20  }
   0xe   :  { %s23_s22 = sshll.u32 %s12591_s21, 4  ;;  %s12592_s23 = smov 1536   ;;  %s24_s22 = int_to_ptr.vmem [resolvable:$true] %s23_s22 }
   0xf   :  { %s12593_s24 = smov 96   ;;  %s48_s26 = sshll.u32 %s13238_s2, 4  ;;  %s49_s26 = int_to_ptr.hbm [resolvable:$true] %s48_s26 }
  0x10   :  { %29 = dma.hbm_to_vmem [thread:$0]  %s22_s3, 3072, %s24_s22, [#allocation3], %s12592_s23, %s12592_s23, %s12593_s24  }
  0x11   :  { %s12594_s27 = smov [#allocation7]   ;;  %s72_s30 = sshll.u32 %s13240_s4, 4  ;;  %s73_s30 = int_to_ptr.hbm [resolvable:$true] %s72_s30 }
  0x12   :  { %s50_s28 = sshll.u32 %s12594_s27, 4  ;;  %s12595_s8 = smov [#allocation10]   ;;  %s51_s28 = int_to_ptr.vmem [resolvable:$true] %s50_s28 }
  0x13   :  { %53 = dma.hbm_to_vmem [thread:$0]  %s49_s26, 64, %s51_s28, [#allocation6]  }
  0x14   :  { %s74_s9 = sshll.u32 %s12595_s8, 4  ;;  %s96_s12 = sshll.u32 %s13242_s6, 4  ;;  %s75_s9 = int_to_ptr.vmem [resolvable:$true] %s74_s9  ;;  %s97_s12 = int_to_ptr.hbm [resolvable:$true] %s96_s12 }
  0x15   :  { %77 = dma.hbm_to_vmem [thread:$0]  %s73_s30, 64, %s75_s9, [#allocation9]  }
  0x16   :  { %s12596_s2 = smov [#allocation13]  }
  0x17   :  { %s98_s13 = sshll.u32 %s12596_s2, 4  ;;  %s99_s13 = int_to_ptr.vmem [resolvable:$true] %s98_s13 }
  0x18   :  { %101 = dma.hbm_to_vmem [thread:$0]  %s97_s12, 16, %s99_s13, [#allocation12]  }
  0x19   :  { %12574 = dma.done.wait [#allocation3], 3072  }
  0x1a   :  { %12575 = vsyncadd [#allocation3], 4294964224 }
  0x1b   :  { %12576 = dma.done.wait [#allocation6], 98368  }
  0x1c   :  { %12577 = vsyncadd [#allocation6], 4294868928 }
  0x1d   :  { %12578 = dma.done.wait [#allocation9], 16448  }
  0x1e   :  { %12579 = vsyncadd [#allocation9], 4294950848 }
  0x1f   :  { %12580 = dma.done.wait [#allocation12], 4112  }
  0x20   :  { %12581 = vsyncadd [#allocation12], 4294963184  ;;  %v7812_v0 = vld [vmem:[#allocation5 + $0xe0] sm:$0xf]  ;;  %v11464_v1 = vld [vmem:[#allocation5 + $0xec] sm:$0xf0] }
  0x21   :  { %v7940_v2 = vld [vmem:[#allocation5 + $0x1e0] sm:$0xf]  ;;  %v7813_v3 = vor.u32 %v11464_v1, %v7812_v0  ;;  %v11496_v4 = vld [vmem:[#allocation5 + $0x1ec] sm:$0xf0]  ;;  %s12597_s4 = smov [#allocation14]   ;;  %s7586_s1 = sshll.u32 %s13243_s7, 4  ;;  %s7587_s1 = int_to_ptr.hbm [resolvable:$true] %s7586_s1 }
  0x22   :  { %v8068_v5 = vld [vmem:[#allocation5 + $0x2e0] sm:$0xf]  ;;  %v11528_v6 = vld [vmem:[#allocation5 + $0x2ec] sm:$0xf0]  ;;  %v7941_v7 = vor.u32 %v11496_v4, %v7940_v2  ;;  %s7584_s6 = sshll.u32 %s12597_s4, 4  ;;  %s12598_s16 = smov 128   ;;  %s7585_s6 = int_to_ptr.vmem [resolvable:$true] %s7584_s6 }
  0x23   :  { %v8069_v8 = vor.u32 %v11528_v6, %v8068_v5  ;;  %v8196_v9 = vld [vmem:[#allocation5 + $0x3e0] sm:$0xf]  ;;  %v11560_v10 = vld [vmem:[#allocation5 + $0x3ec] sm:$0xf0]  ;;  %4892 = vmatpush.bf16.msra.mxu0 %v7813_v3  ;;  %s12599_s17 = smov 8  }
  0x24   :  { %v7796_v11 = vld [vmem:[#allocation5 + $0xc0] sm:$0xf]  ;;  %v8197_v12 = vor.u32 %v11560_v10, %v8196_v9  ;;  %v11460_v13 = vld [vmem:[#allocation5 + $0xcc] sm:$0xf0]  ;;  %4906 = vmatpush.bf16.msra.mxu1 %v7941_v7 }
  0x25   :  { %v7924_v14 = vld [vmem:[#allocation5 + $0x1c0] sm:$0xf]  ;;  %v11492_v15 = vld [vmem:[#allocation5 + $0x1cc] sm:$0xf0]  ;;  %4920 = vmatpush.bf16.msra.mxu2 %v8069_v8  ;;  %v7797_v16 = vor.u32 %v11460_v13, %v7796_v11 }
  0x26   :  { %v7925_v17 = vor.u32 %v11492_v15, %v7924_v14  ;;  %v8052_v18 = vld [vmem:[#allocation5 + $0x2c0] sm:$0xf]  ;;  %v11524_v19 = vld [vmem:[#allocation5 + $0x2cc] sm:$0xf0]  ;;  %4934 = vmatpush.bf16.msra.mxu3 %v8197_v12 }
  0x27   :  { %v8180_v20 = vld [vmem:[#allocation5 + $0x3c0] sm:$0xf]  ;;  %v8053_v21 = vor.u32 %v11524_v19, %v8052_v18  ;;  %v11556_v22 = vld [vmem:[#allocation5 + $0x3cc] sm:$0xf0]  ;;  %4893 = vmatpush.bf16.msra.mxu0 %v7797_v16 }
  0x28   :  { %v7780_v23 = vld [vmem:[#allocation5 + $0xa0] sm:$0xf]  ;;  %v11456_v24 = vld [vmem:[#allocation5 + $0xac] sm:$0xf0]  ;;  %v8181_v25 = vor.u32 %v11556_v22, %v8180_v20  ;;  %4907 = vmatpush.bf16.msra.mxu1 %v7925_v17 }
  0x29   :  { %v7908_v26 = vld [vmem:[#allocation5 + $0x1a0] sm:$0xf]  ;;  %v11488_v27 = vld [vmem:[#allocation5 + $0x1ac] sm:$0xf0]  ;;  %v7781_v29 = vor.u32 %v11456_v24, %v7780_v23  ;;  %4921 = vmatpush.bf16.msra.mxu2 %v8053_v21 }
  0x2a   :  { %v8036_v28 = vld [vmem:[#allocation5 + $0x2a0] sm:$0xf]  ;;  %v11520_v30 = vld [vmem:[#allocation5 + $0x2ac] sm:$0xf0]  ;;  %v7909_v33 = vor.u32 %v11488_v27, %v7908_v26  ;;  %4935 = vmatpush.bf16.msra.mxu3 %v8181_v25 }
  0x2b   :  { %v8164_v31 = vld [vmem:[#allocation5 + $0x3a0] sm:$0xf]  ;;  %v11552_v32 = vld [vmem:[#allocation5 + $0x3ac] sm:$0xf0]  ;;  %v8037_v34 = vor.u32 %v11520_v30, %v8036_v28  ;;  %4894 = vmatpush.bf16.msra.mxu0 %v7781_v29 }
  0x2c   :  { %v7764_v35 = vld [vmem:[#allocation5 + $0x80] sm:$0xf]  ;;  %v11452_v36 = vld [vmem:[#allocation5 + $0x8c] sm:$0xf0]  ;;  %v8165_v38 = vor.u32 %v11552_v32, %v8164_v31  ;;  %4908 = vmatpush.bf16.msra.mxu1 %v7909_v33 }
  0x2d   :  { %v7892_v37 = vld [vmem:[#allocation5 + $0x180] sm:$0xf]  ;;  %v11484_v39 = vld [vmem:[#allocation5 + $0x18c] sm:$0xf0]  ;;  %v7765_v44 = vor.u32 %v11452_v36, %v7764_v35  ;;  %4922 = vmatpush.bf16.msra.mxu2 %v8037_v34 }
  0x2e   :  { %v8020_v40 = vld [vmem:[#allocation5 + $0x280] sm:$0xf]  ;;  %v11516_v41 = vld [vmem:[#allocation5 + $0x28c] sm:$0xf0]  ;;  %v7893_v45 = vor.u32 %v11484_v39, %v7892_v37  ;;  %4936 = vmatpush.bf16.msra.mxu3 %v8165_v38 }
  0x2f   :  { %v8148_v42 = vld [vmem:[#allocation5 + $0x380] sm:$0xf]  ;;  %v11548_v43 = vld [vmem:[#allocation5 + $0x38c] sm:$0xf0]  ;;  %v8021_v46 = vor.u32 %v11516_v41, %v8020_v40  ;;  %4895 = vmatpush.bf16.msra.mxu0 %v7765_v44 }
  0x30   :  { %v7748_v47 = vld [vmem:[#allocation5 + $0x60] sm:$0xf]  ;;  %v11448_v48 = vld [vmem:[#allocation5 + $0x6c] sm:$0xf0]  ;;  %v8149_v50 = vor.u32 %v11548_v43, %v8148_v42  ;;  %4909 = vmatpush.bf16.msra.mxu1 %v7893_v45 }
  0x31   :  { %v7876_v49 = vld [vmem:[#allocation5 + $0x160] sm:$0xf]  ;;  %v11480_v51 = vld [vmem:[#allocation5 + $0x16c] sm:$0xf0]  ;;  %v7749_v56 = vor.u32 %v11448_v48, %v7748_v47  ;;  %4923 = vmatpush.bf16.msra.mxu2 %v8021_v46 }
  0x32   :  { %v8004_v52 = vld [vmem:[#allocation5 + $0x260] sm:$0xf]  ;;  %v11512_v53 = vld [vmem:[#allocation5 + $0x26c] sm:$0xf0]  ;;  %v7877_v57 = vor.u32 %v11480_v51, %v7876_v49  ;;  %4937 = vmatpush.bf16.msra.mxu3 %v8149_v50 }
  0x33   :  { %v8132_v54 = vld [vmem:[#allocation5 + $0x360] sm:$0xf]  ;;  %v11544_v55 = vld [vmem:[#allocation5 + $0x36c] sm:$0xf0]  ;;  %v8005_v58 = vor.u32 %v11512_v53, %v8004_v52  ;;  %4896 = vmatpush.bf16.msra.mxu0 %v7749_v56 }
  0x34   :  { %v7732_v59 = vld [vmem:[#allocation5 + $0x40] sm:$0xf]  ;;  %v11444_v60 = vld [vmem:[#allocation5 + $0x4c] sm:$0xf0]  ;;  %v8133_v62 = vor.u32 %v11544_v55, %v8132_v54  ;;  %4910 = vmatpush.bf16.msra.mxu1 %v7877_v57  ;;  %v7612_v54 = vld [vmem:[#allocation2 + $0x8] sm:$0xf] }
  0x35   :  { %v7860_v61 = vld [vmem:[#allocation5 + $0x140] sm:$0xf]  ;;  %v11476_v63 = vld [vmem:[#allocation5 + $0x14c] sm:$0xf0]  ;;  %v7733_v4 = vor.u32 %v11444_v60, %v7732_v59  ;;  %4924 = vmatpush.bf16.msra.mxu2 %v8005_v58  ;;  %v11423_v59 = vld [vmem:[#allocation2 + $0x64] sm:$0xf0] }
  0x36   :  { %v7988_v0 = vld [vmem:[#allocation5 + $0x240] sm:$0xf]  ;;  %v11508_v1 = vld [vmem:[#allocation5 + $0x24c] sm:$0xf0]  ;;  %v7861_v5 = vor.u32 %v11476_v63, %v7860_v61  ;;  %4938 = vmatpush.bf16.msra.mxu3 %v8133_v62 }
  0x37   :  { %v8116_v2 = vld [vmem:[#allocation5 + $0x340] sm:$0xf]  ;;  %v11540_v3 = vld [vmem:[#allocation5 + $0x34c] sm:$0xf0]  ;;  %v7989_v6 = vor.u32 %v11508_v1, %v7988_v0  ;;  %4897 = vmatpush.bf16.msra.mxu0 %v7733_v4  ;;  %v12663_v1 = vor.u32 %v11423_v59, %v7612_v54 }
  0x38   :  { %v7716_v7 = vld [vmem:[#allocation5 + $0x20] sm:$0xf]  ;;  %v11440_v8 = vld [vmem:[#allocation5 + $0x2c] sm:$0xf0]  ;;  %v8117_v10 = vor.u32 %v11540_v3, %v8116_v2  ;;  %4911 = vmatpush.bf16.msra.mxu1 %v7861_v5 }
  0x39   :  { %v7844_v9 = vld [vmem:[#allocation5 + $0x120] sm:$0xf]  ;;  %v11472_v11 = vld [vmem:[#allocation5 + $0x12c] sm:$0xf0]  ;;  %v7717_v16 = vor.u32 %v11440_v8, %v7716_v7  ;;  %4925 = vmatpush.bf16.msra.mxu2 %v7989_v6  ;;  %v11410_v6 = vld [vmem:[#allocation2 + $0x4] sm:$0xf] }
  0x3a   :  { %v7972_v12 = vld [vmem:[#allocation5 + $0x220] sm:$0xf]  ;;  %v11504_v13 = vld [vmem:[#allocation5 + $0x22c] sm:$0xf0]  ;;  %v7845_v19 = vor.u32 %v11472_v11, %v7844_v9  ;;  %4939 = vmatpush.bf16.msra.mxu3 %v8117_v10  ;;  %v7606_v7 = vld [vmem:[#allocation2 + $0x60] sm:$0xf0] }
  0x3b   :  { %v8100_v14 = vld [vmem:[#allocation5 + $0x320] sm:$0xf]  ;;  %v11536_v15 = vld [vmem:[#allocation5 + $0x32c] sm:$0xf0]  ;;  %v7973_v20 = vor.u32 %v11504_v13, %v7972_v12  ;;  %4898 = vmatpush.bf16.msra.mxu0 %v7717_v16  ;;  %v11411_v8 = vld [vmem:[#allocation2 + $0xc] sm:$0xf]  ;;  %v12667_v10 = vor.u32 %v11410_v6, %v7606_v7 }
  0x3c   :  { %v7700_v17 = vld [vmem:[#allocation5] sm:$0xf]  ;;  %v11436_v18 = vld [vmem:[#allocation5 + $0xc] sm:$0xf0]  ;;  %v8101_v24 = vor.u32 %v11536_v15, %v8100_v14  ;;  %4912 = vmatpush.bf16.msra.mxu1 %v7845_v19  ;;  %v7614_v11 = vld [vmem:[#allocation2 + $0x68] sm:$0xf0] }
  0x3d   :  { %v7828_v21 = vld [vmem:[#allocation5 + $0x100] sm:$0xf]  ;;  %v11468_v22 = vld [vmem:[#allocation5 + $0x10c] sm:$0xf0]  ;;  %v7701_v31 = vor.u32 %v11436_v18, %v7700_v17  ;;  %4926 = vmatpush.bf16.msra.mxu2 %v7973_v20  ;;  %v12669_v17 = vor.u32 %v11411_v8, %v7614_v11 }
  0x3e   :  { %v7956_v23 = vld [vmem:[#allocation5 + $0x200] sm:$0xf]  ;;  %v11500_v25 = vld [vmem:[#allocation5 + $0x20c] sm:$0xf0]  ;;  %v7829_v35 = vor.u32 %v11468_v22, %v7828_v21  ;;  %4940 = vmatpush.bf16.msra.mxu3 %v8101_v24 }
  0x3f   :  { %v8084_v26 = vld [vmem:[#allocation5 + $0x300] sm:$0xf]  ;;  %v11532_v27 = vld [vmem:[#allocation5 + $0x30c] sm:$0xf0]  ;;  %v7957_v36 = vor.u32 %v11500_v25, %v7956_v23  ;;  %4899 = vmatpush.bf16.msra.mxu0 %v7701_v31 }
  0x40   :  { %v8324_v28 = vld [vmem:[#allocation5 + $0x4e0] sm:$0xf]  ;;  %v11592_v29 = vld [vmem:[#allocation5 + $0x4ec] sm:$0xf0]  ;;  %v8085_v39 = vor.u32 %v11532_v27, %v8084_v26  ;;  %4913 = vmatpush.bf16.msra.mxu1 %v7829_v35 }
  0x41   :  { %v8452_v30 = vld [vmem:[#allocation5 + $0x5e0] sm:$0xf]  ;;  %v11624_v32 = vld [vmem:[#allocation5 + $0x5ec] sm:$0xf0]  ;;  %v8325_v40 = vor.u32 %v11592_v29, %v8324_v28  ;;  %4927 = vmatpush.bf16.msra.mxu2 %v7957_v36 }
  0x42   :  { %v8580_v33 = vld [vmem:[#allocation5 + $0x6e0] sm:$0xf]  ;;  %v11656_v34 = vld [vmem:[#allocation5 + $0x6ec] sm:$0xf0]  ;;  %v8453_v43 = vor.u32 %v11624_v32, %v8452_v30  ;;  %4941 = vmatpush.bf16.msra.mxu3 %v8085_v39 }
  0x43   :  { %v8708_v37 = vld [vmem:[#allocation5 + $0x7e0] sm:$0xf]  ;;  %v11688_v38 = vld [vmem:[#allocation5 + $0x7ec] sm:$0xf0]  ;;  %v8581_v44 = vor.u32 %v11656_v34, %v8580_v33  ;;  %4948 = vmatpush.bf16.msrb.mxu0 %v8325_v40  ;;  %4914 = vmatmul.bf16.vlgmr.msra.gmra.mxu1 %v12667_v10 }
  0x44   :  { %v8308_v41 = vld [vmem:[#allocation5 + $0x4c0] sm:$0xf]  ;;  %v11588_v42 = vld [vmem:[#allocation5 + $0x4cc] sm:$0xf0]  ;;  %v8709_v48 = vor.u32 %v11688_v38, %v8708_v37  ;;  %4962 = vmatpush.bf16.msrb.mxu1 %v8453_v43  ;;  %4928 = vmatmul.bf16.vlgmr.msra.gmra.mxu2 %v12663_v1 }
  0x45   :  { %v8436_v45 = vld [vmem:[#allocation5 + $0x5c0] sm:$0xf]  ;;  %v11620_v46 = vld [vmem:[#allocation5 + $0x5cc] sm:$0xf0]  ;;  %v8309_v55 = vor.u32 %v11588_v42, %v8308_v41  ;;  %4976 = vmatpush.bf16.msrb.mxu2 %v8581_v44  ;;  %4942 = vmatmul.bf16.vlgmr.msra.gmra.mxu3 %v12669_v17 }
  0x46   :  { %v8564_v47 = vld [vmem:[#allocation5 + $0x6c0] sm:$0xf]  ;;  %v11652_v49 = vld [vmem:[#allocation5 + $0x6cc] sm:$0xf0]  ;;  %v8437_v60 = vor.u32 %v11620_v46, %v8436_v45  ;;  %4990 = vmatpush.bf16.msrb.mxu3 %v8709_v48 }
  0x47   :  { %v8692_v50 = vld [vmem:[#allocation5 + $0x7c0] sm:$0xf]  ;;  %v11684_v51 = vld [vmem:[#allocation5 + $0x7cc] sm:$0xf0]  ;;  %v8565_v61 = vor.u32 %v11652_v49, %v8564_v47  ;;  %4949 = vmatpush.bf16.msrb.mxu0 %v8309_v55 }
  0x48   :  { %v7604_v52 = vld [vmem:[#allocation2] sm:$0xf]  ;;  %v11584_v57 = vld [vmem:[#allocation5 + $0x4ac] sm:$0xf0]  ;;  %v8693_v2 = vor.u32 %v11684_v51, %v8692_v50  ;;  %4963 = vmatpush.bf16.msrb.mxu1 %v8437_v60 }
  0x49   :  { %v11422_v53 = vld [vmem:[#allocation2 + $0x5c] sm:$0xf0]  ;;  %v11616_v63 = vld [vmem:[#allocation5 + $0x5ac] sm:$0xf0]  ;;  %4977 = vmatpush.bf16.msrb.mxu2 %v8565_v61 }
  0x4a   :  { %v8292_v56 = vld [vmem:[#allocation5 + $0x4a0] sm:$0xf]  ;;  %v12661_v58 = vor.u32 %v11422_v53, %v7604_v52  ;;  %v11648_v3 = vld [vmem:[#allocation5 + $0x6ac] sm:$0xf0]  ;;  %4991 = vmatpush.bf16.msrb.mxu3 %v8693_v2 }
  0x4b   :  { %v8420_v62 = vld [vmem:[#allocation5 + $0x5a0] sm:$0xf]  ;;  %v11680_v5 = vld [vmem:[#allocation5 + $0x7ac] sm:$0xf0]  ;;  %v8293_v9 = vor.u32 %v11584_v57, %v8292_v56 }
  0x4c   :  { %v8548_v0 = vld [vmem:[#allocation5 + $0x6a0] sm:$0xf]  ;;  %4900 = vmatmul.bf16.vlgmr.msra.gmra.mxu0 %v12661_v58  ;;  %v8421_v12 = vor.u32 %v11616_v63, %v8420_v62  ;;  %v11580_v15 = vld [vmem:[#allocation5 + $0x48c] sm:$0xf0] }
  0x4d   :  { %v8676_v4 = vld [vmem:[#allocation5 + $0x7a0] sm:$0xf]  ;;  %v8549_v13 = vor.u32 %v11648_v3, %v8548_v0  ;;  %v11612_v19 = vld [vmem:[#allocation5 + $0x58c] sm:$0xf0]  ;;  %4950 = vmatpush.bf16.msrb.mxu0 %v8293_v9 }
  0x4e   :  { %v8276_v14 = vld [vmem:[#allocation5 + $0x480] sm:$0xf]  ;;  %v8677_v18 = vor.u32 %v11680_v5, %v8676_v4  ;;  %v11644_v21 = vld [vmem:[#allocation5 + $0x68c] sm:$0xf0]  ;;  %4964 = vmatpush.bf16.msrb.mxu1 %v8421_v12 }
  0x4f   :  { %v8404_v16 = vld [vmem:[#allocation5 + $0x580] sm:$0xf]  ;;  %v11676_v23 = vld [vmem:[#allocation5 + $0x78c] sm:$0xf0]  ;;  %v8277_v24 = vor.u32 %v11580_v15, %v8276_v14  ;;  %4978 = vmatpush.bf16.msrb.mxu2 %v8549_v13 }
  0x50   :  { %v8532_v20 = vld [vmem:[#allocation5 + $0x680] sm:$0xf]  ;;  %v8405_v25 = vor.u32 %v11612_v19, %v8404_v16  ;;  %v11576_v28 = vld [vmem:[#allocation5 + $0x46c] sm:$0xf0]  ;;  %4992 = vmatpush.bf16.msrb.mxu3 %v8677_v18 }
  0x51   :  { %v8660_v22 = vld [vmem:[#allocation5 + $0x780] sm:$0xf]  ;;  %v8533_v26 = vor.u32 %v11644_v21, %v8532_v20  ;;  %v11608_v31 = vld [vmem:[#allocation5 + $0x56c] sm:$0xf0]  ;;  %4951 = vmatpush.bf16.msrb.mxu0 %v8277_v24 }
  0x52   :  { %v8260_v27 = vld [vmem:[#allocation5 + $0x460] sm:$0xf]  ;;  %v8661_v30 = vor.u32 %v11676_v23, %v8660_v22  ;;  %v11640_v33 = vld [vmem:[#allocation5 + $0x66c] sm:$0xf0]  ;;  %4965 = vmatpush.bf16.msrb.mxu1 %v8405_v25  ;;  %v7628_v25 = vld [vmem:[#allocation2 + $0x18] sm:$0xf] }
  0x53   :  { %v8388_v29 = vld [vmem:[#allocation5 + $0x560] sm:$0xf]  ;;  %v11672_v35 = vld [vmem:[#allocation5 + $0x76c] sm:$0xf0]  ;;  %v8261_v36 = vor.u32 %v11576_v28, %v8260_v27  ;;  %4979 = vmatpush.bf16.msrb.mxu2 %v8533_v26  ;;  %v11425_v26 = vld [vmem:[#allocation2 + $0x74] sm:$0xf0] }
  0x54   :  { %v8516_v32 = vld [vmem:[#allocation5 + $0x660] sm:$0xf]  ;;  %v8389_v37 = vor.u32 %v11608_v31, %v8388_v29  ;;  %v11572_v40 = vld [vmem:[#allocation5 + $0x44c] sm:$0xf0]  ;;  %4993 = vmatpush.bf16.msrb.mxu3 %v8661_v30  ;;  %v11412_v27 = vld [vmem:[#allocation2 + $0x14] sm:$0xf] }
  0x55   :  { %v8644_v34 = vld [vmem:[#allocation5 + $0x760] sm:$0xf]  ;;  %v8517_v38 = vor.u32 %v11640_v33, %v8516_v32  ;;  %v11604_v43 = vld [vmem:[#allocation5 + $0x54c] sm:$0xf0]  ;;  %4952 = vmatpush.bf16.msrb.mxu0 %v8261_v36  ;;  %v7622_v30 = vld [vmem:[#allocation2 + $0x70] sm:$0xf0] }
  0x56   :  { %v8244_v39 = vld [vmem:[#allocation5 + $0x440] sm:$0xf]  ;;  %v8645_v42 = vor.u32 %v11672_v35, %v8644_v34  ;;  %v11636_v45 = vld [vmem:[#allocation5 + $0x64c] sm:$0xf0]  ;;  %4966 = vmatpush.bf16.msrb.mxu1 %v8389_v37  ;;  %v11413_v31 = vld [vmem:[#allocation2 + $0x1c] sm:$0xf] }
  0x57   :  { %v8372_v41 = vld [vmem:[#allocation5 + $0x540] sm:$0xf]  ;;  %v11668_v47 = vld [vmem:[#allocation5 + $0x74c] sm:$0xf0]  ;;  %v8245_v48 = vor.u32 %v11572_v40, %v8244_v39  ;;  %4980 = vmatpush.bf16.msrb.mxu2 %v8517_v38  ;;  %v7630_v32 = vld [vmem:[#allocation2 + $0x78] sm:$0xf0] }
  0x58   :  { %v8500_v44 = vld [vmem:[#allocation5 + $0x640] sm:$0xf]  ;;  %v8373_v50 = vor.u32 %v11604_v43, %v8372_v41  ;;  %v11568_v52 = vld [vmem:[#allocation5 + $0x42c] sm:$0xf0]  ;;  %4994 = vmatpush.bf16.msrb.mxu3 %v8645_v42  ;;  %v12675_v43 = vor.u32 %v11425_v26, %v7628_v25 }
  0x59   :  { %v8628_v46 = vld [vmem:[#allocation5 + $0x740] sm:$0xf]  ;;  %v8501_v51 = vor.u32 %v11636_v45, %v8500_v44  ;;  %v11600_v54 = vld [vmem:[#allocation5 + $0x52c] sm:$0xf0]  ;;  %4953 = vmatpush.bf16.msrb.mxu0 %v8245_v48  ;;  %v12677_v44 = vor.u32 %v11412_v27, %v7622_v30 }
  0x5a   :  { %v8228_v49 = vld [vmem:[#allocation5 + $0x420] sm:$0xf]  ;;  %v8629_v55 = vor.u32 %v11668_v47, %v8628_v46  ;;  %v11632_v57 = vld [vmem:[#allocation5 + $0x62c] sm:$0xf0]  ;;  %4967 = vmatpush.bf16.msrb.mxu1 %v8373_v50  ;;  %v12679_v47 = vor.u32 %v11413_v31, %v7630_v32 }
  0x5b   :  { %v8356_v53 = vld [vmem:[#allocation5 + $0x520] sm:$0xf]  ;;  %v11664_v60 = vld [vmem:[#allocation5 + $0x72c] sm:$0xf0]  ;;  %v8229_v63 = vor.u32 %v11568_v52, %v8228_v49  ;;  %4981 = vmatpush.bf16.msrb.mxu2 %v8501_v51 }
  0x5c   :  { %v8484_v56 = vld [vmem:[#allocation5 + $0x620] sm:$0xf]  ;;  %v11564_v62 = vld [vmem:[#allocation5 + $0x40c] sm:$0xf0]  ;;  %v8357_v5 = vor.u32 %v11600_v54, %v8356_v53  ;;  %4995 = vmatpush.bf16.msrb.mxu3 %v8629_v55 }
  0x5d   :  { %v8612_v59 = vld [vmem:[#allocation5 + $0x720] sm:$0xf]  ;;  %v11596_v2 = vld [vmem:[#allocation5 + $0x50c] sm:$0xf0]  ;;  %v8485_v6 = vor.u32 %v11632_v57, %v8484_v56  ;;  %4954 = vmatpush.bf16.msrb.mxu0 %v8229_v63 }
  0x5e   :  { %v8212_v61 = vld [vmem:[#allocation5 + $0x400] sm:$0xf]  ;;  %v11628_v4 = vld [vmem:[#allocation5 + $0x60c] sm:$0xf0]  ;;  %v8613_v11 = vor.u32 %v11664_v60, %v8612_v59  ;;  %4968 = vmatpush.bf16.msrb.mxu1 %v8357_v5 }
  0x5f   :  { %v8340_v0 = vld [vmem:[#allocation5 + $0x500] sm:$0xf]  ;;  %v11660_v8 = vld [vmem:[#allocation5 + $0x70c] sm:$0xf0]  ;;  %v8213_v19 = vor.u32 %v11564_v62, %v8212_v61  ;;  %4982 = vmatpush.bf16.msrb.mxu2 %v8485_v6 }
  0x60   :  { %v8468_v3 = vld [vmem:[#allocation5 + $0x600] sm:$0xf]  ;;  %v11720_v12 = vld [vmem:[#allocation5 + $0x8ec] sm:$0xf0]  ;;  %v8341_v23 = vor.u32 %v11596_v2, %v8340_v0  ;;  %4996 = vmatpush.bf16.msrb.mxu3 %v8613_v11 }
  0x61   :  { %v8596_v7 = vld [vmem:[#allocation5 + $0x700] sm:$0xf]  ;;  %v11752_v14 = vld [vmem:[#allocation5 + $0x9ec] sm:$0xf0]  ;;  %v8469_v24 = vor.u32 %v11628_v4, %v8468_v3  ;;  %4955 = vmatpush.bf16.msrb.mxu0 %v8213_v19 }
  0x62   :  { %v8836_v9 = vld [vmem:[#allocation5 + $0x8e0] sm:$0xf]  ;;  %v11784_v16 = vld [vmem:[#allocation5 + $0xaec] sm:$0xf0]  ;;  %v8597_v28 = vor.u32 %v11660_v8, %v8596_v7  ;;  %4969 = vmatpush.bf16.msrb.mxu1 %v8341_v23 }
  0x63   :  { %v8964_v13 = vld [vmem:[#allocation5 + $0x9e0] sm:$0xf]  ;;  %v11816_v20 = vld [vmem:[#allocation5 + $0xbec] sm:$0xf0]  ;;  %v8837_v29 = vor.u32 %v11720_v12, %v8836_v9  ;;  %4983 = vmatpush.bf16.msrb.mxu2 %v8469_v24 }
  0x64   :  { %v9092_v15 = vld [vmem:[#allocation5 + $0xae0] sm:$0xf]  ;;  %v7620_v21 = vld [vmem:[#allocation2 + $0x10] sm:$0xf]  ;;  %v8965_v33 = vor.u32 %v11752_v14, %v8964_v13  ;;  %4997 = vmatpush.bf16.msrb.mxu3 %v8597_v28 }
  0x65   :  { %v9220_v18 = vld [vmem:[#allocation5 + $0xbe0] sm:$0xf]  ;;  %v11424_v22 = vld [vmem:[#allocation2 + $0x6c] sm:$0xf0]  ;;  %v9093_v34 = vor.u32 %v11784_v16, %v9092_v15  ;;  %5004 = vmatpush.bf16.msra.mxu0 %v8837_v29  ;;  %4970 = vmatmul.bf16.vlgmr.msrb.gmra.mxu1 %v12677_v44 }
  0x66   :  { %v8820_v35 = vld [vmem:[#allocation5 + $0x8c0] sm:$0xf]  ;;  %v11716_v36 = vld [vmem:[#allocation5 + $0x8cc] sm:$0xf0]  ;;  %v9221_v38 = vor.u32 %v11816_v20, %v9220_v18  ;;  %v12673_v39 = vor.u32 %v11424_v22, %v7620_v21  ;;  %5018 = vmatpush.bf16.msra.mxu1 %v8965_v33  ;;  %4984 = vmatmul.bf16.vlgmr.msrb.gmra.mxu2 %v12675_v43 }
  0x67   :  { %v8948_v37 = vld [vmem:[#allocation5 + $0x9c0] sm:$0xf]  ;;  %v11748_v40 = vld [vmem:[#allocation5 + $0x9cc] sm:$0xf0]  ;;  %v8821_v48 = vor.u32 %v11716_v36, %v8820_v35  ;;  %5032 = vmatpush.bf16.msra.mxu2 %v9093_v34  ;;  %4998 = vmatmul.bf16.vlgmr.msrb.gmra.mxu3 %v12679_v47 }
  0x68   :  { %v9076_v41 = vld [vmem:[#allocation5 + $0xac0] sm:$0xf]  ;;  %v11780_v42 = vld [vmem:[#allocation5 + $0xacc] sm:$0xf0]  ;;  %v8949_v49 = vor.u32 %v11748_v40, %v8948_v37  ;;  %5046 = vmatpush.bf16.msra.mxu3 %v9221_v38  ;;  %4956 = vmatmul.bf16.vlgmr.msrb.gmra.mxu0 %v12673_v39 }
  0x69   :  { %v9204_v45 = vld [vmem:[#allocation5 + $0xbc0] sm:$0xf]  ;;  %v11812_v46 = vld [vmem:[#allocation5 + $0xbcc] sm:$0xf0]  ;;  %v9077_v50 = vor.u32 %v11780_v42, %v9076_v41  ;;  %5005 = vmatpush.bf16.msra.mxu0 %v8821_v48 }
  0x6a   :  { %v8804_v51 = vld [vmem:[#allocation5 + $0x8a0] sm:$0xf]  ;;  %v11712_v52 = vld [vmem:[#allocation5 + $0x8ac] sm:$0xf0]  ;;  %v9205_v54 = vor.u32 %v11812_v46, %v9204_v45  ;;  %5019 = vmatpush.bf16.msra.mxu1 %v8949_v49 }
  0x6b   :  { %v8932_v53 = vld [vmem:[#allocation5 + $0x9a0] sm:$0xf]  ;;  %v11744_v55 = vld [vmem:[#allocation5 + $0x9ac] sm:$0xf0]  ;;  %v8805_v61 = vor.u32 %v11712_v52, %v8804_v51  ;;  %5033 = vmatpush.bf16.msra.mxu2 %v9077_v50 }
  0x6c   :  { %v9060_v56 = vld [vmem:[#allocation5 + $0xaa0] sm:$0xf]  ;;  %v11776_v57 = vld [vmem:[#allocation5 + $0xaac] sm:$0xf0]  ;;  %v8933_v62 = vor.u32 %v11744_v55, %v8932_v53  ;;  %5047 = vmatpush.bf16.msra.mxu3 %v9205_v54 }
  0x6d   :  { %v9188_v59 = vld [vmem:[#allocation5 + $0xba0] sm:$0xf]  ;;  %v11808_v60 = vld [vmem:[#allocation5 + $0xbac] sm:$0xf0]  ;;  %v9061_v63 = vor.u32 %v11776_v57, %v9060_v56  ;;  %5006 = vmatpush.bf16.msra.mxu0 %v8805_v61 }
  0x6e   :  { %v8788_v0 = vld [vmem:[#allocation5 + $0x880] sm:$0xf]  ;;  %v11708_v2 = vld [vmem:[#allocation5 + $0x88c] sm:$0xf0]  ;;  %v9189_v4 = vor.u32 %v11808_v60, %v9188_v59  ;;  %5020 = vmatpush.bf16.msra.mxu1 %v8933_v62 }
  0x6f   :  { %v8916_v3 = vld [vmem:[#allocation5 + $0x980] sm:$0xf]  ;;  %v11740_v5 = vld [vmem:[#allocation5 + $0x98c] sm:$0xf0]  ;;  %v8789_v11 = vor.u32 %v11708_v2, %v8788_v0  ;;  %5034 = vmatpush.bf16.msra.mxu2 %v9061_v63 }
  0x70   :  { %v9044_v6 = vld [vmem:[#allocation5 + $0xa80] sm:$0xf]  ;;  %v11772_v7 = vld [vmem:[#allocation5 + $0xa8c] sm:$0xf0]  ;;  %v8917_v12 = vor.u32 %v11740_v5, %v8916_v3  ;;  %5048 = vmatpush.bf16.msra.mxu3 %v9189_v4 }
  0x71   :  { %v9172_v8 = vld [vmem:[#allocation5 + $0xb80] sm:$0xf]  ;;  %v11804_v9 = vld [vmem:[#allocation5 + $0xb8c] sm:$0xf0]  ;;  %v9045_v13 = vor.u32 %v11772_v7, %v9044_v6  ;;  %5007 = vmatpush.bf16.msra.mxu0 %v8789_v11 }
  0x72   :  { %v8772_v14 = vld [vmem:[#allocation5 + $0x860] sm:$0xf]  ;;  %v11704_v15 = vld [vmem:[#allocation5 + $0x86c] sm:$0xf0]  ;;  %v9173_v18 = vor.u32 %v11804_v9, %v9172_v8  ;;  %5021 = vmatpush.bf16.msra.mxu1 %v8917_v12 }
  0x73   :  { %v8900_v16 = vld [vmem:[#allocation5 + $0x960] sm:$0xf]  ;;  %v11736_v19 = vld [vmem:[#allocation5 + $0x96c] sm:$0xf0]  ;;  %v8773_v24 = vor.u32 %v11704_v15, %v8772_v14  ;;  %5035 = vmatpush.bf16.msra.mxu2 %v9045_v13 }
  0x74   :  { %v9028_v20 = vld [vmem:[#allocation5 + $0xa60] sm:$0xf]  ;;  %v11768_v21 = vld [vmem:[#allocation5 + $0xa6c] sm:$0xf0]  ;;  %v8901_v25 = vor.u32 %v11736_v19, %v8900_v16  ;;  %5049 = vmatpush.bf16.msra.mxu3 %v9173_v18  ;;  %v7644_v16 = vld [vmem:[#allocation2 + $0x28] sm:$0xf] }
  0x75   :  { %v9156_v22 = vld [vmem:[#allocation5 + $0xb60] sm:$0xf]  ;;  %v11800_v23 = vld [vmem:[#allocation5 + $0xb6c] sm:$0xf0]  ;;  %v9029_v26 = vor.u32 %v11768_v21, %v9028_v20  ;;  %5008 = vmatpush.bf16.msra.mxu0 %v8773_v24  ;;  %v11427_v18 = vld [vmem:[#allocation2 + $0x84] sm:$0xf0] }
  0x76   :  { %v8756_v27 = vld [vmem:[#allocation5 + $0x840] sm:$0xf]  ;;  %v11700_v28 = vld [vmem:[#allocation5 + $0x84c] sm:$0xf0]  ;;  %v9157_v30 = vor.u32 %v11800_v23, %v9156_v22  ;;  %5022 = vmatpush.bf16.msra.mxu1 %v8901_v25  ;;  %v11414_v19 = vld [vmem:[#allocation2 + $0x24] sm:$0xf] }
  0x77   :  { %v8884_v29 = vld [vmem:[#allocation5 + $0x940] sm:$0xf]  ;;  %v11732_v31 = vld [vmem:[#allocation5 + $0x94c] sm:$0xf0]  ;;  %v8757_v36 = vor.u32 %v11700_v28, %v8756_v27  ;;  %5036 = vmatpush.bf16.msra.mxu2 %v9029_v26  ;;  %v7638_v22 = vld [vmem:[#allocation2 + $0x80] sm:$0xf0] }
  0x78   :  { %v9012_v32 = vld [vmem:[#allocation5 + $0xa40] sm:$0xf]  ;;  %v11764_v33 = vld [vmem:[#allocation5 + $0xa4c] sm:$0xf0]  ;;  %v8885_v38 = vor.u32 %v11732_v31, %v8884_v29  ;;  %5050 = vmatpush.bf16.msra.mxu3 %v9157_v30  ;;  %v11415_v23 = vld [vmem:[#allocation2 + $0x2c] sm:$0xf] }
  0x79   :  { %v9140_v34 = vld [vmem:[#allocation5 + $0xb40] sm:$0xf]  ;;  %v11796_v35 = vld [vmem:[#allocation5 + $0xb4c] sm:$0xf0]  ;;  %v9013_v40 = vor.u32 %v11764_v33, %v9012_v32  ;;  %5009 = vmatpush.bf16.msra.mxu0 %v8757_v36  ;;  %v7646_v24 = vld [vmem:[#allocation2 + $0x88] sm:$0xf0]  ;;  %v12689_v36 = vor.u32 %v11414_v19, %v7638_v22 }
  0x7a   :  { %v8740_v37 = vld [vmem:[#allocation5 + $0x820] sm:$0xf]  ;;  %v11696_v41 = vld [vmem:[#allocation5 + $0x82c] sm:$0xf0]  ;;  %v9141_v46 = vor.u32 %v11796_v35, %v9140_v34  ;;  %5023 = vmatpush.bf16.msra.mxu1 %v8885_v38  ;;  %v12687_v35 = vor.u32 %v11427_v18, %v7644_v16 }
  0x7b   :  { %v8868_v42 = vld [vmem:[#allocation5 + $0x920] sm:$0xf]  ;;  %v11728_v45 = vld [vmem:[#allocation5 + $0x92c] sm:$0xf0]  ;;  %v8741_v54 = vor.u32 %v11696_v41, %v8740_v37  ;;  %5037 = vmatpush.bf16.msra.mxu2 %v9013_v40  ;;  %v12691_v40 = vor.u32 %v11415_v23, %v7646_v24 }
  0x7c   :  { %v8996_v48 = vld [vmem:[#allocation5 + $0xa20] sm:$0xf]  ;;  %v11760_v49 = vld [vmem:[#allocation5 + $0xa2c] sm:$0xf0]  ;;  %v8869_v60 = vor.u32 %v11728_v45, %v8868_v42  ;;  %5051 = vmatpush.bf16.msra.mxu3 %v9141_v46 }
  0x7d   :  { %v9124_v50 = vld [vmem:[#allocation5 + $0xb20] sm:$0xf]  ;;  %v11792_v51 = vld [vmem:[#allocation5 + $0xb2c] sm:$0xf0]  ;;  %v8997_v61 = vor.u32 %v11760_v49, %v8996_v48  ;;  %5010 = vmatpush.bf16.msra.mxu0 %v8741_v54 }
  0x7e   :  { %v8724_v52 = vld [vmem:[#allocation5 + $0x800] sm:$0xf]  ;;  %v11692_v53 = vld [vmem:[#allocation5 + $0x80c] sm:$0xf0]  ;;  %v9125_v2 = vor.u32 %v11792_v51, %v9124_v50  ;;  %5024 = vmatpush.bf16.msra.mxu1 %v8869_v60 }
  0x7f   :  { %v8852_v55 = vld [vmem:[#allocation5 + $0x900] sm:$0xf]  ;;  %v11724_v56 = vld [vmem:[#allocation5 + $0x90c] sm:$0xf0]  ;;  %v8725_v9 = vor.u32 %v11692_v53, %v8724_v52  ;;  %5038 = vmatpush.bf16.msra.mxu2 %v8997_v61 }
  0x80   :  { %v8980_v57 = vld [vmem:[#allocation5 + $0xa00] sm:$0xf]  ;;  %v11756_v59 = vld [vmem:[#allocation5 + $0xa0c] sm:$0xf0]  ;;  %v8853_v14 = vor.u32 %v11724_v56, %v8852_v55  ;;  %5052 = vmatpush.bf16.msra.mxu3 %v9125_v2 }
  0x81   :  { %v9108_v62 = vld [vmem:[#allocation5 + $0xb00] sm:$0xf]  ;;  %v11788_v63 = vld [vmem:[#allocation5 + $0xb0c] sm:$0xf0]  ;;  %v8981_v15 = vor.u32 %v11756_v59, %v8980_v57  ;;  %5011 = vmatpush.bf16.msra.mxu0 %v8725_v9 }
  0x82   :  { %v9348_v0 = vld [vmem:[#allocation5 + $0xce0] sm:$0xf]  ;;  %v11848_v3 = vld [vmem:[#allocation5 + $0xcec] sm:$0xf0]  ;;  %v9109_v20 = vor.u32 %v11788_v63, %v9108_v62  ;;  %5025 = vmatpush.bf16.msra.mxu1 %v8853_v14 }
  0x83   :  { %v9476_v4 = vld [vmem:[#allocation5 + $0xde0] sm:$0xf]  ;;  %v11880_v5 = vld [vmem:[#allocation5 + $0xdec] sm:$0xf0]  ;;  %v9349_v21 = vor.u32 %v11848_v3, %v9348_v0  ;;  %5039 = vmatpush.bf16.msra.mxu2 %v8981_v15 }
  0x84   :  { %v9604_v6 = vld [vmem:[#allocation5 + $0xee0] sm:$0xf]  ;;  %v11912_v7 = vld [vmem:[#allocation5 + $0xeec] sm:$0xf0]  ;;  %v9477_v25 = vor.u32 %v11880_v5, %v9476_v4  ;;  %5053 = vmatpush.bf16.msra.mxu3 %v9109_v20 }
  0x85   :  { %v9732_v8 = vld [vmem:[#allocation5 + $0xfe0] sm:$0xf]  ;;  %v11944_v11 = vld [vmem:[#allocation5 + $0xfec] sm:$0xf0]  ;;  %v9605_v26 = vor.u32 %v11912_v7, %v9604_v6  ;;  %5060 = vmatpush.bf16.msrb.mxu0 %v9349_v21  ;;  %5026 = vmatmul.bf16.vlgmr.msra.gmra.mxu1 %v12689_v36 }
  0x86   :  { %v7636_v12 = vld [vmem:[#allocation2 + $0x20] sm:$0xf]  ;;  %v11844_v28 = vld [vmem:[#allocation5 + $0xccc] sm:$0xf0]  ;;  %v9733_v30 = vor.u32 %v11944_v11, %v9732_v8  ;;  %5074 = vmatpush.bf16.msrb.mxu1 %v9477_v25  ;;  %5040 = vmatmul.bf16.vlgmr.msra.gmra.mxu2 %v12687_v35 }
  0x87   :  { %v11426_v13 = vld [vmem:[#allocation2 + $0x7c] sm:$0xf0]  ;;  %v11876_v32 = vld [vmem:[#allocation5 + $0xdcc] sm:$0xf0]  ;;  %5088 = vmatpush.bf16.msrb.mxu2 %v9605_v26  ;;  %5054 = vmatmul.bf16.vlgmr.msra.gmra.mxu3 %v12691_v40 }
  0x88   :  { %v9332_v27 = vld [vmem:[#allocation5 + $0xcc0] sm:$0xf]  ;;  %v12685_v31 = vor.u32 %v11426_v13, %v7636_v12  ;;  %v11908_v34 = vld [vmem:[#allocation5 + $0xecc] sm:$0xf0]  ;;  %5102 = vmatpush.bf16.msrb.mxu3 %v9733_v30 }
  0x89   :  { %v9460_v29 = vld [vmem:[#allocation5 + $0xdc0] sm:$0xf]  ;;  %v11940_v38 = vld [vmem:[#allocation5 + $0xfcc] sm:$0xf0]  ;;  %v9333_v41 = vor.u32 %v11844_v28, %v9332_v27 }
  0x8a   :  { %v9588_v33 = vld [vmem:[#allocation5 + $0xec0] sm:$0xf]  ;;  %v9461_v42 = vor.u32 %v11876_v32, %v9460_v29  ;;  %v11840_v48 = vld [vmem:[#allocation5 + $0xcac] sm:$0xf0]  ;;  %5012 = vmatmul.bf16.vlgmr.msra.gmra.mxu0 %v12685_v31 }
  0x8b   :  { %v9716_v37 = vld [vmem:[#allocation5 + $0xfc0] sm:$0xf]  ;;  %v9589_v45 = vor.u32 %v11908_v34, %v9588_v33  ;;  %v11872_v51 = vld [vmem:[#allocation5 + $0xdac] sm:$0xf0]  ;;  %5061 = vmatpush.bf16.msrb.mxu0 %v9333_v41 }
  0x8c   :  { %v9316_v46 = vld [vmem:[#allocation5 + $0xca0] sm:$0xf]  ;;  %v9717_v50 = vor.u32 %v11940_v38, %v9716_v37  ;;  %v11904_v53 = vld [vmem:[#allocation5 + $0xeac] sm:$0xf0]  ;;  %5075 = vmatpush.bf16.msrb.mxu1 %v9461_v42 }
  0x8d   :  { %v9444_v49 = vld [vmem:[#allocation5 + $0xda0] sm:$0xf]  ;;  %v11936_v55 = vld [vmem:[#allocation5 + $0xfac] sm:$0xf0]  ;;  %v9317_v56 = vor.u32 %v11840_v48, %v9316_v46  ;;  %5089 = vmatpush.bf16.msrb.mxu2 %v9589_v45 }
  0x8e   :  { %v9572_v52 = vld [vmem:[#allocation5 + $0xea0] sm:$0xf]  ;;  %v9445_v57 = vor.u32 %v11872_v51, %v9444_v49  ;;  %v11836_v61 = vld [vmem:[#allocation5 + $0xc8c] sm:$0xf0]  ;;  %5103 = vmatpush.bf16.msrb.mxu3 %v9717_v50 }
  0x8f   :  { %v9700_v54 = vld [vmem:[#allocation5 + $0xfa0] sm:$0xf]  ;;  %v9573_v59 = vor.u32 %v11904_v53, %v9572_v52  ;;  %v11868_v0 = vld [vmem:[#allocation5 + $0xd8c] sm:$0xf0]  ;;  %5062 = vmatpush.bf16.msrb.mxu0 %v9317_v56 }
  0x90   :  { %v9300_v60 = vld [vmem:[#allocation5 + $0xc80] sm:$0xf]  ;;  %v9701_v63 = vor.u32 %v11936_v55, %v9700_v54  ;;  %v11900_v3 = vld [vmem:[#allocation5 + $0xe8c] sm:$0xf0]  ;;  %5076 = vmatpush.bf16.msrb.mxu1 %v9445_v57 }
  0x91   :  { %v9428_v62 = vld [vmem:[#allocation5 + $0xd80] sm:$0xf]  ;;  %v11932_v5 = vld [vmem:[#allocation5 + $0xf8c] sm:$0xf0]  ;;  %v9301_v6 = vor.u32 %v11836_v61, %v9300_v60  ;;  %5090 = vmatpush.bf16.msrb.mxu2 %v9573_v59 }
  0x92   :  { %v9556_v2 = vld [vmem:[#allocation5 + $0xe80] sm:$0xf]  ;;  %v9429_v7 = vor.u32 %v11868_v0, %v9428_v62  ;;  %v11832_v11 = vld [vmem:[#allocation5 + $0xc6c] sm:$0xf0]  ;;  %5104 = vmatpush.bf16.msrb.mxu3 %v9701_v63 }
  0x93   :  { %v9684_v4 = vld [vmem:[#allocation5 + $0xf80] sm:$0xf]  ;;  %v9557_v8 = vor.u32 %v11900_v3, %v9556_v2  ;;  %v11864_v14 = vld [vmem:[#allocation5 + $0xd6c] sm:$0xf0]  ;;  %5063 = vmatpush.bf16.msrb.mxu0 %v9301_v6 }
  0x94   :  { %v9284_v9 = vld [vmem:[#allocation5 + $0xc60] sm:$0xf]  ;;  %v9685_v13 = vor.u32 %v11932_v5, %v9684_v4  ;;  %v11896_v16 = vld [vmem:[#allocation5 + $0xe6c] sm:$0xf0]  ;;  %5077 = vmatpush.bf16.msrb.mxu1 %v9429_v7 }
  0x95   :  { %v9412_v12 = vld [vmem:[#allocation5 + $0xd60] sm:$0xf]  ;;  %v11928_v19 = vld [vmem:[#allocation5 + $0xf6c] sm:$0xf0]  ;;  %v9285_v20 = vor.u32 %v11832_v11, %v9284_v9  ;;  %5091 = vmatpush.bf16.msrb.mxu2 %v9557_v8 }
  0x96   :  { %v9540_v15 = vld [vmem:[#allocation5 + $0xe60] sm:$0xf]  ;;  %v9413_v21 = vor.u32 %v11864_v14, %v9412_v12  ;;  %v11828_v24 = vld [vmem:[#allocation5 + $0xc4c] sm:$0xf0]  ;;  %5105 = vmatpush.bf16.msrb.mxu3 %v9685_v13 }
  0x97   :  { %v9668_v18 = vld [vmem:[#allocation5 + $0xf60] sm:$0xf]  ;;  %v9541_v22 = vor.u32 %v11896_v16, %v9540_v15  ;;  %v11860_v27 = vld [vmem:[#allocation5 + $0xd4c] sm:$0xf0]  ;;  %5064 = vmatpush.bf16.msrb.mxu0 %v9285_v20  ;;  %v7660_v16 = vld [vmem:[#allocation2 + $0x38] sm:$0xf] }
  0x98   :  { %v9268_v23 = vld [vmem:[#allocation5 + $0xc40] sm:$0xf]  ;;  %v9669_v26 = vor.u32 %v11928_v19, %v9668_v18  ;;  %v11892_v29 = vld [vmem:[#allocation5 + $0xe4c] sm:$0xf0]  ;;  %5078 = vmatpush.bf16.msrb.mxu1 %v9413_v21  ;;  %v11429_v18 = vld [vmem:[#allocation2 + $0x94] sm:$0xf0] }
  0x99   :  { %v9396_v25 = vld [vmem:[#allocation5 + $0xd40] sm:$0xf]  ;;  %v11924_v32 = vld [vmem:[#allocation5 + $0xf4c] sm:$0xf0]  ;;  %v9269_v33 = vor.u32 %v11828_v24, %v9268_v23  ;;  %5092 = vmatpush.bf16.msrb.mxu2 %v9541_v22  ;;  %v11416_v19 = vld [vmem:[#allocation2 + $0x34] sm:$0xf] }
  0x9a   :  { %v9524_v28 = vld [vmem:[#allocation5 + $0xe40] sm:$0xf]  ;;  %v11824_v37 = vld [vmem:[#allocation5 + $0xc2c] sm:$0xf0]  ;;  %v9397_v38 = vor.u32 %v11860_v27, %v9396_v25  ;;  %5106 = vmatpush.bf16.msrb.mxu3 %v9669_v26  ;;  %v7654_v22 = vld [vmem:[#allocation2 + $0x90] sm:$0xf0] }
  0x9b   :  { %v9652_v30 = vld [vmem:[#allocation5 + $0xf40] sm:$0xf]  ;;  %v9525_v41 = vor.u32 %v11892_v29, %v9524_v28  ;;  %v11856_v45 = vld [vmem:[#allocation5 + $0xd2c] sm:$0xf0]  ;;  %5065 = vmatpush.bf16.msrb.mxu0 %v9269_v33  ;;  %v11417_v23 = vld [vmem:[#allocation2 + $0x3c] sm:$0xf] }
  0x9c   :  { %v9252_v34 = vld [vmem:[#allocation5 + $0xc20] sm:$0xf]  ;;  %v9653_v48 = vor.u32 %v11924_v32, %v9652_v30  ;;  %v11888_v49 = vld [vmem:[#allocation5 + $0xe2c] sm:$0xf0]  ;;  %5079 = vmatpush.bf16.msrb.mxu1 %v9397_v38  ;;  %v7662_v24 = vld [vmem:[#allocation2 + $0x98] sm:$0xf0]  ;;  %v12699_v38 = vor.u32 %v11429_v18, %v7660_v16 }
  0x9d   :  { %v9380_v42 = vld [vmem:[#allocation5 + $0xd20] sm:$0xf]  ;;  %v11920_v51 = vld [vmem:[#allocation5 + $0xf2c] sm:$0xf0]  ;;  %v9253_v54 = vor.u32 %v11824_v37, %v9252_v34  ;;  %5093 = vmatpush.bf16.msrb.mxu2 %v9525_v41  ;;  %v12701_v41 = vor.u32 %v11416_v19, %v7654_v22 }
  0x9e   :  { %v9508_v46 = vld [vmem:[#allocation5 + $0xe20] sm:$0xf]  ;;  %v11820_v53 = vld [vmem:[#allocation5 + $0xc0c] sm:$0xf0]  ;;  %v9381_v60 = vor.u32 %v11856_v45, %v9380_v42  ;;  %5107 = vmatpush.bf16.msrb.mxu3 %v9653_v48 }
  0x9f   :  { %v9636_v50 = vld [vmem:[#allocation5 + $0xf20] sm:$0xf]  ;;  %v11852_v56 = vld [vmem:[#allocation5 + $0xd0c] sm:$0xf0]  ;;  %v9509_v61 = vor.u32 %v11888_v49, %v9508_v46  ;;  %5066 = vmatpush.bf16.msrb.mxu0 %v9253_v54  ;;  %v12703_v46 = vor.u32 %v11417_v23, %v7662_v24 }
  0xa0   :  { %v9236_v52 = vld [vmem:[#allocation5 + $0xc00] sm:$0xf]  ;;  %v11884_v59 = vld [vmem:[#allocation5 + $0xe0c] sm:$0xf0]  ;;  %v9637_v2 = vor.u32 %v11920_v51, %v9636_v50  ;;  %5080 = vmatpush.bf16.msrb.mxu1 %v9381_v60 }
  0xa1   :  { %v9364_v55 = vld [vmem:[#allocation5 + $0xd00] sm:$0xf]  ;;  %v11916_v63 = vld [vmem:[#allocation5 + $0xf0c] sm:$0xf0]  ;;  %v9237_v9 = vor.u32 %v11820_v53, %v9236_v52  ;;  %5094 = vmatpush.bf16.msrb.mxu2 %v9509_v61 }
  0xa2   :  { %v9492_v57 = vld [vmem:[#allocation5 + $0xe00] sm:$0xf]  ;;  %v11976_v3 = vld [vmem:[#allocation5 + $0x10ec] sm:$0xf0]  ;;  %v9365_v14 = vor.u32 %v11852_v56, %v9364_v55  ;;  %5108 = vmatpush.bf16.msrb.mxu3 %v9637_v2 }
  0xa3   :  { %v9620_v62 = vld [vmem:[#allocation5 + $0xf00] sm:$0xf]  ;;  %v12008_v5 = vld [vmem:[#allocation5 + $0x11ec] sm:$0xf0]  ;;  %v9493_v15 = vor.u32 %v11884_v59, %v9492_v57  ;;  %5067 = vmatpush.bf16.msrb.mxu0 %v9237_v9 }
  0xa4   :  { %v9860_v0 = vld [vmem:[#allocation5 + $0x10e0] sm:$0xf]  ;;  %v12040_v7 = vld [vmem:[#allocation5 + $0x12ec] sm:$0xf0]  ;;  %v9621_v20 = vor.u32 %v11916_v63, %v9620_v62  ;;  %5081 = vmatpush.bf16.msrb.mxu1 %v9365_v14 }
  0xa5   :  { %v9988_v4 = vld [vmem:[#allocation5 + $0x11e0] sm:$0xf]  ;;  %v12072_v11 = vld [vmem:[#allocation5 + $0x13ec] sm:$0xf0]  ;;  %v9861_v21 = vor.u32 %v11976_v3, %v9860_v0  ;;  %5095 = vmatpush.bf16.msrb.mxu2 %v9493_v15 }
  0xa6   :  { %v10116_v6 = vld [vmem:[#allocation5 + $0x12e0] sm:$0xf]  ;;  %v7652_v12 = vld [vmem:[#allocation2 + $0x30] sm:$0xf]  ;;  %v9989_v25 = vor.u32 %v12008_v5, %v9988_v4  ;;  %5109 = vmatpush.bf16.msrb.mxu3 %v9621_v20 }
  0xa7   :  { %v10244_v8 = vld [vmem:[#allocation5 + $0x13e0] sm:$0xf]  ;;  %v11428_v13 = vld [vmem:[#allocation2 + $0x8c] sm:$0xf0]  ;;  %v10117_v26 = vor.u32 %v12040_v7, %v10116_v6  ;;  %5116 = vmatpush.bf16.msra.mxu0 %v9861_v21  ;;  %5082 = vmatmul.bf16.vlgmr.msrb.gmra.mxu1 %v12701_v41 }
  0xa8   :  { %v9844_v27 = vld [vmem:[#allocation5 + $0x10c0] sm:$0xf]  ;;  %v11972_v28 = vld [vmem:[#allocation5 + $0x10cc] sm:$0xf0]  ;;  %v10245_v30 = vor.u32 %v12072_v11, %v10244_v8  ;;  %v12697_v32 = vor.u32 %v11428_v13, %v7652_v12  ;;  %5130 = vmatpush.bf16.msra.mxu1 %v9989_v25  ;;  %5096 = vmatmul.bf16.vlgmr.msrb.gmra.mxu2 %v12699_v38 }
  0xa9   :  { %v9972_v29 = vld [vmem:[#allocation5 + $0x11c0] sm:$0xf]  ;;  %v12004_v33 = vld [vmem:[#allocation5 + $0x11cc] sm:$0xf0]  ;;  %v9845_v48 = vor.u32 %v11972_v28, %v9844_v27  ;;  %5144 = vmatpush.bf16.msra.mxu2 %v10117_v26  ;;  %5110 = vmatmul.bf16.vlgmr.msrb.gmra.mxu3 %v12703_v46 }
  0xaa   :  { %v10100_v34 = vld [vmem:[#allocation5 + $0x12c0] sm:$0xf]  ;;  %v12036_v37 = vld [vmem:[#allocation5 + $0x12cc] sm:$0xf0]  ;;  %v9973_v49 = vor.u32 %v12004_v33, %v9972_v29  ;;  %5158 = vmatpush.bf16.msra.mxu3 %v10245_v30  ;;  %5068 = vmatmul.bf16.vlgmr.msrb.gmra.mxu0 %v12697_v32 }
  0xab   :  { %v10228_v42 = vld [vmem:[#allocation5 + $0x13c0] sm:$0xf]  ;;  %v12068_v45 = vld [vmem:[#allocation5 + $0x13cc] sm:$0xf0]  ;;  %v10101_v50 = vor.u32 %v12036_v37, %v10100_v34  ;;  %5117 = vmatpush.bf16.msra.mxu0 %v9845_v48 }
  0xac   :  { %v9828_v51 = vld [vmem:[#allocation5 + $0x10a0] sm:$0xf]  ;;  %v11968_v52 = vld [vmem:[#allocation5 + $0x10ac] sm:$0xf0]  ;;  %v10229_v54 = vor.u32 %v12068_v45, %v10228_v42  ;;  %5131 = vmatpush.bf16.msra.mxu1 %v9973_v49 }
  0xad   :  { %v9956_v53 = vld [vmem:[#allocation5 + $0x11a0] sm:$0xf]  ;;  %v12000_v55 = vld [vmem:[#allocation5 + $0x11ac] sm:$0xf0]  ;;  %v9829_v61 = vor.u32 %v11968_v52, %v9828_v51  ;;  %5145 = vmatpush.bf16.msra.mxu2 %v10101_v50 }
  0xae   :  { %v10084_v56 = vld [vmem:[#allocation5 + $0x12a0] sm:$0xf]  ;;  %v12032_v57 = vld [vmem:[#allocation5 + $0x12ac] sm:$0xf0]  ;;  %v9957_v62 = vor.u32 %v12000_v55, %v9956_v53  ;;  %5159 = vmatpush.bf16.msra.mxu3 %v10229_v54 }
  0xaf   :  { %v10212_v59 = vld [vmem:[#allocation5 + $0x13a0] sm:$0xf]  ;;  %v12064_v60 = vld [vmem:[#allocation5 + $0x13ac] sm:$0xf0]  ;;  %v10085_v63 = vor.u32 %v12032_v57, %v10084_v56  ;;  %5118 = vmatpush.bf16.msra.mxu0 %v9829_v61 }
  0xb0   :  { %v9812_v0 = vld [vmem:[#allocation5 + $0x1080] sm:$0xf]  ;;  %v11964_v2 = vld [vmem:[#allocation5 + $0x108c] sm:$0xf0]  ;;  %v10213_v4 = vor.u32 %v12064_v60, %v10212_v59  ;;  %5132 = vmatpush.bf16.msra.mxu1 %v9957_v62 }
  0xb1   :  { %v9940_v3 = vld [vmem:[#allocation5 + $0x1180] sm:$0xf]  ;;  %v11996_v5 = vld [vmem:[#allocation5 + $0x118c] sm:$0xf0]  ;;  %v9813_v11 = vor.u32 %v11964_v2, %v9812_v0  ;;  %5146 = vmatpush.bf16.msra.mxu2 %v10085_v63 }
  0xb2   :  { %v10068_v6 = vld [vmem:[#allocation5 + $0x1280] sm:$0xf]  ;;  %v12028_v7 = vld [vmem:[#allocation5 + $0x128c] sm:$0xf0]  ;;  %v9941_v12 = vor.u32 %v11996_v5, %v9940_v3  ;;  %5160 = vmatpush.bf16.msra.mxu3 %v10213_v4 }
  0xb3   :  { %v10196_v8 = vld [vmem:[#allocation5 + $0x1380] sm:$0xf]  ;;  %v12060_v9 = vld [vmem:[#allocation5 + $0x138c] sm:$0xf0]  ;;  %v10069_v13 = vor.u32 %v12028_v7, %v10068_v6  ;;  %5119 = vmatpush.bf16.msra.mxu0 %v9813_v11 }
  0xb4   :  { %v9796_v14 = vld [vmem:[#allocation5 + $0x1060] sm:$0xf]  ;;  %v11960_v15 = vld [vmem:[#allocation5 + $0x106c] sm:$0xf0]  ;;  %v10197_v18 = vor.u32 %v12060_v9, %v10196_v8  ;;  %5133 = vmatpush.bf16.msra.mxu1 %v9941_v12 }
  0xb5   :  { %v9924_v16 = vld [vmem:[#allocation5 + $0x1160] sm:$0xf]  ;;  %v11992_v19 = vld [vmem:[#allocation5 + $0x116c] sm:$0xf0]  ;;  %v9797_v24 = vor.u32 %v11960_v15, %v9796_v14  ;;  %5147 = vmatpush.bf16.msra.mxu2 %v10069_v13 }
  0xb6   :  { %v10052_v20 = vld [vmem:[#allocation5 + $0x1260] sm:$0xf]  ;;  %v12024_v21 = vld [vmem:[#allocation5 + $0x126c] sm:$0xf0]  ;;  %v9925_v25 = vor.u32 %v11992_v19, %v9924_v16  ;;  %5161 = vmatpush.bf16.msra.mxu3 %v10197_v18 }
  0xb7   :  { %v10180_v22 = vld [vmem:[#allocation5 + $0x1360] sm:$0xf]  ;;  %v12056_v23 = vld [vmem:[#allocation5 + $0x136c] sm:$0xf0]  ;;  %v10053_v26 = vor.u32 %v12024_v21, %v10052_v20  ;;  %5120 = vmatpush.bf16.msra.mxu0 %v9797_v24 }
  0xb8   :  { %v9780_v27 = vld [vmem:[#allocation5 + $0x1040] sm:$0xf]  ;;  %v11956_v28 = vld [vmem:[#allocation5 + $0x104c] sm:$0xf0]  ;;  %v10181_v30 = vor.u32 %v12056_v23, %v10180_v22  ;;  %5134 = vmatpush.bf16.msra.mxu1 %v9925_v25  ;;  %v7676_v25 = vld [vmem:[#allocation2 + $0x48] sm:$0xf] }
  0xb9   :  { %v9908_v29 = vld [vmem:[#allocation5 + $0x1140] sm:$0xf]  ;;  %v11988_v33 = vld [vmem:[#allocation5 + $0x114c] sm:$0xf0]  ;;  %v9781_v48 = vor.u32 %v11956_v28, %v9780_v27  ;;  %5148 = vmatpush.bf16.msra.mxu2 %v10053_v26  ;;  %v11431_v26 = vld [vmem:[#allocation2 + $0xa4] sm:$0xf0] }
  0xba   :  { %v10036_v34 = vld [vmem:[#allocation5 + $0x1240] sm:$0xf]  ;;  %v12020_v37 = vld [vmem:[#allocation5 + $0x124c] sm:$0xf0]  ;;  %v9909_v50 = vor.u32 %v11988_v33, %v9908_v29  ;;  %5162 = vmatpush.bf16.msra.mxu3 %v10181_v30  ;;  %v11418_v27 = vld [vmem:[#allocation2 + $0x44] sm:$0xf] }
  0xbb   :  { %v10164_v42 = vld [vmem:[#allocation5 + $0x1340] sm:$0xf]  ;;  %v12052_v45 = vld [vmem:[#allocation5 + $0x134c] sm:$0xf0]  ;;  %v10037_v51 = vor.u32 %v12020_v37, %v10036_v34  ;;  %5121 = vmatpush.bf16.msra.mxu0 %v9781_v48  ;;  %v7670_v30 = vld [vmem:[#allocation2 + $0xa0] sm:$0xf0] }
  0xbc   :  { %v9764_v49 = vld [vmem:[#allocation5 + $0x1020] sm:$0xf]  ;;  %v11952_v52 = vld [vmem:[#allocation5 + $0x102c] sm:$0xf0]  ;;  %v10165_v55 = vor.u32 %v12052_v45, %v10164_v42  ;;  %5135 = vmatpush.bf16.msra.mxu1 %v9909_v50  ;;  %v11419_v33 = vld [vmem:[#allocation2 + $0x4c] sm:$0xf] }
  0xbd   :  { %v9892_v53 = vld [vmem:[#allocation5 + $0x1120] sm:$0xf]  ;;  %v11984_v54 = vld [vmem:[#allocation5 + $0x112c] sm:$0xf0]  ;;  %v9765_v63 = vor.u32 %v11952_v52, %v9764_v49  ;;  %5149 = vmatpush.bf16.msra.mxu2 %v10037_v51  ;;  %v7678_v34 = vld [vmem:[#allocation2 + $0xa8] sm:$0xf0] }
  0xbe   :  { %v10020_v56 = vld [vmem:[#allocation5 + $0x1220] sm:$0xf]  ;;  %v12016_v57 = vld [vmem:[#allocation5 + $0x122c] sm:$0xf0]  ;;  %v9893_v5 = vor.u32 %v11984_v54, %v9892_v53  ;;  %5163 = vmatpush.bf16.msra.mxu3 %v10165_v55  ;;  %v12711_v55 = vor.u32 %v11431_v26, %v7676_v25 }
  0xbf   :  { %v10148_v59 = vld [vmem:[#allocation5 + $0x1320] sm:$0xf]  ;;  %v12048_v60 = vld [vmem:[#allocation5 + $0x132c] sm:$0xf0]  ;;  %v10021_v6 = vor.u32 %v12016_v57, %v10020_v56  ;;  %5122 = vmatpush.bf16.msra.mxu0 %v9765_v63  ;;  %v12713_v56 = vor.u32 %v11418_v27, %v7670_v30 }
  0xc0   :  { %v9748_v61 = vld [vmem:[#allocation5 + $0x1000] sm:$0xf]  ;;  %v11948_v62 = vld [vmem:[#allocation5 + $0x100c] sm:$0xf0]  ;;  %v10149_v11 = vor.u32 %v12048_v60, %v10148_v59  ;;  %5136 = vmatpush.bf16.msra.mxu1 %v9893_v5  ;;  %v12715_v60 = vor.u32 %v11419_v33, %v7678_v34 }
  0xc1   :  { %v9876_v0 = vld [vmem:[#allocation5 + $0x1100] sm:$0xf]  ;;  %v11980_v2 = vld [vmem:[#allocation5 + $0x110c] sm:$0xf0]  ;;  %v9749_v19 = vor.u32 %v11948_v62, %v9748_v61  ;;  %5150 = vmatpush.bf16.msra.mxu2 %v10021_v6 }
  0xc2   :  { %v10004_v3 = vld [vmem:[#allocation5 + $0x1200] sm:$0xf]  ;;  %v12012_v4 = vld [vmem:[#allocation5 + $0x120c] sm:$0xf0]  ;;  %v9877_v23 = vor.u32 %v11980_v2, %v9876_v0  ;;  %5164 = vmatpush.bf16.msra.mxu3 %v10149_v11 }
  0xc3   :  { %v10132_v7 = vld [vmem:[#allocation5 + $0x1300] sm:$0xf]  ;;  %v12044_v8 = vld [vmem:[#allocation5 + $0x130c] sm:$0xf0]  ;;  %v10005_v24 = vor.u32 %v12012_v4, %v10004_v3  ;;  %5123 = vmatpush.bf16.msra.mxu0 %v9749_v19 }
  0xc4   :  { %v10372_v9 = vld [vmem:[#allocation5 + $0x14e0] sm:$0xf]  ;;  %v12104_v12 = vld [vmem:[#allocation5 + $0x14ec] sm:$0xf0]  ;;  %v10133_v28 = vor.u32 %v12044_v8, %v10132_v7  ;;  %5137 = vmatpush.bf16.msra.mxu1 %v9877_v23 }
  0xc5   :  { %v10500_v13 = vld [vmem:[#allocation5 + $0x15e0] sm:$0xf]  ;;  %v12136_v14 = vld [vmem:[#allocation5 + $0x15ec] sm:$0xf0]  ;;  %v10373_v29 = vor.u32 %v12104_v12, %v10372_v9  ;;  %5151 = vmatpush.bf16.msra.mxu2 %v10005_v24 }
  0xc6   :  { %v10628_v15 = vld [vmem:[#allocation5 + $0x16e0] sm:$0xf]  ;;  %v12168_v16 = vld [vmem:[#allocation5 + $0x16ec] sm:$0xf0]  ;;  %v10501_v37 = vor.u32 %v12136_v14, %v10500_v13  ;;  %5165 = vmatpush.bf16.msra.mxu3 %v10133_v28 }
  0xc7   :  { %v10756_v18 = vld [vmem:[#allocation5 + $0x17e0] sm:$0xf]  ;;  %v12200_v20 = vld [vmem:[#allocation5 + $0x17ec] sm:$0xf0]  ;;  %v10629_v42 = vor.u32 %v12168_v16, %v10628_v15  ;;  %5172 = vmatpush.bf16.msrb.mxu0 %v10373_v29  ;;  %5138 = vmatmul.bf16.vlgmr.msra.gmra.mxu1 %v12713_v56 }
  0xc8   :  { %v7668_v21 = vld [vmem:[#allocation2 + $0x40] sm:$0xf]  ;;  %v12100_v48 = vld [vmem:[#allocation5 + $0x14cc] sm:$0xf0]  ;;  %v10757_v50 = vor.u32 %v12200_v20, %v10756_v18  ;;  %5186 = vmatpush.bf16.msrb.mxu1 %v10501_v37  ;;  %5152 = vmatmul.bf16.vlgmr.msra.gmra.mxu2 %v12711_v55 }
  0xc9   :  { %v11430_v22 = vld [vmem:[#allocation2 + $0x9c] sm:$0xf0]  ;;  %v12132_v52 = vld [vmem:[#allocation5 + $0x15cc] sm:$0xf0]  ;;  %5200 = vmatpush.bf16.msrb.mxu2 %v10629_v42  ;;  %5166 = vmatmul.bf16.vlgmr.msra.gmra.mxu3 %v12715_v60  ;;  %v4901_v26 = vpop.f32.mrf.mxu0 }
  0xca   :  { %v10356_v45 = vld [vmem:[#allocation5 + $0x14c0] sm:$0xf]  ;;  %v12709_v51 = vor.u32 %v11430_v22, %v7668_v21  ;;  %v12164_v54 = vld [vmem:[#allocation5 + $0x16cc] sm:$0xf0]  ;;  %5214 = vmatpush.bf16.msrb.mxu3 %v10757_v50 }
  0xcb   :  { %v10484_v49 = vld [vmem:[#allocation5 + $0x15c0] sm:$0xf]  ;;  %v12196_v59 = vld [vmem:[#allocation5 + $0x17cc] sm:$0xf0]  ;;  %v10357_v61 = vor.u32 %v12100_v48, %v10356_v45 }
  0xcc   :  { %v10612_v53 = vld [vmem:[#allocation5 + $0x16c0] sm:$0xf]  ;;  %v10485_v63 = vor.u32 %v12132_v52, %v10484_v49  ;;  %v12096_v2 = vld [vmem:[#allocation5 + $0x14ac] sm:$0xf0]  ;;  %5124 = vmatmul.bf16.vlgmr.msra.gmra.mxu0 %v12709_v51 }
  0xcd   :  { %v10740_v57 = vld [vmem:[#allocation5 + $0x17c0] sm:$0xf]  ;;  %v10613_v0 = vor.u32 %v12164_v54, %v10612_v53  ;;  %v12128_v6 = vld [vmem:[#allocation5 + $0x15ac] sm:$0xf0]  ;;  %5173 = vmatpush.bf16.msrb.mxu0 %v10357_v61  ;;  %v4915_v53 = vpop.f32.mrf.mxu1 }
  0xce   :  { %v10340_v62 = vld [vmem:[#allocation5 + $0x14a0] sm:$0xf]  ;;  %v10741_v5 = vor.u32 %v12196_v59, %v10740_v57  ;;  %v12160_v8 = vld [vmem:[#allocation5 + $0x16ac] sm:$0xf0]  ;;  %5187 = vmatpush.bf16.msrb.mxu1 %v10485_v63 }
  0xcf   :  { %v10468_v3 = vld [vmem:[#allocation5 + $0x15a0] sm:$0xf]  ;;  %v12192_v11 = vld [vmem:[#allocation5 + $0x17ac] sm:$0xf0]  ;;  %v10341_v12 = vor.u32 %v12096_v2, %v10340_v62  ;;  %5201 = vmatpush.bf16.msrb.mxu2 %v10613_v0 }
  0xd0   :  { %v12717_v4 = vld [vmem:[#allocation7] sm:$0xf]  ;;  %v10469_v14 = vor.u32 %v12128_v6, %v10468_v3  ;;  %v12092_v18 = vld [vmem:[#allocation5 + $0x148c] sm:$0xf0]  ;;  %5215 = vmatpush.bf16.msrb.mxu3 %v10741_v5 }
  0xd1   :  { %v10596_v7 = vld [vmem:[#allocation5 + $0x16a0] sm:$0xf]  ;;  %v13244_v13 = vperm.slane %v12717_v4, 0  ;;  %v12124_v21 = vld [vmem:[#allocation5 + $0x158c] sm:$0xf0]  ;;  %5174 = vmatpush.bf16.msrb.mxu0 %v10341_v12 }
  0xd2   :  { %v10724_v9 = vld [vmem:[#allocation5 + $0x17a0] sm:$0xf]  ;;  %v10597_v15 = vor.u32 %v12160_v8, %v10596_v7  ;;  %v12156_v23 = vld [vmem:[#allocation5 + $0x168c] sm:$0xf0]  ;;  %5188 = vmatpush.bf16.msrb.mxu1 %v10469_v14  ;;  %v4929_v7 = vpop.f32.mrf.mxu2 }
  0xd3   :  { %v10324_v16 = vld [vmem:[#allocation5 + $0x1480] sm:$0xf]  ;;  %v10725_v20 = vor.u32 %v12192_v11, %v10724_v9  ;;  %v12188_v25 = vld [vmem:[#allocation5 + $0x178c] sm:$0xf0]  ;;  %v4902_v28 = vadd.f32 %v4901_v26, %v13244_v13  ;;  %v11746_v13 = vld [vmem:[#allocation5 + $0x9c4] sm:$0xf] }
  0xd4   :  { %v10452_v19 = vld [vmem:[#allocation5 + $0x1580] sm:$0xf]  ;;  %v10325_v27 = vor.u32 %v12092_v18, %v10324_v16  ;;  %5202 = vmatpush.bf16.msrb.mxu2 %v10597_v15  ;;  %v12088_v34 = vld [vmem:[#allocation5 + $0x146c] sm:$0xf0] }
  0xd5   :  { %v10580_v22 = vld [vmem:[#allocation5 + $0x1680] sm:$0xf]  ;;  %v10453_v29 = vor.u32 %v12124_v21, %v10452_v19  ;;  %5216 = vmatpush.bf16.msrb.mxu3 %v10725_v20  ;;  %v12120_v45 = vld [vmem:[#allocation5 + $0x156c] sm:$0xf0]  ;;  %v4916_v57 = vadd.f32 %v4915_v53, %v4902_v28 }
  0xd6   :  { %v10708_v24 = vld [vmem:[#allocation5 + $0x1780] sm:$0xf]  ;;  %v10581_v30 = vor.u32 %v12156_v23, %v10580_v22  ;;  %v12152_v49 = vld [vmem:[#allocation5 + $0x166c] sm:$0xf0]  ;;  %5175 = vmatpush.bf16.msrb.mxu0 %v10325_v27 }
  0xd7   :  { %v10308_v33 = vld [vmem:[#allocation5 + $0x1460] sm:$0xf]  ;;  %v10709_v42 = vor.u32 %v12188_v25, %v10708_v24  ;;  %v12184_v52 = vld [vmem:[#allocation5 + $0x176c] sm:$0xf0]  ;;  %5189 = vmatpush.bf16.msrb.mxu1 %v10453_v29  ;;  %v4930_v11 = vadd.f32 %v4929_v7, %v4916_v57  ;;  %v4943_v25 = vpop.f32.mrf.mxu3  ;;  %v11494_v57 = vld [vmem:[#allocation5 + $0x1e4] sm:$0xf] }
  0xd8   :  { %v10436_v37 = vld [vmem:[#allocation5 + $0x1560] sm:$0xf]  ;;  %v10309_v54 = vor.u32 %v12088_v34, %v10308_v33  ;;  %5203 = vmatpush.bf16.msrb.mxu2 %v10581_v30  ;;  %v12084_v63 = vld [vmem:[#allocation5 + $0x144c] sm:$0xf0] }
  0xd9   :  { %v10564_v48 = vld [vmem:[#allocation5 + $0x1660] sm:$0xf]  ;;  %v10437_v59 = vor.u32 %v12120_v45, %v10436_v37  ;;  %5217 = vmatpush.bf16.msrb.mxu3 %v10709_v42  ;;  %v12116_v3 = vld [vmem:[#allocation5 + $0x154c] sm:$0xf0]  ;;  %v12726_v29 = vadd.f32 %v4943_v25, %v4930_v11  ;;  %v11420_v11 = vld [vmem:[#allocation2 + $0x54] sm:$0xf] }
  0xda   :  { %v10692_v50 = vld [vmem:[#allocation5 + $0x1760] sm:$0xf]  ;;  %v10565_v61 = vor.u32 %v12152_v49, %v10564_v48  ;;  %v12148_v6 = vld [vmem:[#allocation5 + $0x164c] sm:$0xf0]  ;;  %5176 = vmatpush.bf16.msrb.mxu0 %v10309_v54  ;;  %v7814_v54 = vld [vmem:[#allocation5 + $0xf0] sm:$0xf0] }
  0xdb   :  { %v10292_v62 = vld [vmem:[#allocation5 + $0x1440] sm:$0xf]  ;;  %v10693_v2 = vor.u32 %v12184_v52, %v10692_v50  ;;  %v12180_v9 = vld [vmem:[#allocation5 + $0x174c] sm:$0xf0]  ;;  %5190 = vmatpush.bf16.msrb.mxu1 %v10437_v59  ;;  %v11462_v52 = vld [vmem:[#allocation5 + $0xe4] sm:$0xf] }
  0xdc   :  { %v10420_v0 = vld [vmem:[#allocation5 + $0x1540] sm:$0xf]  ;;  %v10293_v12 = vor.u32 %v12084_v63, %v10292_v62  ;;  %5204 = vmatpush.bf16.msrb.mxu2 %v10565_v61  ;;  %v12080_v18 = vld [vmem:[#allocation5 + $0x142c] sm:$0xf0]  ;;  %v7942_v59 = vld [vmem:[#allocation5 + $0x1f0] sm:$0xf0] }
  0xdd   :  { %v10548_v5 = vld [vmem:[#allocation5 + $0x1640] sm:$0xf]  ;;  %v10421_v15 = vor.u32 %v12116_v3, %v10420_v0  ;;  %v12112_v20 = vld [vmem:[#allocation5 + $0x152c] sm:$0xf0]  ;;  %5218 = vmatpush.bf16.msrb.mxu3 %v10693_v2  ;;  %v11526_v61 = vld [vmem:[#allocation5 + $0x2e4] sm:$0xf] }
  0xde   :  { %v10676_v8 = vld [vmem:[#allocation5 + $0x1740] sm:$0xf]  ;;  %v10549_v16 = vor.u32 %v12148_v6, %v10548_v5  ;;  %v12144_v23 = vld [vmem:[#allocation5 + $0x162c] sm:$0xf0]  ;;  %5177 = vmatpush.bf16.msrb.mxu0 %v10293_v12  ;;  %v8070_v62 = vld [vmem:[#allocation5 + $0x2f0] sm:$0xf0] }
  0xdf   :  { %v10276_v14 = vld [vmem:[#allocation5 + $0x1420] sm:$0xf]  ;;  %v10677_v21 = vor.u32 %v12180_v9, %v10676_v8  ;;  %v12176_v26 = vld [vmem:[#allocation5 + $0x172c] sm:$0xf0]  ;;  %5191 = vmatpush.bf16.msrb.mxu1 %v10421_v15  ;;  %v11558_v63 = vld [vmem:[#allocation5 + $0x3e4] sm:$0xf] }
  0xe0   :  { %v10404_v19 = vld [vmem:[#allocation5 + $0x1520] sm:$0xf]  ;;  %v12076_v28 = vld [vmem:[#allocation5 + $0x140c] sm:$0xf0]  ;;  %v10277_v30 = vor.u32 %v12080_v18, %v10276_v14  ;;  %5205 = vmatpush.bf16.msrb.mxu2 %v10549_v16  ;;  %v8198_v2 = vld [vmem:[#allocation5 + $0x3f0] sm:$0xf0]  ;;  %v7817_v14 = vor.u32 %v11462_v52, %v7814_v54 }
  0xe1   :  { %v10532_v22 = vld [vmem:[#allocation5 + $0x1620] sm:$0xf]  ;;  %v12108_v34 = vld [vmem:[#allocation5 + $0x150c] sm:$0xf0]  ;;  %v10405_v45 = vor.u32 %v12112_v20, %v10404_v19  ;;  %5219 = vmatpush.bf16.msrb.mxu3 %v10677_v21  ;;  %v7692_v8 = vld [vmem:[#allocation2 + $0x58] sm:$0xf]  ;;  %v7945_v19 = vor.u32 %v11494_v57, %v7942_v59  ;;  %v8073_v20 = vor.u32 %v11526_v61, %v8070_v62  ;;  %v12728_v21 = vpop.f32.mrf.mxu0  ;;  %v8201_v25 = vor.u32 %v11558_v63, %v8198_v2 }
  0xe2   :  { %v10660_v24 = vld [vmem:[#allocation5 + $0x1720] sm:$0xf]  ;;  %v12140_v42 = vld [vmem:[#allocation5 + $0x160c] sm:$0xf0]  ;;  %v10533_v48 = vor.u32 %v12144_v23, %v10532_v22  ;;  %5178 = vmatpush.bf16.msrb.mxu0 %v10277_v30  ;;  %v11433_v9 = vld [vmem:[#allocation2 + $0xb4] sm:$0xf0] }
  0xe3   :  { %v10260_v27 = vld [vmem:[#allocation5 + $0x1400] sm:$0xf]  ;;  %v12172_v50 = vld [vmem:[#allocation5 + $0x170c] sm:$0xf0]  ;;  %v10661_v53 = vor.u32 %v12176_v26, %v10660_v24  ;;  %5192 = vmatpush.bf16.msrb.mxu1 %v10405_v45  ;;  %v7686_v15 = vld [vmem:[#allocation2 + $0xb0] sm:$0xf0]  ;;  %v12736_v45 = vpop.f32.mrf.mxu1 }
  0xe4   :  { %v10388_v33 = vld [vmem:[#allocation5 + $0x1500] sm:$0xf]  ;;  %v10261_v0 = vor.u32 %v12076_v28, %v10260_v27  ;;  %v7684_v3 = vld [vmem:[#allocation2 + $0x50] sm:$0xf]  ;;  %5206 = vmatpush.bf16.msrb.mxu2 %v10533_v48  ;;  %v11421_v16 = vld [vmem:[#allocation2 + $0x5c] sm:$0xf] }
  0xe5   :  { %v10516_v37 = vld [vmem:[#allocation5 + $0x1600] sm:$0xf]  ;;  %v11432_v5 = vld [vmem:[#allocation2 + $0xac] sm:$0xf0]  ;;  %v10389_v6 = vor.u32 %v12108_v34, %v10388_v33  ;;  %5220 = vmatpush.bf16.msrb.mxu3 %v10661_v53  ;;  %v7694_v18 = vld [vmem:[#allocation2 + $0xb8] sm:$0xf0]  ;;  %v12732_v33 = vor.u32 %v11433_v9, %v7692_v8  ;;  %v12734_v34 = vor.u32 %v11420_v11, %v7686_v15 }
  0xe6   :  { %v10644_v49 = vld [vmem:[#allocation5 + $0x1700] sm:$0xf]  ;;  %v10517_v7 = vor.u32 %v12140_v42, %v10516_v37  ;;  %v11458_v22 = vld [vmem:[#allocation5 + $0xc4] sm:$0xf]  ;;  %v7798_v23 = vld [vmem:[#allocation5 + $0xd0] sm:$0xf0]  ;;  %5179 = vmatpush.bf16.msrb.mxu0 %v10261_v0  ;;  %v12730_v26 = vor.u32 %v11432_v5, %v7684_v3  ;;  %v12738_v48 = vor.u32 %v11421_v16, %v7694_v18  ;;  %v12744_v5 = vpop.f32.mrf.mxu2 }
  0xe7   :  { %v10645_v12 = vor.u32 %v12172_v50, %v10644_v49  ;;  %v11490_v24 = vld [vmem:[#allocation5 + $0x1c4] sm:$0xf]  ;;  %v7926_v27 = vld [vmem:[#allocation5 + $0x1d0] sm:$0xf0]  ;;  %5193 = vmatpush.bf16.msrb.mxu1 %v10389_v6  ;;  %v7801_v49 = vor.u32 %v11458_v22, %v7798_v23 }
  0xe8   :  { %v11522_v28 = vld [vmem:[#allocation5 + $0x2c4] sm:$0xf]  ;;  %v8054_v30 = vld [vmem:[#allocation5 + $0x2d0] sm:$0xf0]  ;;  %5207 = vmatpush.bf16.msrb.mxu2 %v10517_v7  ;;  %v7929_v50 = vor.u32 %v11490_v24, %v7926_v27 }
  0xe9   :  { %v11554_v37 = vld [vmem:[#allocation5 + $0x3c4] sm:$0xf]  ;;  %v8182_v42 = vld [vmem:[#allocation5 + $0x3d0] sm:$0xf0]  ;;  %5221 = vmatpush.bf16.msrb.mxu3 %v10645_v12  ;;  %v8057_v52 = vor.u32 %v11522_v28, %v8054_v30  ;;  %5180 = vmatmul.bf16.vlgmr.msrb.gmra.mxu0 %v12730_v26 }
  0xea   :  { %5228 = vmatpush.bf16.msra.mxu0 %v7817_v14  ;;  %v11454_v53 = vld [vmem:[#allocation5 + $0xa4] sm:$0xf]  ;;  %v7782_v54 = vld [vmem:[#allocation5 + $0xb0] sm:$0xf0]  ;;  %v8185_v59 = vor.u32 %v11554_v37, %v8182_v42  ;;  %5194 = vmatmul.bf16.vlgmr.msrb.gmra.mxu1 %v12734_v34  ;;  %v12746_v14 = vpop.f32.mrf.mxu3 }
  0xeb   :  { %5242 = vmatpush.bf16.msra.mxu1 %v7945_v19  ;;  %v11486_v57 = vld [vmem:[#allocation5 + $0x1a4] sm:$0xf]  ;;  %v7910_v61 = vld [vmem:[#allocation5 + $0x1b0] sm:$0xf0]  ;;  %5208 = vmatmul.bf16.vlgmr.msrb.gmra.mxu2 %v12732_v33  ;;  %v7785_v3 = vor.u32 %v11454_v53, %v7782_v54  ;;  %13246 = vst [vmem:[#allocation20_spill] sm:$0xff] %v12746_v14  ;;  %v4957_v19 = vpop.f32.mrf.mxu0  ;;  %v4971_v28 = vpop.f32.mrf.mxu1 }
  0xec   :  { %5256 = vmatpush.bf16.msra.mxu2 %v8073_v20  ;;  %v11518_v62 = vld [vmem:[#allocation5 + $0x2a4] sm:$0xf]  ;;  %v8038_v63 = vld [vmem:[#allocation5 + $0x2b0] sm:$0xf0]  ;;  %5222 = vmatmul.bf16.vlgmr.msrb.gmra.mxu3 %v12738_v48  ;;  %v7913_v6 = vor.u32 %v11486_v57, %v7910_v61  ;;  %v4958_v23 = vadd.f32 %v4957_v19, %v12726_v29  ;;  %v11653_v14 = vld [vmem:[#allocation5 + $0x6d4] sm:$0xf0] }
  0xed   :  { %5270 = vmatpush.bf16.msra.mxu3 %v8201_v25  ;;  %v11550_v0 = vld [vmem:[#allocation5 + $0x3a4] sm:$0xf]  ;;  %v8166_v2 = vld [vmem:[#allocation5 + $0x3b0] sm:$0xf0]  ;;  %v8041_v7 = vor.u32 %v11518_v62, %v8038_v63 }
  0xee   :  { %5229 = vmatpush.bf16.msra.mxu0 %v7801_v49  ;;  %v11450_v8 = vld [vmem:[#allocation5 + $0x84] sm:$0xf]  ;;  %v7766_v9 = vld [vmem:[#allocation5 + $0x90] sm:$0xf0]  ;;  %v8169_v12 = vor.u32 %v11550_v0, %v8166_v2 }
  0xef   :  { %5243 = vmatpush.bf16.msra.mxu1 %v7929_v50  ;;  %v11482_v11 = vld [vmem:[#allocation5 + $0x184] sm:$0xf]  ;;  %v7894_v15 = vld [vmem:[#allocation5 + $0x190] sm:$0xf0]  ;;  %v7769_v24 = vor.u32 %v11450_v8, %v7766_v9  ;;  %v4972_v50 = vadd.f32 %v4971_v28, %v4958_v23 }
  0xf0   :  { %5257 = vmatpush.bf16.msra.mxu2 %v8057_v52  ;;  %v11514_v16 = vld [vmem:[#allocation5 + $0x284] sm:$0xf]  ;;  %v8022_v18 = vld [vmem:[#allocation5 + $0x290] sm:$0xf0]  ;;  %v7897_v25 = vor.u32 %v11482_v11, %v7894_v15 }
  0xf1   :  { %5271 = vmatpush.bf16.msra.mxu3 %v8185_v59  ;;  %v11546_v20 = vld [vmem:[#allocation5 + $0x384] sm:$0xf]  ;;  %v8150_v22 = vld [vmem:[#allocation5 + $0x390] sm:$0xf0]  ;;  %v8025_v27 = vor.u32 %v11514_v16, %v8022_v18 }
  0xf2   :  { %5230 = vmatpush.bf16.msra.mxu0 %v7785_v3  ;;  %v11446_v30 = vld [vmem:[#allocation5 + $0x64] sm:$0xf]  ;;  %v7750_v37 = vld [vmem:[#allocation5 + $0x70] sm:$0xf0]  ;;  %v8153_v49 = vor.u32 %v11546_v20, %v8150_v22  ;;  %v4999_v16 = vpop.f32.mrf.mxu3 }
  0xf3   :  { %5244 = vmatpush.bf16.msra.mxu1 %v7913_v6  ;;  %v11478_v42 = vld [vmem:[#allocation5 + $0x164] sm:$0xf]  ;;  %v7878_v52 = vld [vmem:[#allocation5 + $0x170] sm:$0xf0]  ;;  %v7753_v61 = vor.u32 %v11446_v30, %v7750_v37  ;;  %v4985_v6 = vpop.f32.mrf.mxu2 }
  0xf4   :  { %5258 = vmatpush.bf16.msra.mxu2 %v8041_v7  ;;  %v11510_v53 = vld [vmem:[#allocation5 + $0x264] sm:$0xf]  ;;  %v8006_v54 = vld [vmem:[#allocation5 + $0x270] sm:$0xf0]  ;;  %v7881_v29 = vor.u32 %v11478_v42, %v7878_v52  ;;  %v4986_v11 = vadd.f32 %v4985_v6, %v4972_v50 }
  0xf5   :  { %5272 = vmatpush.bf16.msra.mxu3 %v8169_v12  ;;  %v11542_v57 = vld [vmem:[#allocation5 + $0x364] sm:$0xf]  ;;  %v8134_v59 = vld [vmem:[#allocation5 + $0x370] sm:$0xf0]  ;;  %v8009_v62 = vor.u32 %v11510_v53, %v8006_v54 }
  0xf6   :  { %5231 = vmatpush.bf16.msra.mxu0 %v7769_v24  ;;  %v11442_v63 = vld [vmem:[#allocation5 + $0x44] sm:$0xf]  ;;  %v7734_v0 = vld [vmem:[#allocation5 + $0x50] sm:$0xf0]  ;;  %v8137_v3 = vor.u32 %v11542_v57, %v8134_v59  ;;  %v12749_v19 = vadd.f32 %v4999_v16, %v4986_v11 }
  0xf7   :  { %5245 = vmatpush.bf16.msra.mxu1 %v7897_v25  ;;  %v11474_v2 = vld [vmem:[#allocation5 + $0x144] sm:$0xf]  ;;  %v7862_v7 = vld [vmem:[#allocation5 + $0x150] sm:$0xf0]  ;;  %v7737_v18 = vor.u32 %v11442_v63, %v7734_v0 }
  0xf8   :  { %5259 = vmatpush.bf16.msra.mxu2 %v8025_v27  ;;  %v11506_v8 = vld [vmem:[#allocation5 + $0x244] sm:$0xf]  ;;  %v7990_v9 = vld [vmem:[#allocation5 + $0x250] sm:$0xf0]  ;;  %v7865_v20 = vor.u32 %v11474_v2, %v7862_v7 }
  0xf9   :  { %5273 = vmatpush.bf16.msra.mxu3 %v8153_v49  ;;  %v11538_v12 = vld [vmem:[#allocation5 + $0x344] sm:$0xf]  ;;  %v8118_v15 = vld [vmem:[#allocation5 + $0x350] sm:$0xf0]  ;;  %v7993_v22 = vor.u32 %v11506_v8, %v7990_v9 }
  0xfa   :  { %5232 = vmatpush.bf16.msra.mxu0 %v7753_v61  ;;  %v11438_v23 = vld [vmem:[#allocation5 + $0x24] sm:$0xf]  ;;  %v7718_v24 = vld [vmem:[#allocation5 + $0x30] sm:$0xf0]  ;;  %v8121_v27 = vor.u32 %v11538_v12, %v8118_v15 }
  0xfb   :  { %5246 = vmatpush.bf16.msra.mxu1 %v7881_v29  ;;  %v11470_v25 = vld [vmem:[#allocation5 + $0x124] sm:$0xf]  ;;  %v7846_v28 = vld [vmem:[#allocation5 + $0x130] sm:$0xf0]  ;;  %v7721_v50 = vor.u32 %v11438_v23, %v7718_v24 }
  0xfc   :  { %5260 = vmatpush.bf16.msra.mxu2 %v8009_v62  ;;  %v11502_v30 = vld [vmem:[#allocation5 + $0x224] sm:$0xf]  ;;  %v7974_v37 = vld [vmem:[#allocation5 + $0x230] sm:$0xf0]  ;;  %v7849_v54 = vor.u32 %v11470_v25, %v7846_v28 }
  0xfd   :  { %5274 = vmatpush.bf16.msra.mxu3 %v8137_v3  ;;  %v11534_v42 = vld [vmem:[#allocation5 + $0x324] sm:$0xf]  ;;  %v8102_v49 = vld [vmem:[#allocation5 + $0x330] sm:$0xf0]  ;;  %v7977_v57 = vor.u32 %v11502_v30, %v7974_v37 }
  0xfe   :  { %5233 = vmatpush.bf16.msra.mxu0 %v7737_v18  ;;  %v11434_v52 = vld [vmem:[#allocation5 + $0x4] sm:$0xf]  ;;  %v7702_v53 = vld [vmem:[#allocation5 + $0x10] sm:$0xf0]  ;;  %v8105_v62 = vor.u32 %v11534_v42, %v8102_v49 }
  0xff   :  { %5247 = vmatpush.bf16.msra.mxu1 %v7865_v20  ;;  %v11466_v59 = vld [vmem:[#allocation5 + $0x104] sm:$0xf]  ;;  %v7830_v61 = vld [vmem:[#allocation5 + $0x110] sm:$0xf0]  ;;  %v7705_v8 = vor.u32 %v11434_v52, %v7702_v53  ;;  %v12751_v52 = vpop.f32.mrf.mxu0 }
 0x100   :  { %5261 = vmatpush.bf16.msra.mxu2 %v7993_v22  ;;  %v11498_v29 = vld [vmem:[#allocation5 + $0x204] sm:$0xf]  ;;  %v7958_v63 = vld [vmem:[#allocation5 + $0x210] sm:$0xf0]  ;;  %v7833_v15 = vor.u32 %v11466_v59, %v7830_v61  ;;  %13247 = vst [vmem:[#allocation21_spill] sm:$0xff] %v12751_v52 }
 0x101   :  { %5275 = vmatpush.bf16.msra.mxu3 %v8121_v27  ;;  %v11530_v0 = vld [vmem:[#allocation5 + $0x304] sm:$0xf]  ;;  %v8086_v2 = vld [vmem:[#allocation5 + $0x310] sm:$0xf0]  ;;  %v7961_v16 = vor.u32 %v11498_v29, %v7958_v63  ;;  %v11589_v52 = vld [vmem:[#allocation5 + $0x4d4] sm:$0xf0] }
 0x102   :  { %v11590_v3 = vld [vmem:[#allocation5 + $0x4e4] sm:$0xf]  ;;  %v8326_v6 = vld [vmem:[#allocation5 + $0x4f0] sm:$0xf0]  ;;  %5234 = vmatpush.bf16.msra.mxu0 %v7721_v50  ;;  %v8089_v22 = vor.u32 %v11530_v0, %v8086_v2 }
 0x103   :  { %v11622_v7 = vld [vmem:[#allocation5 + $0x5e4] sm:$0xf]  ;;  %v8454_v9 = vld [vmem:[#allocation5 + $0x5f0] sm:$0xf0]  ;;  %5248 = vmatpush.bf16.msra.mxu1 %v7849_v54  ;;  %v8329_v23 = vor.u32 %v11590_v3, %v8326_v6 }
 0x104   :  { %v11654_v11 = vld [vmem:[#allocation5 + $0x6e4] sm:$0xf]  ;;  %v8582_v12 = vld [vmem:[#allocation5 + $0x6f0] sm:$0xf0]  ;;  %5262 = vmatpush.bf16.msra.mxu2 %v7977_v57  ;;  %v8457_v24 = vor.u32 %v11622_v7, %v8454_v9  ;;  %v12753_v57 = vpop.f32.mrf.mxu1 }
 0x105   :  { %v11686_v18 = vld [vmem:[#allocation5 + $0x7e4] sm:$0xf]  ;;  %v8710_v20 = vld [vmem:[#allocation5 + $0x7f0] sm:$0xf0]  ;;  %5276 = vmatpush.bf16.msra.mxu3 %v8105_v62  ;;  %v8585_v25 = vor.u32 %v11654_v11, %v8582_v12  ;;  %13248 = vst [vmem:[#allocation22_spill] sm:$0xff] %v12753_v57 }
 0x106   :  { %v11586_v27 = vld [vmem:[#allocation5 + $0x4c4] sm:$0xf]  ;;  %v8310_v28 = vld [vmem:[#allocation5 + $0x4d0] sm:$0xf0]  ;;  %5235 = vmatpush.bf16.msra.mxu0 %v7705_v8  ;;  %v8713_v37 = vor.u32 %v11686_v18, %v8710_v20  ;;  %v11545_v57 = vld [vmem:[#allocation5 + $0x374] sm:$0xf0] }
 0x107   :  { %v11618_v30 = vld [vmem:[#allocation5 + $0x5c4] sm:$0xf]  ;;  %v8438_v42 = vld [vmem:[#allocation5 + $0x5d0] sm:$0xf0]  ;;  %5249 = vmatpush.bf16.msra.mxu1 %v7833_v15  ;;  %v8313_v59 = vor.u32 %v11586_v27, %v8310_v28  ;;  %v12761_v28 = vpop.f32.mrf.mxu3 }
 0x108   :  { %v11650_v49 = vld [vmem:[#allocation5 + $0x6c4] sm:$0xf]  ;;  %v8566_v50 = vld [vmem:[#allocation5 + $0x6d0] sm:$0xf0]  ;;  %5263 = vmatpush.bf16.msra.mxu2 %v7961_v16  ;;  %v8441_v61 = vor.u32 %v11618_v30, %v8438_v42  ;;  %13250 = vst [vmem:[#allocation24_spill] sm:$0xff] %v12761_v28  ;;  %v5013_v30 = vpop.f32.mrf.mxu0 }
 0x109   :  { %v11682_v53 = vld [vmem:[#allocation5 + $0x7c4] sm:$0xf]  ;;  %v8694_v54 = vld [vmem:[#allocation5 + $0x7d0] sm:$0xf0]  ;;  %5277 = vmatpush.bf16.msra.mxu3 %v8089_v22  ;;  %v8569_v29 = vor.u32 %v11650_v49, %v8566_v50  ;;  %5236 = vmatmul.bf16.vlgmr.msra.gmra.mxu0 %v12661_v58  ;;  %v12759_v22 = vpop.f32.mrf.mxu2  ;;  %v5014_v49 = vadd.f32 %v5013_v30, %v12749_v19 }
 0x10a   :  { %5284 = vmatpush.bf16.msrb.mxu0 %v8329_v23  ;;  %v11582_v62 = vld [vmem:[#allocation5 + $0x4a4] sm:$0xf]  ;;  %v8294_v63 = vld [vmem:[#allocation5 + $0x4b0] sm:$0xf0]  ;;  %v8697_v2 = vor.u32 %v11682_v53, %v8694_v54  ;;  %5250 = vmatmul.bf16.vlgmr.msra.gmra.mxu1 %v12667_v10  ;;  %13249 = vst [vmem:[#allocation23_spill] sm:$0xff] %v12759_v22 }
 0x10b   :  { %5298 = vmatpush.bf16.msrb.mxu1 %v8457_v24  ;;  %v11614_v0 = vld [vmem:[#allocation5 + $0x5a4] sm:$0xf]  ;;  %v8422_v3 = vld [vmem:[#allocation5 + $0x5b0] sm:$0xf0]  ;;  %5264 = vmatmul.bf16.vlgmr.msra.gmra.mxu2 %v12663_v1  ;;  %v8297_v11 = vor.u32 %v11582_v62, %v8294_v63 }
 0x10c   :  { %5312 = vmatpush.bf16.msrb.mxu2 %v8585_v25  ;;  %v11646_v6 = vld [vmem:[#allocation5 + $0x6a4] sm:$0xf]  ;;  %v8550_v7 = vld [vmem:[#allocation5 + $0x6b0] sm:$0xf0]  ;;  %5278 = vmatmul.bf16.vlgmr.msra.gmra.mxu3 %v12669_v17  ;;  %v8425_v12 = vor.u32 %v11614_v0, %v8422_v3  ;;  %v5027_v53 = vpop.f32.mrf.mxu1 }
 0x10d   :  { %5326 = vmatpush.bf16.msrb.mxu3 %v8713_v37  ;;  %v11678_v8 = vld [vmem:[#allocation5 + $0x7a4] sm:$0xf]  ;;  %v8678_v9 = vld [vmem:[#allocation5 + $0x7b0] sm:$0xf0]  ;;  %v8553_v15 = vor.u32 %v11646_v6, %v8550_v7  ;;  %v5028_v0 = vadd.f32 %v5027_v53, %v5014_v49 }
 0x10e   :  { %5285 = vmatpush.bf16.msrb.mxu0 %v8313_v59  ;;  %v11578_v16 = vld [vmem:[#allocation5 + $0x484] sm:$0xf]  ;;  %v8278_v18 = vld [vmem:[#allocation5 + $0x490] sm:$0xf0]  ;;  %v8681_v23 = vor.u32 %v11678_v8, %v8678_v9 }
 0x10f   :  { %5299 = vmatpush.bf16.msrb.mxu1 %v8441_v61  ;;  %v11610_v20 = vld [vmem:[#allocation5 + $0x584] sm:$0xf]  ;;  %v8406_v24 = vld [vmem:[#allocation5 + $0x590] sm:$0xf0]  ;;  %v8281_v50 = vor.u32 %v11578_v16, %v8278_v18  ;;  %v5055_v30 = vpop.f32.mrf.mxu3 }
 0x110   :  { %5313 = vmatpush.bf16.msrb.mxu2 %v8569_v29  ;;  %v11642_v25 = vld [vmem:[#allocation5 + $0x684] sm:$0xf]  ;;  %v8534_v27 = vld [vmem:[#allocation5 + $0x690] sm:$0xf0]  ;;  %v8409_v54 = vor.u32 %v11610_v20, %v8406_v24  ;;  %v12766_v22 = vpop.f32.mrf.mxu0 }
 0x111   :  { %5327 = vmatpush.bf16.msrb.mxu3 %v8697_v2  ;;  %v11674_v37 = vld [vmem:[#allocation5 + $0x784] sm:$0xf]  ;;  %v8662_v42 = vld [vmem:[#allocation5 + $0x790] sm:$0xf0]  ;;  %v8537_v59 = vor.u32 %v11642_v25, %v8534_v27  ;;  %v5041_v20 = vpop.f32.mrf.mxu2  ;;  %13251 = vst [vmem:[#allocation25_spill] sm:$0xff] %v12766_v22 }
 0x112   :  { %5286 = vmatpush.bf16.msrb.mxu0 %v8297_v11  ;;  %v11574_v61 = vld [vmem:[#allocation5 + $0x464] sm:$0xf]  ;;  %v8262_v29 = vld [vmem:[#allocation5 + $0x470] sm:$0xf0]  ;;  %v8665_v63 = vor.u32 %v11674_v37, %v8662_v42  ;;  %v5042_v27 = vadd.f32 %v5041_v20, %v5028_v0 }
 0x113   :  { %5300 = vmatpush.bf16.msrb.mxu1 %v8425_v12  ;;  %v11606_v62 = vld [vmem:[#allocation5 + $0x564] sm:$0xf]  ;;  %v8390_v2 = vld [vmem:[#allocation5 + $0x570] sm:$0xf0]  ;;  %v8265_v9 = vor.u32 %v11574_v61, %v8262_v29 }
 0x114   :  { %5314 = vmatpush.bf16.msrb.mxu2 %v8553_v15  ;;  %v11638_v3 = vld [vmem:[#allocation5 + $0x664] sm:$0xf]  ;;  %v8518_v6 = vld [vmem:[#allocation5 + $0x670] sm:$0xf0]  ;;  %v8393_v19 = vor.u32 %v11606_v62, %v8390_v2 }
 0x115   :  { %5328 = vmatpush.bf16.msrb.mxu3 %v8681_v23  ;;  %v11670_v7 = vld [vmem:[#allocation5 + $0x764] sm:$0xf]  ;;  %v8646_v8 = vld [vmem:[#allocation5 + $0x770] sm:$0xf0]  ;;  %v8521_v11 = vor.u32 %v11638_v3, %v8518_v6 }
 0x116   :  { %5287 = vmatpush.bf16.msrb.mxu0 %v8281_v50  ;;  %v11570_v12 = vld [vmem:[#allocation5 + $0x444] sm:$0xf]  ;;  %v8246_v15 = vld [vmem:[#allocation5 + $0x450] sm:$0xf0]  ;;  %v8649_v18 = vor.u32 %v11670_v7, %v8646_v8  ;;  %v12764_v50 = vadd.f32 %v5055_v30, %v5042_v27 }
 0x117   :  { %5301 = vmatpush.bf16.msrb.mxu1 %v8409_v54  ;;  %v11602_v16 = vld [vmem:[#allocation5 + $0x544] sm:$0xf]  ;;  %v8374_v23 = vld [vmem:[#allocation5 + $0x550] sm:$0xf0]  ;;  %v8249_v49 = vor.u32 %v11570_v12, %v8246_v15 }
 0x118   :  { %5315 = vmatpush.bf16.msrb.mxu2 %v8537_v59  ;;  %v11634_v24 = vld [vmem:[#allocation5 + $0x644] sm:$0xf]  ;;  %v8502_v25 = vld [vmem:[#allocation5 + $0x650] sm:$0xf0]  ;;  %v8377_v53 = vor.u32 %v11602_v16, %v8374_v23 }
 0x119   :  { %5329 = vmatpush.bf16.msrb.mxu3 %v8665_v63  ;;  %v11666_v37 = vld [vmem:[#allocation5 + $0x744] sm:$0xf]  ;;  %v8630_v42 = vld [vmem:[#allocation5 + $0x750] sm:$0xf0]  ;;  %v8505_v54 = vor.u32 %v11634_v24, %v8502_v25 }
 0x11a   :  { %5288 = vmatpush.bf16.msrb.mxu0 %v8265_v9  ;;  %v11566_v59 = vld [vmem:[#allocation5 + $0x424] sm:$0xf]  ;;  %v8230_v61 = vld [vmem:[#allocation5 + $0x430] sm:$0xf0]  ;;  %v8633_v62 = vor.u32 %v11666_v37, %v8630_v42 }
 0x11b   :  { %5302 = vmatpush.bf16.msrb.mxu1 %v8393_v19  ;;  %v11598_v29 = vld [vmem:[#allocation5 + $0x524] sm:$0xf]  ;;  %v8358_v63 = vld [vmem:[#allocation5 + $0x530] sm:$0xf0]  ;;  %v8233_v7 = vor.u32 %v11566_v59, %v8230_v61 }
 0x11c   :  { %5316 = vmatpush.bf16.msrb.mxu2 %v8521_v11  ;;  %v11630_v2 = vld [vmem:[#allocation5 + $0x624] sm:$0xf]  ;;  %v8486_v3 = vld [vmem:[#allocation5 + $0x630] sm:$0xf0]  ;;  %v8361_v19 = vor.u32 %v11598_v29, %v8358_v63 }
 0x11d   :  { %5330 = vmatpush.bf16.msrb.mxu3 %v8649_v18  ;;  %v11662_v0 = vld [vmem:[#allocation5 + $0x724] sm:$0xf]  ;;  %v8614_v6 = vld [vmem:[#allocation5 + $0x730] sm:$0xf0]  ;;  %v8489_v11 = vor.u32 %v11630_v2, %v8486_v3 }
 0x11e   :  { %5289 = vmatpush.bf16.msrb.mxu0 %v8249_v49  ;;  %v11562_v8 = vld [vmem:[#allocation5 + $0x404] sm:$0xf]  ;;  %v8214_v9 = vld [vmem:[#allocation5 + $0x410] sm:$0xf0]  ;;  %v8617_v20 = vor.u32 %v11662_v0, %v8614_v6 }
 0x11f   :  { %5303 = vmatpush.bf16.msrb.mxu1 %v8377_v53  ;;  %v11594_v12 = vld [vmem:[#allocation5 + $0x504] sm:$0xf]  ;;  %v8342_v15 = vld [vmem:[#allocation5 + $0x510] sm:$0xf0]  ;;  %v8217_v37 = vor.u32 %v11562_v8, %v8214_v9 }
 0x120   :  { %5317 = vmatpush.bf16.msrb.mxu2 %v8505_v54  ;;  %v11626_v16 = vld [vmem:[#allocation5 + $0x604] sm:$0xf]  ;;  %v8470_v18 = vld [vmem:[#allocation5 + $0x610] sm:$0xf0]  ;;  %v8345_v53 = vor.u32 %v11594_v12, %v8342_v15  ;;  %v12768_v12 = vpop.f32.mrf.mxu1 }
 0x121   :  { %5331 = vmatpush.bf16.msrb.mxu3 %v8633_v62  ;;  %v11658_v23 = vld [vmem:[#allocation5 + $0x704] sm:$0xf]  ;;  %v8598_v24 = vld [vmem:[#allocation5 + $0x710] sm:$0xf0]  ;;  %v8473_v54 = vor.u32 %v11626_v16, %v8470_v18  ;;  %13252 = vst [vmem:[#allocation26_spill] sm:$0xff] %v12768_v12 }
 0x122   :  { %v11718_v25 = vld [vmem:[#allocation5 + $0x8e4] sm:$0xf]  ;;  %v8838_v27 = vld [vmem:[#allocation5 + $0x8f0] sm:$0xf0]  ;;  %5290 = vmatpush.bf16.msrb.mxu0 %v8233_v7  ;;  %v8601_v62 = vor.u32 %v11658_v23, %v8598_v24 }
 0x123   :  { %v11750_v30 = vld [vmem:[#allocation5 + $0x9e4] sm:$0xf]  ;;  %v8966_v42 = vld [vmem:[#allocation5 + $0x9f0] sm:$0xf0]  ;;  %5304 = vmatpush.bf16.msrb.mxu1 %v8361_v19  ;;  %v8841_v63 = vor.u32 %v11718_v25, %v8838_v27 }
 0x124   :  { %v11782_v49 = vld [vmem:[#allocation5 + $0xae4] sm:$0xf]  ;;  %v9094_v59 = vld [vmem:[#allocation5 + $0xaf0] sm:$0xf0]  ;;  %5318 = vmatpush.bf16.msrb.mxu2 %v8489_v11  ;;  %v8969_v2 = vor.u32 %v11750_v30, %v8966_v42 }
 0x125   :  { %v11814_v61 = vld [vmem:[#allocation5 + $0xbe4] sm:$0xf]  ;;  %v9222_v29 = vld [vmem:[#allocation5 + $0xbf0] sm:$0xf0]  ;;  %5332 = vmatpush.bf16.msrb.mxu3 %v8617_v20  ;;  %v9097_v3 = vor.u32 %v11782_v49, %v9094_v59 }
 0x126   :  { %v11714_v0 = vld [vmem:[#allocation5 + $0x8c4] sm:$0xf]  ;;  %v8822_v6 = vld [vmem:[#allocation5 + $0x8d0] sm:$0xf0]  ;;  %5291 = vmatpush.bf16.msrb.mxu0 %v8217_v37  ;;  %v9225_v7 = vor.u32 %v11814_v61, %v9222_v29  ;;  %v12774_v29 = vpop.f32.mrf.mxu2 }
 0x127   :  { %v8950_v8 = vld [vmem:[#allocation5 + $0x9d0] sm:$0xf0]  ;;  %v11778_v9 = vld [vmem:[#allocation5 + $0xac4] sm:$0xf]  ;;  %5305 = vmatpush.bf16.msrb.mxu1 %v8345_v53  ;;  %v8825_v15 = vor.u32 %v11714_v0, %v8822_v6  ;;  %13253 = vst [vmem:[#allocation27_spill] sm:$0xff] %v12774_v29  ;;  %v12776_v0 = vpop.f32.mrf.mxu3  ;;  %v5069_v6 = vpop.f32.mrf.mxu0 }
 0x128   :  { %v9078_v28 = vld [vmem:[#allocation5 + $0xad0] sm:$0xf0]  ;;  %5319 = vmatpush.bf16.msrb.mxu2 %v8473_v54  ;;  %v11810_v19 = vld [vmem:[#allocation5 + $0xbc4] sm:$0xf]  ;;  %v8953_v16 = vor.u32 %v11746_v13, %v8950_v8  ;;  %13254 = vst [vmem:[#allocation28_spill] sm:$0xff] %v12776_v0 }
 0x129   :  { %v9206_v11 = vld [vmem:[#allocation5 + $0xbd0] sm:$0xf0]  ;;  %5333 = vmatpush.bf16.msrb.mxu3 %v8601_v62  ;;  %v9081_v20 = vor.u32 %v11778_v9, %v9078_v28  ;;  %v11710_v18 = vld [vmem:[#allocation5 + $0x8a4] sm:$0xf]  ;;  %5292 = vmatmul.bf16.vlgmr.msrb.gmra.mxu0 %v12673_v39  ;;  %v5070_v9 = vadd.f32 %v5069_v6, %v12764_v50 }
 0x12a   :  { %5340 = vmatpush.bf16.msra.mxu0 %v8841_v63  ;;  %v8806_v23 = vld [vmem:[#allocation5 + $0x8b0] sm:$0xf0]  ;;  %v11742_v24 = vld [vmem:[#allocation5 + $0x9a4] sm:$0xf]  ;;  %v9209_v25 = vor.u32 %v11810_v19, %v9206_v11  ;;  %5306 = vmatmul.bf16.vlgmr.msrb.gmra.mxu1 %v12677_v44  ;;  %v5083_v11 = vpop.f32.mrf.mxu1 }
 0x12b   :  { %5354 = vmatpush.bf16.msra.mxu1 %v8969_v2  ;;  %v8934_v27 = vld [vmem:[#allocation5 + $0x9b0] sm:$0xf0]  ;;  %v11774_v30 = vld [vmem:[#allocation5 + $0xaa4] sm:$0xf]  ;;  %5320 = vmatmul.bf16.vlgmr.msrb.gmra.mxu2 %v12675_v43  ;;  %v8809_v13 = vor.u32 %v11710_v18, %v8806_v23 }
 0x12c   :  { %5368 = vmatpush.bf16.msra.mxu2 %v9097_v3  ;;  %v9062_v37 = vld [vmem:[#allocation5 + $0xab0] sm:$0xf0]  ;;  %v11806_v42 = vld [vmem:[#allocation5 + $0xba4] sm:$0xf]  ;;  %5334 = vmatmul.bf16.vlgmr.msrb.gmra.mxu3 %v12679_v47  ;;  %v8937_v28 = vor.u32 %v11742_v24, %v8934_v27 }
 0x12d   :  { %5382 = vmatpush.bf16.msra.mxu3 %v9225_v7  ;;  %v9190_v49 = vld [vmem:[#allocation5 + $0xbb0] sm:$0xf0]  ;;  %v9065_v59 = vor.u32 %v11774_v30, %v9062_v37  ;;  %v11706_v53 = vld [vmem:[#allocation5 + $0x884] sm:$0xf] }
 0x12e   :  { %5341 = vmatpush.bf16.msra.mxu0 %v8825_v15  ;;  %v8790_v54 = vld [vmem:[#allocation5 + $0x890] sm:$0xf0]  ;;  %v11738_v61 = vld [vmem:[#allocation5 + $0x984] sm:$0xf]  ;;  %v9193_v62 = vor.u32 %v11806_v42, %v9190_v49 }
 0x12f   :  { %5355 = vmatpush.bf16.msra.mxu1 %v8953_v16  ;;  %v8918_v63 = vld [vmem:[#allocation5 + $0x990] sm:$0xf0]  ;;  %v11770_v2 = vld [vmem:[#allocation5 + $0xa84] sm:$0xf]  ;;  %v8793_v19 = vor.u32 %v11706_v53, %v8790_v54  ;;  %v12781_v22 = vpop.f32.mrf.mxu0 }
 0x130   :  { %5369 = vmatpush.bf16.msra.mxu2 %v9081_v20  ;;  %v9046_v3 = vld [vmem:[#allocation5 + $0xa90] sm:$0xf0]  ;;  %v11802_v7 = vld [vmem:[#allocation5 + $0xb84] sm:$0xf]  ;;  %v8921_v15 = vor.u32 %v11738_v61, %v8918_v63  ;;  %v5097_v63 = vpop.f32.mrf.mxu2  ;;  %13255 = vst [vmem:[#allocation29_spill] sm:$0xff] %v12781_v22 }
 0x131   :  { %5383 = vmatpush.bf16.msra.mxu3 %v9209_v25  ;;  %v9174_v8 = vld [vmem:[#allocation5 + $0xb90] sm:$0xf0]  ;;  %v9049_v16 = vor.u32 %v11770_v2, %v9046_v3  ;;  %v11702_v20 = vld [vmem:[#allocation5 + $0x864] sm:$0xf]  ;;  %v5084_v25 = vadd.f32 %v5083_v11, %v5070_v9 }
 0x132   :  { %5342 = vmatpush.bf16.msra.mxu0 %v8809_v13  ;;  %v8774_v18 = vld [vmem:[#allocation5 + $0x870] sm:$0xf0]  ;;  %v11734_v23 = vld [vmem:[#allocation5 + $0x964] sm:$0xf]  ;;  %v9177_v24 = vor.u32 %v11802_v7, %v9174_v8  ;;  %v5111_v7 = vpop.f32.mrf.mxu3 }
 0x133   :  { %5356 = vmatpush.bf16.msra.mxu1 %v8937_v28  ;;  %v8902_v27 = vld [vmem:[#allocation5 + $0x970] sm:$0xf0]  ;;  %v11766_v30 = vld [vmem:[#allocation5 + $0xa64] sm:$0xf]  ;;  %v8777_v13 = vor.u32 %v11702_v20, %v8774_v18  ;;  %v5098_v6 = vadd.f32 %v5097_v63, %v5084_v25 }
 0x134   :  { %5370 = vmatpush.bf16.msra.mxu2 %v9065_v59  ;;  %v9030_v37 = vld [vmem:[#allocation5 + $0xa70] sm:$0xf0]  ;;  %v11798_v42 = vld [vmem:[#allocation5 + $0xb64] sm:$0xf]  ;;  %v8905_v50 = vor.u32 %v11734_v23, %v8902_v27 }
 0x135   :  { %5384 = vmatpush.bf16.msra.mxu3 %v9193_v62  ;;  %v9158_v49 = vld [vmem:[#allocation5 + $0xb70] sm:$0xf0]  ;;  %v9033_v28 = vor.u32 %v11766_v30, %v9030_v37  ;;  %v11698_v59 = vld [vmem:[#allocation5 + $0x844] sm:$0xf]  ;;  %v12779_v11 = vadd.f32 %v5111_v7, %v5098_v6 }
 0x136   :  { %5343 = vmatpush.bf16.msra.mxu0 %v8793_v19  ;;  %v8758_v53 = vld [vmem:[#allocation5 + $0x850] sm:$0xf0]  ;;  %v11730_v54 = vld [vmem:[#allocation5 + $0x944] sm:$0xf]  ;;  %v9161_v61 = vor.u32 %v11798_v42, %v9158_v49 }
 0x137   :  { %5357 = vmatpush.bf16.msra.mxu1 %v8921_v15  ;;  %v8886_v62 = vld [vmem:[#allocation5 + $0x950] sm:$0xf0]  ;;  %v11762_v2 = vld [vmem:[#allocation5 + $0xa44] sm:$0xf]  ;;  %v8761_v19 = vor.u32 %v11698_v59, %v8758_v53 }
 0x138   :  { %5371 = vmatpush.bf16.msra.mxu2 %v9049_v16  ;;  %v9014_v3 = vld [vmem:[#allocation5 + $0xa50] sm:$0xf0]  ;;  %v11794_v8 = vld [vmem:[#allocation5 + $0xb44] sm:$0xf]  ;;  %v8889_v15 = vor.u32 %v11730_v54, %v8886_v62 }
 0x139   :  { %5385 = vmatpush.bf16.msra.mxu3 %v9177_v24  ;;  %v9142_v9 = vld [vmem:[#allocation5 + $0xb50] sm:$0xf0]  ;;  %v9017_v16 = vor.u32 %v11762_v2, %v9014_v3  ;;  %v11694_v20 = vld [vmem:[#allocation5 + $0x824] sm:$0xf] }
 0x13a   :  { %5344 = vmatpush.bf16.msra.mxu0 %v8777_v13  ;;  %v8742_v18 = vld [vmem:[#allocation5 + $0x830] sm:$0xf0]  ;;  %v11726_v23 = vld [vmem:[#allocation5 + $0x924] sm:$0xf]  ;;  %v9145_v24 = vor.u32 %v11794_v8, %v9142_v9 }
 0x13b   :  { %5358 = vmatpush.bf16.msra.mxu1 %v8905_v50  ;;  %v8870_v27 = vld [vmem:[#allocation5 + $0x930] sm:$0xf0]  ;;  %v11758_v30 = vld [vmem:[#allocation5 + $0xa24] sm:$0xf]  ;;  %v8745_v49 = vor.u32 %v11694_v20, %v8742_v18 }
 0x13c   :  { %5372 = vmatpush.bf16.msra.mxu2 %v9033_v28  ;;  %v8998_v37 = vld [vmem:[#allocation5 + $0xa30] sm:$0xf0]  ;;  %v11790_v25 = vld [vmem:[#allocation5 + $0xb24] sm:$0xf]  ;;  %v8873_v50 = vor.u32 %v11726_v23, %v8870_v27 }
 0x13d   :  { %5386 = vmatpush.bf16.msra.mxu3 %v9161_v61  ;;  %v9126_v42 = vld [vmem:[#allocation5 + $0xb30] sm:$0xf0]  ;;  %v11690_v13 = vld [vmem:[#allocation5 + $0x804] sm:$0xf]  ;;  %v9001_v28 = vor.u32 %v11758_v30, %v8998_v37 }
 0x13e   :  { %5345 = vmatpush.bf16.msra.mxu0 %v8761_v19  ;;  %v8726_v59 = vld [vmem:[#allocation5 + $0x810] sm:$0xf0]  ;;  %v11722_v53 = vld [vmem:[#allocation5 + $0x904] sm:$0xf]  ;;  %v9129_v62 = vor.u32 %v11790_v25, %v9126_v42 }
 0x13f   :  { %5359 = vmatpush.bf16.msra.mxu1 %v8889_v15  ;;  %v8854_v54 = vld [vmem:[#allocation5 + $0x910] sm:$0xf0]  ;;  %v11754_v63 = vld [vmem:[#allocation5 + $0xa04] sm:$0xf]  ;;  %v8729_v9 = vor.u32 %v11690_v13, %v8726_v59 }
 0x140   :  { %5373 = vmatpush.bf16.msra.mxu2 %v9017_v16  ;;  %v8982_v61 = vld [vmem:[#allocation5 + $0xa10] sm:$0xf0]  ;;  %v11786_v2 = vld [vmem:[#allocation5 + $0xb04] sm:$0xf]  ;;  %v8857_v15 = vor.u32 %v11722_v53, %v8854_v54  ;;  %v12783_v53 = vpop.f32.mrf.mxu1 }
 0x141   :  { %5387 = vmatpush.bf16.msra.mxu3 %v9145_v24  ;;  %v9110_v3 = vld [vmem:[#allocation5 + $0xb10] sm:$0xf0]  ;;  %v11846_v6 = vld [vmem:[#allocation5 + $0xce4] sm:$0xf]  ;;  %v8985_v16 = vor.u32 %v11754_v63, %v8982_v61  ;;  %13256 = vst [vmem:[#allocation30_spill] sm:$0xff] %v12783_v53 }
 0x142   :  { %v9350_v7 = vld [vmem:[#allocation5 + $0xcf0] sm:$0xf0]  ;;  %v11878_v8 = vld [vmem:[#allocation5 + $0xde4] sm:$0xf]  ;;  %5346 = vmatpush.bf16.msra.mxu0 %v8745_v49  ;;  %v9113_v24 = vor.u32 %v11786_v2, %v9110_v3 }
 0x143   :  { %v9478_v19 = vld [vmem:[#allocation5 + $0xdf0] sm:$0xf0]  ;;  %v11910_v20 = vld [vmem:[#allocation5 + $0xee4] sm:$0xf]  ;;  %5360 = vmatpush.bf16.msra.mxu1 %v8873_v50  ;;  %v9353_v30 = vor.u32 %v11846_v6, %v9350_v7 }
 0x144   :  { %v9606_v18 = vld [vmem:[#allocation5 + $0xef0] sm:$0xf0]  ;;  %5374 = vmatpush.bf16.msra.mxu2 %v9001_v28  ;;  %v11942_v23 = vld [vmem:[#allocation5 + $0xfe4] sm:$0xf]  ;;  %v9481_v37 = vor.u32 %v11878_v8, %v9478_v19 }
 0x145   :  { %v9734_v27 = vld [vmem:[#allocation5 + $0xff0] sm:$0xf0]  ;;  %5388 = vmatpush.bf16.msra.mxu3 %v9129_v62  ;;  %v9609_v25 = vor.u32 %v11910_v20, %v9606_v18  ;;  %v11842_v42 = vld [vmem:[#allocation5 + $0xcc4] sm:$0xf] }
 0x146   :  { %v9334_v0 = vld [vmem:[#allocation5 + $0xcd0] sm:$0xf0]  ;;  %v11874_v29 = vld [vmem:[#allocation5 + $0xdc4] sm:$0xf]  ;;  %5347 = vmatpush.bf16.msra.mxu0 %v8729_v9  ;;  %v9737_v49 = vor.u32 %v11942_v23, %v9734_v27  ;;  %v12789_v23 = vpop.f32.mrf.mxu2 }
 0x147   :  { %v9462_v13 = vld [vmem:[#allocation5 + $0xdd0] sm:$0xf0]  ;;  %v11906_v59 = vld [vmem:[#allocation5 + $0xec4] sm:$0xf]  ;;  %5361 = vmatpush.bf16.msra.mxu1 %v8857_v15  ;;  %v9337_v54 = vor.u32 %v11842_v42, %v9334_v0  ;;  %13257 = vst [vmem:[#allocation31_spill] sm:$0xff] %v12789_v23 }
 0x148   :  { %v9590_v12 = vld [vmem:[#allocation5 + $0xed0] sm:$0xf0]  ;;  %5375 = vmatpush.bf16.msra.mxu2 %v8985_v16  ;;  %v11938_v50 = vld [vmem:[#allocation5 + $0xfc4] sm:$0xf]  ;;  %v9465_v63 = vor.u32 %v11874_v29, %v9462_v13 }
 0x149   :  { %v9718_v28 = vld [vmem:[#allocation5 + $0xfd0] sm:$0xf0]  ;;  %5389 = vmatpush.bf16.msra.mxu3 %v9113_v24  ;;  %v9593_v62 = vor.u32 %v11906_v59, %v9590_v12  ;;  %v11838_v61 = vld [vmem:[#allocation5 + $0xca4] sm:$0xf]  ;;  %5348 = vmatmul.bf16.vlgmr.msra.gmra.mxu0 %v12685_v31  ;;  %v5125_v42 = vpop.f32.mrf.mxu0 }
 0x14a   :  { %5396 = vmatpush.bf16.msrb.mxu0 %v9353_v30  ;;  %v9318_v2 = vld [vmem:[#allocation5 + $0xcb0] sm:$0xf0]  ;;  %v11870_v3 = vld [vmem:[#allocation5 + $0xda4] sm:$0xf]  ;;  %v9721_v6 = vor.u32 %v11938_v50, %v9718_v28  ;;  %5362 = vmatmul.bf16.vlgmr.msra.gmra.mxu1 %v12689_v36  ;;  %v5126_v59 = vadd.f32 %v5125_v42, %v12779_v11  ;;  %v5139_v28 = vpop.f32.mrf.mxu1 }
 0x14b   :  { %5410 = vmatpush.bf16.msrb.mxu1 %v9481_v37  ;;  %v9446_v7 = vld [vmem:[#allocation5 + $0xdb0] sm:$0xf0]  ;;  %v11902_v8 = vld [vmem:[#allocation5 + $0xea4] sm:$0xf]  ;;  %5376 = vmatmul.bf16.vlgmr.msra.gmra.mxu2 %v12687_v35  ;;  %v9321_v12 = vor.u32 %v11838_v61, %v9318_v2 }
 0x14c   :  { %5424 = vmatpush.bf16.msrb.mxu2 %v9609_v25  ;;  %v9574_v9 = vld [vmem:[#allocation5 + $0xeb0] sm:$0xf0]  ;;  %v11934_v19 = vld [vmem:[#allocation5 + $0xfa4] sm:$0xf]  ;;  %5390 = vmatmul.bf16.vlgmr.msra.gmra.mxu3 %v12691_v40  ;;  %v9449_v29 = vor.u32 %v11870_v3, %v9446_v7  ;;  %v12791_v25 = vpop.f32.mrf.mxu3 }
 0x14d   :  { %5438 = vmatpush.bf16.msrb.mxu3 %v9737_v49  ;;  %v9702_v0 = vld [vmem:[#allocation5 + $0xfb0] sm:$0xf0]  ;;  %v9577_v20 = vor.u32 %v11902_v8, %v9574_v9  ;;  %v11834_v18 = vld [vmem:[#allocation5 + $0xc84] sm:$0xf]  ;;  %13258 = vst [vmem:[#allocation32_spill] sm:$0xff] %v12791_v25 }
 0x14e   :  { %5397 = vmatpush.bf16.msrb.mxu0 %v9337_v54  ;;  %v9302_v15 = vld [vmem:[#allocation5 + $0xc90] sm:$0xf0]  ;;  %v11866_v16 = vld [vmem:[#allocation5 + $0xd84] sm:$0xf]  ;;  %v9705_v27 = vor.u32 %v11934_v19, %v9702_v0 }
 0x14f   :  { %5411 = vmatpush.bf16.msrb.mxu1 %v9465_v63  ;;  %v9430_v24 = vld [vmem:[#allocation5 + $0xd90] sm:$0xf0]  ;;  %v11898_v30 = vld [vmem:[#allocation5 + $0xe84] sm:$0xf]  ;;  %v9305_v50 = vor.u32 %v11834_v18, %v9302_v15 }
 0x150   :  { %5425 = vmatpush.bf16.msrb.mxu2 %v9593_v62  ;;  %v9558_v37 = vld [vmem:[#allocation5 + $0xe90] sm:$0xf0]  ;;  %v11930_v49 = vld [vmem:[#allocation5 + $0xf84] sm:$0xf]  ;;  %v9433_v54 = vor.u32 %v11866_v16, %v9430_v24  ;;  %v5153_v24 = vpop.f32.mrf.mxu2 }
 0x151   :  { %5439 = vmatpush.bf16.msrb.mxu3 %v9721_v6  ;;  %v9686_v13 = vld [vmem:[#allocation5 + $0xf90] sm:$0xf0]  ;;  %v9561_v63 = vor.u32 %v11898_v30, %v9558_v37  ;;  %v11830_v62 = vld [vmem:[#allocation5 + $0xc64] sm:$0xf]  ;;  %v5140_v6 = vadd.f32 %v5139_v28, %v5126_v59  ;;  %v12796_v22 = vpop.f32.mrf.mxu0 }
 0x152   :  { %5398 = vmatpush.bf16.msrb.mxu0 %v9321_v12  ;;  %v9286_v61 = vld [vmem:[#allocation5 + $0xc70] sm:$0xf0]  ;;  %v11862_v2 = vld [vmem:[#allocation5 + $0xd64] sm:$0xf]  ;;  %v9689_v3 = vor.u32 %v11930_v49, %v9686_v13  ;;  %13259 = vst [vmem:[#allocation33_spill] sm:$0xff] %v12796_v22 }
 0x153   :  { %5412 = vmatpush.bf16.msrb.mxu1 %v9449_v29  ;;  %v9414_v7 = vld [vmem:[#allocation5 + $0xd70] sm:$0xf0]  ;;  %v11894_v8 = vld [vmem:[#allocation5 + $0xe64] sm:$0xf]  ;;  %v9289_v12 = vor.u32 %v11830_v62, %v9286_v61  ;;  %v5154_v42 = vadd.f32 %v5153_v24, %v5140_v6  ;;  %v8060_v22 = vld [vmem:[#allocation5 + $0x2c8] sm:$0xf] }
 0x154   :  { %5426 = vmatpush.bf16.msrb.mxu2 %v9577_v20  ;;  %v9542_v9 = vld [vmem:[#allocation5 + $0xe70] sm:$0xf0]  ;;  %v11926_v19 = vld [vmem:[#allocation5 + $0xf64] sm:$0xf]  ;;  %v9417_v11 = vor.u32 %v11862_v2, %v9414_v7  ;;  %v5167_v49 = vpop.f32.mrf.mxu3 }
 0x155   :  { %5440 = vmatpush.bf16.msrb.mxu3 %v9705_v27  ;;  %v9670_v0 = vld [vmem:[#allocation5 + $0xf70] sm:$0xf0]  ;;  %v9545_v29 = vor.u32 %v11894_v8, %v9542_v9  ;;  %v11826_v20 = vld [vmem:[#allocation5 + $0xc44] sm:$0xf]  ;;  %v12794_v28 = vadd.f32 %v5167_v49, %v5154_v42 }
 0x156   :  { %5399 = vmatpush.bf16.msrb.mxu0 %v9305_v50  ;;  %v9270_v18 = vld [vmem:[#allocation5 + $0xc50] sm:$0xf0]  ;;  %v11858_v15 = vld [vmem:[#allocation5 + $0xd44] sm:$0xf]  ;;  %v9673_v16 = vor.u32 %v11926_v19, %v9670_v0 }
 0x157   :  { %5413 = vmatpush.bf16.msrb.mxu1 %v9433_v54  ;;  %v9398_v27 = vld [vmem:[#allocation5 + $0xd50] sm:$0xf0]  ;;  %v11890_v30 = vld [vmem:[#allocation5 + $0xe44] sm:$0xf]  ;;  %v9273_v50 = vor.u32 %v11826_v20, %v9270_v18 }
 0x158   :  { %5427 = vmatpush.bf16.msrb.mxu2 %v9561_v63  ;;  %v9526_v37 = vld [vmem:[#allocation5 + $0xe50] sm:$0xf0]  ;;  %v11922_v13 = vld [vmem:[#allocation5 + $0xf44] sm:$0xf]  ;;  %v9401_v54 = vor.u32 %v11858_v15, %v9398_v27 }
 0x159   :  { %5441 = vmatpush.bf16.msrb.mxu3 %v9689_v3  ;;  %v9654_v59 = vld [vmem:[#allocation5 + $0xf50] sm:$0xf0]  ;;  %v9529_v63 = vor.u32 %v11890_v30, %v9526_v37  ;;  %v11822_v62 = vld [vmem:[#allocation5 + $0xc24] sm:$0xf] }
 0x15a   :  { %5400 = vmatpush.bf16.msrb.mxu0 %v9289_v12  ;;  %v9254_v61 = vld [vmem:[#allocation5 + $0xc30] sm:$0xf0]  ;;  %v11854_v2 = vld [vmem:[#allocation5 + $0xd24] sm:$0xf]  ;;  %v9657_v3 = vor.u32 %v11922_v13, %v9654_v59 }
 0x15b   :  { %5414 = vmatpush.bf16.msrb.mxu1 %v9417_v11  ;;  %v9382_v7 = vld [vmem:[#allocation5 + $0xd30] sm:$0xf0]  ;;  %v11886_v8 = vld [vmem:[#allocation5 + $0xe24] sm:$0xf]  ;;  %v9257_v0 = vor.u32 %v11822_v62, %v9254_v61 }
 0x15c   :  { %5428 = vmatpush.bf16.msrb.mxu2 %v9545_v29  ;;  %v9510_v9 = vld [vmem:[#allocation5 + $0xe30] sm:$0xf0]  ;;  %v11918_v6 = vld [vmem:[#allocation5 + $0xf24] sm:$0xf]  ;;  %v9385_v11 = vor.u32 %v11854_v2, %v9382_v7 }
 0x15d   :  { %5442 = vmatpush.bf16.msrb.mxu3 %v9673_v16  ;;  %v9638_v19 = vld [vmem:[#allocation5 + $0xf30] sm:$0xf0]  ;;  %v11818_v12 = vld [vmem:[#allocation5 + $0xc04] sm:$0xf]  ;;  %v9513_v29 = vor.u32 %v11886_v8, %v9510_v9 }
 0x15e   :  { %5401 = vmatpush.bf16.msrb.mxu0 %v9273_v50  ;;  %v9238_v20 = vld [vmem:[#allocation5 + $0xc10] sm:$0xf0]  ;;  %v11850_v18 = vld [vmem:[#allocation5 + $0xd04] sm:$0xf]  ;;  %v9641_v27 = vor.u32 %v11918_v6, %v9638_v19 }
 0x15f   :  { %5415 = vmatpush.bf16.msrb.mxu1 %v9401_v54  ;;  %v9366_v15 = vld [vmem:[#allocation5 + $0xd10] sm:$0xf0]  ;;  %v11882_v24 = vld [vmem:[#allocation5 + $0xe04] sm:$0xf]  ;;  %v9241_v59 = vor.u32 %v11818_v12, %v9238_v20 }
 0x160   :  { %5429 = vmatpush.bf16.msrb.mxu2 %v9529_v63  ;;  %v9494_v16 = vld [vmem:[#allocation5 + $0xe10] sm:$0xf0]  ;;  %v11914_v30 = vld [vmem:[#allocation5 + $0xf04] sm:$0xf]  ;;  %v9369_v54 = vor.u32 %v11850_v18, %v9366_v15  ;;  %v12798_v18 = vpop.f32.mrf.mxu1 }
 0x161   :  { %5443 = vmatpush.bf16.msrb.mxu3 %v9657_v3  ;;  %v9622_v37 = vld [vmem:[#allocation5 + $0xf10] sm:$0xf0]  ;;  %v11974_v42 = vld [vmem:[#allocation5 + $0x10e4] sm:$0xf]  ;;  %v9497_v63 = vor.u32 %v11882_v24, %v9494_v16  ;;  %13260 = vst [vmem:[#allocation34_spill] sm:$0xff] %v12798_v18 }
 0x162   :  { %v9862_v49 = vld [vmem:[#allocation5 + $0x10f0] sm:$0xf0]  ;;  %v12006_v13 = vld [vmem:[#allocation5 + $0x11e4] sm:$0xf]  ;;  %5402 = vmatpush.bf16.msrb.mxu0 %v9257_v0  ;;  %v9625_v3 = vor.u32 %v11914_v30, %v9622_v37 }
 0x163   :  { %v9990_v50 = vld [vmem:[#allocation5 + $0x11f0] sm:$0xf0]  ;;  %v12038_v62 = vld [vmem:[#allocation5 + $0x12e4] sm:$0xf]  ;;  %5416 = vmatpush.bf16.msrb.mxu1 %v9385_v11  ;;  %v9865_v8 = vor.u32 %v11974_v42, %v9862_v49 }
 0x164   :  { %v10118_v61 = vld [vmem:[#allocation5 + $0x12f0] sm:$0xf0]  ;;  %5430 = vmatpush.bf16.msrb.mxu2 %v9513_v29  ;;  %v12070_v2 = vld [vmem:[#allocation5 + $0x13e4] sm:$0xf]  ;;  %v9993_v9 = vor.u32 %v12006_v13, %v9990_v50 }
 0x165   :  { %v10246_v7 = vld [vmem:[#allocation5 + $0x13f0] sm:$0xf0]  ;;  %5444 = vmatpush.bf16.msrb.mxu3 %v9641_v27  ;;  %v10121_v6 = vor.u32 %v12038_v62, %v10118_v61  ;;  %v11970_v19 = vld [vmem:[#allocation5 + $0x10c4] sm:$0xf] }
 0x166   :  { %v9846_v25 = vld [vmem:[#allocation5 + $0x10d0] sm:$0xf0]  ;;  %v12002_v23 = vld [vmem:[#allocation5 + $0x11c4] sm:$0xf]  ;;  %5403 = vmatpush.bf16.msrb.mxu0 %v9241_v59  ;;  %v10249_v0 = vor.u32 %v12070_v2, %v10246_v7  ;;  %v12804_v2 = vpop.f32.mrf.mxu2 }
 0x167   :  { %v9974_v12 = vld [vmem:[#allocation5 + $0x11d0] sm:$0xf0]  ;;  %v12034_v20 = vld [vmem:[#allocation5 + $0x12c4] sm:$0xf]  ;;  %5417 = vmatpush.bf16.msrb.mxu1 %v9369_v54  ;;  %v9849_v15 = vor.u32 %v11970_v19, %v9846_v25  ;;  %13261 = vst [vmem:[#allocation35_spill] sm:$0xff] %v12804_v2  ;;  %v5181_v19 = vpop.f32.mrf.mxu0 }
 0x168   :  { %v10102_v53 = vld [vmem:[#allocation5 + $0x12d0] sm:$0xf0]  ;;  %5431 = vmatpush.bf16.msrb.mxu2 %v9497_v63  ;;  %v12066_v11 = vld [vmem:[#allocation5 + $0x13c4] sm:$0xf]  ;;  %v9977_v24 = vor.u32 %v12002_v23, %v9974_v12 }
 0x169   :  { %v10230_v29 = vld [vmem:[#allocation5 + $0x13d0] sm:$0xf0]  ;;  %5445 = vmatpush.bf16.msrb.mxu3 %v9625_v3  ;;  %v10105_v27 = vor.u32 %v12034_v20, %v10102_v53  ;;  %v11966_v16 = vld [vmem:[#allocation5 + $0x10a4] sm:$0xf]  ;;  %5404 = vmatmul.bf16.vlgmr.msrb.gmra.mxu0 %v12697_v32  ;;  %v5182_v20 = vadd.f32 %v5181_v19, %v12794_v28 }
 0x16a   :  { %5452 = vmatpush.bf16.msra.mxu0 %v9865_v8  ;;  %v9830_v30 = vld [vmem:[#allocation5 + $0x10b0] sm:$0xf0]  ;;  %v11998_v37 = vld [vmem:[#allocation5 + $0x11a4] sm:$0xf]  ;;  %v10233_v42 = vor.u32 %v12066_v11, %v10230_v29  ;;  %5418 = vmatmul.bf16.vlgmr.msrb.gmra.mxu1 %v12701_v41  ;;  %v5195_v29 = vpop.f32.mrf.mxu1 }
 0x16b   :  { %5466 = vmatpush.bf16.msra.mxu1 %v9993_v9  ;;  %v9958_v49 = vld [vmem:[#allocation5 + $0x11b0] sm:$0xf0]  ;;  %v12030_v13 = vld [vmem:[#allocation5 + $0x12a4] sm:$0xf]  ;;  %5432 = vmatmul.bf16.vlgmr.msrb.gmra.mxu2 %v12699_v38  ;;  %v9833_v53 = vor.u32 %v11966_v16, %v9830_v30 }
 0x16c   :  { %5480 = vmatpush.bf16.msra.mxu2 %v10121_v6  ;;  %v10086_v59 = vld [vmem:[#allocation5 + $0x12b0] sm:$0xf0]  ;;  %v12062_v50 = vld [vmem:[#allocation5 + $0x13a4] sm:$0xf]  ;;  %5446 = vmatmul.bf16.vlgmr.msrb.gmra.mxu3 %v12703_v46  ;;  %v9961_v23 = vor.u32 %v11998_v37, %v9958_v49  ;;  %v12806_v6 = vpop.f32.mrf.mxu3 }
 0x16d   :  { %5494 = vmatpush.bf16.msra.mxu3 %v10249_v0  ;;  %v10214_v25 = vld [vmem:[#allocation5 + $0x13b0] sm:$0xf0]  ;;  %v10089_v62 = vor.u32 %v12030_v13, %v10086_v59  ;;  %v11962_v61 = vld [vmem:[#allocation5 + $0x1084] sm:$0xf]  ;;  %13262 = vst [vmem:[#allocation36_spill] sm:$0xff] %v12806_v6 }
 0x16e   :  { %5453 = vmatpush.bf16.msra.mxu0 %v9849_v15  ;;  %v9814_v54 = vld [vmem:[#allocation5 + $0x1090] sm:$0xf0]  ;;  %v11994_v63 = vld [vmem:[#allocation5 + $0x1184] sm:$0xf]  ;;  %v10217_v7 = vor.u32 %v12062_v50, %v10214_v25 }
 0x16f   :  { %5467 = vmatpush.bf16.msra.mxu1 %v9977_v24  ;;  %v9942_v3 = vld [vmem:[#allocation5 + $0x1190] sm:$0xf0]  ;;  %v12026_v8 = vld [vmem:[#allocation5 + $0x1284] sm:$0xf]  ;;  %v9817_v11 = vor.u32 %v11962_v61, %v9814_v54  ;;  %v12811_v18 = vpop.f32.mrf.mxu0 }
 0x170   :  { %5481 = vmatpush.bf16.msra.mxu2 %v10105_v27  ;;  %v10070_v9 = vld [vmem:[#allocation5 + $0x1290] sm:$0xf0]  ;;  %v12058_v0 = vld [vmem:[#allocation5 + $0x1384] sm:$0xf]  ;;  %v9945_v15 = vor.u32 %v11994_v63, %v9942_v3  ;;  %v5209_v3 = vpop.f32.mrf.mxu2  ;;  %13264 = vst [vmem:[#allocation38_spill] sm:$0xff] %v12811_v18 }
 0x171   :  { %5495 = vmatpush.bf16.msra.mxu3 %v10233_v42  ;;  %v10198_v12 = vld [vmem:[#allocation5 + $0x1390] sm:$0xf0]  ;;  %v10073_v24 = vor.u32 %v12026_v8, %v10070_v9  ;;  %v11958_v27 = vld [vmem:[#allocation5 + $0x1064] sm:$0xf]  ;;  %v5196_v42 = vadd.f32 %v5195_v29, %v5182_v20  ;;  %v11461_v18 = vld [vmem:[#allocation5 + $0xd4] sm:$0xf0] }
 0x172   :  { %5454 = vmatpush.bf16.msra.mxu0 %v9833_v53  ;;  %v9798_v16 = vld [vmem:[#allocation5 + $0x1070] sm:$0xf0]  ;;  %v11990_v30 = vld [vmem:[#allocation5 + $0x1164] sm:$0xf]  ;;  %v10201_v37 = vor.u32 %v12058_v0, %v10198_v12 }
 0x173   :  { %5468 = vmatpush.bf16.msra.mxu1 %v9961_v23  ;;  %v9926_v49 = vld [vmem:[#allocation5 + $0x1170] sm:$0xf0]  ;;  %v12022_v13 = vld [vmem:[#allocation5 + $0x1264] sm:$0xf]  ;;  %v9801_v53 = vor.u32 %v11958_v27, %v9798_v16  ;;  %v5210_v19 = vadd.f32 %v5209_v3, %v5196_v42 }
 0x174   :  { %5482 = vmatpush.bf16.msra.mxu2 %v10089_v62  ;;  %v10054_v59 = vld [vmem:[#allocation5 + $0x1270] sm:$0xf0]  ;;  %v12054_v50 = vld [vmem:[#allocation5 + $0x1364] sm:$0xf]  ;;  %v9929_v28 = vor.u32 %v11990_v30, %v9926_v49  ;;  %v5223_v0 = vpop.f32.mrf.mxu3 }
 0x175   :  { %5496 = vmatpush.bf16.msra.mxu3 %v10217_v7  ;;  %v10182_v25 = vld [vmem:[#allocation5 + $0x1370] sm:$0xf0]  ;;  %v10057_v23 = vor.u32 %v12022_v13, %v10054_v59  ;;  %v11954_v62 = vld [vmem:[#allocation5 + $0x1044] sm:$0xf]  ;;  %v12809_v29 = vadd.f32 %v5223_v0, %v5210_v19 }
 0x176   :  { %5455 = vmatpush.bf16.msra.mxu0 %v9817_v11  ;;  %v9782_v61 = vld [vmem:[#allocation5 + $0x1050] sm:$0xf0]  ;;  %v11986_v54 = vld [vmem:[#allocation5 + $0x1144] sm:$0xf]  ;;  %v10185_v63 = vor.u32 %v12054_v50, %v10182_v25 }
 0x177   :  { %5469 = vmatpush.bf16.msra.mxu1 %v9945_v15  ;;  %v9910_v7 = vld [vmem:[#allocation5 + $0x1150] sm:$0xf0]  ;;  %v12018_v8 = vld [vmem:[#allocation5 + $0x1244] sm:$0xf]  ;;  %v9785_v11 = vor.u32 %v11954_v62, %v9782_v61  ;;  %13263 = vst [vmem:[#allocation37_spill] sm:$0xff] %v12809_v29 }
 0x178   :  { %5483 = vmatpush.bf16.msra.mxu2 %v10073_v24  ;;  %v10038_v9 = vld [vmem:[#allocation5 + $0x1250] sm:$0xf0]  ;;  %v12050_v12 = vld [vmem:[#allocation5 + $0x1344] sm:$0xf]  ;;  %v9913_v15 = vor.u32 %v11986_v54, %v9910_v7 }
 0x179   :  { %5497 = vmatpush.bf16.msra.mxu3 %v10201_v37  ;;  %v10166_v20 = vld [vmem:[#allocation5 + $0x1350] sm:$0xf0]  ;;  %v10041_v24 = vor.u32 %v12018_v8, %v10038_v9  ;;  %v11950_v27 = vld [vmem:[#allocation5 + $0x1024] sm:$0xf] }
 0x17a   :  { %5456 = vmatpush.bf16.msra.mxu0 %v9801_v53  ;;  %v9766_v16 = vld [vmem:[#allocation5 + $0x1030] sm:$0xf0]  ;;  %v11982_v30 = vld [vmem:[#allocation5 + $0x1124] sm:$0xf]  ;;  %v10169_v37 = vor.u32 %v12050_v12, %v10166_v20 }
 0x17b   :  { %5470 = vmatpush.bf16.msra.mxu1 %v9929_v28  ;;  %v9894_v49 = vld [vmem:[#allocation5 + $0x1130] sm:$0xf0]  ;;  %v12014_v13 = vld [vmem:[#allocation5 + $0x1224] sm:$0xf]  ;;  %v9769_v25 = vor.u32 %v11950_v27, %v9766_v16 }
 0x17c   :  { %5484 = vmatpush.bf16.msra.mxu2 %v10057_v23  ;;  %v10022_v59 = vld [vmem:[#allocation5 + $0x1230] sm:$0xf0]  ;;  %v12046_v42 = vld [vmem:[#allocation5 + $0x1324] sm:$0xf]  ;;  %v9897_v28 = vor.u32 %v11982_v30, %v9894_v49 }
 0x17d   :  { %5498 = vmatpush.bf16.msra.mxu3 %v10185_v63  ;;  %v10150_v50 = vld [vmem:[#allocation5 + $0x1330] sm:$0xf0]  ;;  %v11946_v53 = vld [vmem:[#allocation5 + $0x1004] sm:$0xf]  ;;  %v10025_v23 = vor.u32 %v12014_v13, %v10022_v59 }
 0x17e   :  { %5457 = vmatpush.bf16.msra.mxu0 %v9785_v11  ;;  %v9750_v62 = vld [vmem:[#allocation5 + $0x1010] sm:$0xf0]  ;;  %v11978_v61 = vld [vmem:[#allocation5 + $0x1104] sm:$0xf]  ;;  %v10153_v7 = vor.u32 %v12046_v42, %v10150_v50 }
 0x17f   :  { %5471 = vmatpush.bf16.msra.mxu1 %v9913_v15  ;;  %v9878_v54 = vld [vmem:[#allocation5 + $0x1110] sm:$0xf0]  ;;  %v12010_v3 = vld [vmem:[#allocation5 + $0x1204] sm:$0xf]  ;;  %v9753_v20 = vor.u32 %v11946_v53, %v9750_v62 }
 0x180   :  { %5485 = vmatpush.bf16.msra.mxu2 %v10041_v24  ;;  %v10006_v63 = vld [vmem:[#allocation5 + $0x1210] sm:$0xf0]  ;;  %v12042_v8 = vld [vmem:[#allocation5 + $0x1304] sm:$0xf]  ;;  %v9881_v15 = vor.u32 %v11978_v61, %v9878_v54  ;;  %v12813_v54 = vpop.f32.mrf.mxu1 }
 0x181   :  { %5499 = vmatpush.bf16.msra.mxu3 %v10169_v37  ;;  %v10134_v9 = vld [vmem:[#allocation5 + $0x1310] sm:$0xf0]  ;;  %v12102_v19 = vld [vmem:[#allocation5 + $0x14e4] sm:$0xf]  ;;  %v10009_v24 = vor.u32 %v12010_v3, %v10006_v63  ;;  %13265 = vst [vmem:[#allocation39_spill] sm:$0xff] %v12813_v54 }
 0x182   :  { %v10374_v0 = vld [vmem:[#allocation5 + $0x14f0] sm:$0xf0]  ;;  %v12134_v12 = vld [vmem:[#allocation5 + $0x15e4] sm:$0xf]  ;;  %5458 = vmatpush.bf16.msra.mxu0 %v9769_v25  ;;  %v10137_v37 = vor.u32 %v12042_v8, %v10134_v9  ;;  %v7804_v54 = vld [vmem:[#allocation5 + $0xc8] sm:$0xf] }
 0x183   :  { %v10502_v11 = vld [vmem:[#allocation5 + $0x15f0] sm:$0xf0]  ;;  %v12166_v27 = vld [vmem:[#allocation5 + $0x16e4] sm:$0xf]  ;;  %5472 = vmatpush.bf16.msra.mxu1 %v9897_v28  ;;  %v10377_v13 = vor.u32 %v12102_v19, %v10374_v0 }
 0x184   :  { %v10630_v16 = vld [vmem:[#allocation5 + $0x16f0] sm:$0xf0]  ;;  %5486 = vmatpush.bf16.msra.mxu2 %v10025_v23  ;;  %v12198_v30 = vld [vmem:[#allocation5 + $0x17e4] sm:$0xf]  ;;  %v10505_v59 = vor.u32 %v12134_v12, %v10502_v11 }
 0x185   :  { %v10758_v49 = vld [vmem:[#allocation5 + $0x17f0] sm:$0xf0]  ;;  %5500 = vmatpush.bf16.msra.mxu3 %v10153_v7  ;;  %v10633_v42 = vor.u32 %v12166_v27, %v10630_v16  ;;  %v12098_v50 = vld [vmem:[#allocation5 + $0x14c4] sm:$0xf] }
 0x186   :  { %v10358_v29 = vld [vmem:[#allocation5 + $0x14d0] sm:$0xf0]  ;;  %v12130_v6 = vld [vmem:[#allocation5 + $0x15c4] sm:$0xf]  ;;  %5459 = vmatpush.bf16.msra.mxu0 %v9753_v20  ;;  %v10761_v25 = vor.u32 %v12198_v30, %v10758_v49 }
 0x187   :  { %v10486_v53 = vld [vmem:[#allocation5 + $0x15d0] sm:$0xf0]  ;;  %v12162_v62 = vld [vmem:[#allocation5 + $0x16c4] sm:$0xf]  ;;  %5473 = vmatpush.bf16.msra.mxu1 %v9881_v15  ;;  %v10361_v61 = vor.u32 %v12098_v50, %v10358_v29 }
 0x188   :  { %v10614_v2 = vld [vmem:[#allocation5 + $0x16d0] sm:$0xf0]  ;;  %5487 = vmatpush.bf16.msra.mxu2 %v10009_v24  ;;  %v12194_v28 = vld [vmem:[#allocation5 + $0x17c4] sm:$0xf]  ;;  %v10489_v3 = vor.u32 %v12130_v6, %v10486_v53  ;;  %v12819_v6 = vld [vmem:[#allocation7] sm:$0xf] }
 0x189   :  { %v10742_v23 = vld [vmem:[#allocation5 + $0x17d0] sm:$0xf0]  ;;  %5501 = vmatpush.bf16.msra.mxu3 %v10137_v37  ;;  %v10617_v7 = vor.u32 %v12162_v62, %v10614_v2  ;;  %v12094_v63 = vld [vmem:[#allocation5 + $0x14a4] sm:$0xf]  ;;  %5460 = vmatmul.bf16.vlgmr.msra.gmra.mxu0 %v12709_v51  ;;  %v13245_v27 = vperm.slane %v12819_v6, 1  ;;  %v12822_v37 = vpop.f32.mrf.mxu2  ;;  %v5237_v62 = vpop.f32.mrf.mxu0 }
 0x18a   :  { %5508 = vmatpush.bf16.msrb.mxu0 %v10377_v13  ;;  %v10342_v8 = vld [vmem:[#allocation5 + $0x14b0] sm:$0xf0]  ;;  %v12126_v9 = vld [vmem:[#allocation5 + $0x15a4] sm:$0xf]  ;;  %v10745_v19 = vor.u32 %v12194_v28, %v10742_v23  ;;  %5474 = vmatmul.bf16.vlgmr.msra.gmra.mxu1 %v12713_v56  ;;  %13266 = vst [vmem:[#allocation40_spill] sm:$0xff] %v12822_v37  ;;  %v12824_v28 = vpop.f32.mrf.mxu3 }
 0x18b   :  { %5522 = vmatpush.bf16.msrb.mxu1 %v10505_v59  ;;  %v10470_v0 = vld [vmem:[#allocation5 + $0x15b0] sm:$0xf0]  ;;  %v12158_v12 = vld [vmem:[#allocation5 + $0x16a4] sm:$0xf]  ;;  %5488 = vmatmul.bf16.vlgmr.msra.gmra.mxu2 %v12711_v55  ;;  %v10345_v2 = vor.u32 %v12094_v63, %v10342_v8  ;;  %13267 = vst [vmem:[#allocation41_spill] sm:$0xff] %v12824_v28 }
 0x18c   :  { %5536 = vmatpush.bf16.msrb.mxu2 %v10633_v42  ;;  %v10598_v20 = vld [vmem:[#allocation5 + $0x16b0] sm:$0xf0]  ;;  %v12190_v29 = vld [vmem:[#allocation5 + $0x17a4] sm:$0xf]  ;;  %5502 = vmatmul.bf16.vlgmr.msra.gmra.mxu3 %v12715_v60  ;;  %v10473_v16 = vor.u32 %v12126_v9, %v10470_v0 }
 0x18d   :  { %5550 = vmatpush.bf16.msrb.mxu3 %v10761_v25  ;;  %v10726_v11 = vld [vmem:[#allocation5 + $0x17b0] sm:$0xf0]  ;;  %v10601_v15 = vor.u32 %v12158_v12, %v10598_v20  ;;  %v12090_v24 = vld [vmem:[#allocation5 + $0x1484] sm:$0xf] }
 0x18e   :  { %5509 = vmatpush.bf16.msrb.mxu0 %v10361_v61  ;;  %v10326_v30 = vld [vmem:[#allocation5 + $0x1490] sm:$0xf0]  ;;  %v12122_v49 = vld [vmem:[#allocation5 + $0x1584] sm:$0xf]  ;;  %v10729_v13 = vor.u32 %v12190_v29, %v10726_v11  ;;  %v5238_v61 = vadd.f32 %v5237_v62, %v13245_v27 }
 0x18f   :  { %5523 = vmatpush.bf16.msrb.mxu1 %v10489_v3  ;;  %v10454_v59 = vld [vmem:[#allocation5 + $0x1590] sm:$0xf0]  ;;  %v12154_v42 = vld [vmem:[#allocation5 + $0x1684] sm:$0xf]  ;;  %v10329_v23 = vor.u32 %v12090_v24, %v10326_v30 }
 0x190   :  { %5537 = vmatpush.bf16.msrb.mxu2 %v10617_v7  ;;  %v10582_v50 = vld [vmem:[#allocation5 + $0x1690] sm:$0xf0]  ;;  %v12186_v25 = vld [vmem:[#allocation5 + $0x1784] sm:$0xf]  ;;  %v10457_v3 = vor.u32 %v12122_v49, %v10454_v59 }
 0x191   :  { %5551 = vmatpush.bf16.msrb.mxu3 %v10745_v19  ;;  %v10710_v53 = vld [vmem:[#allocation5 + $0x1790] sm:$0xf0]  ;;  %v10585_v7 = vor.u32 %v12154_v42, %v10582_v50  ;;  %v12086_v63 = vld [vmem:[#allocation5 + $0x1464] sm:$0xf]  ;;  %v5251_v19 = vpop.f32.mrf.mxu1 }
 0x192   :  { %5510 = vmatpush.bf16.msrb.mxu0 %v10345_v2  ;;  %v10310_v8 = vld [vmem:[#allocation5 + $0x1470] sm:$0xf0]  ;;  %v12118_v9 = vld [vmem:[#allocation5 + $0x1564] sm:$0xf]  ;;  %v10713_v0 = vor.u32 %v12186_v25, %v10710_v53  ;;  %v5252_v11 = vadd.f32 %v5251_v19, %v5238_v61  ;;  %v5265_v53 = vpop.f32.mrf.mxu2 }
 0x193   :  { %5524 = vmatpush.bf16.msrb.mxu1 %v10473_v16  ;;  %v10438_v12 = vld [vmem:[#allocation5 + $0x1570] sm:$0xf0]  ;;  %v12150_v20 = vld [vmem:[#allocation5 + $0x1664] sm:$0xf]  ;;  %v10313_v24 = vor.u32 %v12086_v63, %v10310_v8 }
 0x194   :  { %5538 = vmatpush.bf16.msrb.mxu2 %v10601_v15  ;;  %v10566_v29 = vld [vmem:[#allocation5 + $0x1670] sm:$0xf0]  ;;  %v12182_v28 = vld [vmem:[#allocation5 + $0x1764] sm:$0xf]  ;;  %v10441_v16 = vor.u32 %v12118_v9, %v10438_v12  ;;  %v5266_v61 = vadd.f32 %v5265_v53, %v5252_v11  ;;  %v7820_v53 = vld [vmem:[#allocation5 + $0xe8] sm:$0xf] }
 0x195   :  { %5552 = vmatpush.bf16.msrb.mxu3 %v10729_v13  ;;  %v10694_v2 = vld [vmem:[#allocation5 + $0x1770] sm:$0xf0]  ;;  %v10569_v15 = vor.u32 %v12150_v20, %v10566_v29  ;;  %v12082_v30 = vld [vmem:[#allocation5 + $0x1444] sm:$0xf] }
 0x196   :  { %5511 = vmatpush.bf16.msrb.mxu0 %v10329_v23  ;;  %v10294_v49 = vld [vmem:[#allocation5 + $0x1450] sm:$0xf0]  ;;  %v12114_v59 = vld [vmem:[#allocation5 + $0x1544] sm:$0xf]  ;;  %v10697_v42 = vor.u32 %v12182_v28, %v10694_v2  ;;  %v5279_v23 = vpop.f32.mrf.mxu3 }
 0x197   :  { %5525 = vmatpush.bf16.msrb.mxu1 %v10457_v3  ;;  %v10422_v50 = vld [vmem:[#allocation5 + $0x1550] sm:$0xf0]  ;;  %v12146_v13 = vld [vmem:[#allocation5 + $0x1644] sm:$0xf]  ;;  %v10297_v19 = vor.u32 %v12082_v30, %v10294_v49  ;;  %v12828_v12 = vadd.f32 %v5279_v23, %v5266_v61  ;;  %v7948_v61 = vld [vmem:[#allocation5 + $0x1e8] sm:$0xf] }
 0x198   :  { %5539 = vmatpush.bf16.msrb.mxu2 %v10585_v7  ;;  %v10550_v25 = vld [vmem:[#allocation5 + $0x1650] sm:$0xf0]  ;;  %v12178_v62 = vld [vmem:[#allocation5 + $0x1744] sm:$0xf]  ;;  %v10425_v3 = vor.u32 %v12114_v59, %v10422_v50  ;;  %v11497_v23 = vld [vmem:[#allocation5 + $0x1f4] sm:$0xf0] }
 0x199   :  { %5553 = vmatpush.bf16.msrb.mxu3 %v10713_v0  ;;  %v10678_v27 = vld [vmem:[#allocation5 + $0x1750] sm:$0xf0]  ;;  %v10553_v7 = vor.u32 %v12146_v13, %v10550_v25  ;;  %v12078_v63 = vld [vmem:[#allocation5 + $0x1424] sm:$0xf] }
 0x19a   :  { %5512 = vmatpush.bf16.msrb.mxu0 %v10313_v24  ;;  %v10278_v8 = vld [vmem:[#allocation5 + $0x1430] sm:$0xf0]  ;;  %v12110_v9 = vld [vmem:[#allocation5 + $0x1524] sm:$0xf]  ;;  %v10681_v28 = vor.u32 %v12178_v62, %v10678_v27  ;;  %v11465_v62 = vld [vmem:[#allocation5 + $0xf4] sm:$0xf0] }
 0x19b   :  { %5526 = vmatpush.bf16.msrb.mxu1 %v10441_v16  ;;  %v10406_v0 = vld [vmem:[#allocation5 + $0x1530] sm:$0xf0]  ;;  %v12142_v20 = vld [vmem:[#allocation5 + $0x1624] sm:$0xf]  ;;  %v10281_v11 = vor.u32 %v12078_v63, %v10278_v8  ;;  %v8076_v63 = vld [vmem:[#allocation5 + $0x2e8] sm:$0xf] }
 0x19c   :  { %5540 = vmatpush.bf16.msrb.mxu2 %v10569_v15  ;;  %v10534_v29 = vld [vmem:[#allocation5 + $0x1630] sm:$0xf0]  ;;  %v12174_v2 = vld [vmem:[#allocation5 + $0x1724] sm:$0xf]  ;;  %v10409_v16 = vor.u32 %v12110_v9, %v10406_v0  ;;  %v11529_v8 = vld [vmem:[#allocation5 + $0x2f4] sm:$0xf0] }
 0x19d   :  { %5554 = vmatpush.bf16.msrb.mxu3 %v10697_v42  ;;  %v10662_v37 = vld [vmem:[#allocation5 + $0x1730] sm:$0xf0]  ;;  %v12074_v24 = vld [vmem:[#allocation5 + $0x1404] sm:$0xf]  ;;  %v10537_v15 = vor.u32 %v12142_v20, %v10534_v29  ;;  %v8204_v9 = vld [vmem:[#allocation5 + $0x3e8] sm:$0xf]  ;;  %v7949_v20 = vor.u32 %v11497_v23, %v7948_v61  ;;  %v8077_v29 = vor.u32 %v11529_v8, %v8076_v63 }
 0x19e   :  { %5513 = vmatpush.bf16.msrb.mxu0 %v10297_v19  ;;  %v10262_v30 = vld [vmem:[#allocation5 + $0x1410] sm:$0xf0]  ;;  %v12106_v49 = vld [vmem:[#allocation5 + $0x1504] sm:$0xf]  ;;  %v10665_v13 = vor.u32 %v12174_v2, %v10662_v37  ;;  %v11561_v0 = vld [vmem:[#allocation5 + $0x3f4] sm:$0xf0]  ;;  %v7821_v37 = vor.u32 %v11465_v62, %v7820_v53  ;;  %v12830_v2 = vpop.f32.mrf.mxu0 }
 0x19f   :  { %5527 = vmatpush.bf16.msrb.mxu1 %v10425_v3  ;;  %v10390_v59 = vld [vmem:[#allocation5 + $0x1510] sm:$0xf0]  ;;  %v12138_v50 = vld [vmem:[#allocation5 + $0x1604] sm:$0xf]  ;;  %v10265_v19 = vor.u32 %v12074_v24, %v10262_v30  ;;  %v8205_v24 = vor.u32 %v11561_v0, %v8204_v9  ;;  %v11493_v30 = vld [vmem:[#allocation5 + $0x1d4] sm:$0xf0] }
 0x1a0   :  { %5541 = vmatpush.bf16.msrb.mxu2 %v10553_v7  ;;  %v10518_v42 = vld [vmem:[#allocation5 + $0x1610] sm:$0xf0]  ;;  %v12170_v27 = vld [vmem:[#allocation5 + $0x1704] sm:$0xf]  ;;  %v10393_v3 = vor.u32 %v12106_v49, %v10390_v59  ;;  %v11557_v49 = vld [vmem:[#allocation5 + $0x3d4] sm:$0xf0]  ;;  %v12832_v59 = vpop.f32.mrf.mxu1 }
 0x1a1   :  { %5555 = vmatpush.bf16.msrb.mxu3 %v10681_v28  ;;  %v10646_v25 = vld [vmem:[#allocation5 + $0x1710] sm:$0xf0]  ;;  %v10521_v7 = vor.u32 %v12138_v50, %v10518_v42  ;;  %v7805_v50 = vor.u32 %v11461_v18, %v7804_v54  ;;  %v7916_v53 = vld [vmem:[#allocation5 + $0x1a8] sm:$0xf]  ;;  %v11489_v61 = vld [vmem:[#allocation5 + $0x1b4] sm:$0xf0]  ;;  %v12838_v54 = vpop.f32.mrf.mxu2 }
 0x1a2   :  { %5514 = vmatpush.bf16.msrb.mxu0 %v10281_v11  ;;  %v10649_v28 = vor.u32 %v12170_v27, %v10646_v25  ;;  %v7932_v11 = vld [vmem:[#allocation5 + $0x1c8] sm:$0xf]  ;;  %v11457_v25 = vld [vmem:[#allocation5 + $0xb4] sm:$0xf0]  ;;  %13268 = vst [vmem:[#allocation42_spill] sm:$0xff] %v12838_v54  ;;  %v7917_v8 = vor.u32 %v11489_v61, %v7916_v53 }
 0x1a3   :  { %5528 = vmatpush.bf16.msrb.mxu1 %v10409_v16  ;;  %v11525_v16 = vld [vmem:[#allocation5 + $0x2d4] sm:$0xf0]  ;;  %v7788_v27 = vld [vmem:[#allocation5 + $0xa8] sm:$0xf] }
 0x1a4   :  { %5542 = vmatpush.bf16.msrb.mxu2 %v10537_v15  ;;  %v8188_v15 = vld [vmem:[#allocation5 + $0x3c8] sm:$0xf]  ;;  %v8061_v42 = vor.u32 %v11525_v16, %v8060_v22  ;;  %v11521_v23 = vld [vmem:[#allocation5 + $0x2b4] sm:$0xf0]  ;;  %v7789_v22 = vor.u32 %v11457_v25, %v7788_v27 }
 0x1a5   :  { %5556 = vmatpush.bf16.msrb.mxu3 %v10665_v13  ;;  %v7933_v13 = vor.u32 %v11493_v30, %v7932_v11  ;;  %v8189_v62 = vor.u32 %v11557_v49, %v8188_v15  ;;  %v8172_v63 = vld [vmem:[#allocation5 + $0x3a8] sm:$0xf]  ;;  %v11553_v18 = vld [vmem:[#allocation5 + $0x3b4] sm:$0xf0] }
 0x1a6   :  { %5515 = vmatpush.bf16.msrb.mxu0 %v10265_v19  ;;  %v8044_v19 = vld [vmem:[#allocation5 + $0x2a8] sm:$0xf]  ;;  %v11453_v9 = vld [vmem:[#allocation5 + $0x94] sm:$0xf0] }
 0x1a7   :  { %5529 = vmatpush.bf16.msrb.mxu1 %v10393_v3  ;;  %v8045_v3 = vor.u32 %v11521_v23, %v8044_v19  ;;  %v7900_v0 = vld [vmem:[#allocation5 + $0x188] sm:$0xf]  ;;  %v11517_v11 = vld [vmem:[#allocation5 + $0x294] sm:$0xf0] }
 0x1a8   :  { %5543 = vmatpush.bf16.msrb.mxu2 %v10521_v7  ;;  %v7772_v7 = vld [vmem:[#allocation5 + $0x88] sm:$0xf]  ;;  %v11549_v16 = vld [vmem:[#allocation5 + $0x394] sm:$0xf0] }
 0x1a9   :  { %5557 = vmatpush.bf16.msrb.mxu3 %v10649_v28  ;;  %5516 = vmatmul.bf16.vlgmr.msrb.gmra.mxu0 %v12730_v26  ;;  %v8173_v28 = vor.u32 %v11553_v18, %v8172_v63  ;;  %v8156_v30 = vld [vmem:[#allocation5 + $0x388] sm:$0xf]  ;;  %v7773_v49 = vor.u32 %v11453_v9, %v7772_v7  ;;  %v11449_v25 = vld [vmem:[#allocation5 + $0x74] sm:$0xf0] }
 0x1aa   :  { %5564 = vmatpush.bf16.msra.mxu0 %v7821_v37  ;;  %5530 = vmatmul.bf16.vlgmr.msrb.gmra.mxu1 %v12734_v34  ;;  %v12840_v37 = vpop.f32.mrf.mxu3  ;;  %v7756_v27 = vld [vmem:[#allocation5 + $0x68] sm:$0xf]  ;;  %v11481_v19 = vld [vmem:[#allocation5 + $0x174] sm:$0xf0] }
 0x1ab   :  { %5578 = vmatpush.bf16.msra.mxu1 %v7949_v20  ;;  %5544 = vmatmul.bf16.vlgmr.msrb.gmra.mxu2 %v12732_v33  ;;  %13269 = vst [vmem:[#allocation43_spill] sm:$0xff] %v12840_v37  ;;  %v11485_v20 = vld [vmem:[#allocation5 + $0x194] sm:$0xf0]  ;;  %v7884_v53 = vld [vmem:[#allocation5 + $0x168] sm:$0xf] }
 0x1ac   :  { %5592 = vmatpush.bf16.msra.mxu2 %v8077_v29  ;;  %5558 = vmatmul.bf16.vlgmr.msrb.gmra.mxu3 %v12738_v48  ;;  %v8028_v29 = vld [vmem:[#allocation5 + $0x288] sm:$0xf]  ;;  %v11513_v63 = vld [vmem:[#allocation5 + $0x274] sm:$0xf0] }
 0x1ad   :  { %5606 = vmatpush.bf16.msra.mxu3 %v8205_v24  ;;  %v5293_v24 = vpop.f32.mrf.mxu0  ;;  %v8012_v23 = vld [vmem:[#allocation5 + $0x268] sm:$0xf]  ;;  %v11445_v7 = vld [vmem:[#allocation5 + $0x54] sm:$0xf0] }
 0x1ae   :  { %5565 = vmatpush.bf16.msra.mxu0 %v7805_v50  ;;  %v5294_v15 = vadd.f32 %v5293_v24, %v12828_v12  ;;  %v7901_v50 = vor.u32 %v11485_v20, %v7900_v0  ;;  %v8140_v18 = vld [vmem:[#allocation5 + $0x368] sm:$0xf]  ;;  %v7885_v12 = vor.u32 %v11481_v19, %v7884_v53  ;;  %v5321_v20 = vpop.f32.mrf.mxu2 }
 0x1af   :  { %5579 = vmatpush.bf16.msra.mxu1 %v7933_v13  ;;  %v8029_v13 = vor.u32 %v11517_v11, %v8028_v29  ;;  %v7868_v9 = vld [vmem:[#allocation5 + $0x148] sm:$0xf]  ;;  %v8141_v0 = vor.u32 %v11545_v57, %v8140_v18  ;;  %v11509_v11 = vld [vmem:[#allocation5 + $0x254] sm:$0xf0] }
 0x1b0   :  { %5593 = vmatpush.bf16.msra.mxu2 %v8061_v42  ;;  %v5307_v42 = vpop.f32.mrf.mxu1  ;;  %v7996_v29 = vld [vmem:[#allocation5 + $0x248] sm:$0xf] }
 0x1b1   :  { %5607 = vmatpush.bf16.msra.mxu3 %v8189_v62  ;;  %v8157_v62 = vor.u32 %v11549_v16, %v8156_v30  ;;  %v5308_v61 = vadd.f32 %v5307_v42, %v5294_v15  ;;  %v8124_v30 = vld [vmem:[#allocation5 + $0x348] sm:$0xf]  ;;  %v11541_v16 = vld [vmem:[#allocation5 + $0x354] sm:$0xf0]  ;;  %v7997_v42 = vor.u32 %v11509_v11, %v7996_v29 }
 0x1b2   :  { %5566 = vmatpush.bf16.msra.mxu0 %v7789_v22  ;;  %v7757_v22 = vor.u32 %v11449_v25, %v7756_v27  ;;  %v5335_v15 = vpop.f32.mrf.mxu3  ;;  %v7724_v27 = vld [vmem:[#allocation5 + $0x28] sm:$0xf]  ;;  %v11441_v25 = vld [vmem:[#allocation5 + $0x34] sm:$0xf0]  ;;  %v8125_v57 = vor.u32 %v11541_v16, %v8124_v30 }
 0x1b3   :  { %5580 = vmatpush.bf16.msra.mxu1 %v7917_v8  ;;  %v8013_v8 = vor.u32 %v11513_v63, %v8012_v23  ;;  %v5322_v24 = vadd.f32 %v5321_v20, %v5308_v61  ;;  %v7852_v53 = vld [vmem:[#allocation5 + $0x128] sm:$0xf]  ;;  %v11505_v23 = vld [vmem:[#allocation5 + $0x234] sm:$0xf0]  ;;  %v7725_v18 = vor.u32 %v11441_v25, %v7724_v27 }
 0x1b4   :  { %5594 = vmatpush.bf16.msra.mxu2 %v8045_v3  ;;  %v7740_v3 = vld [vmem:[#allocation5 + $0x48] sm:$0xf]  ;;  %v11537_v63 = vld [vmem:[#allocation5 + $0x334] sm:$0xf0] }
 0x1b5   :  { %5608 = vmatpush.bf16.msra.mxu3 %v8173_v28  ;;  %v11477_v28 = vld [vmem:[#allocation5 + $0x154] sm:$0xf0]  ;;  %v7980_v19 = vld [vmem:[#allocation5 + $0x228] sm:$0xf]  ;;  %v12845_v54 = vpop.f32.mrf.mxu0 }
 0x1b6   :  { %5567 = vmatpush.bf16.msra.mxu0 %v7773_v49  ;;  %v7741_v49 = vor.u32 %v11445_v7, %v7740_v3  ;;  %v8108_v61 = vld [vmem:[#allocation5 + $0x328] sm:$0xf]  ;;  %v11437_v3 = vld [vmem:[#allocation5 + $0x14] sm:$0xf0]  ;;  %13270 = vst [vmem:[#allocation44_spill] sm:$0xff] %v12845_v54 }
 0x1b7   :  { %5581 = vmatpush.bf16.msra.mxu1 %v7901_v50  ;;  %v12843_v50 = vadd.f32 %v5335_v15, %v5322_v24  ;;  %v7836_v7 = vld [vmem:[#allocation5 + $0x108] sm:$0xf]  ;;  %v11533_v11 = vld [vmem:[#allocation5 + $0x314] sm:$0xf0] }
 0x1b8   :  { %5595 = vmatpush.bf16.msra.mxu2 %v8029_v13  ;;  %v7869_v13 = vor.u32 %v11477_v28, %v7868_v9  ;;  %v11469_v9 = vld [vmem:[#allocation5 + $0x114] sm:$0xf0]  ;;  %v7964_v20 = vld [vmem:[#allocation5 + $0x208] sm:$0xf]  ;;  %v8109_v28 = vor.u32 %v11537_v63, %v8108_v61 }
 0x1b9   :  { %5609 = vmatpush.bf16.msra.mxu3 %v8157_v62  ;;  %v11473_v62 = vld [vmem:[#allocation5 + $0x134] sm:$0xf0]  ;;  %v8092_v29 = vld [vmem:[#allocation5 + $0x308] sm:$0xf] }
 0x1ba   :  { %5568 = vmatpush.bf16.msra.mxu0 %v7757_v22  ;;  %v7708_v22 = vld [vmem:[#allocation5 + $0x8] sm:$0xf]  ;;  %v11593_v30 = vld [vmem:[#allocation5 + $0x4f4] sm:$0xf0] }
 0x1bb   :  { %5582 = vmatpush.bf16.msra.mxu1 %v7885_v12  ;;  %v7853_v12 = vor.u32 %v11473_v62, %v7852_v53  ;;  %v8332_v24 = vld [vmem:[#allocation5 + $0x4e8] sm:$0xf]  ;;  %v7709_v15 = vor.u32 %v11437_v3, %v7708_v22  ;;  %v11657_v25 = vld [vmem:[#allocation5 + $0x6f4] sm:$0xf0] }
 0x1bc   :  { %5596 = vmatpush.bf16.msra.mxu2 %v8013_v8  ;;  %v7981_v8 = vor.u32 %v11505_v23, %v7980_v19  ;;  %v8460_v16 = vld [vmem:[#allocation5 + $0x5e8] sm:$0xf]  ;;  %v11689_v62 = vld [vmem:[#allocation5 + $0x7f4] sm:$0xf0]  ;;  %v8333_v19 = vor.u32 %v11593_v30, %v8332_v24 }
 0x1bd   :  { %5610 = vmatpush.bf16.msra.mxu3 %v8141_v0  ;;  %v11501_v0 = vld [vmem:[#allocation5 + $0x214] sm:$0xf0]  ;;  %v8588_v27 = vld [vmem:[#allocation5 + $0x6e8] sm:$0xf] }
 0x1be   :  { %5569 = vmatpush.bf16.msra.mxu0 %v7741_v49  ;;  %v11625_v49 = vld [vmem:[#allocation5 + $0x5f4] sm:$0xf0]  ;;  %v8716_v53 = vld [vmem:[#allocation5 + $0x7e8] sm:$0xf]  ;;  %v8589_v61 = vor.u32 %v11657_v25, %v8588_v27 }
 0x1bf   :  { %5583 = vmatpush.bf16.msra.mxu1 %v7869_v13  ;;  %v7837_v13 = vor.u32 %v11469_v9, %v7836_v7  ;;  %v8461_v23 = vor.u32 %v11625_v49, %v8460_v16  ;;  %v8316_v63 = vld [vmem:[#allocation5 + $0x4c8] sm:$0xf]  ;;  %v11621_v22 = vld [vmem:[#allocation5 + $0x5d4] sm:$0xf0]  ;;  %v12847_v7 = vpop.f32.mrf.mxu1 }
 0x1c0   :  { %5597 = vmatpush.bf16.msra.mxu2 %v7997_v42  ;;  %v7965_v42 = vor.u32 %v11501_v0, %v7964_v20  ;;  %v8444_v37 = vld [vmem:[#allocation5 + $0x5c8] sm:$0xf]  ;;  %13271 = vst [vmem:[#allocation45_spill] sm:$0xff] %v12847_v7  ;;  %v8317_v9 = vor.u32 %v11589_v52, %v8316_v63  ;;  %v11617_v30 = vld [vmem:[#allocation5 + $0x5b4] sm:$0xf0] }
 0x1c1   :  { %5611 = vmatpush.bf16.msra.mxu3 %v8125_v57  ;;  %v8093_v57 = vor.u32 %v11533_v11, %v8092_v29  ;;  %v8572_v3 = vld [vmem:[#allocation5 + $0x6c8] sm:$0xf]  ;;  %v8445_v20 = vor.u32 %v11621_v22, %v8444_v37  ;;  %v11585_v29 = vld [vmem:[#allocation5 + $0x4b4] sm:$0xf0] }
 0x1c2   :  { %5570 = vmatpush.bf16.msra.mxu0 %v7725_v18  ;;  %v8717_v18 = vor.u32 %v11689_v62, %v8716_v53  ;;  %v8300_v0 = vld [vmem:[#allocation5 + $0x4a8] sm:$0xf]  ;;  %v11681_v27 = vld [vmem:[#allocation5 + $0x7b4] sm:$0xf0]  ;;  %v12853_v53 = vpop.f32.mrf.mxu2 }
 0x1c3   :  { %5584 = vmatpush.bf16.msra.mxu1 %v7853_v12  ;;  %v8700_v12 = vld [vmem:[#allocation5 + $0x7c8] sm:$0xf]  ;;  %v8301_v52 = vor.u32 %v11585_v29, %v8300_v0  ;;  %13272 = vst [vmem:[#allocation46_spill] sm:$0xff] %v12853_v53  ;;  %v11677_v22 = vld [vmem:[#allocation5 + $0x794] sm:$0xf0] }
 0x1c4   :  { %5598 = vmatpush.bf16.msra.mxu2 %v7981_v8  ;;  %v11685_v8 = vld [vmem:[#allocation5 + $0x7d4] sm:$0xf0]  ;;  %v8428_v11 = vld [vmem:[#allocation5 + $0x5a8] sm:$0xf] }
 0x1c5   :  { %5612 = vmatpush.bf16.msra.mxu3 %v8109_v28  ;;  %v8573_v28 = vor.u32 %v11653_v14, %v8572_v3  ;;  %v8701_v24 = vor.u32 %v11685_v8, %v8700_v12  ;;  %v8556_v16 = vld [vmem:[#allocation5 + $0x6a8] sm:$0xf]  ;;  %v8429_v14 = vor.u32 %v11617_v30, %v8428_v11  ;;  %v11577_v0 = vld [vmem:[#allocation5 + $0x474] sm:$0xf0] }
 0x1c6   :  { %5571 = vmatpush.bf16.msra.mxu0 %v7709_v15  ;;  %v11649_v15 = vld [vmem:[#allocation5 + $0x6b4] sm:$0xf0]  ;;  %v8684_v49 = vld [vmem:[#allocation5 + $0x7a8] sm:$0xf]  ;;  %v5349_v63 = vpop.f32.mrf.mxu0 }
 0x1c7   :  { %5585 = vmatpush.bf16.msra.mxu1 %v7837_v13  ;;  %v8557_v37 = vor.u32 %v11649_v15, %v8556_v16  ;;  %v8284_v25 = vld [vmem:[#allocation5 + $0x488] sm:$0xf]  ;;  %v11581_v13 = vld [vmem:[#allocation5 + $0x494] sm:$0xf0]  ;;  %v8685_v62 = vor.u32 %v11681_v27, %v8684_v49  ;;  %v5350_v3 = vadd.f32 %v5349_v63, %v12843_v50  ;;  %v5363_v8 = vpop.f32.mrf.mxu1 }
 0x1c8   :  { %5599 = vmatpush.bf16.msra.mxu2 %v7965_v42  ;;  %v8412_v42 = vld [vmem:[#allocation5 + $0x588] sm:$0xf]  ;;  %v8285_v12 = vor.u32 %v11581_v13, %v8284_v25  ;;  %v11609_v30 = vld [vmem:[#allocation5 + $0x574] sm:$0xf0] }
 0x1c9   :  { %5613 = vmatpush.bf16.msra.mxu3 %v8093_v57  ;;  %5572 = vmatmul.bf16.vlgmr.msra.gmra.mxu0 %v12661_v58  ;;  %v11613_v57 = vld [vmem:[#allocation5 + $0x594] sm:$0xf0]  ;;  %v8396_v29 = vld [vmem:[#allocation5 + $0x568] sm:$0xf] }
 0x1ca   :  { %5620 = vmatpush.bf16.msrb.mxu0 %v8333_v19  ;;  %5586 = vmatmul.bf16.vlgmr.msra.gmra.mxu1 %v12667_v10  ;;  %v8540_v19 = vld [vmem:[#allocation5 + $0x688] sm:$0xf]  ;;  %v11641_v15 = vld [vmem:[#allocation5 + $0x674] sm:$0xf0]  ;;  %v8397_v50 = vor.u32 %v11609_v30, %v8396_v29 }
 0x1cb   :  { %5634 = vmatpush.bf16.msrb.mxu1 %v8461_v23  ;;  %5600 = vmatmul.bf16.vlgmr.msra.gmra.mxu2 %v12663_v1  ;;  %v11645_v23 = vld [vmem:[#allocation5 + $0x694] sm:$0xf0]  ;;  %v8524_v16 = vld [vmem:[#allocation5 + $0x668] sm:$0xf] }
 0x1cc   :  { %5648 = vmatpush.bf16.msrb.mxu2 %v8589_v61  ;;  %5614 = vmatmul.bf16.vlgmr.msra.gmra.mxu3 %v12669_v17  ;;  %v12855_v61 = vpop.f32.mrf.mxu3  ;;  %v8652_v49 = vld [vmem:[#allocation5 + $0x768] sm:$0xf]  ;;  %v11673_v27 = vld [vmem:[#allocation5 + $0x774] sm:$0xf0] }
 0x1cd   :  { %5662 = vmatpush.bf16.msrb.mxu3 %v8717_v18  ;;  %13273 = vst [vmem:[#allocation47_spill] sm:$0xff] %v12855_v61  ;;  %v8668_v18 = vld [vmem:[#allocation5 + $0x788] sm:$0xf]  ;;  %v11573_v25 = vld [vmem:[#allocation5 + $0x454] sm:$0xf0] }
 0x1ce   :  { %5621 = vmatpush.bf16.msrb.mxu0 %v8317_v9  ;;  %v8413_v9 = vor.u32 %v11613_v57, %v8412_v42  ;;  %v8669_v11 = vor.u32 %v11677_v22, %v8668_v18  ;;  %v8380_v13 = vld [vmem:[#allocation5 + $0x548] sm:$0xf]  ;;  %v8653_v42 = vor.u32 %v11673_v27, %v8652_v49  ;;  %v5377_v57 = vpop.f32.mrf.mxu2  ;;  %v11601_v30 = vld [vmem:[#allocation5 + $0x534] sm:$0xf0]  ;;  %v12860_v54 = vpop.f32.mrf.mxu0 }
 0x1cf   :  { %5635 = vmatpush.bf16.msrb.mxu1 %v8445_v20  ;;  %v8541_v20 = vor.u32 %v11645_v23, %v8540_v19  ;;  %v8508_v19 = vld [vmem:[#allocation5 + $0x648] sm:$0xf]  ;;  %v11637_v23 = vld [vmem:[#allocation5 + $0x654] sm:$0xf0]  ;;  %13274 = vst [vmem:[#allocation48_spill] sm:$0xff] %v12860_v54 }
 0x1d0   :  { %5649 = vmatpush.bf16.msrb.mxu2 %v8573_v28  ;;  %v8268_v28 = vld [vmem:[#allocation5 + $0x468] sm:$0xf]  ;;  %v11665_v49 = vld [vmem:[#allocation5 + $0x734] sm:$0xf0] }
 0x1d1   :  { %5663 = vmatpush.bf16.msrb.mxu3 %v8701_v24  ;;  %v5364_v24 = vadd.f32 %v5363_v8, %v5350_v3  ;;  %v8636_v22 = vld [vmem:[#allocation5 + $0x748] sm:$0xf]  ;;  %v11669_v3 = vld [vmem:[#allocation5 + $0x754] sm:$0xf0] }
 0x1d2   :  { %5622 = vmatpush.bf16.msrb.mxu0 %v8301_v52  ;;  %v8269_v52 = vor.u32 %v11577_v0, %v8268_v28  ;;  %v8236_v28 = vld [vmem:[#allocation5 + $0x428] sm:$0xf]  ;;  %v11569_v0 = vld [vmem:[#allocation5 + $0x434] sm:$0xf0] }
 0x1d3   :  { %5636 = vmatpush.bf16.msrb.mxu1 %v8429_v14  ;;  %v8525_v14 = vor.u32 %v11641_v15, %v8524_v16  ;;  %v5378_v63 = vadd.f32 %v5377_v57, %v5364_v24  ;;  %v8364_v29 = vld [vmem:[#allocation5 + $0x528] sm:$0xf]  ;;  %v11633_v15 = vld [vmem:[#allocation5 + $0x634] sm:$0xf0]  ;;  %v8237_v27 = vor.u32 %v11569_v0, %v8236_v28 }
 0x1d4   :  { %5650 = vmatpush.bf16.msrb.mxu2 %v8557_v37  ;;  %v8252_v37 = vld [vmem:[#allocation5 + $0x448] sm:$0xf]  ;;  %v5391_v18 = vpop.f32.mrf.mxu3  ;;  %v11785_v0 = vld [vmem:[#allocation5 + $0xaf4] sm:$0xf0] }
 0x1d5   :  { %5664 = vmatpush.bf16.msrb.mxu3 %v8685_v62  ;;  %v11605_v62 = vld [vmem:[#allocation5 + $0x554] sm:$0xf0]  ;;  %v12858_v8 = vadd.f32 %v5391_v18, %v5378_v63  ;;  %v8492_v16 = vld [vmem:[#allocation5 + $0x628] sm:$0xf] }
 0x1d6   :  { %5623 = vmatpush.bf16.msrb.mxu0 %v8285_v12  ;;  %v8253_v12 = vor.u32 %v11573_v25, %v8252_v37  ;;  %v8620_v24 = vld [vmem:[#allocation5 + $0x728] sm:$0xf]  ;;  %v11565_v37 = vld [vmem:[#allocation5 + $0x414] sm:$0xf0] }
 0x1d7   :  { %5637 = vmatpush.bf16.msrb.mxu1 %v8413_v9  ;;  %v8381_v9 = vor.u32 %v11605_v62, %v8380_v13  ;;  %v8348_v25 = vld [vmem:[#allocation5 + $0x508] sm:$0xf]  ;;  %v11597_v13 = vld [vmem:[#allocation5 + $0x514] sm:$0xf0]  ;;  %v8621_v62 = vor.u32 %v11665_v49, %v8620_v24 }
 0x1d8   :  { %5651 = vmatpush.bf16.msrb.mxu2 %v8541_v20  ;;  %v8509_v20 = vor.u32 %v11637_v23, %v8508_v19  ;;  %v8476_v57 = vld [vmem:[#allocation5 + $0x608] sm:$0xf]  ;;  %v11661_v23 = vld [vmem:[#allocation5 + $0x714] sm:$0xf0] }
 0x1d9   :  { %5665 = vmatpush.bf16.msrb.mxu3 %v8669_v11  ;;  %v8637_v11 = vor.u32 %v11669_v3, %v8636_v22  ;;  %v8604_v19 = vld [vmem:[#allocation5 + $0x708] sm:$0xf]  ;;  %v11721_v18 = vld [vmem:[#allocation5 + $0x8f4] sm:$0xf0] }
 0x1da   :  { %5624 = vmatpush.bf16.msrb.mxu0 %v8269_v52  ;;  %v8220_v52 = vld [vmem:[#allocation5 + $0x408] sm:$0xf]  ;;  %v11717_v61 = vld [vmem:[#allocation5 + $0x8d4] sm:$0xf0] }
 0x1db   :  { %5638 = vmatpush.bf16.msrb.mxu1 %v8397_v50  ;;  %v8365_v50 = vor.u32 %v11601_v30, %v8364_v29  ;;  %v8844_v63 = vld [vmem:[#allocation5 + $0x8e8] sm:$0xf]  ;;  %v8221_v3 = vor.u32 %v11565_v37, %v8220_v52  ;;  %v11817_v30 = vld [vmem:[#allocation5 + $0xbf4] sm:$0xf0] }
 0x1dc   :  { %5652 = vmatpush.bf16.msrb.mxu2 %v8525_v14  ;;  %v8493_v14 = vor.u32 %v11633_v15, %v8492_v16  ;;  %v8972_v22 = vld [vmem:[#allocation5 + $0x9e8] sm:$0xf]  ;;  %v8845_v16 = vor.u32 %v11721_v18, %v8844_v63  ;;  %v11749_v52 = vld [vmem:[#allocation5 + $0x9d4] sm:$0xf0] }
 0x1dd   :  { %5666 = vmatpush.bf16.msrb.mxu3 %v8653_v42  ;;  %v11629_v42 = vld [vmem:[#allocation5 + $0x614] sm:$0xf0]  ;;  %v9100_v28 = vld [vmem:[#allocation5 + $0xae8] sm:$0xf] }
 0x1de   :  { %5625 = vmatpush.bf16.msrb.mxu0 %v8253_v12  ;;  %v11753_v12 = vld [vmem:[#allocation5 + $0x9f4] sm:$0xf0]  ;;  %v9228_v29 = vld [vmem:[#allocation5 + $0xbe8] sm:$0xf]  ;;  %v9101_v24 = vor.u32 %v11785_v0, %v9100_v28 }
 0x1df   :  { %5639 = vmatpush.bf16.msrb.mxu1 %v8381_v9  ;;  %v8349_v9 = vor.u32 %v11597_v13, %v8348_v25  ;;  %v8973_v15 = vor.u32 %v11753_v12, %v8972_v22  ;;  %v8828_v49 = vld [vmem:[#allocation5 + $0x8c8] sm:$0xf]  ;;  %v11781_v7 = vld [vmem:[#allocation5 + $0xad4] sm:$0xf0]  ;;  %v12862_v25 = vpop.f32.mrf.mxu1 }
 0x1e0   :  { %5653 = vmatpush.bf16.msrb.mxu2 %v8509_v20  ;;  %v8477_v20 = vor.u32 %v11629_v42, %v8476_v57  ;;  %v8956_v53 = vld [vmem:[#allocation5 + $0x9c8] sm:$0xf]  ;;  %13275 = vst [vmem:[#allocation49_spill] sm:$0xff] %v12862_v25  ;;  %v8829_v13 = vor.u32 %v11717_v61, %v8828_v49  ;;  %v11745_v18 = vld [vmem:[#allocation5 + $0x9b4] sm:$0xf0] }
 0x1e1   :  { %5667 = vmatpush.bf16.msrb.mxu3 %v8637_v11  ;;  %v8605_v11 = vor.u32 %v11661_v23, %v8604_v19  ;;  %v9084_v37 = vld [vmem:[#allocation5 + $0xac8] sm:$0xf]  ;;  %v8957_v57 = vor.u32 %v11749_v52, %v8956_v53  ;;  %v11713_v19 = vld [vmem:[#allocation5 + $0x8b4] sm:$0xf0] }
 0x1e2   :  { %5626 = vmatpush.bf16.msrb.mxu0 %v8237_v27  ;;  %v9229_v27 = vor.u32 %v11817_v30, %v9228_v29  ;;  %v8812_v42 = vld [vmem:[#allocation5 + $0x8a8] sm:$0xf]  ;;  %v11809_v61 = vld [vmem:[#allocation5 + $0xbb4] sm:$0xf0]  ;;  %v12868_v29 = vpop.f32.mrf.mxu2 }
 0x1e3   :  { %5640 = vmatpush.bf16.msrb.mxu1 %v8365_v50  ;;  %v9212_v50 = vld [vmem:[#allocation5 + $0xbc8] sm:$0xf]  ;;  %13276 = vst [vmem:[#allocation50_spill] sm:$0xff] %v12868_v29  ;;  %v11805_v52 = vld [vmem:[#allocation5 + $0xb94] sm:$0xf0] }
 0x1e4   :  { %5654 = vmatpush.bf16.msrb.mxu2 %v8493_v14  ;;  %v11813_v14 = vld [vmem:[#allocation5 + $0xbd4] sm:$0xf0]  ;;  %v8940_v23 = vld [vmem:[#allocation5 + $0x9a8] sm:$0xf] }
 0x1e5   :  { %5668 = vmatpush.bf16.msrb.mxu3 %v8621_v62  ;;  %v9085_v62 = vor.u32 %v11781_v7, %v9084_v37  ;;  %v9213_v63 = vor.u32 %v11813_v14, %v9212_v50  ;;  %v9068_v22 = vld [vmem:[#allocation5 + $0xaa8] sm:$0xf]  ;;  %v8813_v7 = vor.u32 %v11713_v19, %v8812_v42  ;;  %v8941_v53 = vor.u32 %v11745_v18, %v8940_v23  ;;  %v11705_v42 = vld [vmem:[#allocation5 + $0x874] sm:$0xf0] }
 0x1e6   :  { %5627 = vmatpush.bf16.msrb.mxu0 %v8221_v3  ;;  %v11777_v3 = vld [vmem:[#allocation5 + $0xab4] sm:$0xf0]  ;;  %v9196_v12 = vld [vmem:[#allocation5 + $0xba8] sm:$0xf]  ;;  %v5405_v49 = vpop.f32.mrf.mxu0 }
 0x1e7   :  { %5641 = vmatpush.bf16.msrb.mxu1 %v8349_v9  ;;  %v9069_v28 = vor.u32 %v11777_v3, %v9068_v22  ;;  %v8796_v0 = vld [vmem:[#allocation5 + $0x888] sm:$0xf]  ;;  %v11709_v9 = vld [vmem:[#allocation5 + $0x894] sm:$0xf0]  ;;  %v9197_v30 = vor.u32 %v11809_v61, %v9196_v12  ;;  %v5406_v37 = vadd.f32 %v5405_v49, %v12858_v8  ;;  %v5419_v14 = vpop.f32.mrf.mxu1 }
 0x1e8   :  { %5655 = vmatpush.bf16.msrb.mxu2 %v8477_v20  ;;  %v8924_v20 = vld [vmem:[#allocation5 + $0x988] sm:$0xf]  ;;  %v8797_v50 = vor.u32 %v11709_v9, %v8796_v0  ;;  %v11737_v18 = vld [vmem:[#allocation5 + $0x974] sm:$0xf0] }
 0x1e9   :  { %5669 = vmatpush.bf16.msrb.mxu3 %v8605_v11  ;;  %5628 = vmatmul.bf16.vlgmr.msrb.gmra.mxu0 %v12673_v39  ;;  %v11741_v11 = vld [vmem:[#allocation5 + $0x994] sm:$0xf0]  ;;  %v8908_v19 = vld [vmem:[#allocation5 + $0x968] sm:$0xf] }
 0x1ea   :  { %5676 = vmatpush.bf16.msra.mxu0 %v8845_v16  ;;  %5642 = vmatmul.bf16.vlgmr.msrb.gmra.mxu1 %v12677_v44  ;;  %v9052_v16 = vld [vmem:[#allocation5 + $0xa88] sm:$0xf]  ;;  %v11769_v3 = vld [vmem:[#allocation5 + $0xa74] sm:$0xf0]  ;;  %v8909_v8 = vor.u32 %v11737_v18, %v8908_v19 }
 0x1eb   :  { %5690 = vmatpush.bf16.msra.mxu1 %v8973_v15  ;;  %5656 = vmatmul.bf16.vlgmr.msrb.gmra.mxu2 %v12675_v43  ;;  %v11773_v15 = vld [vmem:[#allocation5 + $0xa94] sm:$0xf0]  ;;  %v9036_v22 = vld [vmem:[#allocation5 + $0xa68] sm:$0xf] }
 0x1ec   :  { %5704 = vmatpush.bf16.msra.mxu2 %v9101_v24  ;;  %5670 = vmatmul.bf16.vlgmr.msrb.gmra.mxu3 %v12679_v47  ;;  %v12870_v24 = vpop.f32.mrf.mxu3  ;;  %v9164_v12 = vld [vmem:[#allocation5 + $0xb68] sm:$0xf]  ;;  %v11801_v61 = vld [vmem:[#allocation5 + $0xb74] sm:$0xf0] }
 0x1ed   :  { %5718 = vmatpush.bf16.msra.mxu3 %v9229_v27  ;;  %13277 = vst [vmem:[#allocation51_spill] sm:$0xff] %v12870_v24  ;;  %v9180_v27 = vld [vmem:[#allocation5 + $0xb88] sm:$0xf]  ;;  %v11701_v0 = vld [vmem:[#allocation5 + $0x854] sm:$0xf0] }
 0x1ee   :  { %5677 = vmatpush.bf16.msra.mxu0 %v8829_v13  ;;  %v8925_v13 = vor.u32 %v11741_v11, %v8924_v20  ;;  %v9181_v23 = vor.u32 %v11805_v52, %v9180_v27  ;;  %v8892_v9 = vld [vmem:[#allocation5 + $0x948] sm:$0xf]  ;;  %v9165_v20 = vor.u32 %v11801_v61, %v9164_v12  ;;  %v5433_v11 = vpop.f32.mrf.mxu2  ;;  %v11729_v18 = vld [vmem:[#allocation5 + $0x934] sm:$0xf0]  ;;  %v12875_v54 = vpop.f32.mrf.mxu0 }
 0x1ef   :  { %5691 = vmatpush.bf16.msra.mxu1 %v8957_v57  ;;  %v9053_v57 = vor.u32 %v11773_v15, %v9052_v16  ;;  %v9020_v16 = vld [vmem:[#allocation5 + $0xa48] sm:$0xf]  ;;  %v11765_v15 = vld [vmem:[#allocation5 + $0xa54] sm:$0xf0]  ;;  %13278 = vst [vmem:[#allocation52_spill] sm:$0xff] %v12875_v54 }
 0x1f0   :  { %5705 = vmatpush.bf16.msra.mxu2 %v9085_v62  ;;  %v8780_v62 = vld [vmem:[#allocation5 + $0x868] sm:$0xf]  ;;  %v11793_v12 = vld [vmem:[#allocation5 + $0xb34] sm:$0xf0] }
 0x1f1   :  { %5719 = vmatpush.bf16.msra.mxu3 %v9213_v63  ;;  %v5420_v63 = vadd.f32 %v5419_v14, %v5406_v37  ;;  %v9148_v52 = vld [vmem:[#allocation5 + $0xb48] sm:$0xf]  ;;  %v11797_v37 = vld [vmem:[#allocation5 + $0xb54] sm:$0xf0] }
 0x1f2   :  { %5678 = vmatpush.bf16.msra.mxu0 %v8813_v7  ;;  %v8781_v7 = vor.u32 %v11705_v42, %v8780_v62  ;;  %v8748_v62 = vld [vmem:[#allocation5 + $0x828] sm:$0xf]  ;;  %v11697_v42 = vld [vmem:[#allocation5 + $0x834] sm:$0xf0] }
 0x1f3   :  { %5692 = vmatpush.bf16.msra.mxu1 %v8941_v53  ;;  %v9037_v53 = vor.u32 %v11769_v3, %v9036_v22  ;;  %v5434_v49 = vadd.f32 %v5433_v11, %v5420_v63  ;;  %v8876_v19 = vld [vmem:[#allocation5 + $0x928] sm:$0xf]  ;;  %v11761_v3 = vld [vmem:[#allocation5 + $0xa34] sm:$0xf0]  ;;  %v8749_v61 = vor.u32 %v11697_v42, %v8748_v62 }
 0x1f4   :  { %5706 = vmatpush.bf16.msra.mxu2 %v9069_v28  ;;  %v8764_v28 = vld [vmem:[#allocation5 + $0x848] sm:$0xf]  ;;  %v5447_v27 = vpop.f32.mrf.mxu3  ;;  %v11913_v42 = vld [vmem:[#allocation5 + $0xef4] sm:$0xf0] }
 0x1f5   :  { %5720 = vmatpush.bf16.msra.mxu3 %v9197_v30  ;;  %v11733_v30 = vld [vmem:[#allocation5 + $0x954] sm:$0xf0]  ;;  %v12873_v14 = vadd.f32 %v5447_v27, %v5434_v49  ;;  %v9004_v22 = vld [vmem:[#allocation5 + $0xa28] sm:$0xf] }
 0x1f6   :  { %5679 = vmatpush.bf16.msra.mxu0 %v8797_v50  ;;  %v8765_v50 = vor.u32 %v11701_v0, %v8764_v28  ;;  %v9132_v63 = vld [vmem:[#allocation5 + $0xb28] sm:$0xf]  ;;  %v11693_v28 = vld [vmem:[#allocation5 + $0x814] sm:$0xf0] }
 0x1f7   :  { %5693 = vmatpush.bf16.msra.mxu1 %v8925_v13  ;;  %v8893_v13 = vor.u32 %v11733_v30, %v8892_v9  ;;  %v8860_v0 = vld [vmem:[#allocation5 + $0x908] sm:$0xf]  ;;  %v11725_v9 = vld [vmem:[#allocation5 + $0x914] sm:$0xf0]  ;;  %v9133_v30 = vor.u32 %v11793_v12, %v9132_v63 }
 0x1f8   :  { %5707 = vmatpush.bf16.msra.mxu2 %v9053_v57  ;;  %v9021_v57 = vor.u32 %v11765_v15, %v9020_v16  ;;  %v8988_v11 = vld [vmem:[#allocation5 + $0xa08] sm:$0xf]  ;;  %v11789_v15 = vld [vmem:[#allocation5 + $0xb14] sm:$0xf0] }
 0x1f9   :  { %5721 = vmatpush.bf16.msra.mxu3 %v9181_v23  ;;  %v9149_v23 = vor.u32 %v11797_v37, %v9148_v52  ;;  %v9116_v16 = vld [vmem:[#allocation5 + $0xb08] sm:$0xf]  ;;  %v11849_v27 = vld [vmem:[#allocation5 + $0xcf4] sm:$0xf0] }
 0x1fa   :  { %5680 = vmatpush.bf16.msra.mxu0 %v8781_v7  ;;  %v8732_v7 = vld [vmem:[#allocation5 + $0x808] sm:$0xf]  ;;  %v11845_v24 = vld [vmem:[#allocation5 + $0xcd4] sm:$0xf0] }
 0x1fb   :  { %5694 = vmatpush.bf16.msra.mxu1 %v8909_v8  ;;  %v8877_v8 = vor.u32 %v11729_v18, %v8876_v19  ;;  %v9356_v49 = vld [vmem:[#allocation5 + $0xce8] sm:$0xf]  ;;  %v8733_v37 = vor.u32 %v11693_v28, %v8732_v7  ;;  %v11945_v18 = vld [vmem:[#allocation5 + $0xff4] sm:$0xf0] }
 0x1fc   :  { %5708 = vmatpush.bf16.msra.mxu2 %v9037_v53  ;;  %v9005_v53 = vor.u32 %v11761_v3, %v9004_v22  ;;  %v9484_v52 = vld [vmem:[#allocation5 + $0xde8] sm:$0xf]  ;;  %v9357_v22 = vor.u32 %v11849_v27, %v9356_v49  ;;  %v11877_v7 = vld [vmem:[#allocation5 + $0xdd4] sm:$0xf0] }
 0x1fd   :  { %5722 = vmatpush.bf16.msra.mxu3 %v9165_v20  ;;  %v11757_v20 = vld [vmem:[#allocation5 + $0xa14] sm:$0xf0]  ;;  %v9612_v62 = vld [vmem:[#allocation5 + $0xee8] sm:$0xf] }
 0x1fe   :  { %5681 = vmatpush.bf16.msra.mxu0 %v8765_v50  ;;  %v11881_v50 = vld [vmem:[#allocation5 + $0xdf4] sm:$0xf0]  ;;  %v9740_v19 = vld [vmem:[#allocation5 + $0xfe8] sm:$0xf]  ;;  %v9613_v63 = vor.u32 %v11913_v42, %v9612_v62 }
 0x1ff   :  { %5695 = vmatpush.bf16.msra.mxu1 %v8893_v13  ;;  %v8861_v13 = vor.u32 %v11725_v9, %v8860_v0  ;;  %v9485_v3 = vor.u32 %v11881_v50, %v9484_v52  ;;  %v9340_v12 = vld [vmem:[#allocation5 + $0xcc8] sm:$0xf]  ;;  %v11909_v25 = vld [vmem:[#allocation5 + $0xed4] sm:$0xf0]  ;;  %v12877_v0 = vpop.f32.mrf.mxu1 }
 0x200   :  { %5709 = vmatpush.bf16.msra.mxu2 %v9021_v57  ;;  %v8989_v57 = vor.u32 %v11757_v20, %v8988_v11  ;;  %v9468_v29 = vld [vmem:[#allocation5 + $0xdc8] sm:$0xf]  ;;  %13279 = vst [vmem:[#allocation53_spill] sm:$0xff] %v12877_v0  ;;  %v9341_v9 = vor.u32 %v11845_v24, %v9340_v12  ;;  %v11873_v27 = vld [vmem:[#allocation5 + $0xdb4] sm:$0xf0] }
 0x201   :  { %5723 = vmatpush.bf16.msra.mxu3 %v9149_v23  ;;  %v9117_v23 = vor.u32 %v11789_v15, %v9116_v16  ;;  %v9596_v28 = vld [vmem:[#allocation5 + $0xec8] sm:$0xf]  ;;  %v9469_v11 = vor.u32 %v11877_v7, %v9468_v29  ;;  %v11841_v16 = vld [vmem:[#allocation5 + $0xcb4] sm:$0xf0] }
 0x202   :  { %5682 = vmatpush.bf16.msra.mxu0 %v8749_v61  ;;  %v9741_v61 = vor.u32 %v11945_v18, %v9740_v19  ;;  %v9324_v20 = vld [vmem:[#allocation5 + $0xca8] sm:$0xf]  ;;  %v11937_v24 = vld [vmem:[#allocation5 + $0xfb4] sm:$0xf0]  ;;  %v12883_v19 = vpop.f32.mrf.mxu2 }
 0x203   :  { %5696 = vmatpush.bf16.msra.mxu1 %v8877_v8  ;;  %v9724_v8 = vld [vmem:[#allocation5 + $0xfc8] sm:$0xf]  ;;  %13280 = vst [vmem:[#allocation54_spill] sm:$0xff] %v12883_v19  ;;  %v11933_v7 = vld [vmem:[#allocation5 + $0xf94] sm:$0xf0] }
 0x204   :  { %5710 = vmatpush.bf16.msra.mxu2 %v9005_v53  ;;  %v11941_v53 = vld [vmem:[#allocation5 + $0xfd4] sm:$0xf0]  ;;  %v9452_v15 = vld [vmem:[#allocation5 + $0xda8] sm:$0xf] }
 0x205   :  { %5724 = vmatpush.bf16.msra.mxu3 %v9133_v30  ;;  %v9597_v30 = vor.u32 %v11909_v25, %v9596_v28  ;;  %v9725_v49 = vor.u32 %v11941_v53, %v9724_v8  ;;  %v9580_v52 = vld [vmem:[#allocation5 + $0xea8] sm:$0xf]  ;;  %v9325_v25 = vor.u32 %v11841_v16, %v9324_v20  ;;  %v9453_v29 = vor.u32 %v11873_v27, %v9452_v15  ;;  %v11833_v20 = vld [vmem:[#allocation5 + $0xc74] sm:$0xf0] }
 0x206   :  { %5683 = vmatpush.bf16.msra.mxu0 %v8733_v37  ;;  %v11905_v37 = vld [vmem:[#allocation5 + $0xeb4] sm:$0xf0]  ;;  %v9708_v50 = vld [vmem:[#allocation5 + $0xfa8] sm:$0xf]  ;;  %v5461_v12 = vpop.f32.mrf.mxu0 }
 0x207   :  { %5697 = vmatpush.bf16.msra.mxu1 %v8861_v13  ;;  %v9581_v62 = vor.u32 %v11905_v37, %v9580_v52  ;;  %v9308_v42 = vld [vmem:[#allocation5 + $0xc88] sm:$0xf]  ;;  %v11837_v13 = vld [vmem:[#allocation5 + $0xc94] sm:$0xf0]  ;;  %v9709_v18 = vor.u32 %v11937_v24, %v9708_v50  ;;  %v5462_v28 = vadd.f32 %v5461_v12, %v12873_v14  ;;  %v5475_v53 = vpop.f32.mrf.mxu1 }
 0x208   :  { %5711 = vmatpush.bf16.msra.mxu2 %v8989_v57  ;;  %v9436_v57 = vld [vmem:[#allocation5 + $0xd88] sm:$0xf]  ;;  %v9309_v8 = vor.u32 %v11837_v13, %v9308_v42  ;;  %v11865_v27 = vld [vmem:[#allocation5 + $0xd74] sm:$0xf0] }
 0x209   :  { %5725 = vmatpush.bf16.msra.mxu3 %v9117_v23  ;;  %5684 = vmatmul.bf16.vlgmr.msra.gmra.mxu0 %v12685_v31  ;;  %v11869_v23 = vld [vmem:[#allocation5 + $0xd94] sm:$0xf0]  ;;  %v9420_v16 = vld [vmem:[#allocation5 + $0xd68] sm:$0xf] }
 0x20a   :  { %5732 = vmatpush.bf16.msrb.mxu0 %v9357_v22  ;;  %5698 = vmatmul.bf16.vlgmr.msra.gmra.mxu1 %v12689_v36  ;;  %v9564_v22 = vld [vmem:[#allocation5 + $0xe88] sm:$0xf]  ;;  %v11897_v37 = vld [vmem:[#allocation5 + $0xe74] sm:$0xf0]  ;;  %v9421_v14 = vor.u32 %v11865_v27, %v9420_v16 }
 0x20b   :  { %5746 = vmatpush.bf16.msrb.mxu1 %v9485_v3  ;;  %5712 = vmatmul.bf16.vlgmr.msra.gmra.mxu2 %v12687_v35  ;;  %v11901_v3 = vld [vmem:[#allocation5 + $0xe94] sm:$0xf0]  ;;  %v9548_v52 = vld [vmem:[#allocation5 + $0xe68] sm:$0xf] }
 0x20c   :  { %5760 = vmatpush.bf16.msrb.mxu2 %v9613_v63  ;;  %5726 = vmatmul.bf16.vlgmr.msra.gmra.mxu3 %v12691_v40  ;;  %v12885_v63 = vpop.f32.mrf.mxu3  ;;  %v9676_v50 = vld [vmem:[#allocation5 + $0xf68] sm:$0xf]  ;;  %v11929_v24 = vld [vmem:[#allocation5 + $0xf74] sm:$0xf0] }
 0x20d   :  { %5774 = vmatpush.bf16.msrb.mxu3 %v9741_v61  ;;  %13281 = vst [vmem:[#allocation55_spill] sm:$0xff] %v12885_v63  ;;  %v9692_v61 = vld [vmem:[#allocation5 + $0xf88] sm:$0xf]  ;;  %v11829_v42 = vld [vmem:[#allocation5 + $0xc54] sm:$0xf0] }
 0x20e   :  { %5733 = vmatpush.bf16.msrb.mxu0 %v9341_v9  ;;  %v9437_v9 = vor.u32 %v11869_v23, %v9436_v57  ;;  %v9693_v15 = vor.u32 %v11933_v7, %v9692_v61  ;;  %v9404_v13 = vld [vmem:[#allocation5 + $0xd48] sm:$0xf]  ;;  %v9677_v57 = vor.u32 %v11929_v24, %v9676_v50  ;;  %v5489_v23 = vpop.f32.mrf.mxu2  ;;  %v11857_v27 = vld [vmem:[#allocation5 + $0xd34] sm:$0xf0]  ;;  %v12890_v54 = vpop.f32.mrf.mxu0 }
 0x20f   :  { %5747 = vmatpush.bf16.msrb.mxu1 %v9469_v11  ;;  %v9565_v11 = vor.u32 %v11901_v3, %v9564_v22  ;;  %v9532_v22 = vld [vmem:[#allocation5 + $0xe48] sm:$0xf]  ;;  %v11893_v3 = vld [vmem:[#allocation5 + $0xe54] sm:$0xf0] }
 0x210   :  { %5761 = vmatpush.bf16.msrb.mxu2 %v9597_v30  ;;  %v9292_v30 = vld [vmem:[#allocation5 + $0xc68] sm:$0xf]  ;;  %v11921_v50 = vld [vmem:[#allocation5 + $0xf34] sm:$0xf0] }
 0x211   :  { %5775 = vmatpush.bf16.msrb.mxu3 %v9725_v49  ;;  %v5476_v49 = vadd.f32 %v5475_v53, %v5462_v28  ;;  %v9660_v7 = vld [vmem:[#allocation5 + $0xf48] sm:$0xf]  ;;  %v11925_v28 = vld [vmem:[#allocation5 + $0xf54] sm:$0xf0] }
 0x212   :  { %5734 = vmatpush.bf16.msrb.mxu0 %v9325_v25  ;;  %v9293_v25 = vor.u32 %v11833_v20, %v9292_v30  ;;  %v9260_v30 = vld [vmem:[#allocation5 + $0xc28] sm:$0xf]  ;;  %v11825_v20 = vld [vmem:[#allocation5 + $0xc34] sm:$0xf0] }
 0x213   :  { %5748 = vmatpush.bf16.msrb.mxu1 %v9453_v29  ;;  %v9549_v29 = vor.u32 %v11897_v37, %v9548_v52  ;;  %v5490_v12 = vadd.f32 %v5489_v23, %v5476_v49  ;;  %v9388_v16 = vld [vmem:[#allocation5 + $0xd28] sm:$0xf]  ;;  %v11889_v37 = vld [vmem:[#allocation5 + $0xe34] sm:$0xf0]  ;;  %v9261_v24 = vor.u32 %v11825_v20, %v9260_v30 }
 0x214   :  { %5762 = vmatpush.bf16.msrb.mxu2 %v9581_v62  ;;  %v9276_v62 = vld [vmem:[#allocation5 + $0xc48] sm:$0xf]  ;;  %v5503_v61 = vpop.f32.mrf.mxu3  ;;  %v12041_v20 = vld [vmem:[#allocation5 + $0x12f4] sm:$0xf0] }
 0x215   :  { %5776 = vmatpush.bf16.msrb.mxu3 %v9709_v18  ;;  %v11861_v18 = vld [vmem:[#allocation5 + $0xd54] sm:$0xf0]  ;;  %v12888_v53 = vadd.f32 %v5503_v61, %v5490_v12  ;;  %v9516_v52 = vld [vmem:[#allocation5 + $0xe28] sm:$0xf] }
 0x216   :  { %5735 = vmatpush.bf16.msrb.mxu0 %v9309_v8  ;;  %v9277_v8 = vor.u32 %v11829_v42, %v9276_v62  ;;  %v9644_v49 = vld [vmem:[#allocation5 + $0xf28] sm:$0xf]  ;;  %v11821_v62 = vld [vmem:[#allocation5 + $0xc14] sm:$0xf0] }
 0x217   :  { %5749 = vmatpush.bf16.msrb.mxu1 %v9437_v9  ;;  %v9405_v9 = vor.u32 %v11861_v18, %v9404_v13  ;;  %v9372_v42 = vld [vmem:[#allocation5 + $0xd08] sm:$0xf]  ;;  %v11853_v13 = vld [vmem:[#allocation5 + $0xd14] sm:$0xf0]  ;;  %v9645_v18 = vor.u32 %v11921_v50, %v9644_v49 }
 0x218   :  { %5763 = vmatpush.bf16.msrb.mxu2 %v9565_v11  ;;  %v9533_v11 = vor.u32 %v11893_v3, %v9532_v22  ;;  %v9500_v23 = vld [vmem:[#allocation5 + $0xe08] sm:$0xf]  ;;  %v11917_v3 = vld [vmem:[#allocation5 + $0xf14] sm:$0xf0] }
 0x219   :  { %5777 = vmatpush.bf16.msrb.mxu3 %v9693_v15  ;;  %v9661_v15 = vor.u32 %v11925_v28, %v9660_v7  ;;  %v9628_v22 = vld [vmem:[#allocation5 + $0xf08] sm:$0xf]  ;;  %v11977_v61 = vld [vmem:[#allocation5 + $0x10f4] sm:$0xf0] }
 0x21a   :  { %5736 = vmatpush.bf16.msrb.mxu0 %v9293_v25  ;;  %v9244_v25 = vld [vmem:[#allocation5 + $0xc08] sm:$0xf]  ;;  %v11973_v63 = vld [vmem:[#allocation5 + $0x10d4] sm:$0xf0] }
 0x21b   :  { %5750 = vmatpush.bf16.msrb.mxu1 %v9421_v14  ;;  %v9389_v14 = vor.u32 %v11857_v27, %v9388_v16  ;;  %v9868_v12 = vld [vmem:[#allocation5 + $0x10e8] sm:$0xf]  ;;  %v9245_v28 = vor.u32 %v11821_v62, %v9244_v25  ;;  %v12073_v27 = vld [vmem:[#allocation5 + $0x13f4] sm:$0xf0] }
 0x21c   :  { %5764 = vmatpush.bf16.msrb.mxu2 %v9549_v29  ;;  %v9517_v29 = vor.u32 %v11889_v37, %v9516_v52  ;;  %v9996_v7 = vld [vmem:[#allocation5 + $0x11e8] sm:$0xf]  ;;  %v9869_v52 = vor.u32 %v11977_v61, %v9868_v12  ;;  %v12005_v25 = vld [vmem:[#allocation5 + $0x11d4] sm:$0xf0] }
 0x21d   :  { %5778 = vmatpush.bf16.msrb.mxu3 %v9677_v57  ;;  %v11885_v57 = vld [vmem:[#allocation5 + $0xe14] sm:$0xf0]  ;;  %v10124_v30 = vld [vmem:[#allocation5 + $0x12e8] sm:$0xf] }
 0x21e   :  { %5737 = vmatpush.bf16.msrb.mxu0 %v9277_v8  ;;  %v12009_v8 = vld [vmem:[#allocation5 + $0x11f4] sm:$0xf0]  ;;  %v10252_v16 = vld [vmem:[#allocation5 + $0x13e8] sm:$0xf]  ;;  %v10125_v49 = vor.u32 %v12041_v20, %v10124_v30 }
 0x21f   :  { %5751 = vmatpush.bf16.msrb.mxu1 %v9405_v9  ;;  %v9373_v9 = vor.u32 %v11853_v13, %v9372_v42  ;;  %v9997_v37 = vor.u32 %v12009_v8, %v9996_v7  ;;  %v9852_v50 = vld [vmem:[#allocation5 + $0x10c8] sm:$0xf]  ;;  %v12037_v0 = vld [vmem:[#allocation5 + $0x12d4] sm:$0xf0]  ;;  %v12892_v42 = vpop.f32.mrf.mxu1 }
 0x220   :  { %5765 = vmatpush.bf16.msrb.mxu2 %v9533_v11  ;;  %v9501_v11 = vor.u32 %v11885_v57, %v9500_v23  ;;  %v9980_v19 = vld [vmem:[#allocation5 + $0x11c8] sm:$0xf]  ;;  %v9853_v13 = vor.u32 %v11973_v63, %v9852_v50  ;;  %v12001_v61 = vld [vmem:[#allocation5 + $0x11b4] sm:$0xf0] }
 0x221   :  { %5779 = vmatpush.bf16.msrb.mxu3 %v9661_v15  ;;  %v9629_v15 = vor.u32 %v11917_v3, %v9628_v22  ;;  %v10108_v62 = vld [vmem:[#allocation5 + $0x12c8] sm:$0xf]  ;;  %v9981_v23 = vor.u32 %v12005_v25, %v9980_v19  ;;  %v11969_v22 = vld [vmem:[#allocation5 + $0x10b4] sm:$0xf0] }
 0x222   :  { %5738 = vmatpush.bf16.msrb.mxu0 %v9261_v24  ;;  %v10253_v24 = vor.u32 %v12073_v27, %v10252_v16  ;;  %v9836_v57 = vld [vmem:[#allocation5 + $0x10a8] sm:$0xf]  ;;  %v12065_v63 = vld [vmem:[#allocation5 + $0x13b4] sm:$0xf0]  ;;  %v12898_v16 = vpop.f32.mrf.mxu2 }
 0x223   :  { %5752 = vmatpush.bf16.msrb.mxu1 %v9389_v14  ;;  %v10236_v14 = vld [vmem:[#allocation5 + $0x13c8] sm:$0xf]  ;;  %13282 = vst [vmem:[#allocation56_spill] sm:$0xff] %v12898_v16  ;;  %v12061_v25 = vld [vmem:[#allocation5 + $0x1394] sm:$0xf0] }
 0x224   :  { %5766 = vmatpush.bf16.msrb.mxu2 %v9517_v29  ;;  %v12069_v29 = vld [vmem:[#allocation5 + $0x13d4] sm:$0xf0]  ;;  %v9964_v3 = vld [vmem:[#allocation5 + $0x11a8] sm:$0xf] }
 0x225   :  { %5780 = vmatpush.bf16.msrb.mxu3 %v9645_v18  ;;  %v10109_v18 = vor.u32 %v12037_v0, %v10108_v62  ;;  %v10237_v12 = vor.u32 %v12069_v29, %v10236_v14  ;;  %v10092_v7 = vld [vmem:[#allocation5 + $0x12a8] sm:$0xf]  ;;  %v9837_v0 = vor.u32 %v11969_v22, %v9836_v57  ;;  %v9965_v19 = vor.u32 %v12001_v61, %v9964_v3  ;;  %v11961_v57 = vld [vmem:[#allocation5 + $0x1074] sm:$0xf0] }
 0x226   :  { %5739 = vmatpush.bf16.msrb.mxu0 %v9245_v28  ;;  %v12033_v28 = vld [vmem:[#allocation5 + $0x12b4] sm:$0xf0]  ;;  %v10220_v8 = vld [vmem:[#allocation5 + $0x13a8] sm:$0xf]  ;;  %v5517_v50 = vpop.f32.mrf.mxu0 }
 0x227   :  { %5753 = vmatpush.bf16.msrb.mxu1 %v9373_v9  ;;  %v10093_v30 = vor.u32 %v12033_v28, %v10092_v7  ;;  %v9820_v20 = vld [vmem:[#allocation5 + $0x1088] sm:$0xf]  ;;  %v11965_v9 = vld [vmem:[#allocation5 + $0x1094] sm:$0xf0]  ;;  %v10221_v27 = vor.u32 %v12065_v63, %v10220_v8  ;;  %v5518_v62 = vadd.f32 %v5517_v50, %v12888_v53  ;;  %v5531_v29 = vpop.f32.mrf.mxu1 }
 0x228   :  { %5767 = vmatpush.bf16.msrb.mxu2 %v9501_v11  ;;  %v9948_v11 = vld [vmem:[#allocation5 + $0x1188] sm:$0xf]  ;;  %v9821_v14 = vor.u32 %v11965_v9, %v9820_v20  ;;  %v11993_v61 = vld [vmem:[#allocation5 + $0x1174] sm:$0xf0] }
 0x229   :  { %5781 = vmatpush.bf16.msrb.mxu3 %v9629_v15  ;;  %5740 = vmatmul.bf16.vlgmr.msrb.gmra.mxu0 %v12697_v32  ;;  %v11997_v15 = vld [vmem:[#allocation5 + $0x1194] sm:$0xf0]  ;;  %v9932_v22 = vld [vmem:[#allocation5 + $0x1168] sm:$0xf] }
 0x22a   :  { %5788 = vmatpush.bf16.msra.mxu0 %v9869_v52  ;;  %5754 = vmatmul.bf16.vlgmr.msrb.gmra.mxu1 %v12701_v41  ;;  %v10076_v52 = vld [vmem:[#allocation5 + $0x1288] sm:$0xf]  ;;  %v12025_v28 = vld [vmem:[#allocation5 + $0x1274] sm:$0xf0]  ;;  %v9933_v53 = vor.u32 %v11993_v61, %v9932_v22 }
 0x22b   :  { %5802 = vmatpush.bf16.msra.mxu1 %v9997_v37  ;;  %5768 = vmatmul.bf16.vlgmr.msrb.gmra.mxu2 %v12699_v38  ;;  %v12029_v37 = vld [vmem:[#allocation5 + $0x1294] sm:$0xf0]  ;;  %v10060_v7 = vld [vmem:[#allocation5 + $0x1268] sm:$0xf] }
 0x22c   :  { %5816 = vmatpush.bf16.msra.mxu2 %v10125_v49  ;;  %5782 = vmatmul.bf16.vlgmr.msrb.gmra.mxu3 %v12703_v46  ;;  %v12900_v49 = vpop.f32.mrf.mxu3  ;;  %v10188_v8 = vld [vmem:[#allocation5 + $0x1368] sm:$0xf]  ;;  %v12057_v63 = vld [vmem:[#allocation5 + $0x1374] sm:$0xf0] }
 0x22d   :  { %5830 = vmatpush.bf16.msra.mxu3 %v10253_v24  ;;  %13283 = vst [vmem:[#allocation57_spill] sm:$0xff] %v12900_v49  ;;  %v10204_v24 = vld [vmem:[#allocation5 + $0x1388] sm:$0xf]  ;;  %v11957_v20 = vld [vmem:[#allocation5 + $0x1054] sm:$0xf0] }
 0x22e   :  { %5789 = vmatpush.bf16.msra.mxu0 %v9853_v13  ;;  %v9949_v13 = vor.u32 %v11997_v15, %v9948_v11  ;;  %v10205_v3 = vor.u32 %v12061_v25, %v10204_v24  ;;  %v9916_v9 = vld [vmem:[#allocation5 + $0x1148] sm:$0xf]  ;;  %v10189_v11 = vor.u32 %v12057_v63, %v10188_v8  ;;  %v5545_v15 = vpop.f32.mrf.mxu2  ;;  %v11985_v61 = vld [vmem:[#allocation5 + $0x1134] sm:$0xf0] }
 0x22f   :  { %5803 = vmatpush.bf16.msra.mxu1 %v9981_v23  ;;  %v10077_v23 = vor.u32 %v12029_v37, %v10076_v52  ;;  %v10044_v52 = vld [vmem:[#allocation5 + $0x1248] sm:$0xf]  ;;  %v12021_v37 = vld [vmem:[#allocation5 + $0x1254] sm:$0xf0] }
 0x230   :  { %5817 = vmatpush.bf16.msra.mxu2 %v10109_v18  ;;  %v9804_v18 = vld [vmem:[#allocation5 + $0x1068] sm:$0xf]  ;;  %v12049_v8 = vld [vmem:[#allocation5 + $0x1334] sm:$0xf0] }
 0x231   :  { %5831 = vmatpush.bf16.msra.mxu3 %v10237_v12  ;;  %v5532_v12 = vadd.f32 %v5531_v29, %v5518_v62  ;;  %v10172_v25 = vld [vmem:[#allocation5 + $0x1348] sm:$0xf]  ;;  %v12053_v62 = vld [vmem:[#allocation5 + $0x1354] sm:$0xf0] }
 0x232   :  { %5790 = vmatpush.bf16.msra.mxu0 %v9837_v0  ;;  %v9805_v0 = vor.u32 %v11961_v57, %v9804_v18  ;;  %v9772_v18 = vld [vmem:[#allocation5 + $0x1028] sm:$0xf]  ;;  %v11953_v57 = vld [vmem:[#allocation5 + $0x1034] sm:$0xf0] }
 0x233   :  { %5804 = vmatpush.bf16.msra.mxu1 %v9965_v19  ;;  %v10061_v19 = vor.u32 %v12025_v28, %v10060_v7  ;;  %v5546_v50 = vadd.f32 %v5545_v15, %v5532_v12  ;;  %v9900_v22 = vld [vmem:[#allocation5 + $0x1128] sm:$0xf]  ;;  %v12017_v28 = vld [vmem:[#allocation5 + $0x1234] sm:$0xf0]  ;;  %v9773_v63 = vor.u32 %v11953_v57, %v9772_v18 }
 0x234   :  { %5818 = vmatpush.bf16.msra.mxu2 %v10093_v30  ;;  %v9788_v30 = vld [vmem:[#allocation5 + $0x1048] sm:$0xf]  ;;  %v5559_v24 = vpop.f32.mrf.mxu3  ;;  %v12169_v57 = vld [vmem:[#allocation5 + $0x16f4] sm:$0xf0] }
 0x235   :  { %5832 = vmatpush.bf16.msra.mxu3 %v10221_v27  ;;  %v11989_v27 = vld [vmem:[#allocation5 + $0x1154] sm:$0xf0]  ;;  %v12903_v29 = vadd.f32 %v5559_v24, %v5546_v50  ;;  %v10028_v7 = vld [vmem:[#allocation5 + $0x1228] sm:$0xf] }
 0x236   :  { %5791 = vmatpush.bf16.msra.mxu0 %v9821_v14  ;;  %v9789_v14 = vor.u32 %v11957_v20, %v9788_v30  ;;  %v10156_v12 = vld [vmem:[#allocation5 + $0x1328] sm:$0xf]  ;;  %v11949_v30 = vld [vmem:[#allocation5 + $0x1014] sm:$0xf0] }
 0x237   :  { %5805 = vmatpush.bf16.msra.mxu1 %v9949_v13  ;;  %13284 = vst [vmem:[#allocation58_spill] sm:$0xff] %v12903_v29  ;;  %v9917_v13 = vor.u32 %v11989_v27, %v9916_v9  ;;  %v9884_v20 = vld [vmem:[#allocation5 + $0x1108] sm:$0xf]  ;;  %v11981_v9 = vld [vmem:[#allocation5 + $0x1114] sm:$0xf0]  ;;  %v10157_v27 = vor.u32 %v12049_v8, %v10156_v12 }
 0x238   :  { %5819 = vmatpush.bf16.msra.mxu2 %v10077_v23  ;;  %v10045_v23 = vor.u32 %v12021_v37, %v10044_v52  ;;  %v10012_v15 = vld [vmem:[#allocation5 + $0x1208] sm:$0xf]  ;;  %v12045_v37 = vld [vmem:[#allocation5 + $0x1314] sm:$0xf0] }
 0x239   :  { %5833 = vmatpush.bf16.msra.mxu3 %v10205_v3  ;;  %v10173_v3 = vor.u32 %v12053_v62, %v10172_v25  ;;  %v10140_v52 = vld [vmem:[#allocation5 + $0x1308] sm:$0xf]  ;;  %v12105_v24 = vld [vmem:[#allocation5 + $0x14f4] sm:$0xf0] }
 0x23a   :  { %5792 = vmatpush.bf16.msra.mxu0 %v9805_v0  ;;  %v9756_v0 = vld [vmem:[#allocation5 + $0x1008] sm:$0xf]  ;;  %v12101_v29 = vld [vmem:[#allocation5 + $0x14d4] sm:$0xf0] }
 0x23b   :  { %5806 = vmatpush.bf16.msra.mxu1 %v9933_v53  ;;  %v9901_v53 = vor.u32 %v11985_v61, %v9900_v22  ;;  %v10380_v50 = vld [vmem:[#allocation5 + $0x14e8] sm:$0xf]  ;;  %v9757_v62 = vor.u32 %v11949_v30, %v9756_v0  ;;  %v12201_v61 = vld [vmem:[#allocation5 + $0x17f4] sm:$0xf0] }
 0x23c   :  { %5820 = vmatpush.bf16.msra.mxu2 %v10061_v19  ;;  %v10029_v19 = vor.u32 %v12017_v28, %v10028_v7  ;;  %v10508_v25 = vld [vmem:[#allocation5 + $0x15e8] sm:$0xf]  ;;  %v10381_v7 = vor.u32 %v12105_v24, %v10380_v50  ;;  %v12133_v0 = vld [vmem:[#allocation5 + $0x15d4] sm:$0xf0] }
 0x23d   :  { %5834 = vmatpush.bf16.msra.mxu3 %v10189_v11  ;;  %v12013_v11 = vld [vmem:[#allocation5 + $0x1214] sm:$0xf0]  ;;  %v10636_v18 = vld [vmem:[#allocation5 + $0x16e8] sm:$0xf] }
 0x23e   :  { %5793 = vmatpush.bf16.msra.mxu0 %v9789_v14  ;;  %v12137_v14 = vld [vmem:[#allocation5 + $0x15f4] sm:$0xf0]  ;;  %v10764_v22 = vld [vmem:[#allocation5 + $0x17e8] sm:$0xf]  ;;  %v10637_v12 = vor.u32 %v12169_v57, %v10636_v18 }
 0x23f   :  { %5807 = vmatpush.bf16.msra.mxu1 %v9917_v13  ;;  %v9885_v13 = vor.u32 %v11981_v9, %v9884_v20  ;;  %v10509_v28 = vor.u32 %v12137_v14, %v10508_v25  ;;  %v10364_v8 = vld [vmem:[#allocation5 + $0x14c8] sm:$0xf]  ;;  %v12165_v16 = vld [vmem:[#allocation5 + $0x16d4] sm:$0xf0] }
 0x240   :  { %5821 = vmatpush.bf16.msra.mxu2 %v10045_v23  ;;  %v10013_v23 = vor.u32 %v12013_v11, %v10012_v15  ;;  %v10492_v49 = vld [vmem:[#allocation5 + $0x15c8] sm:$0xf]  ;;  %v10365_v20 = vor.u32 %v12101_v29, %v10364_v8  ;;  %v12097_v11 = vld [vmem:[#allocation5 + $0x14b4] sm:$0xf0] }
 0x241   :  { %5835 = vmatpush.bf16.msra.mxu3 %v10173_v3  ;;  %v10141_v3 = vor.u32 %v12045_v37, %v10140_v52  ;;  %v10620_v30 = vld [vmem:[#allocation5 + $0x16c8] sm:$0xf]  ;;  %v10493_v9 = vor.u32 %v12133_v0, %v10492_v49  ;;  %v12129_v50 = vld [vmem:[#allocation5 + $0x15b4] sm:$0xf0] }
 0x242   :  { %5794 = vmatpush.bf16.msra.mxu0 %v9773_v63  ;;  %v10765_v63 = vor.u32 %v12201_v61, %v10764_v22  ;;  %v10621_v15 = vor.u32 %v12165_v16, %v10620_v30  ;;  %v10476_v52 = vld [vmem:[#allocation5 + $0x15a8] sm:$0xf]  ;;  %v12161_v25 = vld [vmem:[#allocation5 + $0x16b4] sm:$0xf0] }
 0x243   :  { %5808 = vmatpush.bf16.msra.mxu1 %v9901_v53  ;;  %v10748_v53 = vld [vmem:[#allocation5 + $0x17c8] sm:$0xf]  ;;  %v12193_v29 = vld [vmem:[#allocation5 + $0x17b4] sm:$0xf0]  ;;  %v10477_v49 = vor.u32 %v12129_v50, %v10476_v52 }
 0x244   :  { %5822 = vmatpush.bf16.msra.mxu2 %v10029_v19  ;;  %v12197_v19 = vld [vmem:[#allocation5 + $0x17d4] sm:$0xf0]  ;;  %v10604_v24 = vld [vmem:[#allocation5 + $0x16a8] sm:$0xf] }
 0x245   :  { %5836 = vmatpush.bf16.msra.mxu3 %v10157_v27  ;;  %v10348_v27 = vld [vmem:[#allocation5 + $0x14a8] sm:$0xf]  ;;  %v10749_v37 = vor.u32 %v12197_v19, %v10748_v53  ;;  %v10605_v14 = vor.u32 %v12161_v25, %v10604_v24  ;;  %v12093_v57 = vld [vmem:[#allocation5 + $0x1494] sm:$0xf0] }
 0x246   :  { %5795 = vmatpush.bf16.msra.mxu0 %v9757_v62  ;;  %v10732_v62 = vld [vmem:[#allocation5 + $0x17a8] sm:$0xf]  ;;  %v10349_v16 = vor.u32 %v12097_v11, %v10348_v27  ;;  %v12125_v22 = vld [vmem:[#allocation5 + $0x1594] sm:$0xf0] }
 0x247   :  { %5809 = vmatpush.bf16.msra.mxu1 %v9885_v13  ;;  %v10332_v18 = vld [vmem:[#allocation5 + $0x1488] sm:$0xf]  ;;  %v12089_v30 = vld [vmem:[#allocation5 + $0x1474] sm:$0xf0] }
 0x248   :  { %5823 = vmatpush.bf16.msra.mxu2 %v10013_v23  ;;  %v10460_v13 = vld [vmem:[#allocation5 + $0x1588] sm:$0xf]  ;;  %v10733_v23 = vor.u32 %v12193_v29, %v10732_v62  ;;  %v12185_v11 = vld [vmem:[#allocation5 + $0x1774] sm:$0xf0] }
 0x249   :  { %5837 = vmatpush.bf16.msra.mxu3 %v10141_v3  ;;  %5796 = vmatmul.bf16.vlgmr.msra.gmra.mxu0 %v12709_v51  ;;  %v10588_v61 = vld [vmem:[#allocation5 + $0x1688] sm:$0xf]  ;;  %v12157_v3 = vld [vmem:[#allocation5 + $0x1694] sm:$0xf0]  ;;  %v10461_v8 = vor.u32 %v12125_v22, %v10460_v13 }
 0x24a   :  { %5844 = vmatpush.bf16.msrb.mxu0 %v10381_v7  ;;  %5810 = vmatmul.bf16.vlgmr.msra.gmra.mxu1 %v12713_v56  ;;  %v10716_v7 = vld [vmem:[#allocation5 + $0x1788] sm:$0xf]  ;;  %v12085_v25 = vld [vmem:[#allocation5 + $0x1454] sm:$0xf0] }
 0x24b   :  { %5858 = vmatpush.bf16.msrb.mxu1 %v10509_v28  ;;  %5824 = vmatmul.bf16.vlgmr.msra.gmra.mxu2 %v12711_v55  ;;  %v12189_v28 = vld [vmem:[#allocation5 + $0x1794] sm:$0xf0]  ;;  %v10316_v0 = vld [vmem:[#allocation5 + $0x1468] sm:$0xf] }
 0x24c   :  { %5872 = vmatpush.bf16.msrb.mxu2 %v10637_v12  ;;  %5838 = vmatmul.bf16.vlgmr.msra.gmra.mxu3 %v12715_v60  ;;  %v10333_v12 = vor.u32 %v12093_v57, %v10332_v18  ;;  %v10444_v53 = vld [vmem:[#allocation5 + $0x1568] sm:$0xf]  ;;  %v10717_v19 = vor.u32 %v12189_v28, %v10716_v7  ;;  %v10317_v52 = vor.u32 %v12089_v30, %v10316_v0  ;;  %v12181_v57 = vld [vmem:[#allocation5 + $0x1754] sm:$0xf0] }
 0x24d   :  { %5886 = vmatpush.bf16.msrb.mxu3 %v10765_v63  ;;  %v10589_v63 = vor.u32 %v12157_v3, %v10588_v61  ;;  %v10700_v27 = vld [vmem:[#allocation5 + $0x1768] sm:$0xf]  ;;  %v12081_v3 = vld [vmem:[#allocation5 + $0x1434] sm:$0xf0] }
 0x24e   :  { %5845 = vmatpush.bf16.msrb.mxu0 %v10365_v20  ;;  %v12121_v20 = vld [vmem:[#allocation5 + $0x1574] sm:$0xf0]  ;;  %v10300_v24 = vld [vmem:[#allocation5 + $0x1448] sm:$0xf]  ;;  %v10701_v29 = vor.u32 %v12185_v11, %v10700_v27 }
 0x24f   :  { %5859 = vmatpush.bf16.msrb.mxu1 %v10493_v9  ;;  %v10572_v9 = vld [vmem:[#allocation5 + $0x1668] sm:$0xf]  ;;  %v10301_v13 = vor.u32 %v12085_v25, %v10300_v24  ;;  %v12177_v30 = vld [vmem:[#allocation5 + $0x1734] sm:$0xf0] }
 0x250   :  { %5873 = vmatpush.bf16.msrb.mxu2 %v10621_v15  ;;  %v12153_v15 = vld [vmem:[#allocation5 + $0x1674] sm:$0xf0]  ;;  %v10428_v62 = vld [vmem:[#allocation5 + $0x1548] sm:$0xf] }
 0x251   :  { %5887 = vmatpush.bf16.msrb.mxu3 %v10749_v37  ;;  %v10445_v37 = vor.u32 %v12121_v20, %v10444_v53  ;;  %v10573_v50 = vor.u32 %v12153_v15, %v10572_v9  ;;  %v10684_v18 = vld [vmem:[#allocation5 + $0x1748] sm:$0xf]  ;;  %v12077_v20 = vld [vmem:[#allocation5 + $0x1414] sm:$0xf0] }
 0x252   :  { %5846 = vmatpush.bf16.msrb.mxu0 %v10349_v16  ;;  %v12117_v16 = vld [vmem:[#allocation5 + $0x1554] sm:$0xf0]  ;;  %v10284_v61 = vld [vmem:[#allocation5 + $0x1428] sm:$0xf]  ;;  %v10685_v28 = vor.u32 %v12181_v57, %v10684_v18  ;;  %v11527_v18 = vld [vmem:[#allocation5 + $0x2ec] sm:$0xf] }
 0x253   :  { %5860 = vmatpush.bf16.msrb.mxu1 %v10477_v49  ;;  %v10556_v49 = vld [vmem:[#allocation5 + $0x1648] sm:$0xf]  ;;  %v10285_v53 = vor.u32 %v12081_v3, %v10284_v61  ;;  %v12109_v11 = vld [vmem:[#allocation5 + $0x1514] sm:$0xf0]  ;;  %v8078_v57 = vld [vmem:[#allocation5 + $0x2f8] sm:$0xf0] }
 0x254   :  { %5874 = vmatpush.bf16.msrb.mxu2 %v10605_v14  ;;  %v12149_v14 = vld [vmem:[#allocation5 + $0x1654] sm:$0xf0]  ;;  %v10412_v7 = vld [vmem:[#allocation5 + $0x1528] sm:$0xf]  ;;  %v8206_v61 = vld [vmem:[#allocation5 + $0x3f8] sm:$0xf0] }
 0x255   :  { %5888 = vmatpush.bf16.msrb.mxu3 %v10733_v23  ;;  %v10429_v23 = vor.u32 %v12117_v16, %v10428_v62  ;;  %v10557_v22 = vor.u32 %v12149_v14, %v10556_v49  ;;  %v10668_v0 = vld [vmem:[#allocation5 + $0x1728] sm:$0xf]  ;;  %v12173_v25 = vld [vmem:[#allocation5 + $0x1714] sm:$0xf0]  ;;  %v11463_v62 = vld [vmem:[#allocation5 + $0xec] sm:$0xf] }
 0x256   :  { %5847 = vmatpush.bf16.msrb.mxu0 %v10333_v12  ;;  %v12113_v12 = vld [vmem:[#allocation5 + $0x1534] sm:$0xf0]  ;;  %v10396_v27 = vld [vmem:[#allocation5 + $0x1508] sm:$0xf]  ;;  %v11495_v16 = vld [vmem:[#allocation5 + $0x1ec] sm:$0xf] }
 0x257   :  { %5861 = vmatpush.bf16.msrb.mxu1 %v10461_v8  ;;  %v10540_v8 = vld [vmem:[#allocation5 + $0x1628] sm:$0xf]  ;;  %v10413_v9 = vor.u32 %v12113_v12, %v10412_v7  ;;  %v7950_v14 = vld [vmem:[#allocation5 + $0x1f8] sm:$0xf0]  ;;  %v8081_v12 = vor.u32 %v11527_v18, %v8078_v57 }
 0x258   :  { %5875 = vmatpush.bf16.msrb.mxu2 %v10589_v63  ;;  %v12145_v63 = vld [vmem:[#allocation5 + $0x1634] sm:$0xf0]  ;;  %v10652_v24 = vld [vmem:[#allocation5 + $0x1708] sm:$0xf] }
 0x259   :  { %5889 = vmatpush.bf16.msrb.mxu3 %v10717_v19  ;;  %v10268_v19 = vld [vmem:[#allocation5 + $0x1408] sm:$0xf]  ;;  %v10541_v15 = vor.u32 %v12145_v63, %v10540_v8  ;;  %v10653_v3 = vor.u32 %v12173_v25, %v10652_v24  ;;  %v11459_v8 = vld [vmem:[#allocation5 + $0xcc] sm:$0xf]  ;;  %v7806_v63 = vld [vmem:[#allocation5 + $0xd8] sm:$0xf0] }
 0x25a   :  { %5848 = vmatpush.bf16.msrb.mxu0 %v10317_v52  ;;  %v10524_v52 = vld [vmem:[#allocation5 + $0x1608] sm:$0xf]  ;;  %v10269_v49 = vor.u32 %v12077_v20, %v10268_v19  ;;  %v11523_v19 = vld [vmem:[#allocation5 + $0x2cc] sm:$0xf]  ;;  %v8062_v20 = vld [vmem:[#allocation5 + $0x2d8] sm:$0xf0] }
 0x25b   :  { %5862 = vmatpush.bf16.msrb.mxu1 %v10445_v37  ;;  %v10669_v37 = vor.u32 %v12177_v30, %v10668_v0  ;;  %v11491_v0 = vld [vmem:[#allocation5 + $0x1cc] sm:$0xf] }
 0x25c   :  { %5876 = vmatpush.bf16.msrb.mxu2 %v10573_v50  ;;  %v12141_v50 = vld [vmem:[#allocation5 + $0x1614] sm:$0xf0]  ;;  %v11487_v24 = vld [vmem:[#allocation5 + $0x1ac] sm:$0xf] }
 0x25d   :  { %5890 = vmatpush.bf16.msrb.mxu3 %v10701_v29  ;;  %v7822_v29 = vld [vmem:[#allocation5 + $0xf8] sm:$0xf0] }
 0x25e   :  { %5849 = vmatpush.bf16.msrb.mxu0 %v10301_v13  ;;  %v10397_v13 = vor.u32 %v12109_v11, %v10396_v27  ;;  %v7825_v7 = vor.u32 %v11463_v62, %v7822_v29  ;;  %v7809_v27 = vor.u32 %v11459_v8, %v7806_v63  ;;  %v7918_v62 = vld [vmem:[#allocation5 + $0x1b8] sm:$0xf0]  ;;  %v11519_v29 = vld [vmem:[#allocation5 + $0x2ac] sm:$0xf] }
 0x25f   :  { %5863 = vmatpush.bf16.msrb.mxu1 %v10429_v23  ;;  %v10525_v23 = vor.u32 %v12141_v50, %v10524_v52  ;;  %v8065_v52 = vor.u32 %v11523_v19, %v8062_v20  ;;  %v7790_v50 = vld [vmem:[#allocation5 + $0xb8] sm:$0xf0]  ;;  %v7921_v57 = vor.u32 %v11487_v24, %v7918_v62  ;;  %v11547_v8 = vld [vmem:[#allocation5 + $0x38c] sm:$0xf] }
 0x260   :  { %5877 = vmatpush.bf16.msrb.mxu2 %v10557_v22  ;;  %v11559_v22 = vld [vmem:[#allocation5 + $0x3ec] sm:$0xf]  ;;  %v8158_v63 = vld [vmem:[#allocation5 + $0x398] sm:$0xf0] }
 0x261   :  { %5891 = vmatpush.bf16.msrb.mxu3 %v10685_v28  ;;  %v7953_v28 = vor.u32 %v11495_v16, %v7950_v14  ;;  %v8209_v30 = vor.u32 %v11559_v22, %v8206_v61  ;;  %v8046_v16 = vld [vmem:[#allocation5 + $0x2b8] sm:$0xf0]  ;;  %v11483_v61 = vld [vmem:[#allocation5 + $0x18c] sm:$0xf] }
 0x262   :  { %5850 = vmatpush.bf16.msrb.mxu0 %v10285_v53  ;;  %v7934_v53 = vld [vmem:[#allocation5 + $0x1d8] sm:$0xf0]  ;;  %v11447_v19 = vld [vmem:[#allocation5 + $0x6c] sm:$0xf] }
 0x263   :  { %5864 = vmatpush.bf16.msrb.mxu1 %v10413_v9  ;;  %v11555_v9 = vld [vmem:[#allocation5 + $0x3cc] sm:$0xf]  ;;  %v7937_v11 = vor.u32 %v11491_v0, %v7934_v53  ;;  %v8174_v14 = vld [vmem:[#allocation5 + $0x3b8] sm:$0xf0] }
 0x264   :  { %5878 = vmatpush.bf16.msrb.mxu2 %v10541_v15  ;;  %v8190_v15 = vld [vmem:[#allocation5 + $0x3d8] sm:$0xf0] }
 0x265   :  { %5892 = vmatpush.bf16.msrb.mxu3 %v10669_v37  ;;  %v11455_v37 = vld [vmem:[#allocation5 + $0xac] sm:$0xf]  ;;  %v8193_v25 = vor.u32 %v11555_v9, %v8190_v15  ;;  %v7774_v22 = vld [vmem:[#allocation5 + $0x98] sm:$0xf0]  ;;  %v8161_v15 = vor.u32 %v11547_v8, %v8158_v63 }
 0x266   :  { %5851 = vmatpush.bf16.msrb.mxu0 %v10269_v49  ;;  %v11551_v49 = vld [vmem:[#allocation5 + $0x3ac] sm:$0xf]  ;;  %v7793_v18 = vor.u32 %v11455_v37, %v7790_v50  ;;  %v7758_v20 = vld [vmem:[#allocation5 + $0x78] sm:$0xf0] }
 0x267   :  { %5865 = vmatpush.bf16.msrb.mxu1 %v10397_v13  ;;  %v8049_v13 = vor.u32 %v11519_v29, %v8046_v16  ;;  %v11479_v9 = vld [vmem:[#allocation5 + $0x16c] sm:$0xf]  ;;  %v8142_v50 = vld [vmem:[#allocation5 + $0x378] sm:$0xf0]  ;;  %v7761_v24 = vor.u32 %v11447_v19, %v7758_v20 }
 0x268   :  { %5879 = vmatpush.bf16.msrb.mxu2 %v10525_v23  ;;  %v11451_v23 = vld [vmem:[#allocation5 + $0x8c] sm:$0xf]  ;;  %v7742_v16 = vld [vmem:[#allocation5 + $0x58] sm:$0xf0] }
 0x269   :  { %5893 = vmatpush.bf16.msrb.mxu3 %v10653_v3  ;;  %5852 = vmatmul.bf16.vlgmr.msrb.gmra.mxu0 %v12730_v26  ;;  %v8177_v3 = vor.u32 %v11551_v49, %v8174_v14  ;;  %v7777_v0 = vor.u32 %v11451_v23, %v7774_v22  ;;  %v11543_v37 = vld [vmem:[#allocation5 + $0x36c] sm:$0xf]  ;;  %v8126_v22 = vld [vmem:[#allocation5 + $0x358] sm:$0xf0] }
 0x26a   :  { %5900 = vmatpush.bf16.msra.mxu0 %v7825_v7  ;;  %5866 = vmatmul.bf16.vlgmr.msrb.gmra.mxu1 %v12734_v34  ;;  %v7902_v7 = vld [vmem:[#allocation5 + $0x198] sm:$0xf0]  ;;  %v11443_v29 = vld [vmem:[#allocation5 + $0x4c] sm:$0xf]  ;;  %v8145_v14 = vor.u32 %v11543_v37, %v8142_v50 }
 0x26b   :  { %5914 = vmatpush.bf16.msra.mxu1 %v7953_v28  ;;  %5880 = vmatmul.bf16.vlgmr.msrb.gmra.mxu2 %v12732_v33  ;;  %v11515_v28 = vld [vmem:[#allocation5 + $0x28c] sm:$0xf]  ;;  %v8110_v20 = vld [vmem:[#allocation5 + $0x338] sm:$0xf0] }
 0x26c   :  { %5928 = vmatpush.bf16.msra.mxu2 %v8081_v12  ;;  %5894 = vmatmul.bf16.vlgmr.msrb.gmra.mxu3 %v12738_v48  ;;  %v8030_v12 = vld [vmem:[#allocation5 + $0x298] sm:$0xf0]  ;;  %v11475_v49 = vld [vmem:[#allocation5 + $0x14c] sm:$0xf] }
 0x26d   :  { %5942 = vmatpush.bf16.msra.mxu3 %v8209_v30  ;;  %v7905_v30 = vor.u32 %v11483_v61, %v7902_v7  ;;  %v8033_v53 = vor.u32 %v11515_v28, %v8030_v12  ;;  %v11539_v23 = vld [vmem:[#allocation5 + $0x34c] sm:$0xf]  ;;  %v7745_v61 = vor.u32 %v11443_v29, %v7742_v16  ;;  %v7726_v12 = vld [vmem:[#allocation5 + $0x38] sm:$0xf0] }
 0x26e   :  { %5901 = vmatpush.bf16.msra.mxu0 %v7809_v27  ;;  %v7886_v27 = vld [vmem:[#allocation5 + $0x178] sm:$0xf0]  ;;  %v11439_v28 = vld [vmem:[#allocation5 + $0x2c] sm:$0xf]  ;;  %v8129_v63 = vor.u32 %v11539_v23, %v8126_v22 }
 0x26f   :  { %5915 = vmatpush.bf16.msra.mxu1 %v7937_v11  ;;  %v11511_v11 = vld [vmem:[#allocation5 + $0x26c] sm:$0xf]  ;;  %v7838_v50 = vld [vmem:[#allocation5 + $0x118] sm:$0xf0] }
 0x270   :  { %5929 = vmatpush.bf16.msra.mxu2 %v8065_v52  ;;  %v8014_v52 = vld [vmem:[#allocation5 + $0x278] sm:$0xf0]  ;;  %v11471_v8 = vld [vmem:[#allocation5 + $0x12c] sm:$0xf] }
 0x271   :  { %5943 = vmatpush.bf16.msra.mxu3 %v8193_v25  ;;  %v7889_v25 = vor.u32 %v11479_v9, %v7886_v27  ;;  %v8017_v62 = vor.u32 %v11511_v11, %v8014_v52  ;;  %v11535_v19 = vld [vmem:[#allocation5 + $0x32c] sm:$0xf]  ;;  %v7729_v9 = vor.u32 %v11439_v28, %v7726_v12  ;;  %v7710_v27 = vld [vmem:[#allocation5 + $0x18] sm:$0xf0] }
 0x272   :  { %5902 = vmatpush.bf16.msra.mxu0 %v7793_v18  ;;  %v7870_v18 = vld [vmem:[#allocation5 + $0x158] sm:$0xf0]  ;;  %v11467_v37 = vld [vmem:[#allocation5 + $0x10c] sm:$0xf] }
 0x273   :  { %5916 = vmatpush.bf16.msra.mxu1 %v7921_v57  ;;  %v11507_v57 = vld [vmem:[#allocation5 + $0x24c] sm:$0xf]  ;;  %v8094_v16 = vld [vmem:[#allocation5 + $0x318] sm:$0xf0] }
 0x274   :  { %5930 = vmatpush.bf16.msra.mxu2 %v8049_v13  ;;  %v7998_v13 = vld [vmem:[#allocation5 + $0x258] sm:$0xf0]  ;;  %v11531_v29 = vld [vmem:[#allocation5 + $0x30c] sm:$0xf] }
 0x275   :  { %5944 = vmatpush.bf16.msra.mxu3 %v8177_v3  ;;  %v7873_v3 = vor.u32 %v11475_v49, %v7870_v18  ;;  %v8001_v7 = vor.u32 %v11507_v57, %v7998_v13  ;;  %v11591_v49 = vld [vmem:[#allocation5 + $0x4ec] sm:$0xf]  ;;  %v8462_v13 = vld [vmem:[#allocation5 + $0x5f8] sm:$0xf0]  ;;  %v8097_v12 = vor.u32 %v11531_v29, %v8094_v16 }
 0x276   :  { %5903 = vmatpush.bf16.msra.mxu0 %v7777_v0  ;;  %v7854_v0 = vld [vmem:[#allocation5 + $0x138] sm:$0xf0]  ;;  %v11623_v18 = vld [vmem:[#allocation5 + $0x5ec] sm:$0xf] }
 0x277   :  { %5917 = vmatpush.bf16.msra.mxu1 %v7905_v30  ;;  %v11503_v30 = vld [vmem:[#allocation5 + $0x22c] sm:$0xf]  ;;  %v7857_v11 = vor.u32 %v11471_v8, %v7854_v0  ;;  %v8590_v22 = vld [vmem:[#allocation5 + $0x6f8] sm:$0xf0] }
 0x278   :  { %5931 = vmatpush.bf16.msra.mxu2 %v8033_v53  ;;  %v7982_v53 = vld [vmem:[#allocation5 + $0x238] sm:$0xf0]  ;;  %v11655_v23 = vld [vmem:[#allocation5 + $0x6ec] sm:$0xf] }
 0x279   :  { %5945 = vmatpush.bf16.msra.mxu3 %v8161_v15  ;;  %v11435_v15 = vld [vmem:[#allocation5 + $0xc] sm:$0xf]  ;;  %v7985_v52 = vor.u32 %v11503_v30, %v7982_v53  ;;  %v8718_v28 = vld [vmem:[#allocation5 + $0x7f8] sm:$0xf0]  ;;  %v8593_v0 = vor.u32 %v11655_v23, %v8590_v22 }
 0x27a   :  { %5904 = vmatpush.bf16.msra.mxu0 %v7761_v24  ;;  %v11499_v24 = vld [vmem:[#allocation5 + $0x20c] sm:$0xf]  ;;  %v7713_v57 = vor.u32 %v11435_v15, %v7710_v27  ;;  %v8318_v53 = vld [vmem:[#allocation5 + $0x4d8] sm:$0xf0] }
 0x27b   :  { %5918 = vmatpush.bf16.msra.mxu1 %v7889_v25  ;;  %v8113_v25 = vor.u32 %v11535_v19, %v8110_v20  ;;  %v11587_v30 = vld [vmem:[#allocation5 + $0x4cc] sm:$0xf]  ;;  %v8574_v27 = vld [vmem:[#allocation5 + $0x6d8] sm:$0xf0] }
 0x27c   :  { %5932 = vmatpush.bf16.msra.mxu2 %v8017_v62  ;;  %v7966_v62 = vld [vmem:[#allocation5 + $0x218] sm:$0xf0]  ;;  %v11619_v19 = vld [vmem:[#allocation5 + $0x5cc] sm:$0xf] }
 0x27d   :  { %5946 = vmatpush.bf16.msra.mxu3 %v8145_v14  ;;  %v8334_v14 = vld [vmem:[#allocation5 + $0x4f8] sm:$0xf0]  ;;  %v11651_v15 = vld [vmem:[#allocation5 + $0x6cc] sm:$0xf] }
 0x27e   :  { %5905 = vmatpush.bf16.msra.mxu0 %v7745_v61  ;;  %v7841_v61 = vor.u32 %v11467_v37, %v7838_v50  ;;  %v8337_v8 = vor.u32 %v11591_v49, %v8334_v14  ;;  %v8321_v37 = vor.u32 %v11587_v30, %v8318_v53  ;;  %v11615_v29 = vld [vmem:[#allocation5 + $0x5ac] sm:$0xf]  ;;  %v8430_v49 = vld [vmem:[#allocation5 + $0x5b8] sm:$0xf0] }
 0x27f   :  { %5919 = vmatpush.bf16.msra.mxu1 %v7873_v3  ;;  %v7969_v3 = vor.u32 %v11499_v24, %v7966_v62  ;;  %v8577_v24 = vor.u32 %v11651_v15, %v8574_v27  ;;  %v8302_v62 = vld [vmem:[#allocation5 + $0x4b8] sm:$0xf0]  ;;  %v11647_v14 = vld [vmem:[#allocation5 + $0x6ac] sm:$0xf]  ;;  %v8433_v22 = vor.u32 %v11615_v29, %v8430_v49 }
 0x280   :  { %5933 = vmatpush.bf16.msra.mxu2 %v8001_v7  ;;  %v11687_v7 = vld [vmem:[#allocation5 + $0x7ec] sm:$0xf]  ;;  %v8398_v15 = vld [vmem:[#allocation5 + $0x578] sm:$0xf0] }
 0x281   :  { %5947 = vmatpush.bf16.msra.mxu3 %v8129_v63  ;;  %v8465_v63 = vor.u32 %v11623_v18, %v8462_v13  ;;  %v8721_v20 = vor.u32 %v11687_v7, %v8718_v28  ;;  %v8558_v18 = vld [vmem:[#allocation5 + $0x6b8] sm:$0xf0]  ;;  %v11611_v28 = vld [vmem:[#allocation5 + $0x58c] sm:$0xf] }
 0x282   :  { %5906 = vmatpush.bf16.msra.mxu0 %v7729_v9  ;;  %v8446_v9 = vld [vmem:[#allocation5 + $0x5d8] sm:$0xf0]  ;;  %v11575_v53 = vld [vmem:[#allocation5 + $0x46c] sm:$0xf] }
 0x283   :  { %5920 = vmatpush.bf16.msra.mxu1 %v7857_v11  ;;  %v11683_v11 = vld [vmem:[#allocation5 + $0x7cc] sm:$0xf]  ;;  %v8449_v50 = vor.u32 %v11619_v19, %v8446_v9  ;;  %v8686_v13 = vld [vmem:[#allocation5 + $0x7b8] sm:$0xf0] }
 0x284   :  { %5934 = vmatpush.bf16.msra.mxu2 %v7985_v52  ;;  %v8702_v52 = vld [vmem:[#allocation5 + $0x7d8] sm:$0xf0]  ;;  %v11639_v27 = vld [vmem:[#allocation5 + $0x66c] sm:$0xf] }
 0x285   :  { %5948 = vmatpush.bf16.msra.mxu3 %v8113_v25  ;;  %v11583_v25 = vld [vmem:[#allocation5 + $0x4ac] sm:$0xf]  ;;  %v8705_v16 = vor.u32 %v11683_v11, %v8702_v52  ;;  %v8286_v7 = vld [vmem:[#allocation5 + $0x498] sm:$0xf0] }
 0x286   :  { %5907 = vmatpush.bf16.msra.mxu0 %v7713_v57  ;;  %v11679_v57 = vld [vmem:[#allocation5 + $0x7ac] sm:$0xf]  ;;  %v8305_v23 = vor.u32 %v11583_v25, %v8302_v62  ;;  %v8270_v19 = vld [vmem:[#allocation5 + $0x478] sm:$0xf0] }
 0x287   :  { %5921 = vmatpush.bf16.msra.mxu1 %v7841_v61  ;;  %v8561_v61 = vor.u32 %v11647_v14, %v8558_v18  ;;  %v8526_v11 = vld [vmem:[#allocation5 + $0x678] sm:$0xf0]  ;;  %v11671_v52 = vld [vmem:[#allocation5 + $0x76c] sm:$0xf] }
 0x288   :  { %5935 = vmatpush.bf16.msra.mxu2 %v7969_v3  ;;  %v11579_v3 = vld [vmem:[#allocation5 + $0x48c] sm:$0xf]  ;;  %v8529_v25 = vor.u32 %v11639_v27, %v8526_v11  ;;  %v8254_v29 = vld [vmem:[#allocation5 + $0x458] sm:$0xf0] }
 0x289   :  { %5949 = vmatpush.bf16.msra.mxu3 %v8097_v12  ;;  %5908 = vmatmul.bf16.vlgmr.msra.gmra.mxu0 %v12661_v58  ;;  %v8689_v12 = vor.u32 %v11679_v57, %v8686_v13  ;;  %v8414_v58 = vld [vmem:[#allocation5 + $0x598] sm:$0xf0]  ;;  %v11571_v62 = vld [vmem:[#allocation5 + $0x44c] sm:$0xf] }
 0x28a   :  { %5956 = vmatpush.bf16.msrb.mxu0 %v8337_v8  ;;  %5922 = vmatmul.bf16.vlgmr.msra.gmra.mxu1 %v12667_v10  ;;  %v11643_v8 = vld [vmem:[#allocation5 + $0x68c] sm:$0xf]  ;;  %v8289_v10 = vor.u32 %v11579_v3, %v8286_v7  ;;  %v8417_v30 = vor.u32 %v11611_v28, %v8414_v58  ;;  %v8382_v14 = vld [vmem:[#allocation5 + $0x558] sm:$0xf0] }
 0x28b   :  { %5970 = vmatpush.bf16.msrb.mxu1 %v8465_v63  ;;  %5936 = vmatmul.bf16.vlgmr.msra.gmra.mxu2 %v12663_v1  ;;  %v8542_v63 = vld [vmem:[#allocation5 + $0x698] sm:$0xf0]  ;;  %v11635_v18 = vld [vmem:[#allocation5 + $0x64c] sm:$0xf] }
 0x28c   :  { %5984 = vmatpush.bf16.msrb.mxu2 %v8593_v0  ;;  %5950 = vmatmul.bf16.vlgmr.msra.gmra.mxu3 %v12669_v17  ;;  %v11675_v0 = vld [vmem:[#allocation5 + $0x78c] sm:$0xf]  ;;  %v8670_v1 = vld [vmem:[#allocation5 + $0x798] sm:$0xf0]  ;;  %v8545_v17 = vor.u32 %v11643_v8, %v8542_v63 }
 0x28d   :  { %5998 = vmatpush.bf16.msrb.mxu3 %v8721_v20  ;;  %v11607_v20 = vld [vmem:[#allocation5 + $0x56c] sm:$0xf]  ;;  %v8673_v9 = vor.u32 %v11675_v0, %v8670_v1  ;;  %v8510_v57 = vld [vmem:[#allocation5 + $0x658] sm:$0xf0] }
 0x28e   :  { %5957 = vmatpush.bf16.msrb.mxu0 %v8321_v37  ;;  %v8654_v37 = vld [vmem:[#allocation5 + $0x778] sm:$0xf0]  ;;  %v11667_v13 = vld [vmem:[#allocation5 + $0x74c] sm:$0xf]  ;;  %v8513_v3 = vor.u32 %v11635_v18, %v8510_v57 }
 0x28f   :  { %5971 = vmatpush.bf16.msrb.mxu1 %v8449_v50  ;;  %v8273_v50 = vor.u32 %v11575_v53, %v8270_v19  ;;  %v8657_v49 = vor.u32 %v11671_v52, %v8654_v37  ;;  %v11567_v7 = vld [vmem:[#allocation5 + $0x42c] sm:$0xf]  ;;  %v8238_v28 = vld [vmem:[#allocation5 + $0x438] sm:$0xf0] }
 0x290   :  { %5985 = vmatpush.bf16.msrb.mxu2 %v8577_v24  ;;  %v8401_v24 = vor.u32 %v11607_v20, %v8398_v15  ;;  %v8366_v8 = vld [vmem:[#allocation5 + $0x538] sm:$0xf0]  ;;  %v11631_v63 = vld [vmem:[#allocation5 + $0x62c] sm:$0xf] }
 0x291   :  { %5999 = vmatpush.bf16.msrb.mxu3 %v8705_v16  ;;  %v11603_v16 = vld [vmem:[#allocation5 + $0x54c] sm:$0xf]  ;;  %v8494_v0 = vld [vmem:[#allocation5 + $0x638] sm:$0xf0] }
 0x292   :  { %5958 = vmatpush.bf16.msrb.mxu0 %v8305_v23  ;;  %v8638_v23 = vld [vmem:[#allocation5 + $0x758] sm:$0xf0]  ;;  %v11663_v1 = vld [vmem:[#allocation5 + $0x72c] sm:$0xf]  ;;  %v8497_v20 = vor.u32 %v11631_v63, %v8494_v0 }
 0x293   :  { %5972 = vmatpush.bf16.msrb.mxu1 %v8433_v22  ;;  %v8257_v22 = vor.u32 %v11571_v62, %v8254_v29  ;;  %v8641_v58 = vor.u32 %v11667_v13, %v8638_v23  ;;  %v8222_v53 = vld [vmem:[#allocation5 + $0x418] sm:$0xf0]  ;;  %v11627_v27 = vld [vmem:[#allocation5 + $0x60c] sm:$0xf] }
 0x294   :  { %5986 = vmatpush.bf16.msrb.mxu2 %v8561_v61  ;;  %v8385_v61 = vor.u32 %v11603_v16, %v8382_v14  ;;  %v8350_v15 = vld [vmem:[#allocation5 + $0x518] sm:$0xf0]  ;;  %v11659_v37 = vld [vmem:[#allocation5 + $0x70c] sm:$0xf] }
 0x295   :  { %6000 = vmatpush.bf16.msrb.mxu3 %v8689_v12  ;;  %v11599_v12 = vld [vmem:[#allocation5 + $0x52c] sm:$0xf]  ;;  %v8478_v52 = vld [vmem:[#allocation5 + $0x618] sm:$0xf0] }
 0x296   :  { %5959 = vmatpush.bf16.msrb.mxu0 %v8289_v10  ;;  %v8622_v10 = vld [vmem:[#allocation5 + $0x738] sm:$0xf0]  ;;  %v8369_v19 = vor.u32 %v11599_v12, %v8366_v8  ;;  %v11751_v62 = vld [vmem:[#allocation5 + $0x9ec] sm:$0xf]  ;;  %v8481_v57 = vor.u32 %v11627_v27, %v8478_v52 }
 0x297   :  { %5973 = vmatpush.bf16.msrb.mxu1 %v8417_v30  ;;  %v8241_v30 = vor.u32 %v11567_v7, %v8238_v28  ;;  %v8625_v11 = vor.u32 %v11663_v1, %v8622_v10  ;;  %v8974_v16 = vld [vmem:[#allocation5 + $0x9f8] sm:$0xf0]  ;;  %v11815_v13 = vld [vmem:[#allocation5 + $0xbec] sm:$0xf] }
 0x298   :  { %5987 = vmatpush.bf16.msrb.mxu2 %v8545_v17  ;;  %v11563_v17 = vld [vmem:[#allocation5 + $0x40c] sm:$0xf]  ;;  %v9102_v14 = vld [vmem:[#allocation5 + $0xaf8] sm:$0xf0] }
 0x299   :  { %6001 = vmatpush.bf16.msrb.mxu3 %v8673_v9  ;;  %v11595_v9 = vld [vmem:[#allocation5 + $0x50c] sm:$0xf]  ;;  %v8225_v29 = vor.u32 %v11563_v17, %v8222_v53  ;;  %v9230_v23 = vld [vmem:[#allocation5 + $0xbf8] sm:$0xf0] }
 0x29a   :  { %5960 = vmatpush.bf16.msrb.mxu0 %v8273_v50  ;;  %v8606_v50 = vld [vmem:[#allocation5 + $0x718] sm:$0xf0]  ;;  %v8353_v18 = vor.u32 %v11595_v9, %v8350_v15  ;;  %v11715_v28 = vld [vmem:[#allocation5 + $0x8cc] sm:$0xf]  ;;  %v9233_v8 = vor.u32 %v11815_v13, %v9230_v23 }
 0x29b   :  { %5974 = vmatpush.bf16.msrb.mxu1 %v8401_v24  ;;  %v11719_v24 = vld [vmem:[#allocation5 + $0x8ec] sm:$0xf]  ;;  %v8830_v12 = vld [vmem:[#allocation5 + $0x8d8] sm:$0xf0] }
 0x29c   :  { %5988 = vmatpush.bf16.msrb.mxu2 %v8529_v25  ;;  %v8846_v25 = vld [vmem:[#allocation5 + $0x8f8] sm:$0xf0]  ;;  %v11779_v0 = vld [vmem:[#allocation5 + $0xacc] sm:$0xf]  ;;  %v8833_v17 = vor.u32 %v11715_v28, %v8830_v12 }
 0x29d   :  { %6002 = vmatpush.bf16.msrb.mxu3 %v8657_v49  ;;  %v11783_v49 = vld [vmem:[#allocation5 + $0xaec] sm:$0xf]  ;;  %v8958_v63 = vld [vmem:[#allocation5 + $0x9d8] sm:$0xf0] }
 0x29e   :  { %5961 = vmatpush.bf16.msrb.mxu0 %v8257_v22  ;;  %v8609_v22 = vor.u32 %v11659_v37, %v8606_v50  ;;  %v9105_v7 = vor.u32 %v11783_v49, %v9102_v14  ;;  %v9086_v1 = vld [vmem:[#allocation5 + $0xad8] sm:$0xf0]  ;;  %v11811_v10 = vld [vmem:[#allocation5 + $0xbcc] sm:$0xf] }
 0x29f   :  { %5975 = vmatpush.bf16.msrb.mxu1 %v8385_v61  ;;  %v8849_v61 = vor.u32 %v11719_v24, %v8846_v25  ;;  %v8814_v9 = vld [vmem:[#allocation5 + $0x8b8] sm:$0xf0]  ;;  %v11743_v15 = vld [vmem:[#allocation5 + $0x9ac] sm:$0xf] }
 0x2a0   :  { %5989 = vmatpush.bf16.msrb.mxu2 %v8513_v3  ;;  %v8977_v3 = vor.u32 %v11751_v62, %v8974_v16  ;;  %v11775_v52 = vld [vmem:[#allocation5 + $0xaac] sm:$0xf]  ;;  %v9070_v37 = vld [vmem:[#allocation5 + $0xab8] sm:$0xf0] }
 0x2a1   :  { %6003 = vmatpush.bf16.msrb.mxu3 %v8641_v58  ;;  %v11747_v58 = vld [vmem:[#allocation5 + $0x9cc] sm:$0xf]  ;;  %v9198_v24 = vld [vmem:[#allocation5 + $0xbb8] sm:$0xf0] }
 0x2a2   :  { %5962 = vmatpush.bf16.msrb.mxu0 %v8241_v30  ;;  %v9214_v30 = vld [vmem:[#allocation5 + $0xbd8] sm:$0xf0]  ;;  %v8961_v53 = vor.u32 %v11747_v58, %v8958_v63  ;;  %v11807_v50 = vld [vmem:[#allocation5 + $0xbac] sm:$0xf] }
 0x2a3   :  { %5976 = vmatpush.bf16.msrb.mxu1 %v8369_v19  ;;  %v9089_v19 = vor.u32 %v11779_v0, %v9086_v1  ;;  %v9217_v27 = vor.u32 %v11811_v10, %v9214_v30  ;;  %v11707_v16 = vld [vmem:[#allocation5 + $0x88c] sm:$0xf]  ;;  %v9201_v14 = vor.u32 %v11807_v50, %v9198_v24  ;;  %v8910_v12 = vld [vmem:[#allocation5 + $0x978] sm:$0xf0] }
 0x2a4   :  { %5990 = vmatpush.bf16.msrb.mxu2 %v8497_v20  ;;  %v11711_v20 = vld [vmem:[#allocation5 + $0x8ac] sm:$0xf]  ;;  %v9166_v0 = vld [vmem:[#allocation5 + $0xb78] sm:$0xf0] }
 0x2a5   :  { %6004 = vmatpush.bf16.msrb.mxu3 %v8625_v11  ;;  %v8942_v11 = vld [vmem:[#allocation5 + $0x9b8] sm:$0xf0]  ;;  %v8817_v25 = vor.u32 %v11711_v20, %v8814_v9  ;;  %v11739_v49 = vld [vmem:[#allocation5 + $0x98c] sm:$0xf] }
 0x2a6   :  { %5963 = vmatpush.bf16.msrb.mxu0 %v8225_v29  ;;  %v8945_v62 = vor.u32 %v11743_v15, %v8942_v11  ;;  %v9073_v29 = vor.u32 %v11775_v52, %v9070_v37  ;;  %v11803_v13 = vld [vmem:[#allocation5 + $0xb8c] sm:$0xf]  ;;  %v8894_v9 = vld [vmem:[#allocation5 + $0x958] sm:$0xf0] }
 0x2a7   :  { %5977 = vmatpush.bf16.msrb.mxu1 %v8353_v18  ;;  %v8926_v18 = vld [vmem:[#allocation5 + $0x998] sm:$0xf0]  ;;  %v11767_v58 = vld [vmem:[#allocation5 + $0xa6c] sm:$0xf] }
 0x2a8   :  { %5991 = vmatpush.bf16.msrb.mxu2 %v8481_v57  ;;  %v11771_v57 = vld [vmem:[#allocation5 + $0xa8c] sm:$0xf]  ;;  %v9150_v52 = vld [vmem:[#allocation5 + $0xb58] sm:$0xf0] }
 0x2a9   :  { %6005 = vmatpush.bf16.msrb.mxu3 %v8609_v22  ;;  %5964 = vmatmul.bf16.vlgmr.msrb.gmra.mxu0 %v12673_v39  ;;  %v8798_v39 = vld [vmem:[#allocation5 + $0x898] sm:$0xf0]  ;;  %v11799_v63 = vld [vmem:[#allocation5 + $0xb6c] sm:$0xf] }
 0x2aa   :  { %6012 = vmatpush.bf16.msra.mxu0 %v8849_v61  ;;  %5978 = vmatmul.bf16.vlgmr.msrb.gmra.mxu1 %v12677_v44  ;;  %v9182_v44 = vld [vmem:[#allocation5 + $0xb98] sm:$0xf0]  ;;  %v8801_v23 = vor.u32 %v11707_v16, %v8798_v39  ;;  %v11703_v61 = vld [vmem:[#allocation5 + $0x86c] sm:$0xf]  ;;  %v9169_v20 = vor.u32 %v11799_v63, %v9166_v0  ;;  %v12923_v63 = vpop.f32.mrf.mxu1 }
 0x2ab   :  { %6026 = vmatpush.bf16.msra.mxu1 %v8977_v3  ;;  %5992 = vmatmul.bf16.vlgmr.msrb.gmra.mxu2 %v12675_v43  ;;  %v9054_v43 = vld [vmem:[#allocation5 + $0xa98] sm:$0xf0]  ;;  %v9185_v28 = vor.u32 %v11803_v13, %v9182_v44  ;;  %v11763_v15 = vld [vmem:[#allocation5 + $0xa4c] sm:$0xf] }
 0x2ac   :  { %6040 = vmatpush.bf16.msra.mxu2 %v9105_v7  ;;  %6006 = vmatmul.bf16.vlgmr.msrb.gmra.mxu3 %v12679_v47  ;;  %v8929_v47 = vor.u32 %v11739_v49, %v8926_v18  ;;  %v9057_v22 = vor.u32 %v11771_v57, %v9054_v43  ;;  %v8782_v3 = vld [vmem:[#allocation5 + $0x878] sm:$0xf0]  ;;  %v11735_v7 = vld [vmem:[#allocation5 + $0x96c] sm:$0xf]  ;;  %v12921_v18 = vpop.f32.mrf.mxu0 }
 0x2ad   :  { %6054 = vmatpush.bf16.msra.mxu3 %v9233_v8  ;;  %v9038_v8 = vld [vmem:[#allocation5 + $0xa78] sm:$0xf0]  ;;  %v8785_v1 = vor.u32 %v11703_v61, %v8782_v3  ;;  %v8913_v10 = vor.u32 %v11735_v7, %v8910_v12  ;;  %v11795_v11 = vld [vmem:[#allocation5 + $0xb4c] sm:$0xf] }
 0x2ae   :  { %6013 = vmatpush.bf16.msra.mxu0 %v8833_v17  ;;  %v9041_v30 = vor.u32 %v11767_v58, %v9038_v8  ;;  %v11699_v17 = vld [vmem:[#allocation5 + $0x84c] sm:$0xf]  ;;  %v9153_v16 = vor.u32 %v11795_v11, %v9150_v52  ;;  %v8878_v39 = vld [vmem:[#allocation5 + $0x938] sm:$0xf0] }
 0x2af   :  { %6027 = vmatpush.bf16.msra.mxu1 %v8961_v53  ;;  %v8766_v53 = vld [vmem:[#allocation5 + $0x858] sm:$0xf0]  ;;  %v11759_v49 = vld [vmem:[#allocation5 + $0xa2c] sm:$0xf] }
 0x2b0   :  { %6041 = vmatpush.bf16.msra.mxu2 %v9089_v19  ;;  %v11731_v19 = vld [vmem:[#allocation5 + $0x94c] sm:$0xf]  ;;  %v8769_v37 = vor.u32 %v11699_v17, %v8766_v53  ;;  %v9134_v43 = vld [vmem:[#allocation5 + $0xb38] sm:$0xf0] }
 0x2b1   :  { %6055 = vmatpush.bf16.msra.mxu3 %v9217_v27  ;;  %v9022_v27 = vld [vmem:[#allocation5 + $0xa58] sm:$0xf0]  ;;  %v8897_v50 = vor.u32 %v11731_v19, %v8894_v9  ;;  %v11791_v57 = vld [vmem:[#allocation5 + $0xb2c] sm:$0xf] }
 0x2b2   :  { %6014 = vmatpush.bf16.msra.mxu0 %v8817_v25  ;;  %v9025_v24 = vor.u32 %v11763_v15, %v9022_v27  ;;  %v11695_v25 = vld [vmem:[#allocation5 + $0x82c] sm:$0xf]  ;;  %v8862_v3 = vld [vmem:[#allocation5 + $0x918] sm:$0xf0] }
 0x2b3   :  { %6028 = vmatpush.bf16.msra.mxu1 %v8945_v62  ;;  %v8750_v62 = vld [vmem:[#allocation5 + $0x838] sm:$0xf0]  ;;  %v11691_v44 = vld [vmem:[#allocation5 + $0x80c] sm:$0xf] }
 0x2b4   :  { %6042 = vmatpush.bf16.msra.mxu2 %v9073_v29  ;;  %v11727_v29 = vld [vmem:[#allocation5 + $0x92c] sm:$0xf]  ;;  %v8753_v13 = vor.u32 %v11695_v25, %v8750_v62  ;;  %v8990_v12 = vld [vmem:[#allocation5 + $0xa18] sm:$0xf0] }
 0x2b5   :  { %6056 = vmatpush.bf16.msra.mxu3 %v9201_v14  ;;  %v9006_v14 = vld [vmem:[#allocation5 + $0xa38] sm:$0xf0]  ;;  %v11723_v61 = vld [vmem:[#allocation5 + $0x90c] sm:$0xf] }
 0x2b6   :  { %6015 = vmatpush.bf16.msra.mxu0 %v8801_v23  ;;  %v8734_v23 = vld [vmem:[#allocation5 + $0x818] sm:$0xf0]  ;;  %v11755_v7 = vld [vmem:[#allocation5 + $0xa0c] sm:$0xf]  ;;  %v8865_v9 = vor.u32 %v11723_v61, %v8862_v3 }
 0x2b7   :  { %6029 = vmatpush.bf16.msra.mxu1 %v8929_v47  ;;  %v8881_v47 = vor.u32 %v11727_v29, %v8878_v39  ;;  %v11787_v58 = vld [vmem:[#allocation5 + $0xb0c] sm:$0xf]  ;;  %v9118_v8 = vld [vmem:[#allocation5 + $0xb18] sm:$0xf0]  ;;  %v8993_v15 = vor.u32 %v11755_v7, %v8990_v12 }
 0x2b8   :  { %6043 = vmatpush.bf16.msra.mxu2 %v9057_v22  ;;  %v9009_v22 = vor.u32 %v11759_v49, %v9006_v14  ;;  %v11847_v0 = vld [vmem:[#allocation5 + $0xcec] sm:$0xf]  ;;  %v9486_v17 = vld [vmem:[#allocation5 + $0xdf8] sm:$0xf0]  ;;  %v9121_v52 = vor.u32 %v11787_v58, %v9118_v8 }
 0x2b9   :  { %6057 = vmatpush.bf16.msra.mxu3 %v9185_v28  ;;  %v9137_v28 = vor.u32 %v11791_v57, %v9134_v43  ;;  %v11911_v53 = vld [vmem:[#allocation5 + $0xeec] sm:$0xf]  ;;  %v9614_v19 = vld [vmem:[#allocation5 + $0xef8] sm:$0xf0]  ;;  %v12929_v43 = vpop.f32.mrf.mxu3 }
 0x2ba   :  { %6016 = vmatpush.bf16.msra.mxu0 %v8785_v1  ;;  %v9358_v1 = vld [vmem:[#allocation5 + $0xcf8] sm:$0xf0]  ;;  %v11943_v27 = vld [vmem:[#allocation5 + $0xfec] sm:$0xf]  ;;  %v9617_v25 = vor.u32 %v11911_v53, %v9614_v19  ;;  %13286 = vst [vmem:[#allocation60_spill] sm:$0xff] %v12929_v43 }
 0x2bb   :  { %6030 = vmatpush.bf16.msra.mxu1 %v8913_v10  ;;  %v11879_v10 = vld [vmem:[#allocation5 + $0xdec] sm:$0xf]  ;;  %v9742_v11 = vld [vmem:[#allocation5 + $0xff8] sm:$0xf0] }
 0x2bc   :  { %6044 = vmatpush.bf16.msra.mxu2 %v9041_v30  ;;  %v8737_v30 = vor.u32 %v11691_v44, %v8734_v23  ;;  %v11843_v62 = vld [vmem:[#allocation5 + $0xccc] sm:$0xf]  ;;  %v9342_v29 = vld [vmem:[#allocation5 + $0xcd8] sm:$0xf0]  ;;  %v9745_v39 = vor.u32 %v11943_v27, %v9742_v11 }
 0x2bd   :  { %6058 = vmatpush.bf16.msra.mxu3 %v9169_v20  ;;  %v12925_v20 = vpop.f32.mrf.mxu2  ;;  %v9470_v49 = vld [vmem:[#allocation5 + $0xdd8] sm:$0xf0]  ;;  %v11907_v14 = vld [vmem:[#allocation5 + $0xecc] sm:$0xf]  ;;  %v9345_v23 = vor.u32 %v11843_v62, %v9342_v29 }
 0x2be   :  { %6017 = vmatpush.bf16.msra.mxu0 %v8769_v37  ;;  %13285 = vst [vmem:[#allocation59_spill] sm:$0xff] %v12925_v20  ;;  %v9361_v37 = vor.u32 %v11847_v0, %v9358_v1  ;;  %v9598_v57 = vld [vmem:[#allocation5 + $0xed8] sm:$0xf0]  ;;  %v11839_v3 = vld [vmem:[#allocation5 + $0xcac] sm:$0xf] }
 0x2bf   :  { %6031 = vmatpush.bf16.msra.mxu1 %v8897_v50  ;;  %v12927_v50 = vpop.f32.mrf.mxu0  ;;  %v9726_v44 = vld [vmem:[#allocation5 + $0xfd8] sm:$0xf0]  ;;  %v9601_v61 = vor.u32 %v11907_v14, %v9598_v57  ;;  %v11903_v8 = vld [vmem:[#allocation5 + $0xeac] sm:$0xf] }
 0x2c0   :  { %6045 = vmatpush.bf16.msra.mxu2 %v9025_v24  ;;  %v9489_v24 = vor.u32 %v11879_v10, %v9486_v17  ;;  %v9326_v7 = vld [vmem:[#allocation5 + $0xcb8] sm:$0xf0]  ;;  %v11935_v10 = vld [vmem:[#allocation5 + $0xfac] sm:$0xf] }
 0x2c1   :  { %6059 = vmatpush.bf16.msra.mxu3 %v9153_v16  ;;  %v11875_v16 = vld [vmem:[#allocation5 + $0xdcc] sm:$0xf]  ;;  %v9454_v58 = vld [vmem:[#allocation5 + $0xdb8] sm:$0xf0]  ;;  %v9329_v17 = vor.u32 %v11839_v3, %v9326_v7 }
 0x2c2   :  { %6018 = vmatpush.bf16.msra.mxu0 %v8753_v13  ;;  %v11939_v13 = vld [vmem:[#allocation5 + $0xfcc] sm:$0xf]  ;;  %v9582_v0 = vld [vmem:[#allocation5 + $0xeb8] sm:$0xf0] }
 0x2c3   :  { %6032 = vmatpush.bf16.msra.mxu1 %v8881_v47  ;;  %v12931_v47 = vpop.f32.mrf.mxu1  ;;  %v9729_v12 = vor.u32 %v11939_v13, %v9726_v44  ;;  %v11835_v19 = vld [vmem:[#allocation5 + $0xc8c] sm:$0xf]  ;;  %v9438_v11 = vld [vmem:[#allocation5 + $0xd98] sm:$0xf0] }
 0x2c4   :  { %6046 = vmatpush.bf16.msra.mxu2 %v9009_v22  ;;  %v9473_v22 = vor.u32 %v11875_v16, %v9470_v49  ;;  %v11831_v16 = vld [vmem:[#allocation5 + $0xc6c] sm:$0xf]  ;;  %v9422_v57 = vld [vmem:[#allocation5 + $0xd78] sm:$0xf0] }
 0x2c5   :  { %6060 = vmatpush.bf16.msra.mxu3 %v9137_v28  ;;  %v11871_v28 = vld [vmem:[#allocation5 + $0xdac] sm:$0xf]  ;;  %v12934_v1 = vpop.f32.mrf.mxu2  ;;  %v9550_v44 = vld [vmem:[#allocation5 + $0xe78] sm:$0xf0] }
 0x2c6   :  { %6019 = vmatpush.bf16.msra.mxu0 %v8737_v30  ;;  %v9710_v30 = vld [vmem:[#allocation5 + $0xfb8] sm:$0xf0]  ;;  %v9457_v53 = vor.u32 %v11871_v28, %v9454_v58  ;;  %v11863_v49 = vld [vmem:[#allocation5 + $0xd6c] sm:$0xf] }
 0x2c7   :  { %6033 = vmatpush.bf16.msra.mxu1 %v8865_v9  ;;  %v9310_v9 = vld [vmem:[#allocation5 + $0xc98] sm:$0xf0]  ;;  %v9713_v27 = vor.u32 %v11935_v10, %v9710_v30  ;;  %v11895_v13 = vld [vmem:[#allocation5 + $0xe6c] sm:$0xf]  ;;  %v9425_v28 = vor.u32 %v11863_v49, %v9422_v57 }
 0x2c8   :  { %6047 = vmatpush.bf16.msra.mxu2 %v8993_v15  ;;  %v11867_v15 = vld [vmem:[#allocation5 + $0xd8c] sm:$0xf]  ;;  %v9406_v30 = vld [vmem:[#allocation5 + $0xd58] sm:$0xf0] }
 0x2c9   :  { %6061 = vmatpush.bf16.msra.mxu3 %v9121_v52  ;;  %6020 = vmatmul.bf16.vlgmr.msra.gmra.mxu0 %v12685_v31  ;;  %v9585_v31 = vor.u32 %v11903_v8, %v9582_v0  ;;  %v11899_v52 = vld [vmem:[#allocation5 + $0xe8c] sm:$0xf]  ;;  %v9441_v62 = vor.u32 %v11867_v15, %v9438_v11  ;;  %v9278_v8 = vld [vmem:[#allocation5 + $0xc58] sm:$0xf0] }
 0x2ca   :  { %6068 = vmatpush.bf16.msrb.mxu0 %v9361_v37  ;;  %6034 = vmatmul.bf16.vlgmr.msra.gmra.mxu1 %v12689_v36  ;;  %v12939_v37 = vpop.f32.mrf.mxu0  ;;  %v12941_v36 = vpop.f32.mrf.mxu3  ;;  %v11827_v58 = vld [vmem:[#allocation5 + $0xc4c] sm:$0xf]  ;;  %v9646_v49 = vld [vmem:[#allocation5 + $0xf38] sm:$0xf0] }
 0x2cb   :  { %6082 = vmatpush.bf16.msrb.mxu1 %v9489_v24  ;;  %6048 = vmatmul.bf16.vlgmr.msra.gmra.mxu2 %v12687_v35  ;;  %v9566_v35 = vld [vmem:[#allocation5 + $0xe98] sm:$0xf0]  ;;  %v11931_v24 = vld [vmem:[#allocation5 + $0xf8c] sm:$0xf] }
 0x2cc   :  { %6096 = vmatpush.bf16.msrb.mxu2 %v9617_v25  ;;  %6062 = vmatmul.bf16.vlgmr.msra.gmra.mxu3 %v12691_v40  ;;  %v9694_v40 = vld [vmem:[#allocation5 + $0xf98] sm:$0xf0]  ;;  %v9313_v25 = vor.u32 %v11835_v19, %v9310_v9  ;;  %v9569_v29 = vor.u32 %v11899_v52, %v9566_v35  ;;  %v11859_v0 = vld [vmem:[#allocation5 + $0xd4c] sm:$0xf]  ;;  %v9281_v9 = vor.u32 %v11827_v58, %v9278_v8 }
 0x2cd   :  { %6110 = vmatpush.bf16.msrb.mxu3 %v9745_v39  ;;  %v9294_v39 = vld [vmem:[#allocation5 + $0xc78] sm:$0xf0]  ;;  %v9697_v14 = vor.u32 %v11931_v24, %v9694_v40  ;;  %v12945_v7 = vpop.f32.mrf.mxu2  ;;  %v9409_v11 = vor.u32 %v11859_v0, %v9406_v30  ;;  %v11823_v35 = vld [vmem:[#allocation5 + $0xc2c] sm:$0xf] }
 0x2ce   :  { %6069 = vmatpush.bf16.msrb.mxu0 %v9345_v23  ;;  %v12943_v23 = vpop.f32.mrf.mxu1  ;;  %v9297_v3 = vor.u32 %v11831_v16, %v9294_v39  ;;  %v9662_v19 = vld [vmem:[#allocation5 + $0xf58] sm:$0xf0]  ;;  %v11855_v40 = vld [vmem:[#allocation5 + $0xd2c] sm:$0xf] }
 0x2cf   :  { %6083 = vmatpush.bf16.msrb.mxu1 %v9473_v22  ;;  %v11927_v22 = vld [vmem:[#allocation5 + $0xf6c] sm:$0xf]  ;;  %v9262_v24 = vld [vmem:[#allocation5 + $0xc38] sm:$0xf0] }
 0x2d0   :  { %6097 = vmatpush.bf16.msrb.mxu2 %v9601_v61  ;;  %v9678_v61 = vld [vmem:[#allocation5 + $0xf78] sm:$0xf0]  ;;  %v11919_v39 = vld [vmem:[#allocation5 + $0xf2c] sm:$0xf] }
 0x2d1   :  { %6111 = vmatpush.bf16.msrb.mxu3 %v9729_v12  ;;  %v9553_v12 = vor.u32 %v11895_v13, %v9550_v44  ;;  %v9681_v10 = vor.u32 %v11927_v22, %v9678_v61  ;;  %v9518_v16 = vld [vmem:[#allocation5 + $0xe38] sm:$0xf0]  ;;  %v11819_v57 = vld [vmem:[#allocation5 + $0xc0c] sm:$0xf]  ;;  %v9649_v58 = vor.u32 %v11919_v39, %v9646_v49 }
 0x2d2   :  { %6070 = vmatpush.bf16.msrb.mxu0 %v9329_v17  ;;  %v11891_v17 = vld [vmem:[#allocation5 + $0xe4c] sm:$0xf]  ;;  %v12947_v15 = vpop.f32.mrf.mxu3  ;;  %v9246_v13 = vld [vmem:[#allocation5 + $0xc18] sm:$0xf0] }
 0x2d3   :  { %6084 = vmatpush.bf16.msrb.mxu1 %v9457_v53  ;;  %v9534_v53 = vld [vmem:[#allocation5 + $0xe58] sm:$0xf0]  ;;  %v11915_v0 = vld [vmem:[#allocation5 + $0xf0c] sm:$0xf] }
 0x2d4   :  { %6098 = vmatpush.bf16.msrb.mxu2 %v9585_v31  ;;  %v11923_v31 = vld [vmem:[#allocation5 + $0xf4c] sm:$0xf]  ;;  %v9537_v52 = vor.u32 %v11891_v17, %v9534_v53  ;;  %v9502_v8 = vld [vmem:[#allocation5 + $0xe18] sm:$0xf0] }
 0x2d5   :  { %6112 = vmatpush.bf16.msrb.mxu3 %v9713_v27  ;;  %v12949_v27 = vpop.f32.mrf.mxu0  ;;  %v12953_v30 = vpop.f32.mrf.mxu2  ;;  %v11975_v17 = vld [vmem:[#allocation5 + $0x10ec] sm:$0xf]  ;;  %v9870_v53 = vld [vmem:[#allocation5 + $0x10f8] sm:$0xf0] }
 0x2d6   :  { %6071 = vmatpush.bf16.msrb.mxu0 %v9313_v25  ;;  %v9665_v25 = vor.u32 %v11923_v31, %v9662_v19  ;;  %v12951_v44 = vpop.f32.mrf.mxu1  ;;  %v12007_v31 = vld [vmem:[#allocation5 + $0x11ec] sm:$0xf]  ;;  %v9249_v19 = vor.u32 %v11819_v57, %v9246_v13  ;;  %v9854_v57 = vld [vmem:[#allocation5 + $0x10d8] sm:$0xf0] }
 0x2d7   :  { %6085 = vmatpush.bf16.msrb.mxu1 %v9441_v62  ;;  %v9390_v62 = vld [vmem:[#allocation5 + $0xd38] sm:$0xf0]  ;;  %v12003_v13 = vld [vmem:[#allocation5 + $0x11cc] sm:$0xf] }
 0x2d8   :  { %6099 = vmatpush.bf16.msrb.mxu2 %v9569_v29  ;;  %v11887_v29 = vld [vmem:[#allocation5 + $0xe2c] sm:$0xf]  ;;  %v9393_v22 = vor.u32 %v11855_v40, %v9390_v62 }
 0x2d9   :  { %6113 = vmatpush.bf16.msrb.mxu3 %v9697_v14  ;;  %v9265_v14 = vor.u32 %v11823_v35, %v9262_v24  ;;  %v9521_v61 = vor.u32 %v11887_v29, %v9518_v16  ;;  %v12071_v40 = vld [vmem:[#allocation5 + $0x13ec] sm:$0xf]  ;;  %v9873_v29 = vor.u32 %v11975_v17, %v9870_v53  ;;  %v9838_v53 = vld [vmem:[#allocation5 + $0x10b8] sm:$0xf0] }
 0x2da   :  { %6072 = vmatpush.bf16.msrb.mxu0 %v9297_v3  ;;  %v11851_v3 = vld [vmem:[#allocation5 + $0xd0c] sm:$0xf]  ;;  %v12957_v39 = vpop.f32.mrf.mxu3 }
 0x2db   :  { %6086 = vmatpush.bf16.msrb.mxu1 %v9425_v28  ;;  %v9374_v28 = vld [vmem:[#allocation5 + $0xd18] sm:$0xf0]  ;;  %v11967_v17 = vld [vmem:[#allocation5 + $0x10ac] sm:$0xf] }
 0x2dc   :  { %6100 = vmatpush.bf16.msrb.mxu2 %v9553_v12  ;;  %v11883_v12 = vld [vmem:[#allocation5 + $0xe0c] sm:$0xf]  ;;  %v9377_v35 = vor.u32 %v11851_v3, %v9374_v28  ;;  %v10110_v3 = vld [vmem:[#allocation5 + $0x12d8] sm:$0xf0] }
 0x2dd   :  { %6114 = vmatpush.bf16.msrb.mxu3 %v9681_v10  ;;  %v9630_v10 = vld [vmem:[#allocation5 + $0xf18] sm:$0xf0]  ;;  %v9505_v24 = vor.u32 %v11883_v12, %v9502_v8  ;;  %v12955_v16 = vpop.f32.mrf.mxu0  ;;  %v12067_v28 = vld [vmem:[#allocation5 + $0x13cc] sm:$0xf] }
 0x2de   :  { %6073 = vmatpush.bf16.msrb.mxu0 %v9281_v9  ;;  %v9998_v9 = vld [vmem:[#allocation5 + $0x11f8] sm:$0xf0]  ;;  %v9633_v62 = vor.u32 %v11915_v0, %v9630_v10  ;;  %v12959_v8 = vpop.f32.mrf.mxu1 }
 0x2df   :  { %6087 = vmatpush.bf16.msrb.mxu1 %v9409_v11  ;;  %v12039_v11 = vld [vmem:[#allocation5 + $0x12ec] sm:$0xf]  ;;  %v10001_v49 = vor.u32 %v12007_v31, %v9998_v9  ;;  %v10238_v12 = vld [vmem:[#allocation5 + $0x13d8] sm:$0xf0] }
 0x2e0   :  { %6101 = vmatpush.bf16.msrb.mxu2 %v9537_v52  ;;  %v10126_v52 = vld [vmem:[#allocation5 + $0x12f8] sm:$0xf0]  ;;  %v11999_v31 = vld [vmem:[#allocation5 + $0x11ac] sm:$0xf] }
 0x2e1   :  { %6115 = vmatpush.bf16.msrb.mxu3 %v9665_v25  ;;  %v10254_v25 = vld [vmem:[#allocation5 + $0x13f8] sm:$0xf0]  ;;  %v10129_v43 = vor.u32 %v12039_v11, %v10126_v52  ;;  %v12031_v11 = vld [vmem:[#allocation5 + $0x12ac] sm:$0xf] }
 0x2e2   :  { %6074 = vmatpush.bf16.msrb.mxu0 %v9265_v14  ;;  %v11971_v14 = vld [vmem:[#allocation5 + $0x10cc] sm:$0xf]  ;;  %v10257_v20 = vor.u32 %v12071_v40, %v10254_v25  ;;  %v9966_v9 = vld [vmem:[#allocation5 + $0x11b8] sm:$0xf0]  ;;  %v12380_v40 = vld [vmem:[#allocation7] sm:$0xf] }
 0x2e3   :  { %6088 = vmatpush.bf16.msrb.mxu1 %v9393_v22  ;;  %v9982_v22 = vld [vmem:[#allocation5 + $0x11d8] sm:$0xf0]  ;;  %v926_v25 = vperm.slane %v12380_v40, 2  ;;  %v12055_v40 = vld [vmem:[#allocation5 + $0x136c] sm:$0xf] }
 0x2e4   :  { %6102 = vmatpush.bf16.msrb.mxu2 %v9521_v61  ;;  %v12035_v61 = vld [vmem:[#allocation5 + $0x12cc] sm:$0xf]  ;;  %v9985_v0 = vor.u32 %v12003_v13, %v9982_v22  ;;  %v10094_v52 = vld [vmem:[#allocation5 + $0x12b8] sm:$0xf0] }
 0x2e5   :  { %6116 = vmatpush.bf16.msrb.mxu3 %v9649_v58  ;;  %v9857_v58 = vor.u32 %v11971_v14, %v9854_v57  ;;  %v10113_v10 = vor.u32 %v12035_v61, %v10110_v3  ;;  %v9822_v14 = vld [vmem:[#allocation5 + $0x1098] sm:$0xf0]  ;;  %v11995_v57 = vld [vmem:[#allocation5 + $0x118c] sm:$0xf]  ;;  %v13288_v3 = vperm.slane %v12819_v6, 1 }
 0x2e6   :  { %6075 = vmatpush.bf16.msrb.mxu0 %v9249_v19  ;;  %v10241_v19 = vor.u32 %v12067_v28, %v10238_v12  ;;  %v9950_v22 = vld [vmem:[#allocation5 + $0x1198] sm:$0xf0]  ;;  %v12027_v61 = vld [vmem:[#allocation5 + $0x128c] sm:$0xf]  ;;  %v12975_v12 = vpop.f32.mrf.mxu3 }
 0x2e7   :  { %6089 = vmatpush.bf16.msrb.mxu1 %v9377_v35  ;;  %v12962_v35 = vpop.f32.mrf.mxu2  ;;  %v5240_v28 = vadd.f32 %v12830_v2, %v13288_v3  ;;  %v9806_v6 = vld [vmem:[#allocation5 + $0x1078] sm:$0xf0] }
 0x2e8   :  { %6103 = vmatpush.bf16.msrb.mxu2 %v9505_v24  ;;  %v12063_v24 = vld [vmem:[#allocation5 + $0x13ac] sm:$0xf] }
 0x2e9   :  { %6117 = vmatpush.bf16.msrb.mxu3 %v9633_v62  ;;  %6076 = vmatmul.bf16.vlgmr.msrb.gmra.mxu0 %v12697_v32  ;;  %v12967_v62 = vpop.f32.mrf.mxu0  ;;  %v9969_v32 = vor.u32 %v11999_v31, %v9966_v9  ;;  %v11991_v9 = vld [vmem:[#allocation5 + $0x116c] sm:$0xf] }
 0x2ea   :  { %6124 = vmatpush.bf16.msra.mxu0 %v9873_v29  ;;  %6090 = vmatmul.bf16.vlgmr.msrb.gmra.mxu1 %v12701_v41  ;;  %v10097_v29 = vor.u32 %v12031_v11, %v10094_v52  ;;  %v9934_v52 = vld [vmem:[#allocation5 + $0x1178] sm:$0xf0] }
 0x2eb   :  { %6138 = vmatpush.bf16.msra.mxu1 %v10001_v49  ;;  %6104 = vmatmul.bf16.vlgmr.msrb.gmra.mxu2 %v12699_v38  ;;  %v11963_v49 = vld [vmem:[#allocation5 + $0x108c] sm:$0xf]  ;;  %v13287_v38 = vperm.slane %v12717_v4, 0 }
 0x2ec   :  { %6152 = vmatpush.bf16.msra.mxu2 %v10129_v43  ;;  %v10222_v43 = vld [vmem:[#allocation5 + $0x13b8] sm:$0xf0]  ;;  %6118 = vmatmul.bf16.vlgmr.msrb.gmra.mxu3 %v12703_v46  ;;  %v9825_v4 = vor.u32 %v11963_v49, %v9822_v14  ;;  %v11955_v14 = vld [vmem:[#allocation5 + $0x104c] sm:$0xf] }
 0x2ed   :  { %6166 = vmatpush.bf16.msra.mxu3 %v10257_v20  ;;  %v9841_v20 = vor.u32 %v11967_v17, %v9838_v53  ;;  %v4904_v41 = vadd.f32 %v12728_v21, %v13287_v38  ;;  %v10225_v13 = vor.u32 %v12063_v24, %v10222_v43  ;;  %v10078_v46 = vld [vmem:[#allocation5 + $0x1298] sm:$0xf0]  ;;  %v5576_v17 = vadd.f32 %v12939_v37, %v926_v25  ;;  %v12979_v21 = vpop.f32.mrf.mxu1  ;;  %v12023_v24 = vld [vmem:[#allocation5 + $0x126c] sm:$0xf] }
 0x2ee   :  { %6125 = vmatpush.bf16.msra.mxu0 %v9857_v58  ;;  %v12059_v58 = vld [vmem:[#allocation5 + $0x138c] sm:$0xf]  ;;  %v9953_v53 = vor.u32 %v11995_v57, %v9950_v22  ;;  %v10081_v31 = vor.u32 %v12027_v61, %v10078_v46  ;;  %v5254_v37 = vadd.f32 %v12832_v59, %v5240_v28  ;;  %v9790_v57 = vld [vmem:[#allocation5 + $0x1058] sm:$0xf0] }
 0x2ef   :  { %6139 = vmatpush.bf16.msra.mxu1 %v9985_v0  ;;  %v10206_v0 = vld [vmem:[#allocation5 + $0x1398] sm:$0xf0]  ;;  %v4918_v2 = vadd.f32 %v12736_v45, %v4904_v41  ;;  %v12983_v43 = vpop.f32.mrf.mxu2  ;;  %v9937_v45 = vor.u32 %v11991_v9, %v9934_v52  ;;  %v11987_v38 = vld [vmem:[#allocation5 + $0x114c] sm:$0xf] }
 0x2f0   :  { %6153 = vmatpush.bf16.msra.mxu2 %v10113_v10  ;;  %v5574_v10 = vadd.f32 %v12927_v50, %v926_v25  ;;  %v10209_v11 = vor.u32 %v12059_v58, %v10206_v0  ;;  %v10062_v50 = vld [vmem:[#allocation5 + $0x1278] sm:$0xf0]  ;;  %v12019_v22 = vld [vmem:[#allocation5 + $0x124c] sm:$0xf] }
 0x2f1   :  { %6167 = vmatpush.bf16.msra.mxu3 %v10241_v19  ;;  %v11959_v19 = vld [vmem:[#allocation5 + $0x106c] sm:$0xf]  ;;  %v10190_v25 = vld [vmem:[#allocation5 + $0x1378] sm:$0xf0]  ;;  %v10065_v49 = vor.u32 %v12023_v24, %v10062_v50  ;;  %v4932_v41 = vadd.f32 %v12744_v5, %v4918_v2  ;;  %v12989_v3 = vpop.f32.mrf.mxu0  ;;  %v13291_v50 = vld [vmem:[#allocation43_spill] sm:$0xff] }
 0x2f2   :  { %6126 = vmatpush.bf16.msra.mxu0 %v9841_v20  ;;  %v5588_v20 = vadd.f32 %v12931_v47, %v5574_v10  ;;  %v10193_v59 = vor.u32 %v12055_v40, %v10190_v25  ;;  %v10046_v61 = vld [vmem:[#allocation5 + $0x1258] sm:$0xf0]  ;;  %v13289_v46 = vld [vmem:[#allocation42_spill] sm:$0xff] }
 0x2f3   :  { %6140 = vmatpush.bf16.msra.mxu1 %v9969_v32  ;;  %v5590_v32 = vadd.f32 %v12943_v23, %v5576_v17  ;;  %v5268_v47 = vadd.f32 %v13289_v46, %v5254_v37  ;;  %v12991_v23 = vpop.f32.mrf.mxu3  ;;  %v12051_v28 = vld [vmem:[#allocation5 + $0x134c] sm:$0xf]  ;;  %v10174_v58 = vld [vmem:[#allocation5 + $0x1358] sm:$0xf0]  ;;  %v9793_v17 = vor.u32 %v11955_v14, %v9790_v57 }
 0x2f4   :  { %6154 = vmatpush.bf16.msra.mxu2 %v10097_v29  ;;  %v9809_v29 = vor.u32 %v11959_v19, %v9806_v6  ;;  %v5602_v0 = vadd.f32 %v12934_v1, %v5588_v20  ;;  %v11983_v19 = vld [vmem:[#allocation5 + $0x112c] sm:$0xf]  ;;  %v13290_v6 = vld [vmem:[#allocation20_spill] sm:$0xff]  ;;  %v10177_v2 = vor.u32 %v12051_v28, %v10174_v58 }
 0x2f5   :  { %6168 = vmatpush.bf16.msra.mxu3 %v10225_v13  ;;  %v9918_v13 = vld [vmem:[#allocation5 + $0x1158] sm:$0xf0]  ;;  %v5604_v10 = vadd.f32 %v12945_v7, %v5590_v32  ;;  %v4946_v9 = vadd.f32 %v13290_v6, %v4932_v41  ;;  %v12015_v52 = vld [vmem:[#allocation5 + $0x122c] sm:$0xf]  ;;  %v5282_v1 = vadd.f32 %v13291_v50, %v5268_v47  ;;  %v12997_v37 = vpop.f32.mrf.mxu1 }
 0x2f6   :  { %6127 = vmatpush.bf16.msra.mxu0 %v9825_v4  ;;  %v9921_v5 = vor.u32 %v11987_v38, %v9918_v13  ;;  %v10049_v4 = vor.u32 %v12019_v22, %v10046_v61  ;;  %v10030_v24 = vld [vmem:[#allocation5 + $0x1238] sm:$0xf0]  ;;  %v12047_v7 = vld [vmem:[#allocation5 + $0x132c] sm:$0xf]  ;;  %v5616_v25 = vadd.f32 %v12941_v36, %v5602_v0  ;;  %v13292_v13 = vld [vmem:[#allocation21_spill] sm:$0xff] }
 0x2f7   :  { %6141 = vmatpush.bf16.msra.mxu1 %v9953_v53  ;;  %v11951_v53 = vld [vmem:[#allocation5 + $0x102c] sm:$0xf]  ;;  %v10158_v40 = vld [vmem:[#allocation5 + $0x1338] sm:$0xf0]  ;;  %v5618_v20 = vadd.f32 %v12947_v15, %v5604_v10  ;;  %v10033_v57 = vor.u32 %v12015_v52, %v10030_v24  ;;  %v4960_v22 = vadd.f32 %v13292_v13, %v4946_v9 }
 0x2f8   :  { %6155 = vmatpush.bf16.msra.mxu2 %v10081_v31  ;;  %v9774_v31 = vld [vmem:[#allocation5 + $0x1038] sm:$0xf0]  ;;  %v11979_v38 = vld [vmem:[#allocation5 + $0x110c] sm:$0xf]  ;;  %v10161_v61 = vor.u32 %v12047_v7, %v10158_v40  ;;  %v13295_v40 = vld [vmem:[#allocation45_spill] sm:$0xff] }
 0x2f9   :  { %6169 = vmatpush.bf16.msra.mxu3 %v10209_v11  ;;  %v9902_v11 = vld [vmem:[#allocation5 + $0x1138] sm:$0xf0]  ;;  %v9777_v32 = vor.u32 %v11951_v53, %v9774_v31  ;;  %v12043_v46 = vld [vmem:[#allocation5 + $0x130c] sm:$0xf]  ;;  %v13005_v58 = vpop.f32.mrf.mxu0 }
 0x2fa   :  { %6128 = vmatpush.bf16.msra.mxu0 %v9809_v29  ;;  %v11947_v29 = vld [vmem:[#allocation5 + $0x100c] sm:$0xf]  ;;  %v9905_v14 = vor.u32 %v11983_v19, %v9902_v11  ;;  %v9886_v41 = vld [vmem:[#allocation5 + $0x1118] sm:$0xf0] }
 0x2fb   :  { %6142 = vmatpush.bf16.msra.mxu1 %v9937_v45  ;;  %v9758_v45 = vld [vmem:[#allocation5 + $0x1018] sm:$0xf0]  ;;  %v12103_v0 = vld [vmem:[#allocation5 + $0x14ec] sm:$0xf]  ;;  %v13009_v9 = vpop.f32.mrf.mxu3 }
 0x2fc   :  { %6156 = vmatpush.bf16.msra.mxu2 %v10065_v49  ;;  %v13001_v49 = vpop.f32.mrf.mxu2  ;;  %v10014_v36 = vld [vmem:[#allocation5 + $0x1218] sm:$0xf0]  ;;  %v9761_v53 = vor.u32 %v11947_v29, %v9758_v45  ;;  %v12167_v19 = vld [vmem:[#allocation5 + $0x16ec] sm:$0xf] }
 0x2fd   :  { %6170 = vmatpush.bf16.msra.mxu3 %v10193_v59  ;;  %v12011_v59 = vld [vmem:[#allocation5 + $0x120c] sm:$0xf]  ;;  %v10142_v15 = vld [vmem:[#allocation5 + $0x1318] sm:$0xf0] }
 0x2fe   :  { %6129 = vmatpush.bf16.msra.mxu0 %v9793_v17  ;;  %v13293_v47 = vld [vmem:[#allocation44_spill] sm:$0xff]  ;;  %v12135_v17 = vld [vmem:[#allocation5 + $0x15ec] sm:$0xf]  ;;  %v10017_v11 = vor.u32 %v12011_v59, %v10014_v36  ;;  %v10145_v7 = vor.u32 %v12043_v46, %v10142_v15 }
 0x2ff   :  { %6143 = vmatpush.bf16.msra.mxu1 %v9921_v5  ;;  %v5296_v28 = vadd.f32 %v13293_v47, %v5282_v1  ;;  %v10382_v10 = vld [vmem:[#allocation5 + $0x14f8] sm:$0xf0]  ;;  %v5630_v5 = vadd.f32 %v12949_v27, %v5616_v25  ;;  %v12199_v52 = vld [vmem:[#allocation5 + $0x17ec] sm:$0xf]  ;;  %v13013_v25 = vpop.f32.mrf.mxu1 }
 0x300   :  { %6157 = vmatpush.bf16.msra.mxu2 %v10049_v4  ;;  %v5632_v4 = vadd.f32 %v12955_v16, %v5618_v20  ;;  %v10510_v31 = vld [vmem:[#allocation5 + $0x15f8] sm:$0xf0]  ;;  %v13294_v50 = vld [vmem:[#allocation22_spill] sm:$0xff]  ;;  %v10385_v27 = vor.u32 %v12103_v0, %v10382_v10 }
 0x301   :  { %6171 = vmatpush.bf16.msra.mxu3 %v10177_v2  ;;  %v10638_v6 = vld [vmem:[#allocation5 + $0x16f8] sm:$0xf0]  ;;  %v9889_v2 = vor.u32 %v11979_v38, %v9886_v41  ;;  %v4974_v1 = vadd.f32 %v13294_v50, %v4960_v22  ;;  %v5310_v16 = vadd.f32 %v13295_v40, %v5296_v28  ;;  %v10513_v20 = vor.u32 %v12135_v17, %v10510_v31  ;;  %v12099_v29 = vld [vmem:[#allocation5 + $0x14cc] sm:$0xf] }
 0x302   :  { %6130 = vmatpush.bf16.msra.mxu0 %v9777_v32  ;;  %v10766_v24 = vld [vmem:[#allocation5 + $0x17f8] sm:$0xf0]  ;;  %v10641_v32 = vor.u32 %v12167_v19, %v10638_v6  ;;  %v12131_v13 = vld [vmem:[#allocation5 + $0x15cc] sm:$0xf]  ;;  %v5644_v38 = vadd.f32 %v12951_v44, %v5630_v5  ;;  %v5646_v41 = vadd.f32 %v12959_v8, %v5632_v4 }
 0x303   :  { %6144 = vmatpush.bf16.msra.mxu1 %v9905_v14  ;;  %v10366_v45 = vld [vmem:[#allocation5 + $0x14d8] sm:$0xf0]  ;;  %v13296_v14 = vld [vmem:[#allocation23_spill] sm:$0xff]  ;;  %v10769_v59 = vor.u32 %v12199_v52, %v10766_v24  ;;  %v13297_v46 = vld [vmem:[#allocation46_spill] sm:$0xff] }
 0x304   :  { %6158 = vmatpush.bf16.msra.mxu2 %v10033_v57  ;;  %v4988_v57 = vadd.f32 %v13296_v14, %v4974_v1  ;;  %v10494_v22 = vld [vmem:[#allocation5 + $0x15d8] sm:$0xf0]  ;;  %v5324_v15 = vadd.f32 %v13297_v46, %v5310_v16  ;;  %v13019_v47 = vpop.f32.mrf.mxu2  ;;  %v12195_v28 = vld [vmem:[#allocation5 + $0x17cc] sm:$0xf]  ;;  %v5660_v10 = vadd.f32 %v12962_v35, %v5646_v41  ;;  %v10369_v44 = vor.u32 %v12099_v29, %v10366_v45  ;;  %v13299_v24 = vld [vmem:[#allocation47_spill] sm:$0xff]  ;;  %v13026_v1 = vpop.f32.mrf.mxu0 }
 0x305   :  { %6172 = vmatpush.bf16.msra.mxu3 %v10161_v61  ;;  %v12163_v61 = vld [vmem:[#allocation5 + $0x16cc] sm:$0xf]  ;;  %v10622_v36 = vld [vmem:[#allocation5 + $0x16d8] sm:$0xf0]  ;;  %v10497_v8 = vor.u32 %v12131_v13, %v10494_v22  ;;  %v5658_v6 = vadd.f32 %v12953_v30, %v5644_v38  ;;  %v13300_v30 = vld [vmem:[#allocation25_spill] sm:$0xff] }
 0x306   :  { %6131 = vmatpush.bf16.msra.mxu0 %v9761_v53  ;;  %v10750_v0 = vld [vmem:[#allocation5 + $0x17d8] sm:$0xf0]  ;;  %v10625_v17 = vor.u32 %v12163_v61, %v10622_v36  ;;  %v12095_v5 = vld [vmem:[#allocation5 + $0x14ac] sm:$0xf]  ;;  %v5338_v50 = vadd.f32 %v13299_v24, %v5324_v15 }
 0x307   :  { %6145 = vmatpush.bf16.msra.mxu1 %v9889_v2  ;;  %v10350_v4 = vld [vmem:[#allocation5 + $0x14b8] sm:$0xf0]  ;;  %v12127_v53 = vld [vmem:[#allocation5 + $0x15ac] sm:$0xf]  ;;  %v10753_v2 = vor.u32 %v12195_v28, %v10750_v0  ;;  %v13038_v22 = vpop.f32.mrf.mxu1 }
 0x308   :  { %6159 = vmatpush.bf16.msra.mxu2 %v10017_v11  ;;  %v13298_v31 = vld [vmem:[#allocation24_spill] sm:$0xff]  ;;  %v12159_v35 = vld [vmem:[#allocation5 + $0x16ac] sm:$0xf] }
 0x309   :  { %6173 = vmatpush.bf16.msra.mxu3 %v10145_v7  ;;  %v5002_v19 = vadd.f32 %v13298_v31, %v4988_v57  ;;  %6132 = vmatmul.bf16.vlgmr.msra.gmra.mxu0 %v12709_v51  ;;  %v10478_v11 = vld [vmem:[#allocation5 + $0x15b8] sm:$0xf0]  ;;  %v13028_v7 = vpop.f32.mrf.mxu3  ;;  %v5674_v51 = vadd.f32 %v12975_v12, %v5660_v10  ;;  %v12091_v14 = vld [vmem:[#allocation5 + $0x148c] sm:$0xf]  ;;  %v13303_v10 = vld [vmem:[#allocation49_spill] sm:$0xff] }
 0x30a   :  { %6180 = vmatpush.bf16.msrb.mxu0 %v10385_v27  ;;  %v10606_v52 = vld [vmem:[#allocation5 + $0x16b8] sm:$0xf0]  ;;  %6146 = vmatmul.bf16.vlgmr.msra.gmra.mxu1 %v12713_v56  ;;  %v12191_v27 = vld [vmem:[#allocation5 + $0x17ac] sm:$0xf]  ;;  %v10481_v45 = vor.u32 %v12127_v53, %v10478_v11  ;;  %v5672_v56 = vadd.f32 %v12957_v39, %v5658_v6  ;;  %v13304_v53 = vld [vmem:[#allocation27_spill] sm:$0xff] }
 0x30b   :  { %6194 = vmatpush.bf16.msrb.mxu1 %v10513_v20  ;;  %6160 = vmatmul.bf16.vlgmr.msra.gmra.mxu2 %v12711_v55  ;;  %v10734_v40 = vld [vmem:[#allocation5 + $0x17b8] sm:$0xf0]  ;;  %v5016_v16 = vadd.f32 %v13300_v30, %v5002_v19  ;;  %v10353_v20 = vor.u32 %v12095_v5, %v10350_v4  ;;  %v10609_v13 = vor.u32 %v12159_v35, %v10606_v52  ;;  %v12123_v57 = vld [vmem:[#allocation5 + $0x158c] sm:$0xf] }
 0x30c   :  { %6208 = vmatpush.bf16.msrb.mxu2 %v10641_v32  ;;  %6174 = vmatmul.bf16.vlgmr.msra.gmra.mxu3 %v12715_v60  ;;  %v13301_v32 = vld [vmem:[#allocation48_spill] sm:$0xff]  ;;  %v5688_v38 = vadd.f32 %v12989_v3, %v5674_v51  ;;  %v10737_v41 = vor.u32 %v12191_v27, %v10734_v40  ;;  %v12187_v61 = vld [vmem:[#allocation5 + $0x178c] sm:$0xf]  ;;  %v5686_v28 = vadd.f32 %v12967_v62, %v5672_v56  ;;  %v13043_v39 = vpop.f32.mrf.mxu2  ;;  %v13048_v24 = vpop.f32.mrf.mxu0 }
 0x30d   :  { %6222 = vmatpush.bf16.msrb.mxu3 %v10769_v59  ;;  %v5352_v29 = vadd.f32 %v13301_v32, %v5338_v50  ;;  %v10334_v55 = vld [vmem:[#allocation5 + $0x1498] sm:$0xf0]  ;;  %v12155_v59 = vld [vmem:[#allocation5 + $0x168c] sm:$0xf] }
 0x30e   :  { %6181 = vmatpush.bf16.msrb.mxu0 %v10369_v44  ;;  %v10462_v12 = vld [vmem:[#allocation5 + $0x1598] sm:$0xf0]  ;;  %v13302_v46 = vld [vmem:[#allocation26_spill] sm:$0xff]  ;;  %v10337_v0 = vor.u32 %v12091_v14, %v10334_v55  ;;  %v5702_v19 = vadd.f32 %v12997_v37, %v5688_v38  ;;  %v5700_v40 = vadd.f32 %v12979_v21, %v5686_v28  ;;  %v13307_v38 = vld [vmem:[#allocation51_spill] sm:$0xff] }
 0x30f   :  { %6195 = vmatpush.bf16.msrb.mxu1 %v10497_v8  ;;  %v10590_v60 = vld [vmem:[#allocation5 + $0x1698] sm:$0xf0]  ;;  %v5030_v15 = vadd.f32 %v13302_v46, %v5016_v16  ;;  %v5366_v44 = vadd.f32 %v13303_v10, %v5352_v29  ;;  %v10465_v3 = vor.u32 %v12123_v57, %v10462_v12  ;;  %v12119_v4 = vld [vmem:[#allocation5 + $0x156c] sm:$0xf]  ;;  %v13057_v12 = vpop.f32.mrf.mxu1 }
 0x310   :  { %6209 = vmatpush.bf16.msrb.mxu2 %v10625_v17  ;;  %v10718_v36 = vld [vmem:[#allocation5 + $0x1798] sm:$0xf0]  ;;  %v10593_v8 = vor.u32 %v12155_v59, %v10590_v60  ;;  %v12087_v17 = vld [vmem:[#allocation5 + $0x146c] sm:$0xf]  ;;  %v5716_v30 = vadd.f32 %v13001_v49, %v5702_v19  ;;  %v5714_v55 = vadd.f32 %v12983_v43, %v5700_v40  ;;  %v13311_v40 = vld [vmem:[#allocation53_spill] sm:$0xff] }
 0x311   :  { %6223 = vmatpush.bf16.msrb.mxu3 %v10753_v2  ;;  %v10318_v5 = vld [vmem:[#allocation5 + $0x1478] sm:$0xf0]  ;;  %v5044_v31 = vadd.f32 %v13304_v53, %v5030_v15  ;;  %v10721_v6 = vor.u32 %v12187_v61, %v10718_v36  ;;  %v12151_v2 = vld [vmem:[#allocation5 + $0x166c] sm:$0xf]  ;;  %v13052_v51 = vpop.f32.mrf.mxu3  ;;  %v13308_v61 = vld [vmem:[#allocation29_spill] sm:$0xff] }
 0x312   :  { %6182 = vmatpush.bf16.msrb.mxu0 %v10353_v20  ;;  %v10446_v62 = vld [vmem:[#allocation5 + $0x1578] sm:$0xf0]  ;;  %v13305_v35 = vld [vmem:[#allocation50_spill] sm:$0xff]  ;;  %v10321_v16 = vor.u32 %v12087_v17, %v10318_v5  ;;  %v5730_v46 = vadd.f32 %v13009_v9, %v5716_v30  ;;  %v5728_v5 = vadd.f32 %v12991_v23, %v5714_v55 }
 0x313   :  { %6196 = vmatpush.bf16.msrb.mxu1 %v10481_v45  ;;  %v10574_v11 = vld [vmem:[#allocation5 + $0x1678] sm:$0xf0]  ;;  %v5380_v52 = vadd.f32 %v13305_v35, %v5366_v44  ;;  %v12183_v50 = vld [vmem:[#allocation5 + $0x176c] sm:$0xf]  ;;  %v10449_v37 = vor.u32 %v12119_v4, %v10446_v62 }
 0x314   :  { %6210 = vmatpush.bf16.msrb.mxu2 %v10609_v13  ;;  %v10702_v27 = vld [vmem:[#allocation5 + $0x1778] sm:$0xf0]  ;;  %v10577_v20 = vor.u32 %v12151_v2, %v10574_v11  ;;  %v12083_v32 = vld [vmem:[#allocation5 + $0x144c] sm:$0xf]  ;;  %v13062_v43 = vpop.f32.mrf.mxu2  ;;  %v5744_v4 = vadd.f32 %v13026_v1, %v5730_v46  ;;  %v5742_v35 = vadd.f32 %v13005_v58, %v5728_v5  ;;  %v5799_v23 = vpop.f32.mrf.mxu0  ;;  %v12264_v46 = vld [vmem:[#allocation8 + $0x1ec] sm:$0xf0] }
 0x315   :  { %6224 = vmatpush.bf16.msrb.mxu3 %v10737_v41  ;;  %v10302_v29 = vld [vmem:[#allocation5 + $0x1458] sm:$0xf0]  ;;  %v12115_v45 = vld [vmem:[#allocation5 + $0x154c] sm:$0xf]  ;;  %v10705_v57 = vor.u32 %v12183_v50, %v10702_v27  ;;  %v5394_v41 = vadd.f32 %v13307_v38, %v5380_v52  ;;  %v10884_v38 = vld [vmem:[#allocation8 + $0xe0] sm:$0xf] }
 0x316   :  { %6183 = vmatpush.bf16.msrb.mxu0 %v10337_v0  ;;  %v13306_v13 = vld [vmem:[#allocation28_spill] sm:$0xff]  ;;  %v12147_v56 = vld [vmem:[#allocation5 + $0x164c] sm:$0xf]  ;;  %v10305_v15 = vor.u32 %v12083_v32, %v10302_v29  ;;  %v5758_v58 = vadd.f32 %v13038_v22, %v5744_v4 }
 0x317   :  { %6197 = vmatpush.bf16.msrb.mxu1 %v10465_v3  ;;  %v5058_v14 = vadd.f32 %v13306_v13, %v5044_v31  ;;  %v10430_v21 = vld [vmem:[#allocation5 + $0x1558] sm:$0xf0]  ;;  %v12179_v59 = vld [vmem:[#allocation5 + $0x174c] sm:$0xf]  ;;  %v5813_v22 = vpop.f32.mrf.mxu1 }
 0x318   :  { %6211 = vmatpush.bf16.msrb.mxu2 %v10593_v8  ;;  %v10558_v49 = vld [vmem:[#allocation5 + $0x1658] sm:$0xf0]  ;;  %v10433_v10 = vor.u32 %v12115_v45, %v10430_v21  ;;  %v12079_v3 = vld [vmem:[#allocation5 + $0x142c] sm:$0xf]  ;;  %v13312_v45 = vld [vmem:[#allocation31_spill] sm:$0xff] }
 0x319   :  { %6225 = vmatpush.bf16.msrb.mxu3 %v10721_v6  ;;  %v10686_v60 = vld [vmem:[#allocation5 + $0x1758] sm:$0xf0]  ;;  %v5072_v36 = vadd.f32 %v13308_v61, %v5058_v14  ;;  %v10561_v44 = vor.u32 %v12147_v56, %v10558_v49  ;;  %v12111_v17 = vld [vmem:[#allocation5 + $0x152c] sm:$0xf]  ;;  %v5772_v61 = vadd.f32 %v13043_v39, %v5758_v58 }
 0x31a   :  { %6184 = vmatpush.bf16.msrb.mxu0 %v10321_v16  ;;  %v13309_v28 = vld [vmem:[#allocation52_spill] sm:$0xff]  ;;  %v10689_v53 = vor.u32 %v12179_v59, %v10686_v60  ;;  %v12143_v31 = vld [vmem:[#allocation5 + $0x162c] sm:$0xf]  ;;  %v13069_v16 = vpop.f32.mrf.mxu3  ;;  %v11012_v59 = vld [vmem:[#allocation8 + $0x1e0] sm:$0xf]  ;;  %v5756_v60 = vadd.f32 %v13013_v25, %v5742_v35 }
 0x31b   :  { %v5408_v0 = vadd.f32 %v13309_v28, %v5394_v41  ;;  %6198 = vmatpush.bf16.msrb.mxu1 %v10449_v37  ;;  %v10286_v8 = vld [vmem:[#allocation5 + $0x1438] sm:$0xf0]  ;;  %v12175_v6 = vld [vmem:[#allocation5 + $0x172c] sm:$0xf]  ;;  %v12232_v41 = vld [vmem:[#allocation8 + $0xec] sm:$0xf0] }
 0x31c   :  { %6212 = vmatpush.bf16.msrb.mxu2 %v10577_v20  ;;  %v10414_v9 = vld [vmem:[#allocation5 + $0x1538] sm:$0xf0]  ;;  %v13310_v2 = vld [vmem:[#allocation30_spill] sm:$0xff]  ;;  %v10289_v52 = vor.u32 %v12079_v3, %v10286_v8  ;;  %v12296_v28 = vld [vmem:[#allocation8 + $0x2ec] sm:$0xf0]  ;;  %v5770_v8 = vadd.f32 %v13019_v47, %v5756_v60  ;;  %v10885_v5 = vor.u32 %v12232_v41, %v10884_v38  ;;  %v5827_v39 = vpop.f32.mrf.mxu2 }
 0x31d   :  { %6226 = vmatpush.bf16.msrb.mxu3 %v10705_v57  ;;  %v10542_v19 = vld [vmem:[#allocation5 + $0x1638] sm:$0xf0]  ;;  %v5086_v11 = vadd.f32 %v13310_v2, %v5072_v36  ;;  %v12075_v50 = vld [vmem:[#allocation5 + $0x140c] sm:$0xf]  ;;  %v5422_v30 = vadd.f32 %v13311_v40, %v5408_v0  ;;  %v10417_v1 = vor.u32 %v12111_v17, %v10414_v9  ;;  %v13315_v25 = vld [vmem:[#allocation55_spill] sm:$0xff] }
 0x31e   :  { %v10670_v62 = vld [vmem:[#allocation5 + $0x1738] sm:$0xf0]  ;;  %6185 = vmatpush.bf16.msrb.mxu0 %v10305_v15  ;;  %v10545_v37 = vor.u32 %v12143_v31, %v10542_v19  ;;  %v12107_v20 = vld [vmem:[#allocation5 + $0x150c] sm:$0xf]  ;;  %v11140_v15 = vld [vmem:[#allocation8 + $0x2e0] sm:$0xf]  ;;  %v5784_v40 = vadd.f32 %v13028_v7, %v5770_v8 }
 0x31f   :  { %v10270_v27 = vld [vmem:[#allocation5 + $0x1418] sm:$0xf0]  ;;  %6199 = vmatpush.bf16.msrb.mxu1 %v10433_v10  ;;  %v12139_v29 = vld [vmem:[#allocation5 + $0x160c] sm:$0xf]  ;;  %v5100_v13 = vadd.f32 %v13312_v45, %v5086_v11  ;;  %v10673_v14 = vor.u32 %v12175_v6, %v10670_v62  ;;  %v11141_v9 = vor.u32 %v12296_v28, %v11140_v15  ;;  %v10868_v31 = vld [vmem:[#allocation8 + $0xc0] sm:$0xf]  ;;  %v5786_v11 = vadd.f32 %v13052_v51, %v5772_v61 }
 0x320   :  { %6213 = vmatpush.bf16.msrb.mxu2 %v10561_v44  ;;  %v10398_v32 = vld [vmem:[#allocation5 + $0x1518] sm:$0xf0]  ;;  %v12171_v57 = vld [vmem:[#allocation5 + $0x170c] sm:$0xf]  ;;  %v10273_v36 = vor.u32 %v12075_v50, %v10270_v27  ;;  %v12228_v19 = vld [vmem:[#allocation8 + $0xcc] sm:$0xf0]  ;;  %v13082_v27 = vpop.f32.mrf.mxu0  ;;  %v5798_v58 = vadd.f32 %v13048_v24, %v5784_v40 }
 0x321   :  { %6227 = vmatpush.bf16.msrb.mxu3 %v10689_v53  ;;  %v10526_v55 = vld [vmem:[#allocation5 + $0x1618] sm:$0xf0]  ;;  %v13313_v56 = vld [vmem:[#allocation54_spill] sm:$0xff]  ;;  %v10401_v0 = vor.u32 %v12107_v20, %v10398_v32  ;;  %v11013_v53 = vor.u32 %v12264_v46, %v11012_v59  ;;  %v10996_v6 = vld [vmem:[#allocation8 + $0x1c0] sm:$0xf] }
 0x322   :  { %v10654_v21 = vld [vmem:[#allocation5 + $0x1718] sm:$0xf0]  ;;  %v5436_v49 = vadd.f32 %v13313_v56, %v5422_v30  ;;  %6186 = vmatpush.bf16.msrb.mxu0 %v10289_v52  ;;  %v10529_v10 = vor.u32 %v12139_v29, %v10526_v55  ;;  %v13316_v62 = vld [vmem:[#allocation33_spill] sm:$0xff]  ;;  %v12260_v35 = vld [vmem:[#allocation8 + $0x1cc] sm:$0xf0]  ;;  %v5800_v30 = vadd.f32 %v5799_v23, %v5786_v11 }
 0x323   :  { %6200 = vmatpush.bf16.msrb.mxu1 %v10417_v1  ;;  %v13314_v44 = vld [vmem:[#allocation32_spill] sm:$0xff]  ;;  %v10657_v17 = vor.u32 %v12171_v57, %v10654_v21  ;;  %v11124_v52 = vld [vmem:[#allocation8 + $0x2c0] sm:$0xf]  ;;  %v12292_v50 = vld [vmem:[#allocation8 + $0x2cc] sm:$0xf0]  ;;  %v10869_v1 = vor.u32 %v12228_v19, %v10868_v31  ;;  %v10997_v51 = vor.u32 %v12260_v35, %v10996_v6  ;;  %v13090_v57 = vpop.f32.mrf.mxu1 }
 0x324   :  { %6214 = vmatpush.bf16.msrb.mxu2 %v10545_v37  ;;  %v5114_v3 = vadd.f32 %v13314_v44, %v5100_v13  ;;  %v5450_v4 = vadd.f32 %v13315_v25, %v5436_v49  ;;  %v5841_v37 = vpop.f32.mrf.mxu3  ;;  %v11125_v20 = vor.u32 %v12292_v50, %v11124_v52  ;;  %v10852_v32 = vld [vmem:[#allocation8 + $0xa0] sm:$0xf]  ;;  %v12224_v29 = vld [vmem:[#allocation8 + $0xac] sm:$0xf0]  ;;  %v13317_v13 = vld [vmem:[#allocation34_spill] sm:$0xff]  ;;  %v5814_v49 = vadd.f32 %v5813_v22, %v5800_v30  ;;  %v13096_v41 = vpop.f32.mrf.mxu2 }
 0x325   :  { %6228 = vmatpush.bf16.msrb.mxu3 %v10673_v14  ;;  %v10980_v45 = vld [vmem:[#allocation8 + $0x1a0] sm:$0xf]  ;;  %v12256_v7 = vld [vmem:[#allocation8 + $0x1ac] sm:$0xf0]  ;;  %v10853_v24 = vor.u32 %v12224_v29, %v10852_v32  ;;  %v13319_v38 = vld [vmem:[#allocation56_spill] sm:$0xff] }
 0x326   :  { %v5128_v2 = vadd.f32 %v13316_v62, %v5114_v3  ;;  %6187 = vmatpush.bf16.msrb.mxu0 %v10273_v36  ;;  %v5464_v47 = vadd.f32 %v12890_v54, %v5450_v4  ;;  %v11108_v23 = vld [vmem:[#allocation8 + $0x2a0] sm:$0xf]  ;;  %v12288_v14 = vld [vmem:[#allocation8 + $0x2ac] sm:$0xf0]  ;;  %v5828_v36 = vadd.f32 %v5827_v39, %v5814_v49  ;;  %v13320_v28 = vld [vmem:[#allocation36_spill] sm:$0xff] }
 0x327   :  { %6201 = vmatpush.bf16.msrb.mxu1 %v10401_v0  ;;  %v13318_v21 = vld [vmem:[#allocation35_spill] sm:$0xff]  ;;  %v11109_v59 = vor.u32 %v12288_v14, %v11108_v23  ;;  %v10964_v61 = vld [vmem:[#allocation8 + $0x180] sm:$0xf] }
 0x328   :  { %6215 = vmatpush.bf16.msrb.mxu2 %v10529_v10  ;;  %v5142_v54 = vadd.f32 %v13317_v13, %v5128_v2  ;;  %v5478_v55 = vadd.f32 %v12892_v42, %v5464_v47  ;;  %v10836_v42 = vld [vmem:[#allocation8 + $0x80] sm:$0xf]  ;;  %v12220_v60 = vld [vmem:[#allocation8 + $0x8c] sm:$0xf0]  ;;  %v5855_v8 = vpop.f32.mrf.mxu0  ;;  %v5842_v31 = vadd.f32 %v5841_v37, %v5828_v36  ;;  %v13324_v13 = vld [vmem:[#allocation40_spill] sm:$0xff] }
 0x329   :  { %6229 = vmatpush.bf16.msrb.mxu3 %v10657_v17  ;;  %6188 = vmatmul.bf16.vlgmr.msrb.gmra.mxu0 %v12730_v26  ;;  %v11092_v46 = vld [vmem:[#allocation8 + $0x280] sm:$0xf]  ;;  %v12284_v15 = vld [vmem:[#allocation8 + $0x28c] sm:$0xf0]  ;;  %v10837_v10 = vor.u32 %v12220_v60, %v10836_v42 }
 0x32a   :  { %7026 = vmatpush.bf16.msra.mxu0 %v10885_v5  ;;  %6202 = vmatmul.bf16.vlgmr.msrb.gmra.mxu1 %v12734_v34  ;;  %v5156_v56 = vadd.f32 %v13318_v21, %v5142_v54  ;;  %v5492_v26 = vadd.f32 %v13319_v38, %v5478_v55  ;;  %v10981_v34 = vor.u32 %v12256_v7, %v10980_v45  ;;  %v13321_v44 = vld [vmem:[#allocation57_spill] sm:$0xff]  ;;  %v12216_v4 = vld [vmem:[#allocation8 + $0x6c] sm:$0xf0] }
 0x32b   :  { %7040 = vmatpush.bf16.msra.mxu1 %v11013_v53  ;;  %6216 = vmatmul.bf16.vlgmr.msrb.gmra.mxu2 %v12732_v33  ;;  %v5812_v33 = vadd.f32 %v13057_v12, %v5798_v58  ;;  %v11093_v25 = vor.u32 %v12284_v15, %v11092_v46  ;;  %v10820_v12 = vld [vmem:[#allocation8 + $0x60] sm:$0xf]  ;;  %v13322_v53 = vld [vmem:[#allocation38_spill] sm:$0xff]  ;;  %v12248_v19 = vld [vmem:[#allocation8 + $0x16c] sm:$0xf0]  ;;  %v5856_v11 = vadd.f32 %v5855_v8, %v5842_v31  ;;  %v5869_v52 = vpop.f32.mrf.mxu1 }
 0x32c   :  { %7054 = vmatpush.bf16.msra.mxu2 %v11141_v9  ;;  %6230 = vmatmul.bf16.vlgmr.msrb.gmra.mxu3 %v12738_v48  ;;  %v12252_v48 = vld [vmem:[#allocation8 + $0x18c] sm:$0xf0]  ;;  %v5170_v22 = vadd.f32 %v13320_v28, %v5156_v56  ;;  %v5506_v3 = vadd.f32 %v13321_v44, %v5492_v26  ;;  %v13102_v17 = vpop.f32.mrf.mxu3  ;;  %v10948_v39 = vld [vmem:[#allocation8 + $0x160] sm:$0xf]  ;;  %v10821_v35 = vor.u32 %v12216_v4, %v10820_v12  ;;  %v5883_v45 = vpop.f32.mrf.mxu2  ;;  %v12230_v8 = vld [vmem:[#allocation8 + $0xe4] sm:$0xf] }
 0x32d   :  { %v5826_v0 = vadd.f32 %v13062_v43, %v5812_v33  ;;  %v10965_v5 = vor.u32 %v12252_v48, %v10964_v61  ;;  %v11076_v6 = vld [vmem:[#allocation8 + $0x260] sm:$0xf]  ;;  %v12280_v43 = vld [vmem:[#allocation8 + $0x26c] sm:$0xf0]  ;;  %v10949_v50 = vor.u32 %v12248_v19, %v10948_v39  ;;  %v5870_v58 = vadd.f32 %v5869_v52, %v5856_v11  ;;  %v13327_v48 = vld [vmem:[#allocation60_spill] sm:$0xff] }
 0x32e   :  { %7027 = vmatpush.bf16.msra.mxu0 %v10869_v1  ;;  %v5184_v9 = vadd.f32 %v13322_v53, %v5170_v22  ;;  %v5520_v62 = vadd.f32 %v12921_v18, %v5506_v3  ;;  %v11077_v47 = vor.u32 %v12280_v43, %v11076_v6  ;;  %v10804_v40 = vld [vmem:[#allocation8 + $0x40] sm:$0xf]  ;;  %v12212_v30 = vld [vmem:[#allocation8 + $0x4c] sm:$0xf0]  ;;  %v11014_v12 = vld [vmem:[#allocation8 + $0x1f0] sm:$0xf0] }
 0x32f   :  { %7041 = vmatpush.bf16.msra.mxu1 %v10997_v51  ;;  %v5840_v2 = vadd.f32 %v13069_v16, %v5826_v0  ;;  %v10932_v1 = vld [vmem:[#allocation8 + $0x140] sm:$0xf]  ;;  %v13323_v51 = vld [vmem:[#allocation39_spill] sm:$0xff]  ;;  %v10805_v7 = vor.u32 %v12212_v30, %v10804_v40  ;;  %v5884_v38 = vadd.f32 %v5883_v45, %v5870_v58 }
 0x330   :  { %7055 = vmatpush.bf16.msra.mxu2 %v11125_v20  ;;  %v5198_v37 = vadd.f32 %v13323_v51, %v5184_v9  ;;  %v12244_v32 = vld [vmem:[#allocation8 + $0x14c] sm:$0xf0]  ;;  %v11060_v29 = vld [vmem:[#allocation8 + $0x240] sm:$0xf]  ;;  %v5534_v16 = vadd.f32 %v12923_v63, %v5520_v62  ;;  %v12294_v9 = vld [vmem:[#allocation8 + $0x2e4] sm:$0xf] }
 0x331   :  { %v5854_v20 = vadd.f32 %v13082_v27, %v5840_v2  ;;  %v12276_v18 = vld [vmem:[#allocation8 + $0x24c] sm:$0xf0]  ;;  %v10933_v55 = vor.u32 %v12244_v32, %v10932_v1  ;;  %v10788_v56 = vld [vmem:[#allocation8 + $0x20] sm:$0xf]  ;;  %v11142_v31 = vld [vmem:[#allocation8 + $0x2f0] sm:$0xf0] }
 0x332   :  { %7028 = vmatpush.bf16.msra.mxu0 %v10853_v24  ;;  %v5212_v54 = vadd.f32 %v13324_v13, %v5198_v37  ;;  %v13325_v23 = vld [vmem:[#allocation59_spill] sm:$0xff]  ;;  %v11061_v21 = vor.u32 %v12276_v18, %v11060_v29  ;;  %v10916_v27 = vld [vmem:[#allocation8 + $0x120] sm:$0xf]  ;;  %v13329_v2 = vld [vmem:[#allocation58_spill] sm:$0xff]  ;;  %v11145_v40 = vor.u32 %v12294_v9, %v11142_v31 }
 0x333   :  { %7042 = vmatpush.bf16.msra.mxu1 %v10981_v34  ;;  %v5548_v14 = vadd.f32 %v13325_v23, %v5534_v16  ;;  %v12208_v49 = vld [vmem:[#allocation8 + $0x2c] sm:$0xf0]  ;;  %v5868_v24 = vadd.f32 %v13090_v57, %v5854_v20  ;;  %v11044_v63 = vld [vmem:[#allocation8 + $0x220] sm:$0xf]  ;;  %v6237_v11 = vmax.f32 %v13329_v2, 0.0 }
 0x334   :  { %7056 = vmatpush.bf16.msra.mxu2 %v11109_v59  ;;  %v12240_v26 = vld [vmem:[#allocation8 + $0x12c] sm:$0xf0]  ;;  %v5897_v59 = vpop.f32.mrf.mxu3  ;;  %v13326_v42 = vld [vmem:[#allocation41_spill] sm:$0xff]  ;;  %v10789_v33 = vor.u32 %v12208_v49, %v10788_v56  ;;  %v10870_v30 = vld [vmem:[#allocation8 + $0xd0] sm:$0xf0] }
 0x335   :  { %v12272_v34 = vld [vmem:[#allocation8 + $0x22c] sm:$0xf0]  ;;  %v5226_v60 = vadd.f32 %v13326_v42, %v5212_v54  ;;  %v5882_v61 = vadd.f32 %v13096_v41, %v5868_v24  ;;  %v10772_v36 = vld [vmem:[#allocation8] sm:$0xf]  ;;  %v5562_v46 = vadd.f32 %v13327_v48, %v5548_v14  ;;  %v10917_v15 = vor.u32 %v12240_v26, %v10916_v27  ;;  %v12258_v1 = vld [vmem:[#allocation8 + $0x1c4] sm:$0xf]  ;;  %v13128_v27 = vpop.f32.mrf.mxu0  ;;  %v13130_v42 = vpop.f32.mrf.mxu1 }
 0x336   :  { %7029 = vmatpush.bf16.msra.mxu0 %v10837_v10  ;;  %v11045_v28 = vor.u32 %v12272_v34, %v11044_v63  ;;  %v12204_v22 = vld [vmem:[#allocation8 + $0xc] sm:$0xf0]  ;;  %v10900_v57 = vld [vmem:[#allocation8 + $0x100] sm:$0xf]  ;;  %v5898_v10 = vadd.f32 %v5897_v59, %v5884_v38  ;;  %v12290_v37 = vld [vmem:[#allocation8 + $0x2c4] sm:$0xf] }
 0x337   :  { %7043 = vmatpush.bf16.msra.mxu1 %v10965_v5  ;;  %v12236_v0 = vld [vmem:[#allocation8 + $0x10c] sm:$0xf0]  ;;  %v11028_v44 = vld [vmem:[#allocation8 + $0x200] sm:$0xf]  ;;  %v10886_v5 = vld [vmem:[#allocation8 + $0xf0] sm:$0xf0]  ;;  %v5896_v39 = vadd.f32 %v13102_v17, %v5882_v61  ;;  %v10773_v53 = vor.u32 %v12204_v22, %v10772_v36 }
 0x338   :  { %7057 = vmatpush.bf16.msra.mxu2 %v11093_v25  ;;  %v12268_v3 = vld [vmem:[#allocation8 + $0x20c] sm:$0xf0]  ;;  %v12262_v25 = vld [vmem:[#allocation8 + $0x1e4] sm:$0xf]  ;;  %v6240_v19 = vmax.f32 %v5226_v60, 0.0  ;;  %v6241_v6 = vmax.f32 %v5562_v46, 0.0  ;;  %v10901_v43 = vor.u32 %v12236_v0, %v10900_v57  ;;  %v10889_v52 = vor.u32 %v12230_v8, %v10886_v5  ;;  %v13132_v57 = vpop.f32.mrf.mxu2 }
 0x339   :  { %v13328_v41 = vld [vmem:[#allocation37_spill] sm:$0xff]  ;;  %v11029_v62 = vor.u32 %v12268_v3, %v11028_v44  ;;  %v10998_v17 = vld [vmem:[#allocation8 + $0x1d0] sm:$0xf0]  ;;  %v6238_v51 = vmax.f32 %v5896_v39, 0.0 }
 0x33a   :  { %7030 = vmatpush.bf16.msra.mxu0 %v10821_v35  ;;  %v6236_v4 = vmax.f32 %v13328_v41, 0.0  ;;  %v6242_v35 = vmax.f32 %v5898_v10, 0.0  ;;  %v11126_v20 = vld [vmem:[#allocation8 + $0x2d0] sm:$0xf0]  ;;  %v13121_v29 = vpack.c.bf16 %v6241_v6, %v6237_v11  ;;  %v11001_v45 = vor.u32 %v12258_v1, %v10998_v17  ;;  %v12222_v13 = vld [vmem:[#allocation8 + $0xa4] sm:$0xf] }
 0x33b   :  { %7044 = vmatpush.bf16.msra.mxu1 %v10949_v50  ;;  %v11017_v50 = vor.u32 %v12262_v25, %v11014_v12  ;;  %v11129_v54 = vor.u32 %v12290_v37, %v11126_v20  ;;  %v10854_v58 = vld [vmem:[#allocation8 + $0xb0] sm:$0xf0]  ;;  %v12286_v14 = vld [vmem:[#allocation8 + $0x2a4] sm:$0xf] }
 0x33c   :  { %7058 = vmatpush.bf16.msra.mxu2 %v11077_v47  ;;  %v12226_v47 = vld [vmem:[#allocation8 + $0xc4] sm:$0xf]  ;;  %v13119_v32 = vpack.c.bf16 %v6240_v19, %v6236_v4  ;;  %v13123_v18 = vpack.c.bf16 %v6242_v35, %v6238_v51  ;;  %v10982_v23 = vld [vmem:[#allocation8 + $0x1b0] sm:$0xf0]  ;;  %v13134_v0 = vpop.f32.mrf.mxu3 }
 0x33d   :  { %v10873_v16 = vor.u32 %v12226_v47, %v10870_v30  ;;  %v12218_v49 = vld [vmem:[#allocation8 + $0x84] sm:$0xf]  ;;  %v10838_v38 = vld [vmem:[#allocation8 + $0x90] sm:$0xf0]  ;;  %v13136_v39 = vpop.f32.mrf.mxu0  ;;  %v13138_v2 = vpop.f32.mrf.mxu1 }
 0x33e   :  { %7031 = vmatpush.bf16.msra.mxu0 %v10805_v7  ;;  %v12254_v7 = vld [vmem:[#allocation8 + $0x1a4] sm:$0xf]  ;;  %v10966_v63 = vld [vmem:[#allocation8 + $0x190] sm:$0xf0]  ;;  %v10841_v60 = vor.u32 %v12218_v49, %v10838_v38 }
 0x33f   :  { %7045 = vmatpush.bf16.msra.mxu1 %v10933_v55  ;;  %v11110_v55 = vld [vmem:[#allocation8 + $0x2b0] sm:$0xf0]  ;;  %v10985_v56 = vor.u32 %v12254_v7, %v10982_v23  ;;  %v12250_v26 = vld [vmem:[#allocation8 + $0x184] sm:$0xf]  ;;  %v11148_v7 = vld [vmem:[#allocation8 + $0x2e8] sm:$0xf] }
 0x340   :  { %7059 = vmatpush.bf16.msra.mxu2 %v11061_v21  ;;  %v10857_v21 = vor.u32 %v12222_v13, %v10854_v58  ;;  %v11113_v24 = vor.u32 %v12286_v14, %v11110_v55  ;;  %v12282_v34 = vld [vmem:[#allocation8 + $0x284] sm:$0xf]  ;;  %v11094_v59 = vld [vmem:[#allocation8 + $0x290] sm:$0xf0]  ;;  %v10969_v61 = vor.u32 %v12250_v26, %v10966_v63  ;;  %v13140_v20 = vpop.f32.mrf.mxu2  ;;  %v12233_v13 = vld [vmem:[#allocation8 + $0xf4] sm:$0xf0] }
 0x341   :  { %v11097_v36 = vor.u32 %v12282_v34, %v11094_v59  ;;  %v10822_v48 = vld [vmem:[#allocation8 + $0x70] sm:$0xf0]  ;;  %v12246_v46 = vld [vmem:[#allocation8 + $0x164] sm:$0xf]  ;;  %v12265_v58 = vld [vmem:[#allocation8 + $0x1f4] sm:$0xf0] }
 0x342   :  { %7032 = vmatpush.bf16.msra.mxu0 %v10789_v33  ;;  %v12214_v33 = vld [vmem:[#allocation8 + $0x64] sm:$0xf]  ;;  %v11078_v22 = vld [vmem:[#allocation8 + $0x270] sm:$0xf0]  ;;  %v12297_v23 = vld [vmem:[#allocation8 + $0x2f4] sm:$0xf0] }
 0x343   :  { %7046 = vmatpush.bf16.msra.mxu1 %v10917_v15  ;;  %v10950_v15 = vld [vmem:[#allocation8 + $0x170] sm:$0xf0]  ;;  %v10825_v10 = vor.u32 %v12214_v33, %v10822_v48  ;;  %v12210_v3 = vld [vmem:[#allocation8 + $0x44] sm:$0xf]  ;;  %v11149_v38 = vor.u32 %v12297_v23, %v11148_v7  ;;  %v10876_v26 = vld [vmem:[#allocation8 + $0xc8] sm:$0xf] }
 0x344   :  { %7060 = vmatpush.bf16.msra.mxu2 %v11045_v28  ;;  %v12278_v28 = vld [vmem:[#allocation8 + $0x264] sm:$0xf]  ;;  %v10953_v44 = vor.u32 %v12246_v46, %v10950_v15  ;;  %v10806_v5 = vld [vmem:[#allocation8 + $0x50] sm:$0xf0]  ;;  %v12229_v63 = vld [vmem:[#allocation8 + $0xd4] sm:$0xf0] }
 0x345   :  { %v11081_v8 = vor.u32 %v12278_v28, %v11078_v22  ;;  %v12242_v25 = vld [vmem:[#allocation8 + $0x144] sm:$0xf]  ;;  %v10934_v12 = vld [vmem:[#allocation8 + $0x150] sm:$0xf0]  ;;  %v11004_v34 = vld [vmem:[#allocation8 + $0x1c8] sm:$0xf]  ;;  %v13146_v33 = vpop.f32.mrf.mxu1 }
 0x346   :  { %7033 = vmatpush.bf16.msra.mxu0 %v10773_v53  ;;  %v12274_v41 = vld [vmem:[#allocation8 + $0x244] sm:$0xf]  ;;  %v11062_v4 = vld [vmem:[#allocation8 + $0x250] sm:$0xf0]  ;;  %v10809_v53 = vor.u32 %v12210_v3, %v10806_v5  ;;  %v10937_v9 = vor.u32 %v12242_v25, %v10934_v12  ;;  %v12261_v59 = vld [vmem:[#allocation8 + $0x1d4] sm:$0xf0] }
 0x347   :  { %7047 = vmatpush.bf16.msra.mxu1 %v10901_v43  ;;  %v12206_v31 = vld [vmem:[#allocation8 + $0x24] sm:$0xf]  ;;  %v11065_v19 = vor.u32 %v12274_v41, %v11062_v4  ;;  %v10790_v6 = vld [vmem:[#allocation8 + $0x30] sm:$0xf0]  ;;  %v10860_v48 = vld [vmem:[#allocation8 + $0xa8] sm:$0xf]  ;;  %v11005_v15 = vor.u32 %v12261_v59, %v11004_v34 }
 0x348   :  { %7061 = vmatpush.bf16.msra.mxu2 %v11029_v62  ;;  %v12238_v43 = vld [vmem:[#allocation8 + $0x124] sm:$0xf]  ;;  %v10918_v62 = vld [vmem:[#allocation8 + $0x130] sm:$0xf0]  ;;  %v12225_v46 = vld [vmem:[#allocation8 + $0xb4] sm:$0xf0]  ;;  %v13150_v41 = vpop.f32.mrf.mxu2 }
 0x349   :  { %7034 = vmatmul.bf16.vlgmr.msra.gmra.mxu0 %v13119_v32  ;;  %v12270_v11 = vld [vmem:[#allocation8 + $0x224] sm:$0xf]  ;;  %v11046_v35 = vld [vmem:[#allocation8 + $0x230] sm:$0xf0]  ;;  %v10988_v22 = vld [vmem:[#allocation8 + $0x1a8] sm:$0xf] }
 0x34a   :  { %7082 = vmatpush.bf16.msrb.mxu0 %v10889_v52  ;;  %7048 = vmatmul.bf16.vlgmr.msra.gmra.mxu1 %v13121_v29  ;;  %v10793_v52 = vor.u32 %v12206_v31, %v10790_v6  ;;  %v12202_v47 = vld [vmem:[#allocation8 + $0x4] sm:$0xf]  ;;  %v11049_v1 = vor.u32 %v12270_v11, %v11046_v35  ;;  %v10902_v17 = vld [vmem:[#allocation8 + $0x110] sm:$0xf0]  ;;  %v12289_v3 = vld [vmem:[#allocation8 + $0x2b4] sm:$0xf0] }
 0x34b   :  { %7096 = vmatpush.bf16.msrb.mxu1 %v11017_v50  ;;  %7062 = vmatmul.bf16.vlgmr.msra.gmra.mxu2 %v13123_v18  ;;  %v10921_v50 = vor.u32 %v12238_v43, %v10918_v62  ;;  %v12234_v30 = vld [vmem:[#allocation8 + $0x104] sm:$0xf]  ;;  %v11030_v37 = vld [vmem:[#allocation8 + $0x210] sm:$0xf0]  ;;  %v12328_v5 = vld [vmem:[#allocation8 + $0x3ec] sm:$0xf0] }
 0x34c   :  { %7110 = vmatpush.bf16.msrb.mxu2 %v11145_v40  ;;  %v10774_v40 = vld [vmem:[#allocation8 + $0x10] sm:$0xf0]  ;;  %v12266_v51 = vld [vmem:[#allocation8 + $0x204] sm:$0xf]  ;;  %v10905_v55 = vor.u32 %v12234_v30, %v10902_v17  ;;  %v12381_v25 = vld [vmem:[#allocation7] sm:$0xf] }
 0x34d   :  { %v10777_v14 = vor.u32 %v12202_v47, %v10774_v40  ;;  %v927_v12 = vperm.slane %v12381_v25, 3  ;;  %v10844_v31 = vld [vmem:[#allocation8 + $0x88] sm:$0xf]  ;;  %v11252_v11 = vld [vmem:[#allocation8 + $0x3c0] sm:$0xf] }
 0x34e   :  { %7083 = vmatpush.bf16.msrb.mxu0 %v10873_v16  ;;  %v13142_v16 = vpop.f32.mrf.mxu3  ;;  %v10972_v62 = vld [vmem:[#allocation8 + $0x188] sm:$0xf]  ;;  %v12324_v35 = vld [vmem:[#allocation8 + $0x3cc] sm:$0xf0]  ;;  %v12285_v40 = vld [vmem:[#allocation8 + $0x294] sm:$0xf0] }
 0x34f   :  { %7097 = vmatpush.bf16.msrb.mxu1 %v11001_v45  ;;  %v10892_v45 = vld [vmem:[#allocation8 + $0xe8] sm:$0xf]  ;;  %v11253_v30 = vor.u32 %v12324_v35, %v11252_v11  ;;  %v11236_v7 = vld [vmem:[#allocation8 + $0x3a0] sm:$0xf]  ;;  %v12320_v23 = vld [vmem:[#allocation8 + $0x3ac] sm:$0xf0] }
 0x350   :  { %7111 = vmatpush.bf16.msrb.mxu2 %v11129_v54  ;;  %v11020_v54 = vld [vmem:[#allocation8 + $0x1e8] sm:$0xf]  ;;  %v10893_v49 = vor.u32 %v12233_v13, %v10892_v45  ;;  %v13158_v45 = vpop.f32.mrf.mxu1 }
 0x351   :  { %v11100_v47 = vld [vmem:[#allocation8 + $0x288] sm:$0xf] }
 0x352   :  { %7084 = vmatpush.bf16.msrb.mxu0 %v10857_v21  ;;  %v13144_v21 = vpop.f32.mrf.mxu0 }
 0x353   :  { %7098 = vmatpush.bf16.msrb.mxu1 %v10985_v56  ;;  %v11033_v56 = vor.u32 %v12266_v51, %v11030_v37  ;;  %v10828_v51 = vld [vmem:[#allocation8 + $0x68] sm:$0xf]  ;;  %v12217_v37 = vld [vmem:[#allocation8 + $0x74] sm:$0xf0] }
 0x354   :  { %7112 = vmatpush.bf16.msrb.mxu2 %v11113_v24  ;;  %v11021_v24 = vor.u32 %v12265_v58, %v11020_v54  ;;  %v11101_v54 = vor.u32 %v12285_v40, %v11100_v47  ;;  %v10956_v58 = vld [vmem:[#allocation8 + $0x168] sm:$0xf]  ;;  %v12205_v47 = vld [vmem:[#allocation8 + $0x14] sm:$0xf0] }
 0x355   :  { %v10908_v40 = vld [vmem:[#allocation8 + $0x108] sm:$0xf] }
 0x356   :  { %7085 = vmatpush.bf16.msrb.mxu0 %v10841_v60  ;;  %v11132_v60 = vld [vmem:[#allocation8 + $0x2c8] sm:$0xf]  ;;  %v13152_v4 = vpop.f32.mrf.mxu3 }
 0x357   :  { %7099 = vmatpush.bf16.msrb.mxu1 %v10969_v61  ;;  %v12293_v61 = vld [vmem:[#allocation8 + $0x2d4] sm:$0xf0] }
 0x358   :  { %7113 = vmatpush.bf16.msrb.mxu2 %v11097_v36  ;;  %v10877_v36 = vor.u32 %v12229_v63, %v10876_v26  ;;  %v11133_v28 = vor.u32 %v12293_v61, %v11132_v60  ;;  %v12213_v26 = vld [vmem:[#allocation8 + $0x54] sm:$0xf0]  ;;  %v13161_v63 = vpop.f32.mrf.mxu2  ;;  %v10940_v61 = vld [vmem:[#allocation8 + $0x148] sm:$0xf]  ;;  %v13169_v25 = vpop.f32.mrf.mxu1 }
 0x35a   :  { %7086 = vmatpush.bf16.msrb.mxu0 %v10825_v10  ;;  %v12257_v10 = vld [vmem:[#allocation8 + $0x1b4] sm:$0xf0] }
 0x35b   :  { %7100 = vmatpush.bf16.msrb.mxu1 %v10953_v44  ;;  %v11116_v44 = vld [vmem:[#allocation8 + $0x2a8] sm:$0xf]  ;;  %v10989_v6 = vor.u32 %v12257_v10, %v10988_v22  ;;  %v12277_v22 = vld [vmem:[#allocation8 + $0x254] sm:$0xf0] }
 0x35c   :  { %7114 = vmatpush.bf16.msrb.mxu2 %v11081_v8  ;;  %v11268_v8 = vld [vmem:[#allocation8 + $0x3e0] sm:$0xf]  ;;  %v11117_v43 = vor.u32 %v12289_v3, %v11116_v44 }
 0x35e   :  { %7087 = vmatpush.bf16.msrb.mxu0 %v10809_v53  ;;  %v11269_v53 = vor.u32 %v12328_v5, %v11268_v8  ;;  %v13163_v34 = vpop.f32.mrf.mxu3  ;;  %v10796_v8 = vld [vmem:[#allocation8 + $0x28] sm:$0xf]  ;;  %v12209_v5 = vld [vmem:[#allocation8 + $0x34] sm:$0xf0] }
 0x35f   :  { %7101 = vmatpush.bf16.msrb.mxu1 %v10937_v9  ;;  %v10861_v9 = vor.u32 %v12225_v46, %v10860_v48  ;;  %v12316_v48 = vld [vmem:[#allocation8 + $0x38c] sm:$0xf0]  ;;  %v5912_v46 = vadd.f32 %v13136_v39, %v927_v12  ;;  %v10924_v39 = vld [vmem:[#allocation8 + $0x128] sm:$0xf]  ;;  %v10797_v35 = vor.u32 %v12209_v5, %v10796_v8  ;;  %v12291_v8 = vld [vmem:[#allocation8 + $0x2cc] sm:$0xf] }
 0x360   :  { %7115 = vmatpush.bf16.msrb.mxu2 %v11065_v19  ;;  %v12221_v19 = vld [vmem:[#allocation8 + $0x94] sm:$0xf0]  ;;  %7068 = vmatpush.bf16.msra.mxu3 %v11269_v53  ;;  %v11134_v5 = vld [vmem:[#allocation8 + $0x2d8] sm:$0xf0] }
 0x361   :  { %v10845_v17 = vor.u32 %v12221_v19, %v10844_v31  ;;  %v11052_v31 = vld [vmem:[#allocation8 + $0x228] sm:$0xf]  ;;  %v5926_v19 = vadd.f32 %v13138_v2, %v5912_v46  ;;  %v12304_v46 = vld [vmem:[#allocation8 + $0x32c] sm:$0xf0] }
 0x362   :  { %7088 = vmatpush.bf16.msrb.mxu0 %v10793_v52  ;;  %v13155_v52 = vpop.f32.mrf.mxu0 }
 0x363   :  { %7102 = vmatpush.bf16.msrb.mxu1 %v10921_v50  ;;  %v12253_v50 = vld [vmem:[#allocation8 + $0x194] sm:$0xf0] }
 0x364   :  { %7116 = vmatpush.bf16.msrb.mxu2 %v11049_v1  ;;  %v5910_v1 = vadd.f32 %v13128_v27, %v927_v12  ;;  %v10973_v13 = vor.u32 %v12253_v50, %v10972_v62  ;;  %7069 = vmatpush.bf16.msra.mxu3 %v11253_v30  ;;  %v12241_v12 = vld [vmem:[#allocation8 + $0x134] sm:$0xf0]  ;;  %v12312_v62 = vld [vmem:[#allocation8 + $0x36c] sm:$0xf0]  ;;  %v10780_v50 = vld [vmem:[#allocation8 + $0x8] sm:$0xf]  ;;  %v13173_v30 = vpop.f32.mrf.mxu2 }
 0x366   :  { %7089 = vmatpush.bf16.msrb.mxu0 %v10777_v14  ;;  %v12249_v14 = vld [vmem:[#allocation8 + $0x174] sm:$0xf0]  ;;  %v5924_v27 = vadd.f32 %v13130_v42, %v5910_v1  ;;  %v13175_v1 = vpop.f32.mrf.mxu3 }
 0x367   :  { %7103 = vmatpush.bf16.msrb.mxu1 %v10905_v55  ;;  %v11084_v55 = vld [vmem:[#allocation8 + $0x268] sm:$0xf]  ;;  %v10957_v59 = vor.u32 %v12249_v14, %v10956_v58  ;;  %v12245_v42 = vld [vmem:[#allocation8 + $0x154] sm:$0xf0] }
 0x368   :  { %7117 = vmatpush.bf16.msrb.mxu2 %v11033_v56  ;;  %v12281_v56 = vld [vmem:[#allocation8 + $0x274] sm:$0xf0]  ;;  %v5938_v44 = vadd.f32 %v13132_v57, %v5924_v27  ;;  %v10941_v53 = vor.u32 %v12245_v42, %v10940_v61 }
 0x369   :  { %7090 = vmatmul.bf16.vlgmr.msrb.gmra.mxu0 %v13119_v32  ;;  %v11085_v60 = vor.u32 %v12281_v56, %v11084_v55  ;;  %v12269_v58 = vld [vmem:[#allocation8 + $0x214] sm:$0xf0]  ;;  %v10894_v55 = vld [vmem:[#allocation8 + $0xf8] sm:$0xf0]  ;;  %v12263_v56 = vld [vmem:[#allocation8 + $0x1ec] sm:$0xf] }
 0x36a   :  { %7138 = vmatpush.bf16.msra.mxu0 %v10893_v49  ;;  %7104 = vmatmul.bf16.vlgmr.msrb.gmra.mxu1 %v13121_v29  ;;  %v11237_v49 = vor.u32 %v12320_v23, %v11236_v7  ;;  %v5952_v57 = vadd.f32 %v13134_v0, %v5938_v44  ;;  %v11036_v0 = vld [vmem:[#allocation8 + $0x208] sm:$0xf]  ;;  %v12231_v7 = vld [vmem:[#allocation8 + $0xec] sm:$0xf] }
 0x36b   :  { %7152 = vmatpush.bf16.msra.mxu1 %v11021_v24  ;;  %7118 = vmatmul.bf16.vlgmr.msrb.gmra.mxu2 %v13123_v18  ;;  %v10829_v24 = vor.u32 %v12217_v37, %v10828_v51  ;;  %v12237_v51 = vld [vmem:[#allocation8 + $0x114] sm:$0xf0]  ;;  %v11188_v37 = vld [vmem:[#allocation8 + $0x340] sm:$0xf]  ;;  %v10897_v61 = vor.u32 %v12231_v7, %v10894_v55  ;;  %v12259_v44 = vld [vmem:[#allocation8 + $0x1cc] sm:$0xf] }
 0x36c   :  { %7166 = vmatpush.bf16.msra.mxu2 %v11149_v38  ;;  %v10812_v38 = vld [vmem:[#allocation8 + $0x48] sm:$0xf]  ;;  %7070 = vmatpush.bf16.msra.mxu3 %v11237_v49  ;;  %v5966_v14 = vadd.f32 %v13144_v21, %v5952_v57  ;;  %v11022_v49 = vld [vmem:[#allocation8 + $0x1f8] sm:$0xf0]  ;;  %v11172_v21 = vld [vmem:[#allocation8 + $0x320] sm:$0xf]  ;;  %v11137_v57 = vor.u32 %v12291_v8, %v11134_v5 }
 0x36d   :  { %v10813_v3 = vor.u32 %v12213_v26, %v10812_v38  ;;  %v12295_v38 = vld [vmem:[#allocation8 + $0x2ec] sm:$0xf]  ;;  %v11150_v26 = vld [vmem:[#allocation8 + $0x2f8] sm:$0xf0] }
 0x36e   :  { %7139 = vmatpush.bf16.msra.mxu0 %v10877_v36  ;;  %v11220_v36 = vld [vmem:[#allocation8 + $0x380] sm:$0xf]  ;;  %v5980_v42 = vadd.f32 %v13146_v33, %v5966_v14  ;;  %v10862_v33 = vld [vmem:[#allocation8 + $0xb8] sm:$0xf0]  ;;  %v12283_v55 = vld [vmem:[#allocation8 + $0x28c] sm:$0xf] }
 0x36f   :  { %7153 = vmatpush.bf16.msra.mxu1 %v11005_v15  ;;  %v13166_v15 = vpop.f32.mrf.mxu0  ;;  %v11221_v10 = vor.u32 %v12316_v48, %v11220_v36  ;;  %v11025_v36 = vor.u32 %v12263_v56, %v11022_v49  ;;  %v12227_v48 = vld [vmem:[#allocation8 + $0xcc] sm:$0xf]  ;;  %v10974_v14 = vld [vmem:[#allocation8 + $0x198] sm:$0xf0] }
 0x370   :  { %7167 = vmatpush.bf16.msra.mxu2 %v11133_v28  ;;  %v11068_v28 = vld [vmem:[#allocation8 + $0x248] sm:$0xf] }
 0x371   :  { %7071 = vmatpush.bf16.msra.mxu3 %v11221_v10  ;;  %v10878_v10 = vld [vmem:[#allocation8 + $0xd8] sm:$0xf0] }
 0x372   :  { %7140 = vmatpush.bf16.msra.mxu0 %v10861_v9  ;;  %v11069_v9 = vor.u32 %v12277_v22, %v11068_v28  ;;  %v13183_v28 = vpop.f32.mrf.mxu1  ;;  %v11153_v22 = vor.u32 %v12295_v38, %v11150_v26  ;;  %v11254_v38 = vld [vmem:[#allocation8 + $0x3d0] sm:$0xf0] }
 0x373   :  { %7154 = vmatpush.bf16.msra.mxu1 %v10989_v6  ;;  %v12273_v6 = vld [vmem:[#allocation8 + $0x234] sm:$0xf0] }
 0x374   :  { %7168 = vmatpush.bf16.msra.mxu2 %v11117_v43  ;;  %v11204_v43 = vld [vmem:[#allocation8 + $0x360] sm:$0xf]  ;;  %v11053_v2 = vor.u32 %v12273_v6, %v11052_v31  ;;  %v5994_v6 = vadd.f32 %v13150_v41, %v5980_v42  ;;  %v11270_v41 = vld [vmem:[#allocation8 + $0x3f0] sm:$0xf0] }
 0x375   :  { %v11205_v11 = vor.u32 %v12312_v62, %v11204_v43  ;;  %v11156_v31 = vld [vmem:[#allocation8 + $0x300] sm:$0xf]  ;;  %v13187_v43 = vpop.f32.mrf.mxu2  ;;  %v13189_v62 = vpop.f32.mrf.mxu3 }
 0x376   :  { %7141 = vmatpush.bf16.msra.mxu0 %v10845_v17  ;;  %v10925_v17 = vor.u32 %v12241_v12, %v10924_v39  ;;  %v10881_v39 = vor.u32 %v12227_v48, %v10878_v10  ;;  %v12318_v10 = vld [vmem:[#allocation8 + $0x3a4] sm:$0xf] }
 0x377   :  { %7155 = vmatpush.bf16.msra.mxu1 %v10973_v13  ;;  %v12308_v13 = vld [vmem:[#allocation8 + $0x34c] sm:$0xf0]  ;;  %7072 = vmatpush.bf16.msra.mxu3 %v11205_v11  ;;  %v13179_v27 = vpop.f32.mrf.mxu0  ;;  %v12255_v11 = vld [vmem:[#allocation8 + $0x1ac] sm:$0xf] }
 0x378   :  { %7169 = vmatpush.bf16.msra.mxu2 %v11101_v54  ;;  %v5940_v54 = vadd.f32 %v13140_v20, %v5926_v19  ;;  %v11189_v23 = vor.u32 %v12308_v13, %v11188_v37  ;;  %v11037_v20 = vor.u32 %v12269_v58, %v11036_v0  ;;  %v12300_v19 = vld [vmem:[#allocation8 + $0x30c] sm:$0xf0]  ;;  %v12219_v13 = vld [vmem:[#allocation8 + $0x8c] sm:$0xf]  ;;  %v6008_v0 = vadd.f32 %v13152_v4, %v5994_v6 }
 0x37a   :  { %7142 = vmatpush.bf16.msra.mxu0 %v10829_v24  ;;  %v10781_v24 = vor.u32 %v12205_v47, %v10780_v50  ;;  %v11118_v47 = vld [vmem:[#allocation8 + $0x2b8] sm:$0xf0]  ;;  %v13198_v58 = vpop.f32.mrf.mxu1  ;;  %v6022_v26 = vadd.f32 %v13166_v15, %v6008_v0 }
 0x37b   :  { %7156 = vmatpush.bf16.msra.mxu1 %v10957_v59  ;;  %v10909_v59 = vor.u32 %v12237_v51, %v10908_v40  ;;  %7073 = vmatpush.bf16.msra.mxu3 %v11189_v23  ;;  %v12326_v40 = vld [vmem:[#allocation8 + $0x3e4] sm:$0xf]  ;;  %v12251_v23 = vld [vmem:[#allocation8 + $0x18c] sm:$0xf]  ;;  %v11054_v0 = vld [vmem:[#allocation8 + $0x238] sm:$0xf0] }
 0x37c   :  { %7170 = vmatpush.bf16.msra.mxu2 %v11085_v60  ;;  %v5954_v60 = vadd.f32 %v13142_v16, %v5940_v54  ;;  %v12223_v16 = vld [vmem:[#allocation8 + $0xac] sm:$0xf]  ;;  %v10846_v54 = vld [vmem:[#allocation8 + $0x98] sm:$0xf0]  ;;  %v11273_v56 = vor.u32 %v12326_v40, %v11270_v41  ;;  %v10977_v4 = vor.u32 %v12251_v23, %v10974_v14 }
 0x37d   :  { %v10865_v51 = vor.u32 %v12223_v16, %v10862_v33  ;;  %v12207_v40 = vld [vmem:[#allocation8 + $0x2c] sm:$0xf]  ;;  %v10798_v41 = vld [vmem:[#allocation8 + $0x38] sm:$0xf0] }
 0x37e   :  { %7143 = vmatpush.bf16.msra.mxu0 %v10813_v3  ;;  %v11006_v3 = vld [vmem:[#allocation8 + $0x1d8] sm:$0xf0] }
 0x37f   :  { %7157 = vmatpush.bf16.msra.mxu1 %v10941_v53  ;;  %v11173_v53 = vor.u32 %v12304_v46, %v11172_v21  ;;  %v11009_v12 = vor.u32 %v12259_v44, %v11006_v3  ;;  %v13192_v50 = vpop.f32.mrf.mxu0  ;;  %v12247_v21 = vld [vmem:[#allocation8 + $0x16c] sm:$0xf]  ;;  %v11238_v44 = vld [vmem:[#allocation8 + $0x3b0] sm:$0xf0]  ;;  %v6036_v3 = vadd.f32 %v13169_v25, %v6022_v26  ;;  %v12314_v25 = vld [vmem:[#allocation8 + $0x384] sm:$0xf] }
 0x380   :  { %7171 = vmatpush.bf16.msra.mxu2 %v11069_v9  ;;  %v5968_v9 = vadd.f32 %v13155_v52, %v5954_v60  ;;  %v12287_v52 = vld [vmem:[#allocation8 + $0x2ac] sm:$0xf]  ;;  %v10830_v60 = vld [vmem:[#allocation8 + $0x78] sm:$0xf0]  ;;  %v11241_v6 = vor.u32 %v12318_v10, %v11238_v44 }
 0x381   :  { %7074 = vmatpush.bf16.msra.mxu3 %v11173_v53  ;;  %v11121_v7 = vor.u32 %v12287_v52, %v11118_v47  ;;  %v12279_v46 = vld [vmem:[#allocation8 + $0x26c] sm:$0xf] }
 0x382   :  { %7144 = vmatpush.bf16.msra.mxu0 %v10797_v35  ;;  %v10990_v35 = vld [vmem:[#allocation8 + $0x1b8] sm:$0xf0]  ;;  %v12235_v26 = vld [vmem:[#allocation8 + $0x10c] sm:$0xf] }
 0x383   :  { %7158 = vmatpush.bf16.msra.mxu1 %v10925_v17  ;;  %v11157_v17 = vor.u32 %v12300_v19, %v11156_v31  ;;  %v10993_v37 = vor.u32 %v12255_v11, %v10990_v35  ;;  %v12243_v31 = vld [vmem:[#allocation8 + $0x14c] sm:$0xf]  ;;  %v11222_v11 = vld [vmem:[#allocation8 + $0x390] sm:$0xf0] }
 0x384   :  { %7172 = vmatpush.bf16.msra.mxu2 %v11053_v2  ;;  %v5982_v2 = vadd.f32 %v13158_v45, %v5968_v9  ;;  %v12322_v45 = vld [vmem:[#allocation8 + $0x3c4] sm:$0xf]  ;;  %v12211_v9 = vld [vmem:[#allocation8 + $0x4c] sm:$0xf] }
 0x385   :  { %7075 = vmatpush.bf16.msra.mxu3 %v11157_v17  ;;  %v11257_v42 = vor.u32 %v12322_v45, %v11254_v38  ;;  %v12275_v19 = vld [vmem:[#allocation8 + $0x24c] sm:$0xf]  ;;  %v10782_v45 = vld [vmem:[#allocation8 + $0x18] sm:$0xf0] }
 0x386   :  { %7145 = vmatpush.bf16.msra.mxu0 %v10781_v24  ;;  %v5996_v49 = vadd.f32 %v13161_v63, %v5982_v2  ;;  %v11102_v24 = vld [vmem:[#allocation8 + $0x298] sm:$0xf0]  ;;  %v12239_v2 = vld [vmem:[#allocation8 + $0x12c] sm:$0xf] }
 0x387   :  { %7159 = vmatpush.bf16.msra.mxu1 %v10909_v59  ;;  %v10849_v59 = vor.u32 %v12219_v13, %v10846_v54  ;;  %v11105_v48 = vor.u32 %v12283_v55, %v11102_v24  ;;  %v10958_v63 = vld [vmem:[#allocation8 + $0x178] sm:$0xf0]  ;;  %v6079_v5 = vpop.f32.mrf.mxu0  ;;  %v11225_v13 = vor.u32 %v12314_v25, %v11222_v11  ;;  %v12203_v24 = vld [vmem:[#allocation8 + $0xc] sm:$0xf] }
 0x388   :  { %7173 = vmatpush.bf16.msra.mxu2 %v11037_v20  ;;  %v12215_v20 = vld [vmem:[#allocation8 + $0x6c] sm:$0xf]  ;;  %v6010_v15 = vadd.f32 %v13163_v34, %v5996_v49  ;;  %v10961_v53 = vor.u32 %v12247_v21, %v10958_v63  ;;  %v10942_v34 = vld [vmem:[#allocation8 + $0x158] sm:$0xf0] }
 0x389   :  { %7146 = vmatmul.bf16.vlgmr.msra.gmra.mxu0 %v13119_v32  ;;  %7124 = vmatpush.bf16.msrb.mxu3 %v11273_v56  ;;  %v10833_v16 = vor.u32 %v12215_v20, %v10830_v60  ;;  %v10945_v47 = vor.u32 %v12243_v31, %v10942_v34  ;;  %v11038_v60 = vld [vmem:[#allocation8 + $0x218] sm:$0xf0] }
 0x38a   :  { %7194 = vmatpush.bf16.msrb.mxu0 %v10897_v61  ;;  %7160 = vmatmul.bf16.vlgmr.msra.gmra.mxu1 %v13121_v29  ;;  %v13202_v61 = vpop.f32.mrf.mxu2  ;;  %v6024_v8 = vadd.f32 %v13179_v27, %v6010_v15  ;;  %v6093_v27 = vpop.f32.mrf.mxu1 }
 0x38b   :  { %7208 = vmatpush.bf16.msrb.mxu1 %v11025_v36  ;;  %7174 = vmatmul.bf16.vlgmr.msra.gmra.mxu2 %v13123_v18  ;;  %v13204_v36 = vpop.f32.mrf.mxu3 }
 0x38c   :  { %7222 = vmatpush.bf16.msrb.mxu2 %v11153_v22  ;;  %v11086_v22 = vld [vmem:[#allocation8 + $0x278] sm:$0xf0]  ;;  %v6038_v35 = vadd.f32 %v13183_v28, %v6024_v8  ;;  %v11206_v28 = vld [vmem:[#allocation8 + $0x370] sm:$0xf0] }
 0x38d   :  { %v11089_v33 = vor.u32 %v12279_v46, %v11086_v22  ;;  %7125 = vmatpush.bf16.msrb.mxu3 %v11257_v42  ;;  %v10785_v42 = vor.u32 %v12203_v24, %v10782_v45  ;;  %v11174_v8 = vld [vmem:[#allocation8 + $0x330] sm:$0xf0]  ;;  %v11260_v45 = vld [vmem:[#allocation8 + $0x3c8] sm:$0xf] }
 0x38e   :  { %7195 = vmatpush.bf16.msrb.mxu0 %v10881_v39  ;;  %v10814_v39 = vld [vmem:[#allocation8 + $0x58] sm:$0xf0]  ;;  %v6052_v54 = vadd.f32 %v13187_v43, %v6038_v35 }
 0x38f   :  { %7209 = vmatpush.bf16.msrb.mxu1 %v11009_v12  ;;  %v6050_v12 = vadd.f32 %v13173_v30, %v6036_v3  ;;  %v10817_v52 = vor.u32 %v12211_v9, %v10814_v39  ;;  %v6133_v56 = vpop.f32.mrf.mxu0  ;;  %v12302_v3 = vld [vmem:[#allocation8 + $0x324] sm:$0xf] }
 0x390   :  { %7223 = vmatpush.bf16.msrb.mxu2 %v11137_v57  ;;  %v11070_v57 = vld [vmem:[#allocation8 + $0x258] sm:$0xf0]  ;;  %v6066_v20 = vadd.f32 %v13189_v62, %v6052_v54 }
 0x391   :  { %v6064_v30 = vadd.f32 %v13175_v1, %v6050_v12  ;;  %v11073_v17 = vor.u32 %v12275_v19, %v11070_v57  ;;  %7126 = vmatpush.bf16.msrb.mxu3 %v11241_v6  ;;  %v10801_v1 = vor.u32 %v12207_v40, %v10798_v41  ;;  %v12298_v12 = vld [vmem:[#allocation8 + $0x304] sm:$0xf] }
 0x392   :  { %7196 = vmatpush.bf16.msrb.mxu0 %v10865_v51  ;;  %v10926_v51 = vld [vmem:[#allocation8 + $0x138] sm:$0xf0]  ;;  %v6107_v14 = vpop.f32.mrf.mxu2  ;;  %v6147_v63 = vpop.f32.mrf.mxu1  ;;  %v6080_v46 = vadd.f32 %v6079_v5, %v6066_v20  ;;  %v11228_v20 = vld [vmem:[#allocation8 + $0x388] sm:$0xf] }
 0x393   :  { %7210 = vmatpush.bf16.msrb.mxu1 %v10993_v37  ;;  %v12271_v37 = vld [vmem:[#allocation8 + $0x22c] sm:$0xf]  ;;  %v6078_v23 = vadd.f32 %v13192_v50, %v6064_v30  ;;  %v6121_v55 = vpop.f32.mrf.mxu3  ;;  %v10929_v49 = vor.u32 %v12239_v2, %v10926_v51  ;;  %v12306_v50 = vld [vmem:[#allocation8 + $0x344] sm:$0xf] }
 0x394   :  { %7224 = vmatpush.bf16.msrb.mxu2 %v11121_v7  ;;  %v12310_v7 = vld [vmem:[#allocation8 + $0x364] sm:$0xf]  ;;  %v11057_v38 = vor.u32 %v12271_v37, %v11054_v0 }
 0x395   :  { %7127 = vmatpush.bf16.msrb.mxu3 %v11225_v13  ;;  %v11209_v43 = vor.u32 %v12310_v7, %v11206_v28  ;;  %v6092_v21 = vadd.f32 %v13198_v58, %v6078_v23  ;;  %v11177_v58 = vor.u32 %v12302_v3, %v11174_v8  ;;  %v11164_v3 = vld [vmem:[#allocation8 + $0x308] sm:$0xf]  ;;  %v12301_v8 = vld [vmem:[#allocation8 + $0x314] sm:$0xf0] }
 0x396   :  { %7197 = vmatpush.bf16.msrb.mxu0 %v10849_v59  ;;  %v10910_v59 = vld [vmem:[#allocation8 + $0x118] sm:$0xf0] }
 0x397   :  { %7211 = vmatpush.bf16.msrb.mxu1 %v10977_v4  ;;  %v12267_v4 = vld [vmem:[#allocation8 + $0x20c] sm:$0xf]  ;;  %v10913_v15 = vor.u32 %v12235_v26, %v10910_v59  ;;  %v6106_v44 = vadd.f32 %v13202_v61, %v6092_v21  ;;  %v6135_v39 = vpop.f32.mrf.mxu0  ;;  %v11244_v59 = vld [vmem:[#allocation8 + $0x3a8] sm:$0xf]  ;;  %v12313_v21 = vld [vmem:[#allocation8 + $0x374] sm:$0xf0] }
 0x398   :  { %7225 = vmatpush.bf16.msrb.mxu2 %v11105_v48  ;;  %v11190_v48 = vld [vmem:[#allocation8 + $0x350] sm:$0xf0]  ;;  %v11041_v22 = vor.u32 %v12267_v4, %v11038_v60  ;;  %v12321_v4 = vld [vmem:[#allocation8 + $0x3b4] sm:$0xf0] }
 0x399   :  { %7128 = vmatpush.bf16.msrb.mxu3 %v11209_v43  ;;  %v11193_v10 = vor.u32 %v12306_v50, %v11190_v48  ;;  %v6120_v5 = vadd.f32 %v13204_v36, %v6106_v44  ;;  %v11245_v43 = vor.u32 %v12321_v4, %v11244_v59  ;;  %v12317_v60 = vld [vmem:[#allocation8 + $0x394] sm:$0xf0]  ;;  %v11212_v48 = vld [vmem:[#allocation8 + $0x368] sm:$0xf] }
 0x39a   :  { %7198 = vmatpush.bf16.msrb.mxu0 %v10833_v16  ;;  %v6161_v62 = vpop.f32.mrf.mxu2  ;;  %v6149_v31 = vpop.f32.mrf.mxu1  ;;  %v11229_v50 = vor.u32 %v12317_v60, %v11228_v20  ;;  %v12350_v20 = vld [vmem:[#allocation11 + $0xa0] sm:$0xff] }
 0x39b   :  { %7212 = vmatpush.bf16.msrb.mxu1 %v10961_v53  ;;  %v6175_v16 = vpop.f32.mrf.mxu3  ;;  %v6094_v53 = vadd.f32 %v6093_v27, %v6080_v46  ;;  %v6134_v61 = vadd.f32 %v6133_v56, %v6120_v5  ;;  %v11196_v46 = vld [vmem:[#allocation8 + $0x348] sm:$0xf]  ;;  %v12323_v5 = vld [vmem:[#allocation8 + $0x3cc] sm:$0xf] }
 0x39c   :  { %7226 = vmatpush.bf16.msrb.mxu2 %v11089_v33  ;;  %v11158_v33 = vld [vmem:[#allocation8 + $0x310] sm:$0xf0] }
 0x39d   :  { %7129 = vmatpush.bf16.msrb.mxu3 %v11193_v10  ;;  %v6108_v9 = vadd.f32 %v6107_v14, %v6094_v53  ;;  %v11161_v34 = vor.u32 %v12298_v12, %v11158_v33  ;;  %v6148_v6 = vadd.f32 %v6147_v63, %v6134_v61  ;;  %v11276_v14 = vld [vmem:[#allocation8 + $0x3e8] sm:$0xf]  ;;  %v11213_v63 = vor.u32 %v12313_v21, %v11212_v48  ;;  %v12305_v10 = vld [vmem:[#allocation8 + $0x334] sm:$0xf0]  ;;  %v12319_v12 = vld [vmem:[#allocation8 + $0x3ac] sm:$0xf] }
 0x39e   :  { %7199 = vmatpush.bf16.msrb.mxu0 %v10817_v52  ;;  %v11165_v53 = vor.u32 %v12301_v8, %v11164_v3  ;;  %v11246_v33 = vld [vmem:[#allocation8 + $0x3b8] sm:$0xf0] }
 0x39f   :  { %7213 = vmatpush.bf16.msrb.mxu1 %v10945_v47  ;;  %v6122_v19 = vadd.f32 %v6121_v55, %v6108_v9  ;;  %v6162_v36 = vadd.f32 %v6161_v62, %v6148_v6  ;;  %v12329_v55 = vld [vmem:[#allocation8 + $0x3f4] sm:$0xf0]  ;;  %v12327_v62 = vld [vmem:[#allocation8 + $0x3ec] sm:$0xf]  ;;  %v11262_v9 = vld [vmem:[#allocation8 + $0x3d8] sm:$0xf0]  ;;  %v11249_v61 = vor.u32 %v12319_v12, %v11246_v33 }
 0x3a0   :  { %7227 = vmatpush.bf16.msrb.mxu2 %v11073_v17  ;;  %v12311_v6 = vld [vmem:[#allocation8 + $0x36c] sm:$0xf] }
 0x3a1   :  { %7130 = vmatpush.bf16.msrb.mxu3 %v11177_v58  ;;  %v6136_v57 = vadd.f32 %v6135_v39, %v6122_v19  ;;  %v6176_v47 = vadd.f32 %v6175_v16, %v6162_v36  ;;  %v11278_v16 = vld [vmem:[#allocation8 + $0x3f8] sm:$0xf0]  ;;  %v11265_v39 = vor.u32 %v12323_v5, %v11262_v9 }
 0x3a2   :  { %7200 = vmatpush.bf16.msrb.mxu0 %v10801_v1  ;;  %v6163_v25 = vpop.f32.mrf.mxu2  ;;  %v11281_v58 = vor.u32 %v12327_v62, %v11278_v16  ;;  %v11198_v36 = vld [vmem:[#allocation8 + $0x358] sm:$0xf0] }
 0x3a3   :  { %7214 = vmatpush.bf16.msrb.mxu1 %v10929_v49  ;;  %v6177_v11 = vpop.f32.mrf.mxu3  ;;  %v6150_v35 = vadd.f32 %v6149_v31, %v6136_v57  ;;  %v11277_v49 = vor.u32 %v12329_v55, %v11276_v14  ;;  %v12315_v31 = vld [vmem:[#allocation8 + $0x38c] sm:$0xf]  ;;  %v11214_v57 = vld [vmem:[#allocation8 + $0x378] sm:$0xf0] }
 0x3a4   :  { %7228 = vmatpush.bf16.msrb.mxu2 %v11057_v38  ;;  %v12325_v38 = vld [vmem:[#allocation8 + $0x3d4] sm:$0xf0]  ;;  %v12341_v14 = vld [vmem:[#allocation11 + $0x58] sm:$0xff] }
 0x3a5   :  { %7131 = vmatpush.bf16.msrb.mxu3 %v11161_v34  ;;  %v11261_v26 = vor.u32 %v12325_v38, %v11260_v45  ;;  %v11230_v34 = vld [vmem:[#allocation8 + $0x398] sm:$0xf0]  ;;  %v13227_v45 = vld [vmem:[#allocation10] sm:$0xf]  ;;  %v12339_v38 = vld [vmem:[#allocation11 + $0x48] sm:$0xff] }
 0x3a6   :  { %7201 = vmatpush.bf16.msrb.mxu0 %v10785_v42  ;;  %v6189_v27 = vpop.f32.mrf.mxu0  ;;  %v12309_v42 = vld [vmem:[#allocation8 + $0x354] sm:$0xf0]  ;;  %v11233_v19 = vor.u32 %v12315_v31, %v11230_v34  ;;  %v12353_v55 = vld [vmem:[#allocation11 + $0xb8] sm:$0xff]  ;;  %v6378_v4 = vperm.slane %v13227_v45, 0  ;;  %v6379_v9 = vperm.slane %v13227_v45, 1 }
 0x3a7   :  { %7215 = vmatpush.bf16.msrb.mxu1 %v10913_v15  ;;  %v6203_v52 = vpop.f32.mrf.mxu1  ;;  %v6190_v40 = vadd.f32 %v6189_v27, %v6176_v47  ;;  %v11197_v15 = vor.u32 %v12309_v42, %v11196_v46  ;;  %v12361_v31 = vld [vmem:[#allocation11 + $0xf8] sm:$0xff] }
 0x3a8   :  { %7229 = vmatpush.bf16.msrb.mxu2 %v11041_v22  ;;  %v11180_v22 = vld [vmem:[#allocation8 + $0x328] sm:$0xf] }
 0x3a9   :  { %7202 = vmatmul.bf16.vlgmr.msrb.gmra.mxu0 %v13119_v32  ;;  %v6164_v32 = vadd.f32 %v6163_v25, %v6150_v35  ;;  %v6204_v17 = vadd.f32 %v6203_v52, %v6190_v40  ;;  %v11181_v44 = vor.u32 %v12305_v10, %v11180_v22  ;;  %v11217_v25 = vor.u32 %v12311_v6, %v11214_v57  ;;  %v12303_v35 = vld [vmem:[#allocation8 + $0x32c] sm:$0xf]  ;;  %v11182_v52 = vld [vmem:[#allocation8 + $0x338] sm:$0xf0]  ;;  %v12348_v22 = vld [vmem:[#allocation11 + $0x90] sm:$0xff] }
 0x3aa   :  { %7216 = vmatmul.bf16.vlgmr.msrb.gmra.mxu1 %v13121_v29  ;;  %v11185_v47 = vor.u32 %v12303_v35, %v11182_v52  ;;  %v11166_v40 = vld [vmem:[#allocation8 + $0x318] sm:$0xf0]  ;;  %v12360_v6 = vld [vmem:[#allocation11 + $0xf0] sm:$0xff] }
 0x3ab   :  { %7230 = vmatmul.bf16.vlgmr.msrb.gmra.mxu2 %v13123_v18  ;;  %v6178_v30 = vadd.f32 %v6177_v11, %v6164_v32  ;;  %v12307_v11 = vld [vmem:[#allocation8 + $0x34c] sm:$0xf] }
 0x3ac   :  { %v11201_v27 = vor.u32 %v12307_v11, %v11198_v36  ;;  %v12299_v32 = vld [vmem:[#allocation8 + $0x30c] sm:$0xf]  ;;  %7550 = vmatpush.bf16.msra.mxu2 %v12353_v55 }
 0x3ae   :  { %v6217_v29 = vpop.f32.mrf.mxu2  ;;  %v6191_v18 = vpop.f32.mrf.mxu0 }
 0x3af   :  { %v6231_v41 = vpop.f32.mrf.mxu3  ;;  %v6192_v2 = vadd.f32 %v6191_v18, %v6178_v30  ;;  %v6218_v51 = vadd.f32 %v6217_v29, %v6204_v17  ;;  %v6205_v37 = vpop.f32.mrf.mxu1  ;;  %v11169_v29 = vor.u32 %v12299_v32, %v11166_v40  ;;  %v12336_v30 = vld [vmem:[#allocation11 + $0x30] sm:$0xff]  ;;  %v12335_v18 = vld [vmem:[#allocation11 + $0x28] sm:$0xff]  ;;  %v12334_v17 = vld [vmem:[#allocation11 + $0x20] sm:$0xff] }
 0x3b0   :  { %v12358_v40 = vld [vmem:[#allocation11 + $0xe0] sm:$0xff] }
 0x3b1   :  { %v6206_v13 = vadd.f32 %v6205_v37, %v6192_v2  ;;  %v6232_v0 = vadd.f32 %v6231_v41, %v6218_v51  ;;  %v12337_v41 = vld [vmem:[#allocation11 + $0x38] sm:$0xff]  ;;  %v12332_v37 = vld [vmem:[#allocation11 + $0x10] sm:$0xff] }
 0x3b2   :  { %7522 = vmatpush.bf16.msra.mxu0 %v12337_v41  ;;  %v12333_v2 = vld [vmem:[#allocation11 + $0x18] sm:$0xff] }
 0x3b3   :  { %v6239_v56 = vmax.f32 %v6232_v0, 0.0  ;;  %v12345_v51 = vld [vmem:[#allocation11 + $0x78] sm:$0xff]  ;;  %v12343_v0 = vld [vmem:[#allocation11 + $0x68] sm:$0xff] }
 0x3b4   :  { %7536 = vmatpush.bf16.msra.mxu1 %v12345_v51  ;;  %v6380_v51 = vperm.slane %v13227_v45, 2 }
 0x3b6   :  { %v6219_v54 = vpop.f32.mrf.mxu2  ;;  %7523 = vmatpush.bf16.msra.mxu0 %v12336_v30 }
 0x3b7   :  { %v6220_v7 = vadd.f32 %v6219_v54, %v6206_v13  ;;  %v6233_v28 = vpop.f32.mrf.mxu3  ;;  %v12344_v13 = vld [vmem:[#allocation11 + $0x70] sm:$0xff]  ;;  %v12331_v54 = vld [vmem:[#allocation11 + $0x8] sm:$0xff] }
 0x3b8   :  { %7537 = vmatpush.bf16.msra.mxu1 %v12344_v13 }
 0x3b9   :  { %v6234_v23 = vadd.f32 %v6233_v28, %v6220_v7  ;;  %v12330_v7 = vld [vmem:[#allocation11] sm:$0xff] }
 0x3ba   :  { %7524 = vmatpush.bf16.msra.mxu0 %v12335_v18  ;;  %v12342_v28 = vld [vmem:[#allocation11 + $0x60] sm:$0xff] }
 0x3bb   :  { %v6243_v1 = vmax.f32 %v6234_v23, 0.0 }
 0x3bc   :  { %7538 = vmatpush.bf16.msra.mxu1 %v12343_v0 }
 0x3bd   :  { %v13221_v24 = vpack.c.bf16 %v6243_v1, %v6239_v56  ;;  %v12340_v56 = vld [vmem:[#allocation11 + $0x50] sm:$0xff] }
 0x3be   :  { %7525 = vmatpush.bf16.msra.mxu0 %v12334_v17  ;;  %v12352_v1 = vld [vmem:[#allocation11 + $0xb0] sm:$0xff] }
 0x3bf   :  { %7076 = vmatmul.bf16.vlgmr.msra.gmra.mxu3 %v13221_v24  ;;  %7551 = vmatpush.bf16.msra.mxu2 %v12352_v1 }
 0x3c0   :  { %7180 = vmatpush.bf16.msra.mxu3 %v11277_v49  ;;  %7539 = vmatpush.bf16.msra.mxu1 %v12342_v28 }
 0x3c2   :  { %7526 = vmatpush.bf16.msra.mxu0 %v12333_v2 }
 0x3c4   :  { %7181 = vmatpush.bf16.msra.mxu3 %v11261_v26  ;;  %7540 = vmatpush.bf16.msra.mxu1 %v12341_v14  ;;  %v12351_v26 = vld [vmem:[#allocation11 + $0xa8] sm:$0xff]  ;;  %v12356_v14 = vld [vmem:[#allocation11 + $0xd0] sm:$0xff] }
 0x3c5   :  { %7552 = vmatpush.bf16.msra.mxu2 %v12351_v26 }
 0x3c6   :  { %7527 = vmatpush.bf16.msra.mxu0 %v12332_v37  ;;  %v7035_v23 = vpop.f32.mrf.mxu0 }
 0x3c7   :  { %v7049_v49 = vpop.f32.mrf.mxu1  ;;  %v7036_v60 = vadd.f32 %v7035_v23, %v6378_v4 }
 0x3c8   :  { %7182 = vmatpush.bf16.msra.mxu3 %v11245_v43  ;;  %7541 = vmatpush.bf16.msra.mxu1 %v12340_v56  ;;  %v12338_v43 = vld [vmem:[#allocation11 + $0x40] sm:$0xff] }
 0x3c9   :  { %7553 = vmatpush.bf16.msra.mxu2 %v12350_v20  ;;  %v12354_v20 = vld [vmem:[#allocation11 + $0xc0] sm:$0xff] }
 0x3ca   :  { %7528 = vmatpush.bf16.msra.mxu0 %v12331_v54  ;;  %v12357_v54 = vld [vmem:[#allocation11 + $0xd8] sm:$0xff] }
 0x3cc   :  { %7183 = vmatpush.bf16.msra.mxu3 %v11229_v50  ;;  %7542 = vmatpush.bf16.msra.mxu1 %v12339_v38 }
 0x3ce   :  { %7529 = vmatpush.bf16.msra.mxu0 %v12330_v7  ;;  %v7037_v59 = vpop.f32.mrf.mxu0 }
 0x3cf   :  { %7132 = vmatmul.bf16.vlgmr.msrb.gmra.mxu3 %v13221_v24  ;;  %v7051_v50 = vpop.f32.mrf.mxu1  ;;  %v7038_v46 = vadd.f32 %v7037_v59, %v6378_v4 }
 0x3d0   :  { %7184 = vmatpush.bf16.msra.mxu3 %v11213_v63  ;;  %7543 = vmatpush.bf16.msra.mxu1 %v12338_v43  ;;  %v12349_v63 = vld [vmem:[#allocation11 + $0x98] sm:$0xff] }
 0x3d1   :  { %7554 = vmatpush.bf16.msra.mxu2 %v12349_v63 }
 0x3d4   :  { %7185 = vmatpush.bf16.msra.mxu3 %v11197_v15  ;;  %v7050_v15 = vadd.f32 %v7049_v49, %v7036_v60 }
 0x3d5   :  { %7555 = vmatpush.bf16.msra.mxu2 %v12348_v22 }
 0x3d8   :  { %7186 = vmatpush.bf16.msra.mxu3 %v11181_v44  ;;  %v7052_v44 = vadd.f32 %v7051_v50, %v7038_v46 }
 0x3dc   :  { %7187 = vmatpush.bf16.msra.mxu3 %v11165_v53 }
 0x3df   :  { %7188 = vmatmul.bf16.vlgmr.msra.gmra.mxu3 %v13221_v24 }
 0x3e0   :  { %7236 = vmatpush.bf16.msrb.mxu3 %v11281_v58  ;;  %v12347_v58 = vld [vmem:[#allocation11 + $0x88] sm:$0xff] }
 0x3e1   :  { %7556 = vmatpush.bf16.msra.mxu2 %v12347_v58 }
 0x3e4   :  { %7237 = vmatpush.bf16.msrb.mxu3 %v11265_v39 }
 0x3e6   :  { %v7091_v42 = vpop.f32.mrf.mxu0 }
 0x3e7   :  { %v7105_v8 = vpop.f32.mrf.mxu1 }
 0x3e8   :  { %7238 = vmatpush.bf16.msrb.mxu3 %v11249_v61  ;;  %v12346_v61 = vld [vmem:[#allocation11 + $0x80] sm:$0xff] }
 0x3e9   :  { %7557 = vmatpush.bf16.msra.mxu2 %v12346_v61 }
 0x3ec   :  { %7239 = vmatpush.bf16.msrb.mxu3 %v11233_v19  ;;  %v7092_v19 = vadd.f32 %v7091_v42, %v6379_v9 }
 0x3ee   :  { %v7093_v33 = vpop.f32.mrf.mxu0  ;;  %v7106_v35 = vadd.f32 %v7105_v8, %v7092_v19  ;;  %v12378_v19 = vld [vmem:[#allocation13] ss:$0 sm:$0xff] }
 0x3ef   :  { %v7107_v11 = vpop.f32.mrf.mxu1 }
 0x3f0   :  { %7240 = vmatpush.bf16.msrb.mxu3 %v11217_v25  ;;  %v7094_v25 = vadd.f32 %v7093_v33, %v6379_v9 }
 0x3f2   :  { %v7108_v32 = vadd.f32 %v7107_v11, %v7094_v25 }
 0x3f4   :  { %7241 = vmatpush.bf16.msrb.mxu3 %v11201_v27  ;;  %v12359_v27 = vld [vmem:[#allocation11 + $0xe8] sm:$0xff] }
 0x3f8   :  { %7242 = vmatpush.bf16.msrb.mxu3 %v11185_v47 }
 0x3fc   :  { %7243 = vmatpush.bf16.msrb.mxu3 %v11169_v29 }
 0x3ff   :  { %7244 = vmatmul.bf16.vlgmr.msrb.gmra.mxu3 %v13221_v24  ;;  %v7063_v24 = vpop.f32.mrf.mxu2 }
 0x400   :  { %v7064_v10 = vadd.f32 %v7063_v24, %v7050_v15  ;;  %7564 = vmatpush.bf16.msra.mxu3 %v12361_v31  ;;  %v12355_v24 = vld [vmem:[#allocation11 + $0xc8] sm:$0xff]  ;;  %v6381_v15 = vperm.slane %v13227_v45, 3 }
 0x404   :  { %7565 = vmatpush.bf16.msra.mxu3 %v12360_v6 }
 0x406   :  { %v7147_v52 = vpop.f32.mrf.mxu0 }
 0x407   :  { %v7065_v48 = vpop.f32.mrf.mxu2  ;;  %v7161_v17 = vpop.f32.mrf.mxu1  ;;  %v7148_v28 = vadd.f32 %v7147_v52, %v6380_v51 }
 0x408   :  { %v7066_v3 = vadd.f32 %v7065_v48, %v7052_v44  ;;  %7566 = vmatpush.bf16.msra.mxu3 %v12359_v27 }
 0x409   :  { %v7162_v56 = vadd.f32 %v7161_v17, %v7148_v28 }
 0x40c   :  { %7567 = vmatpush.bf16.msra.mxu3 %v12358_v40 }
 0x40e   :  { %v7149_v7 = vpop.f32.mrf.mxu0 }
 0x40f   :  { %v7119_v16 = vpop.f32.mrf.mxu2  ;;  %v7150_v55 = vadd.f32 %v7149_v7, %v6380_v51  ;;  %v7163_v1 = vpop.f32.mrf.mxu1 }
 0x410   :  { %v7120_v47 = vadd.f32 %v7119_v16, %v7106_v35  ;;  %7568 = vmatpush.bf16.msra.mxu3 %v12357_v54 }
 0x411   :  { %v7164_v26 = vadd.f32 %v7163_v1, %v7150_v55 }
 0x414   :  { %7569 = vmatpush.bf16.msra.mxu3 %v12356_v14 }
 0x417   :  { %v7121_v36 = vpop.f32.mrf.mxu2 }
 0x418   :  { %v7122_v29 = vadd.f32 %v7121_v36, %v7108_v32  ;;  %7570 = vmatpush.bf16.msra.mxu3 %v12355_v24 }
 0x41c   :  { %7571 = vmatpush.bf16.msra.mxu3 %v12354_v20 }
 0x41f   :  { %v7175_v2 = vpop.f32.mrf.mxu2 }
 0x420   :  { %v7176_v38 = vadd.f32 %v7175_v2, %v7162_v56 }
 0x426   :  { %v7203_v63 = vpop.f32.mrf.mxu0 }
 0x427   :  { %v7177_v49 = vpop.f32.mrf.mxu2  ;;  %v7217_v46 = vpop.f32.mrf.mxu1 }
 0x428   :  { %v7178_v59 = vadd.f32 %v7177_v49, %v7164_v26 }
 0x42e   :  { %v7205_v22 = vpop.f32.mrf.mxu0 }
 0x42f   :  { %v7231_v42 = vpop.f32.mrf.mxu2 }
 0x437   :  { %v7233_v16 = vpop.f32.mrf.mxu2 }
 0x442   :  { %v7077_v21 = vpop.f32.mrf.mxu3 }
 0x443   :  { %v7078_v62 = vadd.f32 %v7077_v21, %v7064_v10  ;;  %v7204_v10 = vadd.f32 %v7203_v63, %v6381_v15 }
 0x445   :  { %v7250_v39 = vmax.f32 %v7078_v62, 0.0  ;;  %v7218_v8 = vadd.f32 %v7217_v46, %v7204_v10  ;;  %v7219_v62 = vpop.f32.mrf.mxu1 }
 0x44a   :  { %v7079_v53 = vpop.f32.mrf.mxu3 }
 0x44b   :  { %v7080_v5 = vadd.f32 %v7079_v53, %v7066_v3  ;;  %v7206_v3 = vadd.f32 %v7205_v22, %v6381_v15  ;;  %v7232_v53 = vadd.f32 %v7231_v42, %v7218_v8 }
 0x44d   :  { %v7254_v12 = vmax.f32 %v7080_v5, 0.0  ;;  %v7220_v58 = vadd.f32 %v7219_v62, %v7206_v3 }
 0x44f   :  { %v7258_v34 = vpack.c.bf16 %v7254_v12, %v7250_v39  ;;  %v7234_v5 = vadd.f32 %v7233_v16, %v7220_v58 }
 0x451   :  { %7530 = vmatmul.bf16.vlgmr.msra.gmra.mxu0 %v7258_v34 }
 0x452   :  { %v7133_v57 = vpop.f32.mrf.mxu3 }
 0x453   :  { %v7134_v41 = vadd.f32 %v7133_v57, %v7120_v47 }
 0x455   :  { %v7251_v37 = vmax.f32 %v7134_v41, 0.0 }
 0x45a   :  { %v7135_v30 = vpop.f32.mrf.mxu3 }
 0x45b   :  { %v7136_v18 = vadd.f32 %v7135_v30, %v7122_v29 }
 0x45d   :  { %v7255_v13 = vmax.f32 %v7136_v18, 0.0 }
 0x45f   :  { %v7259_v0 = vpack.c.bf16 %v7255_v13, %v7251_v37 }
 0x461   :  { %7544 = vmatmul.bf16.vlgmr.msra.gmra.mxu1 %v7259_v0 }
 0x462   :  { %v7189_v23 = vpop.f32.mrf.mxu3 }
 0x463   :  { %v7190_v4 = vadd.f32 %v7189_v23, %v7176_v38 }
 0x465   :  { %v7252_v50 = vmax.f32 %v7190_v4, 0.0 }
 0x46a   :  { %v7191_v43 = vpop.f32.mrf.mxu3 }
 0x46b   :  { %v7192_v60 = vadd.f32 %v7191_v43, %v7178_v59 }
 0x46d   :  { %v7256_v48 = vmax.f32 %v7192_v60, 0.0 }
 0x46f   :  { %v7260_v21 = vpack.c.bf16 %v7256_v48, %v7252_v50 }
 0x471   :  { %7558 = vmatmul.bf16.vlgmr.msra.gmra.mxu2 %v7260_v21 }
 0x482   :  { %v7245_v44 = vpop.f32.mrf.mxu3 }
 0x483   :  { %v7246_v9 = vadd.f32 %v7245_v44, %v7232_v53 }
 0x485   :  { %v7253_v33 = vmax.f32 %v7246_v9, 0.0 }
 0x48a   :  { %v7247_v39 = vpop.f32.mrf.mxu3 }
 0x48b   :  { %v7248_v12 = vadd.f32 %v7247_v39, %v7234_v5 }
 0x48d   :  { %v7257_v61 = vmax.f32 %v7248_v12, 0.0 }
 0x48f   :  { %v7261_v31 = vpack.c.bf16 %v7257_v61, %v7253_v33 }
 0x491   :  { %7572 = vmatmul.bf16.vlgmr.msra.gmra.mxu3 %v7261_v31 }
 0x4ce   :  { %v7531_v34 = vpop.f32.mrf.mxu0 }
 0x4cf   :  { %v7532_v57 = vadd.f32 %v12378_v19, %v7531_v34 }
 0x4d6   :  { %v7533_v36 = vpop.f32.mrf.mxu0 }
 0x4d7   :  { %v7534_v47 = vadd.f32 %v12378_v19, %v7533_v36 }
 0x4de   :  { %v7545_v45 = vpop.f32.mrf.mxu1 }
 0x4df   :  { %v7546_v25 = vadd.f32 %v7545_v45, %v7532_v57 }
 0x4e6   :  { %v7547_v52 = vpop.f32.mrf.mxu1 }
 0x4e7   :  { %v7548_v40 = vadd.f32 %v7547_v52, %v7534_v47 }
 0x4f4   :  { %v7559_v6 = vpop.f32.mrf.mxu2 }
 0x4f5   :  { %v7560_v11 = vadd.f32 %v7559_v6, %v7546_v25 }
 0x4fc   :  { %v7561_v32 = vpop.f32.mrf.mxu2 }
 0x4fd   :  { %v7562_v29 = vadd.f32 %v7561_v32, %v7548_v40 }
 0x514   :  { %v7573_v27 = vpop.f32.mrf.mxu3 }
 0x515   :  { %v7574_v35 = vadd.f32 %v7573_v27, %v7560_v11 }
 0x517   :  { %7578 = vst [vmem:[#allocation14] sm:$0xff] %v7574_v35 }
 0x51c   :  { %v7575_v41 = vpop.f32.mrf.mxu3 }
 0x51d   :  { %v7576_v30 = vadd.f32 %v7575_v41, %v7562_v29 }
 0x51f   :  { %7579 = vst [vmem:[#allocation14 + $0x8] sm:$0xff] %v7576_v30 }
 0x520   :  { %7592 = dma.vmem_to_hbm [thread:$0]  %s7585_s6, 256, %s7587_s1, [#allocation4], %s12598_s16, %s12598_s16, %s12599_s17  }
 0x521   :  { %12582 = dma.done.wait [#allocation4], 256  }
 0x522   :  { %12583 = vsyncadd [#allocation4], 4294967040 }
 0x523   :  { %7597 = vsyncpa [#allocation3], 1 }
 0x524   :  { %7598 = vsyncpa [#allocation6], 1 }
 0x525   :  { %7599 = vsyncpa [#allocation9], 1 }
 0x526   :  { %7600 = vsyncpa [#allocation12], 1 }
 0x527   :  { %7601 = vsyncpa [#allocation4], 1 }

</bundles_post_ra>
